<compile_context>
chip_gen: v7x
topology: tpu7x:2x2x1
jax: 0.10.0
libtpu: 0.0.40
codegen_flags: <defaults>
</compile_context>

<pallas_src>
import jax
import jax.numpy as jnp
from jax import lax
from jax.experimental import pallas as pl
from jax.experimental.pallas import tpu as pltpu


# ----------------------------------------------------------------------------
# helpers
# ----------------------------------------------------------------------------
def _largest_divisor_leq(n, cap):
    """Largest divisor of n that is <= cap (robust tiling, no divisibility assert)."""
    cap = int(max(1, min(cap, n)))
    for t in range(cap, 0, -1):
        if n % t == 0:
            return t
    return 1


def fold_bn(gamma, beta, mean, var, eps=1e-5):
    scale = gamma * lax.rsqrt(var + eps)
    bias = beta - mean * scale
    return scale, bias


# ----------------------------------------------------------------------------
# Kernel 1: fused 1x1 conv (channel matmul) + folded BatchNorm + SiLU  (cv1)
# ----------------------------------------------------------------------------
def _conv1x1_bn_silu_kernel(x_ref, w_ref, scale_ref, bias_ref, o_ref):
    # Feed native dtype straight to the MXU; accumulate in f32.
    y = jnp.dot(x_ref[...], w_ref[...], preferred_element_type=jnp.float32)
    y = y * scale_ref[...] + bias_ref[...]                  # folded BN
    o_ref[...] = (y * jax.nn.sigmoid(y)).astype(o_ref.dtype)  # SiLU


def conv1x1_bn_silu(x_nhwc, w, scale, bias, *, tm_max=512):
    """x_nhwc: (N,H,W,Cin), w: (Cin,Cout) -> (N,H,W,Cout)."""
    n, h, wd, cin = x_nhwc.shape
    cout = w.shape[1]
    m = n * h * wd
    tm = _largest_divisor_leq(m, tm_max)
    xm = x_nhwc.reshape(m, cin)
    out = pl.pallas_call(
        _conv1x1_bn_silu_kernel,
        out_shape=jax.ShapeDtypeStruct((m, cout), x_nhwc.dtype),
        grid_spec=pltpu.PrefetchScalarGridSpec(
            num_scalar_prefetch=0,
            grid=(m // tm,),
            in_specs=[
                pl.BlockSpec((tm, cin), lambda i: (i, 0)),
                pl.BlockSpec((cin, cout), lambda i: (0, 0)),
                pl.BlockSpec((1, cout), lambda i: (0, 0)),
                pl.BlockSpec((1, cout), lambda i: (0, 0)),
            ],
            out_specs=pl.BlockSpec((tm, cout), lambda i: (i, 0)),
        ),
        compiler_params=pltpu.CompilerParams(dimension_semantics=("parallel",)),
    )(xm, w,
      scale.reshape(1, cout).astype(jnp.float32),
      bias.reshape(1, cout).astype(jnp.float32))
    return out.reshape(n, h, wd, cout)


# ----------------------------------------------------------------------------
# Kernel 2: fused SPPF-style pooling.
#   pool5/pool9/pool13 (stride 1, "same") computed as a chain of 5x5 VALID
#   pools on a -inf-extended in-VMEM block.  Exact equivalence for stride-1
#   max pools: pool9 = pool5(pool5), pool13 = pool5(pool9).
# ----------------------------------------------------------------------------
def _pool5_valid(x):
    """5x5 stride-1 VALID max pool over the first two axes of (A,B,C)."""
    a, b, _ = x.shape
    r = x[0:a - 4]
    for d in range(1, 5):
        r = jnp.maximum(r, x[d:d + a - 4])
    out = r[:, 0:b - 4]
    for d in range(1, 5):
        out = jnp.maximum(out, r[:, d:d + b - 4])
    return out


def _make_sppf_kernel(h, w):
    def kern(y_ref, p5_ref, p9_ref, p13_ref):
        y = y_ref[0]                                           # (H, W, C)
        c = y.shape[-1]
        # Border handling fully in VMEM: extend once by the total radius (6)
        # of the chained k=13 pool with -inf (matches torch MaxPool2d padding).
        neg_rows = jnp.full((6, w, c), -jnp.inf, y.dtype)
        yp = jnp.concatenate([neg_rows, y, neg_rows], axis=0)  # (H+12, W, C)
        neg_cols = jnp.full((h + 12, 6, c), -jnp.inf, y.dtype)
        yp = jnp.concatenate([neg_cols, yp, neg_cols], axis=1)  # (H+12, W+12, C)

        q1 = _pool5_valid(yp)   # (H+8, W+8, C): pool5 on extended domain
        q2 = _pool5_valid(q1)   # (H+4, W+4, C): pool9 on extended domain
        q3 = _pool5_valid(q2)   # (H,   W,   C): pool13 on the valid domain

        p5_ref[0] = q1[4:4 + h, 4:4 + w].astype(p5_ref.dtype)
        p9_ref[0] = q2[2:2 + h, 2:2 + w].astype(p9_ref.dtype)
        p13_ref[0] = q3.astype(p13_ref.dtype)
    return kern


def sppf_pools(y_nhwc, *, tc_cap=128, vmem_budget=24 * 1024 * 1024):
    """Returns (pool5, pool9, pool13) of y with stride 1 / 'same' padding."""
    n, h, w, c = y_nhwc.shape
    itemsize = jnp.dtype(y_nhwc.dtype).itemsize
    # Rough in-kernel working-set per channel (extended block + chain temps +
    # double-buffered in/out blocks); keep the block inside the scoped VMEM
    # default even on v7x (32 MiB scoped / 64 MiB physical).
    per_chan = (h + 12) * (w + 12) * itemsize * 12
    cap = min(tc_cap, max(1, vmem_budget // per_chan))
    tc = _largest_divisor_leq(c, cap)

    spec = pl.BlockSpec((1, h, w, tc), lambda ni, ci: (ni, 0, 0, ci))
    shape = jax.ShapeDtypeStruct((n, h, w, c), y_nhwc.dtype)
    return pl.pallas_call(
        _make_sppf_kernel(h, w),
        out_shape=(shape, shape, shape),
        grid_spec=pltpu.PrefetchScalarGridSpec(
            num_scalar_prefetch=0,
            grid=(n, c // tc),                    # both axes independent
            in_specs=[spec],
            out_specs=(spec, spec, spec),
        ),
        compiler_params=pltpu.CompilerParams(
            dimension_semantics=("parallel", "parallel")),
    )(y_nhwc)


# ----------------------------------------------------------------------------
# Kernel 3: cv2 = 1x1 conv + BN + SiLU over the *virtual* concat
#   [y, p5, p9, p13]; the 4c_ slab is never written to HBM.  Four partial
#   matmuls against the row blocks of w2 are accumulated in-kernel.
# ----------------------------------------------------------------------------
def _conv1x1_cat4_bn_silu_kernel(y_ref, p5_ref, p9_ref, p13_ref, w_ref,
                                 scale_ref, bias_ref, o_ref):
    acc = jnp.dot(y_ref[...], w_ref[0], preferred_element_type=jnp.float32)
    acc = acc + jnp.dot(p5_ref[...], w_ref[1], preferred_element_type=jnp.float32)
    acc = acc + jnp.dot(p9_ref[...], w_ref[2], preferred_element_type=jnp.float32)
    acc = acc + jnp.dot(p13_ref[...], w_ref[3], preferred_element_type=jnp.float32)
    z = acc * scale_ref[...] + bias_ref[...]
    o_ref[...] = (z * jax.nn.sigmoid(z)).astype(o_ref.dtype)


def conv1x1_cat4_bn_silu(parts, w, scale, bias, *, tm_max=512):
    """parts: 4 NHWC tensors with c channels each; w: (4*c, cout)."""
    n, h, wd, c = parts[0].shape
    cout = w.shape[1]
    assert w.shape[0] == 4 * c
    m = n * h * wd
    tm = _largest_divisor_leq(m, tm_max)
    flats = [p.reshape(m, c) for p in parts]
    w4 = w.reshape(4, c, cout)
    act_spec = pl.BlockSpec((tm, c), lambda i: (i, 0))
    out = pl.pallas_call(
        _conv1x1_cat4_bn_silu_kernel,
        out_shape=jax.ShapeDtypeStruct((m, cout), parts[0].dtype),
        grid_spec=pltpu.PrefetchScalarGridSpec(
            num_scalar_prefetch=0,
            grid=(m // tm,),
            in_specs=[act_spec, act_spec, act_spec, act_spec,
                      pl.BlockSpec((4, c, cout), lambda i: (0, 0, 0)),
                      pl.BlockSpec((1, cout), lambda i: (0, 0)),
                      pl.BlockSpec((1, cout), lambda i: (0, 0))],
            out_specs=pl.BlockSpec((tm, cout), lambda i: (i, 0)),
        ),
        compiler_params=pltpu.CompilerParams(dimension_semantics=("parallel",)),
    )(*flats, w4,
      scale.reshape(1, cout).astype(jnp.float32),
      bias.reshape(1, cout).astype(jnp.float32))
    return out.reshape(n, h, wd, cout)


# ----------------------------------------------------------------------------
# SPP module: parameters + forward
# ----------------------------------------------------------------------------
def init_spp_params(key, c1, c2, k=(5, 9, 13), dtype=jnp.float32):
    c_ = c1 // 2
    cin2 = c_ * (len(k) + 1)
    ks = jax.random.split(key, 10)
    # cv1: Conv2d(c1, c_, 1, bias=False) + BN(c_)
    w1 = jax.random.normal(ks[0], (c1, c_), dtype) * 0.1          # (Cin, Cout)
    g1 = jax.random.uniform(ks[1], (c_,), dtype, 0.5, 1.5)
    b1 = jax.random.normal(ks[2], (c_,), dtype) * 0.1
    m1 = jax.random.normal(ks[3], (c_,), dtype) * 0.1
    v1 = jax.random.uniform(ks[4], (c_,), dtype, 0.5, 1.5)
    # cv2: Conv2d(4*c_, c2, 1, bias=False) + BN(c2)
    w2 = jax.random.normal(ks[5], (cin2, c2), dtype) * 0.1
    g2 = jax.random.uniform(ks[6], (c2,), dtype, 0.5, 1.5)
    b2 = jax.random.normal(ks[7], (c2,), dtype) * 0.1
    m2 = jax.random.normal(ks[8], (c2,), dtype) * 0.1
    v2 = jax.random.uniform(ks[9], (c2,), dtype, 0.5, 1.5)
    s1, bias1 = fold_bn(g1, b1, m1, v1)
    s2, bias2 = fold_bn(g2, b2, m2, v2)
    return dict(w1=w1, s1=s1, b1=bias1, w2=w2, s2=s2, b2=bias2)


@jax.jit
def spp_forward(x_nchw, params):
    x = jnp.transpose(x_nchw, (0, 2, 3, 1))                        # NCHW -> NHWC
    y = conv1x1_bn_silu(x, params["w1"], params["s1"], params["b1"])
    p5, p9, p13 = sppf_pools(y)                                    # one fused kernel
    z = conv1x1_cat4_bn_silu((y, p5, p9, p13), params["w2"],
                             params["s2"], params["b2"])
    return jnp.transpose(z, (0, 3, 1, 2))                          # NHWC -> NCHW


# ----------------------------------------------------------------------------
# Pure-JAX reference (original SPP: independent k=5,9,13 pools + concat)
# ----------------------------------------------------------------------------
def spp_reference(x_nchw, params):
    def cbs(x, w, s, b):                                           # conv1x1+BN+SiLU
        y = jnp.einsum("nhwc,cd->nhwd", x, w) * s + b
        return y * jax.nn.sigmoid(y)

    def pool(x, k):
        p = k // 2
        return lax.reduce_window(x, -jnp.inf, lax.max,
                                 (1, k, k, 1), (1, 1, 1, 1),
                                 ((0, 0), (p, p), (p, p), (0, 0)))

    x = jnp.transpose(x_nchw, (0, 2, 3, 1))
    y = cbs(x, params["w1"], params["s1"], params["b1"])
    cat = jnp.concatenate([y] + [pool(y, k) for k in (5, 9, 13)], axis=-1)
    z = cbs(cat, params["w2"], params["s2"], params["b2"])
    return jnp.transpose(z, (0, 3, 1, 2))


if __name__ == "__main__":
    key = jax.random.PRNGKey(0)
    kx, kp = jax.random.split(key)

    N, C1, H, W = 2, 8, 16, 16
    C2 = 8
    x = jax.random.normal(kx, (N, C1, H, W), jnp.float32)
    params = init_spp_params(kp, C1, C2)

    out = spp_forward(x, params)
    out = jax.block_until_ready(out)

    ref = spp_reference(x, params)
    assert out.shape == (N, C2, H, W), out.shape
    assert jnp.allclose(out, ref, atol=1e-5, rtol=1e-5), float(
        jnp.max(jnp.abs(out - ref)))

    print("KERNEL_OK")
</pallas_src>

<mosaic_0001>
module attributes {stable_mosaic.version = 11 : i64} {
  func.func @_conv1x1_bn_silu_kernel(%arg0: i32, %arg1: memref<512x8xf32, #tpu.memory_space<vmem>>, %arg2: memref<8x4xf32, #tpu.memory_space<vmem>>, %arg3: memref<1x4xf32, #tpu.memory_space<vmem>>, %arg4: memref<1x4xf32, #tpu.memory_space<vmem>>, %arg5: memref<512x4xf32, #tpu.memory_space<vmem>>) attributes {dimension_semantics = [#tpu.dimension_semantics<parallel>], iteration_bounds = array<i64: 1>, scalar_prefetch = 0 : i64, scratch_operands = 0 : i64, tpu.core_type = #tpu.core_type<tc>, window_params = [{transform_indices = @transform_0, window_bounds = array<i64: 512, 8>}, {pipeline_mode = #tpu.pipeline_mode<synchronous>, transform_indices = @transform_1, window_bounds = array<i64: 8, 4>}, {pipeline_mode = #tpu.pipeline_mode<synchronous>, transform_indices = @transform_2, window_bounds = array<i64: 1, 4>}, {pipeline_mode = #tpu.pipeline_mode<synchronous>, transform_indices = @transform_3, window_bounds = array<i64: 1, 4>}, {transform_indices = @transform_4, window_bounds = array<i64: 512, 4>}]} {
    %c0 = arith.constant 0 : index
    %c0_0 = arith.constant 0 : index
    %0 = vector.load %arg1[%c0, %c0_0] : memref<512x8xf32, #tpu.memory_space<vmem>>, vector<512x8xf32>
    %c0_1 = arith.constant 0 : index
    %c0_2 = arith.constant 0 : index
    %1 = vector.load %arg2[%c0_1, %c0_2] : memref<8x4xf32, #tpu.memory_space<vmem>>, vector<8x4xf32>
    %cst = arith.constant dense<0.000000e+00> : vector<512x4xf32>
    %2 = tpu.matmul %0, %1, %cst {dimension_numbers = #tpu.dot_dimension_numbers<[1], [0], [0], [1], [0, 0, 1, 1], [], []>} : vector<512x8xf32>, vector<8x4xf32>, vector<512x4xf32> -> vector<512x4xf32>
    %c0_3 = arith.constant 0 : index
    %c0_4 = arith.constant 0 : index
    %3 = vector.load %arg3[%c0_3, %c0_4] : memref<1x4xf32, #tpu.memory_space<vmem>>, vector<1x4xf32>
    %4 = vector.broadcast %3 : vector<1x4xf32> to vector<512x4xf32>
    %5 = arith.mulf %2, %4 : vector<512x4xf32>
    %c0_5 = arith.constant 0 : index
    %c0_6 = arith.constant 0 : index
    %6 = vector.load %arg4[%c0_5, %c0_6] : memref<1x4xf32, #tpu.memory_space<vmem>>, vector<1x4xf32>
    %7 = vector.broadcast %6 : vector<1x4xf32> to vector<512x4xf32>
    %8 = arith.addf %5, %7 : vector<512x4xf32>
    %9 = arith.negf %8 : vector<512x4xf32>
    %10 = math.exp %9 : vector<512x4xf32>
    %cst_7 = arith.constant 1.000000e+00 : f32
    %11 = vector.broadcast %cst_7 : f32 to vector<512x4xf32>
    %12 = arith.addf %11, %10 : vector<512x4xf32>
    %13 = arith.divf %11, %12 : vector<512x4xf32>
    %14 = arith.mulf %8, %13 : vector<512x4xf32>
    %c0_8 = arith.constant 0 : index
    %c0_9 = arith.constant 0 : index
    %15 = vector.load %arg5[%c0_8, %c0_9] : memref<512x4xf32, #tpu.memory_space<vmem>>, vector<512x4xf32>
    tpu.vector_store %arg5[%c0_8, %c0_9], %14 {strides = array<i32>} : memref<512x4xf32, #tpu.memory_space<vmem>>, vector<512x4xf32>,
    return
  }
  func.func @transform_0(%arg0: i32) -> (i32, i32) {
    %c0_i32 = arith.constant 0 : i32
    %c0_i32_0 = arith.constant 0 : i32
    return %arg0, %c0_i32 : i32, i32
  }
  func.func @transform_1(%arg0: i32) -> (i32, i32) {
    %c0_i32 = arith.constant 0 : i32
    %c0_i32_0 = arith.constant 0 : i32
    %c0_i32_1 = arith.constant 0 : i32
    return %c0_i32, %c0_i32_0 : i32, i32
  }
  func.func @transform_2(%arg0: i32) -> (i32, i32) {
    %c0_i32 = arith.constant 0 : i32
    %c0_i32_0 = arith.constant 0 : i32
    %c0_i32_1 = arith.constant 0 : i32
    return %c0_i32, %c0_i32_0 : i32, i32
  }
  func.func @transform_3(%arg0: i32) -> (i32, i32) {
    %c0_i32 = arith.constant 0 : i32
    %c0_i32_0 = arith.constant 0 : i32
    %c0_i32_1 = arith.constant 0 : i32
    return %c0_i32, %c0_i32_0 : i32, i32
  }
  func.func @transform_4(%arg0: i32) -> (i32, i32) {
    %c0_i32 = arith.constant 0 : i32
    %c0_i32_0 = arith.constant 0 : i32
    return %arg0, %c0_i32 : i32, i32
  }
}

module attributes {stable_mosaic.version = 11 : i64} {
  func.func @kern(%arg0: i32, %arg1: i32, %arg2: memref<1x16x16x4xf32, #tpu.memory_space<vmem>>, %arg3: memref<1x16x16x4xf32, #tpu.memory_space<vmem>>, %arg4: memref<1x16x16x4xf32, #tpu.memory_space<vmem>>, %arg5: memref<1x16x16x4xf32, #tpu.memory_space<vmem>>) attributes {dimension_semantics = [#tpu.dimension_semantics<parallel>, #tpu.dimension_semantics<parallel>], iteration_bounds = array<i64: 2, 1>, scalar_prefetch = 0 : i64, scratch_operands = 0 : i64, tpu.core_type = #tpu.core_type<tc>, window_params = [{transform_indices = @transform_0, window_bounds = array<i64: 1, 16, 16, 4>}, {transform_indices = @transform_1, window_bounds = array<i64: 1, 16, 16, 4>}, {transform_indices = @transform_2, window_bounds = array<i64: 1, 16, 16, 4>}, {transform_indices = @transform_3, window_bounds = array<i64: 1, 16, 16, 4>}]} {
    %c0 = arith.constant 0 : index
    %c0_0 = arith.constant 0 : index
    %c0_1 = arith.constant 0 : index
    %c0_2 = arith.constant 0 : index
    %0 = vector.load %arg2[%c0, %c0_0, %c0_1, %c0_2] : memref<1x16x16x4xf32, #tpu.memory_space<vmem>>, vector<1x16x16x4xf32>
    %1 = vector.shape_cast %0 : vector<1x16x16x4xf32> to vector<16x16x4xf32>
    %cst = arith.constant 0xFF800000 : f32
    %2 = vector.broadcast %cst : f32 to vector<6x16x4xf32>
    %3 = tpu.concatenate %2, %1, %2 in 0 : vector<6x16x4xf32>, vector<16x16x4xf32>, vector<6x16x4xf32> -> vector<28x16x4xf32>
    %cst_3 = arith.constant 0xFF800000 : f32
    %4 = vector.broadcast %cst_3 : f32 to vector<28x6x4xf32>
    %5 = tpu.concatenate %4, %3, %4 in 1 : vector<28x6x4xf32>, vector<28x16x4xf32>, vector<28x6x4xf32> -> vector<28x28x4xf32>
    %6 = vector.extract_strided_slice %5 {offsets = [0, 0, 0], sizes = [24, 28, 4], strides = [1, 1, 1]} : vector<28x28x4xf32> to vector<24x28x4xf32>
    %7 = vector.extract_strided_slice %5 {offsets = [1, 0, 0], sizes = [24, 28, 4], strides = [1, 1, 1]} : vector<28x28x4xf32> to vector<24x28x4xf32>
    %8 = arith.maximumf %6, %7 : vector<24x28x4xf32>
    %9 = vector.extract_strided_slice %5 {offsets = [2, 0, 0], sizes = [24, 28, 4], strides = [1, 1, 1]} : vector<28x28x4xf32> to vector<24x28x4xf32>
    %10 = arith.maximumf %8, %9 : vector<24x28x4xf32>
    %11 = vector.extract_strided_slice %5 {offsets = [3, 0, 0], sizes = [24, 28, 4], strides = [1, 1, 1]} : vector<28x28x4xf32> to vector<24x28x4xf32>
    %12 = arith.maximumf %10, %11 : vector<24x28x4xf32>
    %13 = vector.extract_strided_slice %5 {offsets = [4, 0, 0], sizes = [24, 28, 4], strides = [1, 1, 1]} : vector<28x28x4xf32> to vector<24x28x4xf32>
    %14 = arith.maximumf %12, %13 : vector<24x28x4xf32>
    %15 = vector.extract_strided_slice %14 {offsets = [0, 0, 0], sizes = [24, 24, 4], strides = [1, 1, 1]} : vector<24x28x4xf32> to vector<24x24x4xf32>
    %16 = vector.extract_strided_slice %14 {offsets = [0, 1, 0], sizes = [24, 24, 4], strides = [1, 1, 1]} : vector<24x28x4xf32> to vector<24x24x4xf32>
    %17 = arith.maximumf %15, %16 : vector<24x24x4xf32>
    %18 = vector.extract_strided_slice %14 {offsets = [0, 2, 0], sizes = [24, 24, 4], strides = [1, 1, 1]} : vector<24x28x4xf32> to vector<24x24x4xf32>
    %19 = arith.maximumf %17, %18 : vector<24x24x4xf32>
    %20 = vector.extract_strided_slice %14 {offsets = [0, 3, 0], sizes = [24, 24, 4], strides = [1, 1, 1]} : vector<24x28x4xf32> to vector<24x24x4xf32>
    %21 = arith.maximumf %19, %20 : vector<24x24x4xf32>
    %22 = vector.extract_strided_slice %14 {offsets = [0, 4, 0], sizes = [24, 24, 4], strides = [1, 1, 1]} : vector<24x28x4xf32> to vector<24x24x4xf32>
    %23 = arith.maximumf %21, %22 : vector<24x24x4xf32>
    %24 = vector.extract_strided_slice %23 {offsets = [0, 0, 0], sizes = [20, 24, 4], strides = [1, 1, 1]} : vector<24x24x4xf32> to vector<20x24x4xf32>
    %25 = vector.extract_strided_slice %23 {offsets = [1, 0, 0], sizes = [20, 24, 4], strides = [1, 1, 1]} : vector<24x24x4xf32> to vector<20x24x4xf32>
    %26 = arith.maximumf %24, %25 : vector<20x24x4xf32>
    %27 = vector.extract_strided_slice %23 {offsets = [2, 0, 0], sizes = [20, 24, 4], strides = [1, 1, 1]} : vector<24x24x4xf32> to vector<20x24x4xf32>
    %28 = arith.maximumf %26, %27 : vector<20x24x4xf32>
    %29 = vector.extract_strided_slice %23 {offsets = [3, 0, 0], sizes = [20, 24, 4], strides = [1, 1, 1]} : vector<24x24x4xf32> to vector<20x24x4xf32>
    %30 = arith.maximumf %28, %29 : vector<20x24x4xf32>
    %31 = vector.extract_strided_slice %23 {offsets = [4, 0, 0], sizes = [20, 24, 4], strides = [1, 1, 1]} : vector<24x24x4xf32> to vector<20x24x4xf32>
    %32 = arith.maximumf %30, %31 : vector<20x24x4xf32>
    %33 = vector.extract_strided_slice %32 {offsets = [0, 0, 0], sizes = [20, 20, 4], strides = [1, 1, 1]} : vector<20x24x4xf32> to vector<20x20x4xf32>
    %34 = vector.extract_strided_slice %32 {offsets = [0, 1, 0], sizes = [20, 20, 4], strides = [1, 1, 1]} : vector<20x24x4xf32> to vector<20x20x4xf32>
    %35 = arith.maximumf %33, %34 : vector<20x20x4xf32>
    %36 = vector.extract_strided_slice %32 {offsets = [0, 2, 0], sizes = [20, 20, 4], strides = [1, 1, 1]} : vector<20x24x4xf32> to vector<20x20x4xf32>
    %37 = arith.maximumf %35, %36 : vector<20x20x4xf32>
    %38 = vector.extract_strided_slice %32 {offsets = [0, 3, 0], sizes = [20, 20, 4], strides = [1, 1, 1]} : vector<20x24x4xf32> to vector<20x20x4xf32>
    %39 = arith.maximumf %37, %38 : vector<20x20x4xf32>
    %40 = vector.extract_strided_slice %32 {offsets = [0, 4, 0], sizes = [20, 20, 4], strides = [1, 1, 1]} : vector<20x24x4xf32> to vector<20x20x4xf32>
    %41 = arith.maximumf %39, %40 : vector<20x20x4xf32>
    %42 = vector.extract_strided_slice %41 {offsets = [0, 0, 0], sizes = [16, 20, 4], strides = [1, 1, 1]} : vector<20x20x4xf32> to vector<16x20x4xf32>
    %43 = vector.extract_strided_slice %41 {offsets = [1, 0, 0], sizes = [16, 20, 4], strides = [1, 1, 1]} : vector<20x20x4xf32> to vector<16x20x4xf32>
    %44 = arith.maximumf %42, %43 : vector<16x20x4xf32>
    %45 = vector.extract_strided_slice %41 {offsets = [2, 0, 0], sizes = [16, 20, 4], strides = [1, 1, 1]} : vector<20x20x4xf32> to vector<16x20x4xf32>
    %46 = arith.maximumf %44, %45 : vector<16x20x4xf32>
    %47 = vector.extract_strided_slice %41 {offsets = [3, 0, 0], sizes = [16, 20, 4], strides = [1, 1, 1]} : vector<20x20x4xf32> to vector<16x20x4xf32>
    %48 = arith.maximumf %46, %47 : vector<16x20x4xf32>
    %49 = vector.extract_strided_slice %41 {offsets = [4, 0, 0], sizes = [16, 20, 4], strides = [1, 1, 1]} : vector<20x20x4xf32> to vector<16x20x4xf32>
    %50 = arith.maximumf %48, %49 : vector<16x20x4xf32>
    %51 = vector.extract_strided_slice %50 {offsets = [0, 0, 0], sizes = [16, 16, 4], strides = [1, 1, 1]} : vector<16x20x4xf32> to vector<16x16x4xf32>
    %52 = vector.extract_strided_slice %50 {offsets = [0, 1, 0], sizes = [16, 16, 4], strides = [1, 1, 1]} : vector<16x20x4xf32> to vector<16x16x4xf32>
    %53 = arith.maximumf %51, %52 : vector<16x16x4xf32>
    %54 = vector.extract_strided_slice %50 {offsets = [0, 2, 0], sizes = [16, 16, 4], strides = [1, 1, 1]} : vector<16x20x4xf32> to vector<16x16x4xf32>
    %55 = arith.maximumf %53, %54 : vector<16x16x4xf32>
    %56 = vector.extract_strided_slice %50 {offsets = [0, 3, 0], sizes = [16, 16, 4], strides = [1, 1, 1]} : vector<16x20x4xf32> to vector<16x16x4xf32>
    %57 = arith.maximumf %55, %56 : vector<16x16x4xf32>
    %58 = vector.extract_strided_slice %50 {offsets = [0, 4, 0], sizes = [16, 16, 4], strides = [1, 1, 1]} : vector<16x20x4xf32> to vector<16x16x4xf32>
    %59 = arith.maximumf %57, %58 : vector<16x16x4xf32>
    %60 = vector.extract_strided_slice %23 {offsets = [4, 4, 0], sizes = [16, 16, 4], strides = [1, 1, 1]} : vector<24x24x4xf32> to vector<16x16x4xf32>
    %c0_4 = arith.constant 0 : index
    %c0_5 = arith.constant 0 : index
    %c0_6 = arith.constant 0 : index
    %c0_7 = arith.constant 0 : index
    %61 = vector.load %arg3[%c0_4, %c0_5, %c0_6, %c0_7] : memref<1x16x16x4xf32, #tpu.memory_space<vmem>>, vector<1x16x16x4xf32>
    %62 = vector.shape_cast %61 : vector<1x16x16x4xf32> to vector<16x16x4xf32>
    %63 = vector.shape_cast %60 : vector<16x16x4xf32> to vector<1x16x16x4xf32>
    tpu.vector_store %arg3[%c0_4, %c0_5, %c0_6, %c0_7], %63 {strides = array<i32>} : memref<1x16x16x4xf32, #tpu.memory_space<vmem>>, vector<1x16x16x4xf32>,
    %64 = vector.extract_strided_slice %41 {offsets = [2, 2, 0], sizes = [16, 16, 4], strides = [1, 1, 1]} : vector<20x20x4xf32> to vector<16x16x4xf32>
    %c0_8 = arith.constant 0 : index
    %c0_9 = arith.constant 0 : index
    %c0_10 = arith.constant 0 : index
    %c0_11 = arith.constant 0 : index
    %65 = vector.load %arg4[%c0_8, %c0_9, %c0_10, %c0_11] : memref<1x16x16x4xf32, #tpu.memory_space<vmem>>, vector<1x16x16x4xf32>
    %66 = vector.shape_cast %65 : vector<1x16x16x4xf32> to vector<16x16x4xf32>
    %67 = vector.shape_cast %64 : vector<16x16x4xf32> to vector<1x16x16x4xf32>
    tpu.vector_store %arg4[%c0_8, %c0_9, %c0_10, %c0_11], %67 {strides = array<i32>} : memref<1x16x16x4xf32, #tpu.memory_space<vmem>>, vector<1x16x16x4xf32>,
    %c0_12 = arith.constant 0 : index
    %c0_13 = arith.constant 0 : index
    %c0_14 = arith.constant 0 : index
    %c0_15 = arith.constant 0 : index
    %68 = vector.load %arg5[%c0_12, %c0_13, %c0_14, %c0_15] : memref<1x16x16x4xf32, #tpu.memory_space<vmem>>, vector<1x16x16x4xf32>
    %69 = vector.shape_cast %68 : vector<1x16x16x4xf32> to vector<16x16x4xf32>
    %70 = vector.shape_cast %59 : vector<16x16x4xf32> to vector<1x16x16x4xf32>
    tpu.vector_store %arg5[%c0_12, %c0_13, %c0_14, %c0_15], %70 {strides = array<i32>} : memref<1x16x16x4xf32, #tpu.memory_space<vmem>>, vector<1x16x16x4xf32>,
    return
  }
  func.func @transform_0(%arg0: i32, %arg1: i32) -> (i32, i32, i32, i32) {
    %c0_i32 = arith.constant 0 : i32
    %c0_i32_0 = arith.constant 0 : i32
    %c0_i32_1 = arith.constant 0 : i32
    return %arg0, %c0_i32, %c0_i32_0, %arg1 : i32, i32, i32, i32
  }
  func.func @transform_1(%arg0: i32, %arg1: i32) -> (i32, i32, i32, i32) {
    %c0_i32 = arith.constant 0 : i32
    %c0_i32_0 = arith.constant 0 : i32
    %c0_i32_1 = arith.constant 0 : i32
    return %arg0, %c0_i32, %c0_i32_0, %arg1 : i32, i32, i32, i32
  }
  func.func @transform_2(%arg0: i32, %arg1: i32) -> (i32, i32, i32, i32) {
    %c0_i32 = arith.constant 0 : i32
    %c0_i32_0 = arith.constant 0 : i32
    %c0_i32_1 = arith.constant 0 : i32
    return %arg0, %c0_i32, %c0_i32_0, %arg1 : i32, i32, i32, i32
  }
  func.func @transform_3(%arg0: i32, %arg1: i32) -> (i32, i32, i32, i32) {
    %c0_i32 = arith.constant 0 : i32
    %c0_i32_0 = arith.constant 0 : i32
    %c0_i32_1 = arith.constant 0 : i32
    return %arg0, %c0_i32, %c0_i32_0, %arg1 : i32, i32, i32, i32
  }
}

module attributes {stable_mosaic.version = 11 : i64} {
  func.func @_conv1x1_cat4_bn_silu_kernel(%arg0: i32, %arg1: memref<512x4xf32, #tpu.memory_space<vmem>>, %arg2: memref<512x4xf32, #tpu.memory_space<vmem>>, %arg3: memref<512x4xf32, #tpu.memory_space<vmem>>, %arg4: memref<512x4xf32, #tpu.memory_space<vmem>>, %arg5: memref<4x4x8xf32, #tpu.memory_space<vmem>>, %arg6: memref<1x8xf32, #tpu.memory_space<vmem>>, %arg7: memref<1x8xf32, #tpu.memory_space<vmem>>, %arg8: memref<512x8xf32, #tpu.memory_space<vmem>>) attributes {dimension_semantics = [#tpu.dimension_semantics<parallel>], iteration_bounds = array<i64: 1>, scalar_prefetch = 0 : i64, scratch_operands = 0 : i64, tpu.core_type = #tpu.core_type<tc>, window_params = [{transform_indices = @transform_0, window_bounds = array<i64: 512, 4>}, {transform_indices = @transform_1, window_bounds = array<i64: 512, 4>}, {transform_indices = @transform_2, window_bounds = array<i64: 512, 4>}, {transform_indices = @transform_3, window_bounds = array<i64: 512, 4>}, {pipeline_mode = #tpu.pipeline_mode<synchronous>, transform_indices = @transform_4, window_bounds = array<i64: 4, 4, 8>}, {pipeline_mode = #tpu.pipeline_mode<synchronous>, transform_indices = @transform_5, window_bounds = array<i64: 1, 8>}, {pipeline_mode = #tpu.pipeline_mode<synchronous>, transform_indices = @transform_6, window_bounds = array<i64: 1, 8>}, {transform_indices = @transform_7, window_bounds = array<i64: 512, 8>}]} {
    %c0 = arith.constant 0 : index
    %c0_0 = arith.constant 0 : index
    %0 = vector.load %arg1[%c0, %c0_0] : memref<512x4xf32, #tpu.memory_space<vmem>>, vector<512x4xf32>
    %c0_1 = arith.constant 0 : index
    %c0_2 = arith.constant 0 : index
    %c0_3 = arith.constant 0 : index
    %1 = vector.load %arg5[%c0_1, %c0_2, %c0_3] : memref<4x4x8xf32, #tpu.memory_space<vmem>>, vector<1x4x8xf32>
    %2 = vector.shape_cast %1 : vector<1x4x8xf32> to vector<4x8xf32>
    %cst = arith.constant dense<0.000000e+00> : vector<512x8xf32>
    %3 = tpu.matmul %0, %2, %cst {dimension_numbers = #tpu.dot_dimension_numbers<[1], [0], [0], [1], [0, 0, 1, 1], [], []>} : vector<512x4xf32>, vector<4x8xf32>, vector<512x8xf32> -> vector<512x8xf32>
    %c0_4 = arith.constant 0 : index
    %c0_5 = arith.constant 0 : index
    %4 = vector.load %arg2[%c0_4, %c0_5] : memref<512x4xf32, #tpu.memory_space<vmem>>, vector<512x4xf32>
    %c1 = arith.constant 1 : index
    %c0_6 = arith.constant 0 : index
    %c0_7 = arith.constant 0 : index
    %5 = vector.load %arg5[%c1, %c0_6, %c0_7] : memref<4x4x8xf32, #tpu.memory_space<vmem>>, vector<1x4x8xf32>
    %6 = vector.shape_cast %5 : vector<1x4x8xf32> to vector<4x8xf32>
    %cst_8 = arith.constant dense<0.000000e+00> : vector<512x8xf32>
    %7 = tpu.matmul %4, %6, %cst_8 {dimension_numbers = #tpu.dot_dimension_numbers<[1], [0], [0], [1], [0, 0, 1, 1], [], []>} : vector<512x4xf32>, vector<4x8xf32>, vector<512x8xf32> -> vector<512x8xf32>
    %8 = arith.addf %3, %7 : vector<512x8xf32>
    %c0_9 = arith.constant 0 : index
    %c0_10 = arith.constant 0 : index
    %9 = vector.load %arg3[%c0_9, %c0_10] : memref<512x4xf32, #tpu.memory_space<vmem>>, vector<512x4xf32>
    %c2 = arith.constant 2 : index
    %c0_11 = arith.constant 0 : index
    %c0_12 = arith.constant 0 : index
    %10 = vector.load %arg5[%c2, %c0_11, %c0_12] : memref<4x4x8xf32, #tpu.memory_space<vmem>>, vector<1x4x8xf32>
    %11 = vector.shape_cast %10 : vector<1x4x8xf32> to vector<4x8xf32>
    %cst_13 = arith.constant dense<0.000000e+00> : vector<512x8xf32>
    %12 = tpu.matmul %9, %11, %cst_13 {dimension_numbers = #tpu.dot_dimension_numbers<[1], [0], [0], [1], [0, 0, 1, 1], [], []>} : vector<512x4xf32>, vector<4x8xf32>, vector<512x8xf32> -> vector<512x8xf32>
    %13 = arith.addf %8, %12 : vector<512x8xf32>
    %c0_14 = arith.constant 0 : index
    %c0_15 = arith.constant 0 : index
    %14 = vector.load %arg4[%c0_14, %c0_15] : memref<512x4xf32, #tpu.memory_space<vmem>>, vector<512x4xf32>
    %c3 = arith.constant 3 : index
    %c0_16 = arith.constant 0 : index
    %c0_17 = arith.constant 0 : index
    %15 = vector.load %arg5[%c3, %c0_16, %c0_17] : memref<4x4x8xf32, #tpu.memory_space<vmem>>, vector<1x4x8xf32>
    %16 = vector.shape_cast %15 : vector<1x4x8xf32> to vector<4x8xf32>
    %cst_18 = arith.constant dense<0.000000e+00> : vector<512x8xf32>
    %17 = tpu.matmul %14, %16, %cst_18 {dimension_numbers = #tpu.dot_dimension_numbers<[1], [0], [0], [1], [0, 0, 1, 1], [], []>} : vector<512x4xf32>, vector<4x8xf32>, vector<512x8xf32> -> vector<512x8xf32>
    %18 = arith.addf %13, %17 : vector<512x8xf32>
    %c0_19 = arith.constant 0 : index
    %c0_20 = arith.constant 0 : index
    %19 = vector.load %arg6[%c0_19, %c0_20] : memref<1x8xf32, #tpu.memory_space<vmem>>, vector<1x8xf32>
    %20 = vector.broadcast %19 : vector<1x8xf32> to vector<512x8xf32>
    %21 = arith.mulf %18, %20 : vector<512x8xf32>
    %c0_21 = arith.constant 0 : index
    %c0_22 = arith.constant 0 : index
    %22 = vector.load %arg7[%c0_21, %c0_22] : memref<1x8xf32, #tpu.memory_space<vmem>>, vector<1x8xf32>
    %23 = vector.broadcast %22 : vector<1x8xf32> to vector<512x8xf32>
    %24 = arith.addf %21, %23 : vector<512x8xf32>
    %25 = arith.negf %24 : vector<512x8xf32>
    %26 = math.exp %25 : vector<512x8xf32>
    %cst_23 = arith.constant 1.000000e+00 : f32
    %27 = vector.broadcast %cst_23 : f32 to vector<512x8xf32>
    %28 = arith.addf %27, %26 : vector<512x8xf32>
    %29 = arith.divf %27, %28 : vector<512x8xf32>
    %30 = arith.mulf %24, %29 : vector<512x8xf32>
    %c0_24 = arith.constant 0 : index
    %c0_25 = arith.constant 0 : index
    %31 = vector.load %arg8[%c0_24, %c0_25] : memref<512x8xf32, #tpu.memory_space<vmem>>, vector<512x8xf32>
    tpu.vector_store %arg8[%c0_24, %c0_25], %30 {strides = array<i32>} : memref<512x8xf32, #tpu.memory_space<vmem>>, vector<512x8xf32>,
    return
  }
  func.func @transform_0(%arg0: i32) -> (i32, i32) {
    %c0_i32 = arith.constant 0 : i32
    %c0_i32_0 = arith.constant 0 : i32
    return %arg0, %c0_i32 : i32, i32
  }
  func.func @transform_1(%arg0: i32) -> (i32, i32) {
    %c0_i32 = arith.constant 0 : i32
    %c0_i32_0 = arith.constant 0 : i32
    return %arg0, %c0_i32 : i32, i32
  }
  func.func @transform_2(%arg0: i32) -> (i32, i32) {
    %c0_i32 = arith.constant 0 : i32
    %c0_i32_0 = arith.constant 0 : i32
    return %arg0, %c0_i32 : i32, i32
  }
  func.func @transform_3(%arg0: i32) -> (i32, i32) {
    %c0_i32 = arith.constant 0 : i32
    %c0_i32_0 = arith.constant 0 : i32
    return %arg0, %c0_i32 : i32, i32
  }
  func.func @transform_4(%arg0: i32) -> (i32, i32, i32) {
    %c0_i32 = arith.constant 0 : i32
    %c0_i32_0 = arith.constant 0 : i32
    %c0_i32_1 = arith.constant 0 : i32
    %c0_i32_2 = arith.constant 0 : i32
    return %c0_i32, %c0_i32_0, %c0_i32_1 : i32, i32, i32
  }
  func.func @transform_5(%arg0: i32) -> (i32, i32) {
    %c0_i32 = arith.constant 0 : i32
    %c0_i32_0 = arith.constant 0 : i32
    %c0_i32_1 = arith.constant 0 : i32
    return %c0_i32, %c0_i32_0 : i32, i32
  }
  func.func @transform_6(%arg0: i32) -> (i32, i32) {
    %c0_i32 = arith.constant 0 : i32
    %c0_i32_0 = arith.constant 0 : i32
    %c0_i32_1 = arith.constant 0 : i32
    return %c0_i32, %c0_i32_0 : i32, i32
  }
  func.func @transform_7(%arg0: i32) -> (i32, i32) {
    %c0_i32 = arith.constant 0 : i32
    %c0_i32_0 = arith.constant 0 : i32
    return %arg0, %c0_i32 : i32, i32
  }
}

</mosaic_0001>

<bundles_post_ra>
// kernel: spp_forward.3
= control target key start
LH: loop header
LB: loop body
LE: loop exit
PB: predicated region body
PF: predicated region fallthrough
CT: control target
= control target key end

     0   :  { %vm82_vm0 = vcmask 64512   ;;  %vm1250_vm1 = vcmask 31744   ;;  %s2922_s1 = inlined_call_operand.vmem [shape: f32[8,4], index: 1, kind: input, shape index: {}]   ;;  %s2923_s0 = inlined_call_operand.vmem [shape: f32[512,8], index: 0, kind: input, shape index: {}]   ;;  %s2924_s2 = inlined_call_operand.vmem [shape: f32[1,4], index: 2, kind: input, shape index: {}]   ;;  %s2925_s3 = inlined_call_operand.vmem [shape: f32[1,4], index: 3, kind: input, shape index: {}]   ;;  %s2926_s4 = inlined_call_operand.vmem [shape: f32[512,4], index: 4, kind: output, shape index: {}]  }
   0x1   :  { %v81_v0 = vld [vmem:[%s2922_s1] sm:$0xff]  ;;  %v18_v3 = vld [vmem:[%s2923_s0 + $0x8] sm:$0xff]  ;;  %v19_v5 = vld [vmem:[%s2923_s0 + $0x10] sm:$0xff] }
   0x2   :  { %v17_v1 = vld [vmem:[%s2923_s0] sm:$0xff]  ;;  %1514 = vmatprep.subr.mxu0 %v81_v0  ;;  %1612 = vmatprep.subr.mxu1 %v81_v0  ;;  %v50_v4 = vld [vmem:[%s2923_s0 + $0x108] sm:$0xff]  ;;  %v51_v6 = vld [vmem:[%s2923_s0 + $0x110] sm:$0xff] }
   0x3   :  { %v49_v2 = vld [vmem:[%s2923_s0 + $0x100] sm:$0xff]  ;;  %1515 = vmatpush3.msra.mxu0 %v81_v0  ;;  %1613 = vmatpush3.msra.mxu1 %v81_v0  ;;  %v20_v7 = vld [vmem:[%s2923_s0 + $0x18] sm:$0xff]  ;;  %v22_v11 = vld [vmem:[%s2923_s0 + $0x28] sm:$0xff] }
   0x4   :  { %1516 = vmatprep.mubr.msk.f32.mxu0 %vm82_vm0, %v17_v1  ;;  %1564 = vmatprep.mubr.msk.f32.mxu1 %vm82_vm0, %v49_v2  ;;  %v52_v8 = vld [vmem:[%s2923_s0 + $0x118] sm:$0xff]  ;;  %v21_v9 = vld [vmem:[%s2923_s0 + $0x20] sm:$0xff]  ;;  %v54_v12 = vld [vmem:[%s2923_s0 + $0x128] sm:$0xff] }
   0x5   :  { %1517 = vmatmul.mubr.msk.f32.vlgmr.msra.gmra.mrb[0].mxu0 %vm82_vm0, %v18_v3  ;;  %1565 = vmatmul.mubr.msk.f32.vlgmr.msra.gmra.mrb[0].mxu1 %vm82_vm0, %v50_v4  ;;  %v53_v10 = vld [vmem:[%s2923_s0 + $0x120] sm:$0xff]  ;;  %v23_v13 = vld [vmem:[%s2923_s0 + $0x30] sm:$0xff]  ;;  %v24_v15 = vld [vmem:[%s2923_s0 + $0x38] sm:$0xff] }
   0x6   :  { %1519 = vmatprep.mubr.msk.f32.mxu0 %vm82_vm0, %v19_v5  ;;  %1567 = vmatprep.mubr.msk.f32.mxu1 %vm82_vm0, %v51_v6  ;;  %v55_v14 = vld [vmem:[%s2923_s0 + $0x130] sm:$0xff]  ;;  %v56_v16 = vld [vmem:[%s2923_s0 + $0x138] sm:$0xff]  ;;  %v25_v17 = vld [vmem:[%s2923_s0 + $0x40] sm:$0xff] }
   0x7   :  { %v57_v18 = vld [vmem:[%s2923_s0 + $0x140] sm:$0xff]  ;;  %v26_v19 = vld [vmem:[%s2923_s0 + $0x48] sm:$0xff]  ;;  %v27_v21 = vld [vmem:[%s2923_s0 + $0x50] sm:$0xff] }
   0x8   :  { %v58_v20 = vld [vmem:[%s2923_s0 + $0x148] sm:$0xff]  ;;  %v59_v22 = vld [vmem:[%s2923_s0 + $0x150] sm:$0xff]  ;;  %v28_v23 = vld [vmem:[%s2923_s0 + $0x58] sm:$0xff] }
   0x9   :  { %1520 = vmatmul.mubr.msk.f32.gmra.mrb[2].mxu0 %vm82_vm0, %v20_v7  ;;  %1568 = vmatmul.mubr.msk.f32.gmra.mrb[2].mxu1 %vm82_vm0, %v52_v8  ;;  %v60_v24 = vld [vmem:[%s2923_s0 + $0x158] sm:$0xff]  ;;  %v29_v25 = vld [vmem:[%s2923_s0 + $0x60] sm:$0xff]  ;;  %v30_v27 = vld [vmem:[%s2923_s0 + $0x68] sm:$0xff] }
   0xa   :  { %1522 = vmatprep.mubr.msk.f32.mxu0 %vm82_vm0, %v21_v9  ;;  %1570 = vmatprep.mubr.msk.f32.mxu1 %vm82_vm0, %v53_v10  ;;  %v61_v26 = vld [vmem:[%s2923_s0 + $0x160] sm:$0xff]  ;;  %v62_v28 = vld [vmem:[%s2923_s0 + $0x168] sm:$0xff]  ;;  %v31_v29 = vld [vmem:[%s2923_s0 + $0x70] sm:$0xff] }
   0xb   :  { %v63_v30 = vld [vmem:[%s2923_s0 + $0x170] sm:$0xff]  ;;  %v32_v31 = vld [vmem:[%s2923_s0 + $0x78] sm:$0xff]  ;;  %v33_v33 = vld [vmem:[%s2923_s0 + $0x80] sm:$0xff] }
   0xc   :  { %v64_v32 = vld [vmem:[%s2923_s0 + $0x178] sm:$0xff]  ;;  %v65_v34 = vld [vmem:[%s2923_s0 + $0x180] sm:$0xff]  ;;  %v34_v35 = vld [vmem:[%s2923_s0 + $0x88] sm:$0xff] }
   0xd   :  { %1523 = vmatmul.mubr.msk.f32.gmra.mrb[4].mxu0 %vm82_vm0, %v22_v11  ;;  %1571 = vmatmul.mubr.msk.f32.gmra.mrb[4].mxu1 %vm82_vm0, %v54_v12  ;;  %v66_v36 = vld [vmem:[%s2923_s0 + $0x188] sm:$0xff]  ;;  %v35_v37 = vld [vmem:[%s2923_s0 + $0x90] sm:$0xff]  ;;  %v36_v39 = vld [vmem:[%s2923_s0 + $0x98] sm:$0xff] }
   0xe   :  { %1525 = vmatprep.mubr.msk.f32.mxu0 %vm82_vm0, %v23_v13  ;;  %1573 = vmatprep.mubr.msk.f32.mxu1 %vm82_vm0, %v55_v14  ;;  %v67_v38 = vld [vmem:[%s2923_s0 + $0x190] sm:$0xff]  ;;  %v68_v40 = vld [vmem:[%s2923_s0 + $0x198] sm:$0xff]  ;;  %v37_v41 = vld [vmem:[%s2923_s0 + $0xa0] sm:$0xff] }
   0xf   :  { %v69_v42 = vld [vmem:[%s2923_s0 + $0x1a0] sm:$0xff]  ;;  %v38_v43 = vld [vmem:[%s2923_s0 + $0xa8] sm:$0xff]  ;;  %v39_v45 = vld [vmem:[%s2923_s0 + $0xb0] sm:$0xff] }
  0x10   :  { %v70_v44 = vld [vmem:[%s2923_s0 + $0x1a8] sm:$0xff]  ;;  %v71_v46 = vld [vmem:[%s2923_s0 + $0x1b0] sm:$0xff]  ;;  %v40_v47 = vld [vmem:[%s2923_s0 + $0xb8] sm:$0xff] }
  0x11   :  { %1526 = vmatmul.mubr.msk.f32.gmra.mrb[6].mxu0 %vm82_vm0, %v24_v15  ;;  %1574 = vmatmul.mubr.msk.f32.gmra.mrb[6].mxu1 %vm82_vm0, %v56_v16  ;;  %v72_v48 = vld [vmem:[%s2923_s0 + $0x1b8] sm:$0xff]  ;;  %v41_v49 = vld [vmem:[%s2923_s0 + $0xc0] sm:$0xff]  ;;  %v42_v51 = vld [vmem:[%s2923_s0 + $0xc8] sm:$0xff] }
  0x12   :  { %1528 = vmatprep.mubr.msk.f32.mxu0 %vm82_vm0, %v25_v17  ;;  %1576 = vmatprep.mubr.msk.f32.mxu1 %vm82_vm0, %v57_v18  ;;  %v73_v50 = vld [vmem:[%s2923_s0 + $0x1c0] sm:$0xff]  ;;  %v74_v52 = vld [vmem:[%s2923_s0 + $0x1c8] sm:$0xff]  ;;  %v43_v53 = vld [vmem:[%s2923_s0 + $0xd0] sm:$0xff] }
  0x13   :  { %v75_v54 = vld [vmem:[%s2923_s0 + $0x1d0] sm:$0xff]  ;;  %v44_v55 = vld [vmem:[%s2923_s0 + $0xd8] sm:$0xff]  ;;  %v45_v57 = vld [vmem:[%s2923_s0 + $0xe0] sm:$0xff] }
  0x14   :  { %v76_v56 = vld [vmem:[%s2923_s0 + $0x1d8] sm:$0xff]  ;;  %v77_v58 = vld [vmem:[%s2923_s0 + $0x1e0] sm:$0xff]  ;;  %v46_v59 = vld [vmem:[%s2923_s0 + $0xe8] sm:$0xff] }
  0x15   :  { %1529 = vmatmul.mubr.msk.f32.gmra.mrb[8].mxu0 %vm82_vm0, %v26_v19  ;;  %1577 = vmatmul.mubr.msk.f32.gmra.mrb[8].mxu1 %vm82_vm0, %v58_v20  ;;  %v78_v60 = vld [vmem:[%s2923_s0 + $0x1e8] sm:$0xff]  ;;  %v47_v61 = vld [vmem:[%s2923_s0 + $0xf0] sm:$0xff]  ;;  %v48_v63 = vld [vmem:[%s2923_s0 + $0xf8] sm:$0xff] }
  0x16   :  { %1531 = vmatprep.mubr.msk.f32.mxu0 %vm82_vm0, %v27_v21  ;;  %1579 = vmatprep.mubr.msk.f32.mxu1 %vm82_vm0, %v59_v22  ;;  %v79_v62 = vld [vmem:[%s2923_s0 + $0x1f0] sm:$0xff]  ;;  %v80_v0 = vld [vmem:[%s2923_s0 + $0x1f8] sm:$0xff]  ;;  %v2159_v1 = vld [vmem:[%s2924_s2] ss:$0 sm:$0xff] }
  0x17   :  { %v2164_v3 = vld [vmem:[%s2925_s3] ss:$0 sm:$0xff] }
  0x19   :  { %1532 = vmatmul.mubr.msk.f32.gmra.mrb[10].mxu0 %vm82_vm0, %v28_v23  ;;  %1580 = vmatmul.mubr.msk.f32.gmra.mrb[10].mxu1 %vm82_vm0, %v60_v24 }
  0x1a   :  { %1534 = vmatprep.mubr.msk.f32.mxu0 %vm82_vm0, %v29_v25  ;;  %1582 = vmatprep.mubr.msk.f32.mxu1 %vm82_vm0, %v61_v26 }
  0x1d   :  { %1535 = vmatmul.mubr.msk.f32.gmra.mrb[12].mxu0 %vm82_vm0, %v30_v27  ;;  %1583 = vmatmul.mubr.msk.f32.gmra.mrb[12].mxu1 %vm82_vm0, %v62_v28 }
  0x1e   :  { %1537 = vmatprep.mubr.msk.f32.mxu0 %vm82_vm0, %v31_v29  ;;  %1585 = vmatprep.mubr.msk.f32.mxu1 %vm82_vm0, %v63_v30 }
  0x21   :  { %1538 = vmatmul.mubr.msk.f32.gmra.mrb[14].mxu0 %vm82_vm0, %v32_v31  ;;  %1586 = vmatmul.mubr.msk.f32.gmra.mrb[14].mxu1 %vm82_vm0, %v64_v32 }
  0x22   :  { %1540 = vmatprep.mubr.msk.f32.mxu0 %vm82_vm0, %v33_v33  ;;  %1588 = vmatprep.mubr.msk.f32.mxu1 %vm82_vm0, %v65_v34 }
  0x25   :  { %1541 = vmatmul.mubr.msk.f32.gmra.mrb[16].mxu0 %vm82_vm0, %v34_v35  ;;  %1589 = vmatmul.mubr.msk.f32.gmra.mrb[16].mxu1 %vm82_vm0, %v66_v36 }
  0x26   :  { %1543 = vmatprep.mubr.msk.f32.mxu0 %vm82_vm0, %v35_v37  ;;  %1591 = vmatprep.mubr.msk.f32.mxu1 %vm82_vm0, %v67_v38 }
  0x29   :  { %1544 = vmatmul.mubr.msk.f32.gmra.mrb[18].mxu0 %vm82_vm0, %v36_v39  ;;  %1592 = vmatmul.mubr.msk.f32.gmra.mrb[18].mxu1 %vm82_vm0, %v68_v40 }
  0x2a   :  { %1546 = vmatprep.mubr.msk.f32.mxu0 %vm82_vm0, %v37_v41  ;;  %1594 = vmatprep.mubr.msk.f32.mxu1 %vm82_vm0, %v69_v42 }
  0x2d   :  { %1547 = vmatmul.mubr.msk.f32.gmra.mrb[20].mxu0 %vm82_vm0, %v38_v43  ;;  %1595 = vmatmul.mubr.msk.f32.gmra.mrb[20].mxu1 %vm82_vm0, %v70_v44 }
  0x2e   :  { %1549 = vmatprep.mubr.msk.f32.mxu0 %vm82_vm0, %v39_v45  ;;  %1597 = vmatprep.mubr.msk.f32.mxu1 %vm82_vm0, %v71_v46 }
  0x31   :  { %1550 = vmatmul.mubr.msk.f32.gmra.mrb[22].mxu0 %vm82_vm0, %v40_v47  ;;  %1598 = vmatmul.mubr.msk.f32.gmra.mrb[22].mxu1 %vm82_vm0, %v72_v48 }
  0x32   :  { %1552 = vmatprep.mubr.msk.f32.mxu0 %vm82_vm0, %v41_v49  ;;  %1600 = vmatprep.mubr.msk.f32.mxu1 %vm82_vm0, %v73_v50 }
  0x35   :  { %1553 = vmatmul.mubr.msk.f32.gmra.mrb[24].mxu0 %vm82_vm0, %v42_v51  ;;  %1601 = vmatmul.mubr.msk.f32.gmra.mrb[24].mxu1 %vm82_vm0, %v74_v52 }
  0x36   :  { %1555 = vmatprep.mubr.msk.f32.mxu0 %vm82_vm0, %v43_v53  ;;  %1603 = vmatprep.mubr.msk.f32.mxu1 %vm82_vm0, %v75_v54 }
  0x39   :  { %1556 = vmatmul.mubr.msk.f32.gmra.mrb[26].mxu0 %vm82_vm0, %v44_v55  ;;  %1604 = vmatmul.mubr.msk.f32.gmra.mrb[26].mxu1 %vm82_vm0, %v76_v56 }
  0x3a   :  { %1558 = vmatprep.mubr.msk.f32.mxu0 %vm82_vm0, %v45_v57  ;;  %1606 = vmatprep.mubr.msk.f32.mxu1 %vm82_vm0, %v77_v58 }
  0x3d   :  { %1559 = vmatmul.mubr.msk.f32.gmra.mrb[28].mxu0 %vm82_vm0, %v46_v59  ;;  %1607 = vmatmul.mubr.msk.f32.gmra.mrb[28].mxu1 %vm82_vm0, %v78_v60 }
  0x3e   :  { %1561 = vmatprep.mubr.msk.f32.mxu0 %vm82_vm0, %v47_v61  ;;  %1609 = vmatprep.mubr.msk.f32.mxu1 %vm82_vm0, %v79_v62 }
  0x41   :  { %1562 = vmatmul.mubr.msk.f32.gmra.mrb[30].mxu0 %vm82_vm0, %v48_v63  ;;  %1610 = vmatmul.mubr.msk.f32.gmra.mrb[30].mxu1 %vm82_vm0, %v80_v0 }
  0xd8   :  { %v1518_v2 = vpop.f32.mrb[0].mxu0  ;;  %v1566_v4 = vpop.f32.mrb[0].mxu1 }
  0xd9   :  { %v668_v5 = vmul.f32 %v1518_v2, %v2159_v1  ;;  %v700_v6 = vmul.f32 %v1566_v4, %v2159_v1  ;;  %v341_v7 = vpop.f32.mrb[1].mxu0  ;;  %v501_v8 = vpop.f32.mrb[1].mxu1 }
  0xda   :  { %v667_v9 = vmul.f32 %v2159_v1, %v341_v7  ;;  %v699_v10 = vmul.f32 %v2159_v1, %v501_v8 }
  0xdb   :  { %v2171_v11 = vadd.f32 %v2164_v3, %v668_v5  ;;  %v2174_v12 = vadd.f32 %v2164_v3, %v700_v6 }
  0xdc   :  { %v2177_v13 = vadd.f32 %v2164_v3, %v667_v9  ;;  %v2180_v14 = vadd.f32 %v2164_v3, %v699_v10  ;;  %v1521_v15 = vpop.f32.mrb[2].mxu0  ;;  %v1569_v16 = vpop.f32.mrb[2].mxu1 }
  0xdd   :  { %v1386_v17 = vmul.f32 -1.442695, %v2171_v11  ;;  %v1418_v18 = vmul.f32 -1.442695, %v2174_v12  ;;  %v670_v19 = vmul.f32 %v1521_v15, %v2159_v1  ;;  %v702_v20 = vmul.f32 %v1569_v16, %v2159_v1  ;;  %v351_v21 = vpop.f32.mrb[3].mxu0  ;;  %v511_v22 = vpop.f32.mrb[3].mxu1 }
  0xde   :  { %v1385_v23 = vmul.f32 -1.442695, %v2177_v13  ;;  %v1417_v24 = vmul.f32 -1.442695, %v2180_v14  ;;  %v669_v25 = vmul.f32 %v2159_v1, %v351_v21  ;;  %v701_v26 = vmul.f32 %v2159_v1, %v511_v22 }
  0xdf   :  { %1614 = vpow2.f32 %v1386_v17  ;;  %v2191_v27 = vadd.f32 %v2164_v3, %v670_v19  ;;  %v2194_v28 = vadd.f32 %v2164_v3, %v702_v20 }
  0xe0   :  { %1616 = vpow2.f32 %v1418_v18  ;;  %v2197_v29 = vadd.f32 %v2164_v3, %v669_v25  ;;  %v2200_v30 = vadd.f32 %v2164_v3, %v701_v26  ;;  %v1524_v31 = vpop.f32.mrb[4].mxu0  ;;  %v1572_v32 = vpop.f32.mrb[4].mxu1 }
  0xe1   :  { %1618 = vpow2.f32 %v1385_v23  ;;  %v1388_v33 = vmul.f32 -1.442695, %v2191_v27  ;;  %v1420_v34 = vmul.f32 -1.442695, %v2194_v28  ;;  %v672_v35 = vmul.f32 %v1524_v31, %v2159_v1  ;;  %v361_v36 = vpop.f32.mrb[5].mxu0  ;;  %v521_v37 = vpop.f32.mrb[5].mxu1 }
  0xe2   :  { %1620 = vpow2.f32 %v1417_v24  ;;  %v1387_v38 = vmul.f32 -1.442695, %v2197_v29  ;;  %v1419_v39 = vmul.f32 -1.442695, %v2200_v30  ;;  %v704_v40 = vmul.f32 %v1572_v32, %v2159_v1 }
  0xe3   :  { %1622 = vpow2.f32 %v1388_v33  ;;  %v2209_v41 = vadd.f32 %v2164_v3, %v672_v35  ;;  %v671_v42 = vmul.f32 %v2159_v1, %v361_v36  ;;  %v703_v43 = vmul.f32 %v2159_v1, %v521_v37 }
  0xe4   :  { %1624 = vpow2.f32 %v1420_v34  ;;  %v2214_v44 = vadd.f32 %v2164_v3, %v704_v40  ;;  %v1527_v45 = vpop.f32.mrb[6].mxu0  ;;  %v1575_v46 = vpop.f32.mrb[6].mxu1 }
  0xe5   :  { %1626 = vpow2.f32 %v1387_v38  ;;  %v1390_v47 = vmul.f32 -1.442695, %v2209_v41  ;;  %v2218_v48 = vadd.f32 %v2164_v3, %v671_v42  ;;  %v2221_v49 = vadd.f32 %v2164_v3, %v703_v43  ;;  %v371_v50 = vpop.f32.mrb[7].mxu0  ;;  %v531_v51 = vpop.f32.mrb[7].mxu1 }
  0xe6   :  { %1628 = vpow2.f32 %v1419_v39  ;;  %v1422_v52 = vmul.f32 -1.442695, %v2214_v44  ;;  %v674_v55 = vmul.f32 %v1527_v45, %v2159_v1  ;;  %v706_v59 = vmul.f32 %v1575_v46, %v2159_v1 }
  0xe7   :  { %1630 = vpow2.f32 %v1390_v47  ;;  %v1389_v53 = vmul.f32 -1.442695, %v2218_v48  ;;  %v1421_v54 = vmul.f32 -1.442695, %v2221_v49  ;;  %v673_v4 = vmul.f32 %v2159_v1, %v371_v50 }
  0xe8   :  { %1632 = vpow2.f32 %v1422_v52  ;;  %v1530_v56 = vpop.f32.mrb[8].mxu0  ;;  %v1578_v57 = vpop.f32.mrb[8].mxu1  ;;  %v2230_v7 = vadd.f32 %v2164_v3, %v674_v55  ;;  %v2233_v16 = vadd.f32 %v2164_v3, %v706_v59  ;;  %v705_v17 = vmul.f32 %v2159_v1, %v531_v51 }
  0xe9   :  { %v1615_v58 = vpop.eup %1614  ;;  %1634 = vpow2.f32 %v1389_v53  ;;  %v381_v60 = vpop.f32.mrb[9].mxu0  ;;  %v676_v21 = vmul.f32 %v1530_v56, %v2159_v1  ;;  %v2238_v25 = vadd.f32 %v2164_v3, %v673_v4  ;;  %v708_v33 = vmul.f32 %v1578_v57, %v2159_v1 }
  0xea   :  { %v541_v61 = vpop.f32.mrb[9].mxu1  ;;  %v1617_v62 = vpop.eup %1616  ;;  %v995_v63 = vadd.f32 1.0, %v1615_v58  ;;  %1636 = vpow2.f32 %v1421_v54  ;;  %v1392_v32 = vmul.f32 -1.442695, %v2230_v7  ;;  %v1424_v38 = vmul.f32 -1.442695, %v2233_v16 }
  0xeb   :  { %v1619_v0 = vpop.eup %1618  ;;  %v1027_v2 = vadd.f32 1.0, %v1617_v62  ;;  %v2246_v39 = vadd.f32 %v2164_v3, %v705_v17  ;;  %v2253_v46 = vadd.f32 %v2164_v3, %v676_v21  ;;  %v675_v47 = vmul.f32 %v2159_v1, %v381_v60 }
  0xec   :  { %v1621_v5 = vpop.eup %1620  ;;  %1638 = vrcp.f32 %v995_v63  ;;  %v994_v6 = vadd.f32 1.0, %v1619_v0  ;;  %v1533_v8 = vpop.f32.mrb[10].mxu0  ;;  %v1391_v52 = vmul.f32 -1.442695, %v2238_v25  ;;  %v707_v53 = vmul.f32 %v2159_v1, %v541_v61 }
  0xed   :  { %v1581_v9 = vpop.f32.mrb[10].mxu1  ;;  %v1623_v10 = vpop.eup %1622  ;;  %1640 = vrcp.f32 %v1027_v2  ;;  %v1026_v15 = vadd.f32 1.0, %v1621_v5  ;;  %v2259_v56 = vadd.f32 %v2164_v3, %v708_v33  ;;  %v678_v57 = vmul.f32 %v1533_v8, %v2159_v1 }
  0xee   :  { %v391_v18 = vpop.f32.mrb[11].mxu0  ;;  %v1625_v19 = vpop.eup %1624  ;;  %1642 = vrcp.f32 %v994_v6  ;;  %v997_v20 = vadd.f32 1.0, %v1623_v10  ;;  %v1423_v62 = vmul.f32 -1.442695, %v2246_v39  ;;  %v710_v63 = vmul.f32 %v1581_v9, %v2159_v1 }
  0xef   :  { %v551_v22 = vpop.f32.mrb[11].mxu1  ;;  %v1627_v23 = vpop.eup %1626  ;;  %1644 = vrcp.f32 %v1026_v15  ;;  %v1029_v24 = vadd.f32 1.0, %v1625_v19  ;;  %v1394_v4 = vmul.f32 -1.442695, %v2253_v46  ;;  %v2274_v5 = vadd.f32 %v2164_v3, %v675_v47 }
  0xf0   :  { %v1629_v26 = vpop.eup %1628  ;;  %1646 = vrcp.f32 %v997_v20  ;;  %v996_v31 = vadd.f32 1.0, %v1627_v23  ;;  %v1536_v34 = vpop.f32.mrb[12].mxu0  ;;  %v677_v6 = vmul.f32 %v2159_v1, %v391_v18  ;;  %v2279_v15 = vadd.f32 %v2164_v3, %v707_v53 }
  0xf1   :  { %v2242_v35 = vpop.f32.mrb[12].mxu1  ;;  %v1631_v36 = vpop.eup %1630  ;;  %1648 = vrcp.f32 %v1029_v24  ;;  %v1028_v37 = vadd.f32 1.0, %v1629_v26  ;;  %v709_v9 = vmul.f32 %v2159_v1, %v551_v22  ;;  %v2284_v20 = vadd.f32 %v2164_v3, %v678_v57 }
  0xf2   :  { %v2248_v40 = vpop.f32.mrb[13].mxu0  ;;  %v2250_v42 = vpop.f32.mrb[13].mxu1  ;;  %1650 = vrcp.f32 %v996_v31  ;;  %v999_v45 = vadd.f32 1.0, %v1631_v36  ;;  %v680_v21 = vmul.f32 %v1536_v34, %v2159_v1  ;;  %v2298_v24 = vadd.f32 %v2164_v3, %v710_v63 }
  0xf3   :  { %v1633_v43 = vpop.eup %1632  ;;  %1652 = vrcp.f32 %v1028_v37  ;;  %v2311_v34 = vadd.f32 %v2164_v3, %v677_v6  ;;  %v1396_v47 = vmul.f32 -1.442695, %v2284_v20 }
  0xf4   :  { %v1635_v50 = vpop.eup %1634  ;;  %v1031_v51 = vadd.f32 1.0, %v1633_v43  ;;  %1654 = vrcp.f32 %v999_v45  ;;  %v2262_v58 = vpop.f32.mrb[14].mxu0  ;;  %v2320_v43 = vadd.f32 %v2164_v3, %v709_v9 }
  0xf5   :  { %v1637_v54 = vpop.eup %1636  ;;  %v998_v55 = vadd.f32 1.0, %v1635_v50  ;;  %v2264_v59 = vpop.f32.mrb[14].mxu1  ;;  %v2329_v50 = vadd.f32 %v2164_v3, %v680_v21 }
  0xf6   :  { %1656 = vrcp.f32 %v1031_v51  ;;  %v1030_v60 = vadd.f32 1.0, %v1637_v54  ;;  %v2268_v0 = vpop.f32.mrb[15].mxu0  ;;  %v2270_v61 = vpop.f32.mrb[15].mxu1 }
  0xf7   :  { %v1639_v2 = vpop.eup %1638  ;;  %1658 = vrcp.f32 %v998_v55  ;;  %v1398_v6 = vmul.f32 -1.442695, %v2329_v50 }
  0xf8   :  { %v1641_v8 = vpop.eup %1640  ;;  %v1187_v10 = vmul.f32 %v1639_v2, %v2171_v11  ;;  %1660 = vrcp.f32 %v1030_v60  ;;  %v2287_v23 = vpop.f32.mrb[16].mxu0  ;;  %v1427_v2 = vmul.f32 -1.442695, %v2320_v43 }
  0xf9   :  { %v1643_v17 = vpop.eup %1642  ;;  %v1219_v19 = vmul.f32 %v1641_v8, %v2174_v12  ;;  %1662 = vpow2.f32 %v1392_v32  ;;  %v2289_v18 = vpop.f32.mrb[16].mxu1  ;;  %v1426_v12 = vmul.f32 -1.442695, %v2259_v56 }
  0xfa   :  { %v1645_v11 = vpop.eup %1644  ;;  %1252 = vst.msk [vmem:[%s2926_s4 + $0x8] sm:$0xff] %vm1250_vm1, %v1187_v10  ;;  %v1186_v22 = vmul.f32 %v1643_v17, %v2177_v13  ;;  %1664 = vpow2.f32 %v1424_v38  ;;  %v2300_v26 = vpop.f32.mrb[17].mxu0  ;;  %v1393_v13 = vmul.f32 -1.442695, %v2274_v5  ;;  %v1425_v38 = vmul.f32 -1.442695, %v2279_v15 }
  0xfb   :  { %v2302_v31 = vpop.f32.mrb[17].mxu1  ;;  %v1647_v32 = vpop.eup %1646  ;;  %1284 = vst.msk [vmem:[%s2926_s4 + $0x108] sm:$0xff] %vm1250_vm1, %v1219_v19  ;;  %v1218_v33 = vmul.f32 %v1645_v11, %v2180_v14  ;;  %1666 = vpow2.f32 %v1391_v52  ;;  %v712_v11 = vmul.f32 %v2242_v35, %v2159_v1 }
  0xfc   :  { %v1649_v36 = vpop.eup %1648  ;;  %1251 = vst.msk [vmem:[%s2926_s4] sm:$0xff] %vm1250_vm1, %v1186_v22  ;;  %v1189_v37 = vmul.f32 %v1647_v32, %v2191_v27  ;;  %1668 = vpow2.f32 %v1423_v62  ;;  %v2331_v27 = vpop.f32.mrb[18].mxu0  ;;  %v1395_v62 = vmul.f32 -1.442695, %v2311_v34 }
  0xfd   :  { %v1651_v14 = vpop.eup %1650  ;;  %1283 = vst.msk [vmem:[%s2926_s4 + $0x100] sm:$0xff] %vm1250_vm1, %v1218_v33  ;;  %v1221_v45 = vmul.f32 %v1649_v36, %v2194_v28  ;;  %1670 = vpow2.f32 %v1394_v4  ;;  %v2333_v51 = vpop.f32.mrb[18].mxu1  ;;  %v1428_v28 = vmul.f32 -1.442695, %v2298_v24 }
  0xfe   :  { %v1653_v52 = vpop.eup %1652  ;;  %1254 = vst.msk [vmem:[%s2926_s4 + $0x18] sm:$0xff] %vm1250_vm1, %v1189_v37  ;;  %v1188_v53 = vmul.f32 %v1651_v14, %v2197_v29  ;;  %1672 = vpow2.f32 %v1426_v12  ;;  %v2341_v54 = vpop.f32.mrb[19].mxu0  ;;  %v679_v12 = vmul.f32 %v2159_v1, %v2248_v40  ;;  %v711_v37 = vmul.f32 %v2159_v1, %v2250_v42 }
  0xff   :  { %v2343_v55 = vpop.f32.mrb[19].mxu1  ;;  %v1655_v57 = vpop.eup %1654  ;;  %1286 = vst.msk [vmem:[%s2926_s4 + $0x118] sm:$0xff] %vm1250_vm1, %v1221_v45  ;;  %v1220_v60 = vmul.f32 %v1653_v52, %v2200_v30  ;;  %1674 = vpow2.f32 %v1393_v13  ;;  %v2402_v45 = vadd.f32 %v2164_v3, %v712_v11  ;;  %v714_v42 = vmul.f32 %v2264_v59, %v2159_v1 }
 0x100   :  { %v1657_v63 = vpop.eup %1656  ;;  %1253 = vst.msk [vmem:[%s2926_s4 + $0x10] sm:$0xff] %vm1250_vm1, %v1188_v53  ;;  %v1191_v29 = vmul.f32 %v1655_v57, %v2209_v41  ;;  %1676 = vpow2.f32 %v1425_v38  ;;  %v2363_v8 = vpop.f32.mrb[20].mxu0  ;;  %v2409_v57 = vadd.f32 %v2164_v3, %v679_v12 }
 0x101   :  { %v1659_v4 = vpop.eup %1658  ;;  %1285 = vst.msk [vmem:[%s2926_s4 + $0x110] sm:$0xff] %vm1250_vm1, %v1220_v60  ;;  %v1223_v30 = vmul.f32 %v1657_v63, %v2214_v44  ;;  %1678 = vpow2.f32 %v1396_v47  ;;  %v2365_v10 = vpop.f32.mrb[20].mxu1  ;;  %v682_v47 = vmul.f32 %v2262_v58, %v2159_v1  ;;  %v681_v63 = vmul.f32 %v2159_v1, %v2268_v0 }
 0x102   :  { %v1661_v9 = vpop.eup %1660  ;;  %1256 = vst.msk [vmem:[%s2926_s4 + $0x28] sm:$0xff] %vm1250_vm1, %v1191_v29  ;;  %v1190_v41 = vmul.f32 %v1659_v4, %v2218_v48  ;;  %1680 = vpow2.f32 %v1428_v28  ;;  %v2372_v17 = vpop.f32.mrb[21].mxu0 }
 0x103   :  { %v2374_v19 = vpop.f32.mrb[21].mxu1  ;;  %v1663_v44 = vpop.eup %1662  ;;  %1288 = vst.msk [vmem:[%s2926_s4 + $0x128] sm:$0xff] %vm1250_vm1, %v1223_v30  ;;  %v1222_v21 = vmul.f32 %v1661_v9, %v2221_v49  ;;  %1682 = vpow2.f32 %v1395_v62  ;;  %v2420_v30 = vadd.f32 %v2164_v3, %v711_v37  ;;  %v2428_v0 = vadd.f32 %v2164_v3, %v682_v47 }
 0x104   :  { %v1665_v22 = vpop.eup %1664  ;;  %1255 = vst.msk [vmem:[%s2926_s4 + $0x20] sm:$0xff] %vm1250_vm1, %v1190_v41  ;;  %v1001_v48 = vadd.f32 1.0, %v1663_v44  ;;  %1684 = vpow2.f32 %v1427_v2  ;;  %v2393_v35 = vpop.f32.mrb[22].mxu0  ;;  %v1430_v44 = vmul.f32 -1.442695, %v2402_v45  ;;  %v684_v47 = vmul.f32 %v2287_v23, %v2159_v1 }
 0x105   :  { %v1667_v32 = vpop.eup %1666  ;;  %1287 = vst.msk [vmem:[%s2926_s4 + $0x120] sm:$0xff] %vm1250_vm1, %v1222_v21  ;;  %v1033_v49 = vadd.f32 1.0, %v1665_v22  ;;  %1686 = vpow2.f32 %v1398_v6  ;;  %v2395_v33 = vpop.f32.mrb[22].mxu1  ;;  %v1397_v22 = vmul.f32 -1.442695, %v2409_v57  ;;  %v683_v23 = vmul.f32 %v2159_v1, %v2300_v26 }
 0x106   :  { %v1669_v13 = vpop.eup %1668  ;;  %1688 = vrcp.f32 %v1001_v48  ;;  %v1000_v36 = vadd.f32 1.0, %v1667_v32  ;;  %v2399_v38 = vpop.f32.mrb[23].mxu0  ;;  %v2432_v48 = vadd.f32 %v2164_v3, %v714_v42  ;;  %v2468_v26 = vadd.f32 %v2164_v3, %v684_v47 }
 0x107   :  { %v1671_v40 = vpop.eup %1670  ;;  %1690 = vrcp.f32 %v1033_v49  ;;  %v1032_v14 = vadd.f32 1.0, %v1669_v13  ;;  %v2406_v52 = vpop.f32.mrb[23].mxu1  ;;  %v2435_v49 = vadd.f32 %v2164_v3, %v681_v63  ;;  %v713_v13 = vmul.f32 %v2159_v1, %v2270_v61 }
 0x108   :  { %v1673_v53 = vpop.eup %1672  ;;  %1692 = vrcp.f32 %v1000_v36  ;;  %v1003_v28 = vadd.f32 1.0, %v1671_v40  ;;  %v2415_v29 = vpop.f32.mrb[24].mxu0  ;;  %v716_v61 = vmul.f32 %v2289_v18, %v2159_v1  ;;  %v715_v18 = vmul.f32 %v2159_v1, %v2302_v31 }
 0x109   :  { %v1675_v60 = vpop.eup %1674  ;;  %1694 = vrcp.f32 %v1032_v14  ;;  %v1035_v62 = vadd.f32 1.0, %v1673_v53  ;;  %v2417_v58 = vpop.f32.mrb[24].mxu1  ;;  %v1429_v14 = vmul.f32 -1.442695, %v2420_v30  ;;  %v718_v47 = vmul.f32 %v2333_v51, %v2159_v1 }
 0x10a   :  { %v1677_v2 = vpop.eup %1676  ;;  %1696 = vrcp.f32 %v1003_v28  ;;  %v1002_v4 = vadd.f32 1.0, %v1675_v60  ;;  %v2422_v6 = vpop.f32.mrb[25].mxu0 }
 0x10b   :  { %v2424_v9 = vpop.f32.mrb[25].mxu1  ;;  %v1679_v59 = vpop.eup %1678  ;;  %1698 = vrcp.f32 %v1035_v62  ;;  %v1034_v41 = vadd.f32 1.0, %v1677_v2  ;;  %v1400_v62 = vmul.f32 -1.442695, %v2428_v0 }
 0x10c   :  { %v1681_v21 = vpop.eup %1680  ;;  %1700 = vrcp.f32 %v1002_v4  ;;  %v1005_v11 = vadd.f32 1.0, %v1679_v59  ;;  %v2439_v36 = vpop.f32.mrb[26].mxu0  ;;  %v1432_v59 = vmul.f32 -1.442695, %v2432_v48 }
 0x10d   :  { %v1683_v12 = vpop.eup %1682  ;;  %1702 = vrcp.f32 %v1034_v41  ;;  %v1037_v32 = vadd.f32 1.0, %v1681_v21  ;;  %v2444_v53 = vpop.f32.mrb[26].mxu1 }
 0x10e   :  { %v1685_v37 = vpop.eup %1684  ;;  %1704 = vrcp.f32 %v1005_v11  ;;  %v1004_v40 = vadd.f32 1.0, %v1683_v12  ;;  %v2446_v28 = vpop.f32.mrb[27].mxu0  ;;  %v2458_v11 = vadd.f32 %v2164_v3, %v713_v13 }
 0x10f   :  { %v1687_v42 = vpop.eup %1686  ;;  %1706 = vrcp.f32 %v1037_v32  ;;  %v1036_v60 = vadd.f32 1.0, %v1685_v37  ;;  %v2451_v63 = vpop.f32.mrb[27].mxu1 }
 0x110   :  { %v1689_v2 = vpop.eup %1688  ;;  %1708 = vrcp.f32 %v1004_v40  ;;  %v1007_v4 = vadd.f32 1.0, %v1687_v42  ;;  %v2462_v12 = vpop.f32.mrb[28].mxu0 }
 0x111   :  { %v1691_v41 = vpop.eup %1690  ;;  %v1193_v21 = vmul.f32 %v1689_v2, %v2230_v7  ;;  %1710 = vrcp.f32 %v1036_v60  ;;  %v2464_v32 = vpop.f32.mrb[28].mxu1  ;;  %v686_v7 = vmul.f32 %v2331_v27, %v2159_v1 }
 0x112   :  { %v1693_v37 = vpop.eup %1692  ;;  %v1225_v40 = vmul.f32 %v1691_v41, %v2233_v16  ;;  %1712 = vrcp.f32 %v1007_v4  ;;  %v2472_v42 = vpop.f32.mrb[29].mxu0  ;;  %v2482_v16 = vadd.f32 %v2164_v3, %v716_v61  ;;  %v1399_v4 = vmul.f32 -1.442695, %v2435_v49 }
 0x113   :  { %v2474_v13 = vpop.f32.mrb[29].mxu1  ;;  %v1695_v60 = vpop.eup %1694  ;;  %1258 = vst.msk [vmem:[%s2926_s4 + $0x38] sm:$0xff] %vm1250_vm1, %v1193_v21  ;;  %v1192_v31 = vmul.f32 %v1693_v37, %v2238_v25  ;;  %1714 = vpow2.f32 %v1430_v44  ;;  %v2493_v25 = vadd.f32 %v2164_v3, %v683_v23  ;;  %v1431_v61 = vmul.f32 -1.442695, %v2458_v11 }
 0x114   :  { %v1697_v27 = vpop.eup %1696  ;;  %1290 = vst.msk [vmem:[%s2926_s4 + $0x138] sm:$0xff] %vm1250_vm1, %v1225_v40  ;;  %v1224_v2 = vmul.f32 %v1695_v60, %v2246_v39  ;;  %1716 = vpow2.f32 %v1397_v22  ;;  %v2502_v41 = vadd.f32 %v2164_v3, %v715_v18  ;;  %v2504_v39 = vpop.f32.mrb[30].mxu0 }
 0x115   :  { %v1699_v44 = vpop.eup %1698  ;;  %1257 = vst.msk [vmem:[%s2926_s4 + $0x30] sm:$0xff] %vm1250_vm1, %v1192_v31  ;;  %v1195_v51 = vmul.f32 %v1697_v27, %v2253_v46  ;;  %1718 = vpow2.f32 %v1429_v14  ;;  %v2506_v22 = vpop.f32.mrb[30].mxu1  ;;  %v1402_v46 = vmul.f32 -1.442695, %v2468_v26  ;;  %v2515_v14 = vadd.f32 %v2164_v3, %v686_v7 }
 0x116   :  { %v1701_v23 = vpop.eup %1700  ;;  %1289 = vst.msk [vmem:[%s2926_s4 + $0x130] sm:$0xff] %vm1250_vm1, %v1224_v2  ;;  %v1227_v21 = vmul.f32 %v1699_v44, %v2259_v56  ;;  %1720 = vpow2.f32 %v1400_v62  ;;  %v2517_v18 = vpop.f32.mrb[31].mxu0  ;;  %v1434_v56 = vmul.f32 -1.442695, %v2482_v16  ;;  %v2528_v62 = vadd.f32 %v2164_v3, %v718_v47 }
 0x117   :  { %v2519_v37 = vpop.f32.mrb[31].mxu1  ;;  %v1703_v40 = vpop.eup %1702  ;;  %1260 = vst.msk [vmem:[%s2926_s4 + $0x48] sm:$0xff] %vm1250_vm1, %v1195_v51  ;;  %v1194_v60 = vmul.f32 %v1701_v23, %v2274_v5  ;;  %1722 = vpow2.f32 %v1432_v59  ;;  %v1401_v27 = vmul.f32 -1.442695, %v2493_v25  ;;  %v1433_v59 = vmul.f32 -1.442695, %v2502_v41 }
 0x118   :  { %v1705_v7 = vpop.eup %1704  ;;  %1292 = vst.msk [vmem:[%s2926_s4 + $0x148] sm:$0xff] %vm1250_vm1, %v1227_v21  ;;  %v1226_v31 = vmul.f32 %v1703_v40, %v2279_v15  ;;  %1724 = vpow2.f32 %v1399_v4  ;;  %v1404_v4 = vmul.f32 -1.442695, %v2515_v14  ;;  %v1436_v51 = vmul.f32 -1.442695, %v2528_v62 }
 0x119   :  { %v1707_v2 = vpop.eup %1706  ;;  %1259 = vst.msk [vmem:[%s2926_s4 + $0x40] sm:$0xff] %vm1250_vm1, %v1194_v60  ;;  %v1197_v5 = vmul.f32 %v1705_v7, %v2284_v20  ;;  %1726 = vpow2.f32 %v1431_v61  ;;  %v685_v21 = vmul.f32 %v2159_v1, %v2341_v54  ;;  %v717_v40 = vmul.f32 %v2159_v1, %v2343_v55 }
 0x11a   :  { %v1709_v47 = vpop.eup %1708  ;;  %1291 = vst.msk [vmem:[%s2926_s4 + $0x140] sm:$0xff] %vm1250_vm1, %v1226_v31  ;;  %v1229_v15 = vmul.f32 %v1707_v2, %v2298_v24  ;;  %1728 = vpow2.f32 %v1402_v46  ;;  %v688_v54 = vmul.f32 %v2363_v8, %v2159_v1  ;;  %v720_v31 = vmul.f32 %v2365_v10, %v2159_v1 }
 0x11b   :  { %v1711_v44 = vpop.eup %1710  ;;  %1262 = vst.msk [vmem:[%s2926_s4 + $0x58] sm:$0xff] %vm1250_vm1, %v1197_v5  ;;  %v1196_v20 = vmul.f32 %v1709_v47, %v2311_v34  ;;  %1730 = vpow2.f32 %v1434_v56  ;;  %v2581_v2 = vadd.f32 %v2164_v3, %v685_v21  ;;  %v687_v5 = vmul.f32 %v2159_v1, %v2372_v17 }
 0x11c   :  { %v1713_v61 = vpop.eup %1712  ;;  %1294 = vst.msk [vmem:[%s2926_s4 + $0x158] sm:$0xff] %vm1250_vm1, %v1229_v15  ;;  %v1228_v24 = vmul.f32 %v1711_v44, %v2320_v43  ;;  %1732 = vpow2.f32 %v1401_v27  ;;  %v2586_v8 = vadd.f32 %v2164_v3, %v717_v40  ;;  %v2589_v10 = vadd.f32 %v2164_v3, %v688_v54 }
 0x11d   :  { %v1715_v23 = vpop.eup %1714  ;;  %1261 = vst.msk [vmem:[%s2926_s4 + $0x50] sm:$0xff] %vm1250_vm1, %v1196_v20  ;;  %v1199_v34 = vmul.f32 %v1713_v61, %v2329_v50  ;;  %1734 = vpow2.f32 %v1433_v59  ;;  %v690_v54 = vmul.f32 %v2393_v35, %v2159_v1 }
 0x11e   :  { %v1717_v46 = vpop.eup %1716  ;;  %1293 = vst.msk [vmem:[%s2926_s4 + $0x150] sm:$0xff] %vm1250_vm1, %v1228_v24  ;;  %v1039_v43 = vadd.f32 1.0, %v1715_v23  ;;  %1736 = vpow2.f32 %v1404_v4  ;;  %v1403_v24 = vmul.f32 -1.442695, %v2581_v2  ;;  %v2596_v23 = vadd.f32 %v2164_v3, %v687_v5 }
 0x11f   :  { %v1719_v60 = vpop.eup %1718  ;;  %1264 = vst.msk [vmem:[%s2926_s4 + $0x68] sm:$0xff] %vm1250_vm1, %v1199_v34  ;;  %v1006_v50 = vadd.f32 1.0, %v1717_v46  ;;  %1738 = vpow2.f32 %v1436_v51  ;;  %v2592_v51 = vadd.f32 %v2164_v3, %v720_v31  ;;  %v1435_v46 = vmul.f32 -1.442695, %v2586_v8 }
 0x120   :  { %v1721_v56 = vpop.eup %1720  ;;  %1740 = vrcp.f32 %v1039_v43  ;;  %v1038_v7 = vadd.f32 1.0, %v1719_v60  ;;  %v719_v43 = vmul.f32 %v2159_v1, %v2374_v19  ;;  %v1405_v19 = vmul.f32 -1.442695, %v2596_v23 }
 0x121   :  { %v1723_v27 = vpop.eup %1722  ;;  %1742 = vrcp.f32 %v1006_v50  ;;  %v1009_v55 = vadd.f32 1.0, %v1721_v56  ;;  %v1406_v50 = vmul.f32 -1.442695, %v2589_v10  ;;  %v1438_v31 = vmul.f32 -1.442695, %v2592_v51 }
 0x122   :  { %v1725_v59 = vpop.eup %1724  ;;  %1744 = vrcp.f32 %v1038_v7  ;;  %v1041_v47 = vadd.f32 1.0, %v1723_v27  ;;  %v722_v27 = vmul.f32 %v2395_v33, %v2159_v1  ;;  %v2611_v35 = vadd.f32 %v2164_v3, %v719_v43 }
 0x123   :  { %v1727_v15 = vpop.eup %1726  ;;  %1746 = vrcp.f32 %v1009_v55  ;;  %v1008_v4 = vadd.f32 1.0, %v1725_v59  ;;  %v689_v59 = vmul.f32 %v2159_v1, %v2399_v38 }
 0x124   :  { %v1729_v44 = vpop.eup %1728  ;;  %1748 = vrcp.f32 %v1041_v47  ;;  %v1040_v20 = vadd.f32 1.0, %v1727_v15 }
 0x125   :  { %v1731_v61 = vpop.eup %1730  ;;  %1750 = vrcp.f32 %v1008_v4  ;;  %v1011_v17 = vadd.f32 1.0, %v1729_v44  ;;  %v721_v4 = vmul.f32 %v2159_v1, %v2406_v52  ;;  %v724_v52 = vmul.f32 %v2417_v58, %v2159_v1 }
 0x126   :  { %v1733_v34 = vpop.eup %1732  ;;  %1752 = vrcp.f32 %v1040_v20  ;;  %v1043_v21 = vadd.f32 1.0, %v1731_v61  ;;  %v2617_v20 = vadd.f32 %v2164_v3, %v690_v54  ;;  %v692_v61 = vmul.f32 %v2415_v29, %v2159_v1 }
 0x127   :  { %v1735_v40 = vpop.eup %1734  ;;  %1754 = vrcp.f32 %v1011_v17  ;;  %v1010_v60 = vadd.f32 1.0, %v1733_v34  ;;  %v2623_v34 = vadd.f32 %v2164_v3, %v722_v27  ;;  %v2633_v29 = vadd.f32 %v2164_v3, %v689_v59 }
 0x128   :  { %v1737_v56 = vpop.eup %1736  ;;  %1756 = vrcp.f32 %v1043_v21  ;;  %v1042_v7 = vadd.f32 1.0, %v1735_v40  ;;  %v1437_v40 = vmul.f32 -1.442695, %v2611_v35  ;;  %v2653_v54 = vadd.f32 %v2164_v3, %v692_v61 }
 0x129   :  { %v1739_v55 = vpop.eup %1738  ;;  %1758 = vrcp.f32 %v1010_v60  ;;  %v1013_v5 = vadd.f32 1.0, %v1737_v56  ;;  %v1408_v60 = vmul.f32 -1.442695, %v2617_v20  ;;  %v1440_v56 = vmul.f32 -1.442695, %v2623_v34 }
 0x12a   :  { %v1741_v47 = vpop.eup %1740  ;;  %1760 = vrcp.f32 %v1042_v7  ;;  %v1045_v15 = vadd.f32 1.0, %v1739_v55  ;;  %v2662_v7 = vadd.f32 %v2164_v3, %v724_v52  ;;  %v1407_v27 = vmul.f32 -1.442695, %v2633_v29 }
 0x12b   :  { %v1743_v44 = vpop.eup %1742  ;;  %v1231_v33 = vmul.f32 %v1741_v47, %v2402_v45  ;;  %1762 = vrcp.f32 %v1013_v5  ;;  %v723_v61 = vmul.f32 %v2159_v1, %v2424_v9  ;;  %v726_v9 = vmul.f32 %v2444_v53, %v2159_v1 }
 0x12c   :  { %v1745_v38 = vpop.eup %1744  ;;  %v1198_v17 = vmul.f32 %v1743_v44, %v2409_v57  ;;  %1764 = vrcp.f32 %v1045_v15  ;;  %v691_v57 = vmul.f32 %v2159_v1, %v2422_v6  ;;  %v1442_v47 = vmul.f32 -1.442695, %v2662_v7 }
 0x12d   :  { %v1747_v21 = vpop.eup %1746  ;;  %1296 = vst.msk [vmem:[%s2926_s4 + $0x168] sm:$0xff] %vm1250_vm1, %v1231_v33  ;;  %v1230_v45 = vmul.f32 %v1745_v38, %v2420_v30  ;;  %1766 = vpow2.f32 %v1403_v24  ;;  %v2644_v30 = vadd.f32 %v2164_v3, %v721_v4 }
 0x12e   :  { %v1749_v43 = vpop.eup %1748  ;;  %1263 = vst.msk [vmem:[%s2926_s4 + $0x60] sm:$0xff] %vm1250_vm1, %v1198_v17  ;;  %v1201_v58 = vmul.f32 %v1747_v21, %v2428_v0  ;;  %1768 = vpow2.f32 %v1435_v46  ;;  %v2671_v55 = vadd.f32 %v2164_v3, %v691_v57  ;;  %v694_v17 = vmul.f32 %v2439_v36, %v2159_v1 }
 0x12f   :  { %v1751_v24 = vpop.eup %1750  ;;  %1295 = vst.msk [vmem:[%s2926_s4 + $0x160] sm:$0xff] %vm1250_vm1, %v1230_v45  ;;  %v1233_v6 = vmul.f32 %v1749_v43, %v2432_v48  ;;  %1770 = vpow2.f32 %v1406_v50  ;;  %v1439_v5 = vmul.f32 -1.442695, %v2644_v30  ;;  %v693_v57 = vmul.f32 %v2159_v1, %v2446_v28 }
 0x130   :  { %v1753_v0 = vpop.eup %1752  ;;  %1266 = vst.msk [vmem:[%s2926_s4 + $0x78] sm:$0xff] %vm1250_vm1, %v1201_v58  ;;  %v1200_v46 = vmul.f32 %v1751_v24, %v2435_v49  ;;  %1772 = vpow2.f32 %v1438_v31  ;;  %v1409_v4 = vmul.f32 -1.442695, %v2671_v55  ;;  %v2726_v58 = vld [vmem:[%s2925_s3] ss:$0 sm:$0xff] }
 0x131   :  { %v1755_v48 = vpop.eup %1754  ;;  %1298 = vst.msk [vmem:[%s2926_s4 + $0x178] sm:$0xff] %vm1250_vm1, %v1233_v6  ;;  %v1232_v50 = vmul.f32 %v1753_v0, %v2458_v11  ;;  %1774 = vpow2.f32 %v1405_v19  ;;  %v1410_v11 = vmul.f32 -1.442695, %v2653_v54  ;;  %v2732_v6 = vadd.f32 %v2726_v58, %v694_v17 }
 0x132   :  { %v1757_v49 = vpop.eup %1756  ;;  %1265 = vst.msk [vmem:[%s2926_s4 + $0x70] sm:$0xff] %vm1250_vm1, %v1200_v46  ;;  %v1203_v31 = vmul.f32 %v1755_v48, %v2468_v26  ;;  %1776 = vpow2.f32 %v1437_v40  ;;  %v2729_v40 = vadd.f32 %v2726_v58, %v723_v61  ;;  %v2735_v28 = vadd.f32 %v2726_v58, %v726_v9  ;;  %v1871_v48 = vld [vmem:[%s2924_s2] ss:$0 sm:$0xff] }
 0x133   :  { %v1759_v59 = vpop.eup %1758  ;;  %1297 = vst.msk [vmem:[%s2926_s4 + $0x170] sm:$0xff] %vm1250_vm1, %v1232_v50  ;;  %v1235_v3 = vmul.f32 %v1757_v49, %v2482_v16  ;;  %1778 = vpow2.f32 %v1408_v60  ;;  %v725_v50 = vmul.f32 %v1871_v48, %v2451_v63  ;;  %v695_v63 = vmul.f32 %v1871_v48, %v2472_v42 }
 0x134   :  { %v1761_v19 = vpop.eup %1760  ;;  %1268 = vst.msk [vmem:[%s2926_s4 + $0x88] sm:$0xff] %vm1250_vm1, %v1203_v31  ;;  %v1202_v26 = vmul.f32 %v1759_v59, %v2493_v25  ;;  %1780 = vpow2.f32 %v1440_v56  ;;  %v2738_v56 = vadd.f32 %v2726_v58, %v693_v57  ;;  %v1441_v31 = vmul.f32 -1.442695, %v2729_v40 }
 0x135   :  { %v1763_v15 = vpop.eup %1762  ;;  %1300 = vst.msk [vmem:[%s2926_s4 + $0x188] sm:$0xff] %vm1250_vm1, %v1235_v3  ;;  %v1234_v16 = vmul.f32 %v1761_v19, %v2502_v41  ;;  %1782 = vpow2.f32 %v1407_v27  ;;  %v728_v19 = vmul.f32 %v1871_v48, %v2464_v32  ;;  %v730_v9 = vmul.f32 %v1871_v48, %v2506_v22 }
 0x136   :  { %v1765_v44 = vpop.eup %1764  ;;  %1267 = vst.msk [vmem:[%s2926_s4 + $0x80] sm:$0xff] %vm1250_vm1, %v1202_v26  ;;  %v1205_v25 = vmul.f32 %v1763_v15, %v2515_v14  ;;  %1784 = vpow2.f32 %v1439_v5  ;;  %v696_v5 = vmul.f32 %v1871_v48, %v2462_v12  ;;  %v1444_v15 = vmul.f32 -1.442695, %v2735_v28 }
 0x137   :  { %v1767_v33 = vpop.eup %1766  ;;  %1299 = vst.msk [vmem:[%s2926_s4 + $0x180] sm:$0xff] %vm1250_vm1, %v1234_v16  ;;  %v1237_v41 = vmul.f32 %v1765_v44, %v2528_v62  ;;  %1786 = vpow2.f32 %v1410_v11  ;;  %v1412_v11 = vmul.f32 -1.442695, %v2732_v6  ;;  %v1411_v44 = vmul.f32 -1.442695, %v2738_v56 }
 0x138   :  { %v1769_v38 = vpop.eup %1768  ;;  %1270 = vst.msk [vmem:[%s2926_s4 + $0x98] sm:$0xff] %vm1250_vm1, %v1205_v25  ;;  %v1012_v14 = vadd.f32 1.0, %v1767_v33  ;;  %1788 = vpow2.f32 %v1442_v47  ;;  %v2752_v12 = vadd.f32 %v2726_v58, %v725_v50  ;;  %v2755_v32 = vadd.f32 %v2726_v58, %v696_v5 }
 0x139   :  { %v1771_v52 = vpop.eup %1770  ;;  %1302 = vst.msk [vmem:[%s2926_s4 + $0x198] sm:$0xff] %vm1250_vm1, %v1237_v41  ;;  %v1044_v62 = vadd.f32 1.0, %v1769_v38  ;;  %1790 = vpow2.f32 %v1409_v4  ;;  %v727_v41 = vmul.f32 %v1871_v48, %v2474_v13  ;;  %v2759_v42 = vadd.f32 %v2726_v58, %v728_v19 }
 0x13a   :  { %v1773_v21 = vpop.eup %1772  ;;  %1792 = vrcp.f32 %v1012_v14  ;;  %v1015_v45 = vadd.f32 1.0, %v1771_v52  ;;  %v698_v14 = vmul.f32 %v1871_v48, %v2504_v39  ;;  %v697_v57 = vmul.f32 %v1871_v48, %v2517_v18 }
 0x13b   :  { %v1775_v43 = vpop.eup %1774  ;;  %1794 = vrcp.f32 %v1044_v62  ;;  %v1047_v36 = vadd.f32 1.0, %v1773_v21  ;;  %v2764_v62 = vadd.f32 %v2726_v58, %v695_v63  ;;  %v729_v22 = vmul.f32 %v1871_v48, %v2519_v37 }
 0x13c   :  { %v1777_v24 = vpop.eup %1776  ;;  %1796 = vrcp.f32 %v1015_v45  ;;  %v1014_v53 = vadd.f32 1.0, %v1775_v43  ;;  %v1443_v45 = vmul.f32 -1.442695, %v2752_v12 }
 0x13d   :  { %v1779_v60 = vpop.eup %1778  ;;  %1798 = vrcp.f32 %v1047_v36  ;;  %v1046_v1 = vadd.f32 1.0, %v1777_v24  ;;  %v1414_v36 = vmul.f32 -1.442695, %v2755_v32  ;;  %v2786_v24 = vadd.f32 %v2726_v58, %v698_v14 }
 0x13e   :  { %v1781_v0 = vpop.eup %1780  ;;  %1800 = vrcp.f32 %v1014_v53  ;;  %v1017_v46 = vadd.f32 1.0, %v1779_v60  ;;  %v1446_v53 = vmul.f32 -1.442695, %v2759_v42  ;;  %v2795_v60 = vadd.f32 %v2726_v58, %v730_v9 }
 0x13f   :  { %v1783_v27 = vpop.eup %1782  ;;  %1802 = vrcp.f32 %v1046_v1  ;;  %v1049_v49 = vadd.f32 1.0, %v1781_v0  ;;  %v1413_v0 = vmul.f32 -1.442695, %v2764_v62 }
 0x140   :  { %v1785_v59 = vpop.eup %1784  ;;  %1804 = vrcp.f32 %v1017_v46  ;;  %v1016_v3 = vadd.f32 1.0, %v1783_v27  ;;  %v2804_v46 = vadd.f32 %v2726_v58, %v697_v57  ;;  %v2813_v27 = vadd.f32 %v2726_v58, %v729_v22 }
 0x141   :  { %v1787_v26 = vpop.eup %1786  ;;  %1806 = vrcp.f32 %v1049_v49  ;;  %v1048_v47 = vadd.f32 1.0, %v1785_v59 }
 0x142   :  { %v1789_v16 = vpop.eup %1788  ;;  %1808 = vrcp.f32 %v1016_v3  ;;  %v1019_v4 = vadd.f32 1.0, %v1787_v26  ;;  %v1415_v3 = vmul.f32 -1.442695, %v2804_v46  ;;  %v1447_v19 = vmul.f32 -1.442695, %v2813_v27 }
 0x143   :  { %v1791_v25 = vpop.eup %1790  ;;  %1810 = vrcp.f32 %v1048_v47  ;;  %v1051_v33 = vadd.f32 1.0, %v1789_v16 }
 0x144   :  { %v1793_v61 = vpop.eup %1792  ;;  %1812 = vrcp.f32 %v1019_v4  ;;  %v1018_v38 = vadd.f32 1.0, %v1791_v25 }
 0x145   :  { %v1795_v17 = vpop.eup %1794  ;;  %v1204_v52 = vmul.f32 %v1793_v61, %v2581_v2  ;;  %1814 = vrcp.f32 %v1051_v33  ;;  %v2776_v2 = vadd.f32 %v2726_v58, %v727_v41  ;;  %v1448_v58 = vmul.f32 -1.442695, %v2795_v60 }
 0x146   :  { %v1797_v21 = vpop.eup %1796  ;;  %v1236_v13 = vmul.f32 %v1795_v17, %v2586_v8  ;;  %1816 = vrcp.f32 %v1018_v38 }
 0x147   :  { %v1799_v43 = vpop.eup %1798  ;;  %1269 = vst.msk [vmem:[%s2926_s4 + $0x90] sm:$0xff] %vm1250_vm1, %v1204_v52  ;;  %v1207_v39 = vmul.f32 %v1797_v21, %v2589_v10  ;;  %1818 = vpow2.f32 %v1441_v31  ;;  %v1445_v50 = vmul.f32 -1.442695, %v2776_v2  ;;  %v1416_v31 = vmul.f32 -1.442695, %v2786_v24 }
 0x148   :  { %v1801_v8 = vpop.eup %1800  ;;  %1301 = vst.msk [vmem:[%s2926_s4 + $0x190] sm:$0xff] %vm1250_vm1, %v1236_v13  ;;  %v1239_v18 = vmul.f32 %v1799_v43, %v2592_v51  ;;  %1820 = vpow2.f32 %v1412_v11 }
 0x149   :  { %v1803_v10 = vpop.eup %1802  ;;  %1272 = vst.msk [vmem:[%s2926_s4 + $0xa8] sm:$0xff] %vm1250_vm1, %v1207_v39  ;;  %v1206_v37 = vmul.f32 %v1801_v8, %v2596_v23  ;;  %1822 = vpow2.f32 %v1444_v15 }
 0x14a   :  { %v1805_v51 = vpop.eup %1804  ;;  %1304 = vst.msk [vmem:[%s2926_s4 + $0x1a8] sm:$0xff] %vm1250_vm1, %v1239_v18  ;;  %v1238_v1 = vmul.f32 %v1803_v10, %v2611_v35  ;;  %1824 = vpow2.f32 %v1411_v44 }
 0x14b   :  { %v1807_v23 = vpop.eup %1806  ;;  %1271 = vst.msk [vmem:[%s2926_s4 + $0xa0] sm:$0xff] %vm1250_vm1, %v1206_v37  ;;  %v1209_v48 = vmul.f32 %v1805_v51, %v2617_v20  ;;  %1826 = vpow2.f32 %v1443_v45 }
 0x14c   :  { %v1809_v35 = vpop.eup %1808  ;;  %1303 = vst.msk [vmem:[%s2926_s4 + $0x1a0] sm:$0xff] %vm1250_vm1, %v1238_v1  ;;  %v1241_v49 = vmul.f32 %v1807_v23, %v2623_v34  ;;  %1828 = vpow2.f32 %v1414_v36 }
 0x14d   :  { %v1811_v5 = vpop.eup %1810  ;;  %1274 = vst.msk [vmem:[%s2926_s4 + $0xb8] sm:$0xff] %vm1250_vm1, %v1209_v48  ;;  %v1208_v20 = vmul.f32 %v1809_v35, %v2633_v29  ;;  %1830 = vpow2.f32 %v1446_v53 }
 0x14e   :  { %v1813_v59 = vpop.eup %1812  ;;  %1306 = vst.msk [vmem:[%s2926_s4 + $0x1b8] sm:$0xff] %vm1250_vm1, %v1241_v49  ;;  %v1240_v34 = vmul.f32 %v1811_v5, %v2644_v30  ;;  %1832 = vpow2.f32 %v1413_v0 }
 0x14f   :  { %v1815_v11 = vpop.eup %1814  ;;  %1273 = vst.msk [vmem:[%s2926_s4 + $0xb0] sm:$0xff] %vm1250_vm1, %v1208_v20  ;;  %v1211_v29 = vmul.f32 %v1813_v59, %v2653_v54  ;;  %1834 = vpow2.f32 %v1445_v50 }
 0x150   :  { %v1817_v26 = vpop.eup %1816  ;;  %1305 = vst.msk [vmem:[%s2926_s4 + $0x1b0] sm:$0xff] %vm1250_vm1, %v1240_v34  ;;  %v1243_v30 = vmul.f32 %v1815_v11, %v2662_v7  ;;  %1836 = vpow2.f32 %v1416_v31 }
 0x151   :  { %v1819_v47 = vpop.eup %1818  ;;  %1276 = vst.msk [vmem:[%s2926_s4 + $0xc8] sm:$0xff] %vm1250_vm1, %v1211_v29  ;;  %v1210_v54 = vmul.f32 %v1817_v26, %v2671_v55  ;;  %1838 = vpow2.f32 %v1448_v58 }
 0x152   :  { %v1821_v15 = vpop.eup %1820  ;;  %1308 = vst.msk [vmem:[%s2926_s4 + $0x1c8] sm:$0xff] %vm1250_vm1, %v1243_v30  ;;  %v1050_v63 = vadd.f32 1.0, %v1819_v47  ;;  %1840 = vpow2.f32 %v1415_v3 }
 0x153   :  { %v1823_v16 = vpop.eup %1822  ;;  %1275 = vst.msk [vmem:[%s2926_s4 + $0xc0] sm:$0xff] %vm1250_vm1, %v1210_v54  ;;  %v1021_v7 = vadd.f32 1.0, %v1821_v15  ;;  %1842 = vpow2.f32 %v1447_v19 }
 0x154   :  { %v1825_v4 = vpop.eup %1824  ;;  %1844 = vrcp.f32 %v1050_v63  ;;  %v1053_v55 = vadd.f32 1.0, %v1823_v16 }
 0x155   :  { %v1827_v44 = vpop.eup %1826  ;;  %1846 = vrcp.f32 %v1021_v7  ;;  %v1020_v25 = vadd.f32 1.0, %v1825_v4 }
 0x156   :  { %v1829_v33 = vpop.eup %1828  ;;  %1848 = vrcp.f32 %v1053_v55  ;;  %v1052_v41 = vadd.f32 1.0, %v1827_v44 }
 0x157   :  { %v1831_v61 = vpop.eup %1830  ;;  %1850 = vrcp.f32 %v1020_v25  ;;  %v1023_v38 = vadd.f32 1.0, %v1829_v33 }
 0x158   :  { %v1833_v14 = vpop.eup %1832  ;;  %1852 = vrcp.f32 %v1052_v41  ;;  %v1055_v17 = vadd.f32 1.0, %v1831_v61 }
 0x159   :  { %v1835_v52 = vpop.eup %1834  ;;  %1854 = vrcp.f32 %v1023_v38  ;;  %v1022_v9 = vadd.f32 1.0, %v1833_v14 }
 0x15a   :  { %v1837_v21 = vpop.eup %1836  ;;  %1856 = vrcp.f32 %v1055_v17  ;;  %v1054_v13 = vadd.f32 1.0, %v1835_v52 }
 0x15b   :  { %v1839_v45 = vpop.eup %1838  ;;  %1858 = vrcp.f32 %v1022_v9  ;;  %v1025_v57 = vadd.f32 1.0, %v1837_v21 }
 0x15c   :  { %v1841_v43 = vpop.eup %1840  ;;  %1860 = vrcp.f32 %v1054_v13  ;;  %v1057_v39 = vadd.f32 1.0, %v1839_v45 }
 0x15d   :  { %v1843_v22 = vpop.eup %1842  ;;  %1862 = vrcp.f32 %v1025_v57  ;;  %v1024_v8 = vadd.f32 1.0, %v1841_v43 }
 0x15e   :  { %v1845_v18 = vpop.eup %1844  ;;  %1864 = vrcp.f32 %v1057_v39  ;;  %v1056_v36 = vadd.f32 1.0, %v1843_v22 }
 0x15f   :  { %v1847_v10 = vpop.eup %1846  ;;  %v1242_v37 = vmul.f32 %v1845_v18, %v2729_v40  ;;  %1866 = vrcp.f32 %v1024_v8 }
 0x160   :  { %v1849_v53 = vpop.eup %1848  ;;  %v1213_v51 = vmul.f32 %v1847_v10, %v2732_v6  ;;  %1868 = vrcp.f32 %v1056_v36 }
 0x161   :  { %v1851_v1 = vpop.eup %1850  ;;  %1307 = vst.msk [vmem:[%s2926_s4 + $0x1c0] sm:$0xff] %vm1250_vm1, %v1242_v37  ;;  %v1245_v0 = vmul.f32 %v1849_v53, %v2735_v28 }
 0x162   :  { %v1853_v23 = vpop.eup %1852  ;;  %1278 = vst.msk [vmem:[%s2926_s4 + $0xd8] sm:$0xff] %vm1250_vm1, %v1213_v51  ;;  %v1212_v40 = vmul.f32 %v1851_v1, %v2738_v56 }
 0x163   :  { %v1855_v48 = vpop.eup %1854  ;;  %1310 = vst.msk [vmem:[%s2926_s4 + $0x1d8] sm:$0xff] %vm1250_vm1, %v1245_v0  ;;  %v1244_v6 = vmul.f32 %v1853_v23, %v2752_v12 }
 0x164   :  { %v1857_v50 = vpop.eup %1856  ;;  %1277 = vst.msk [vmem:[%s2926_s4 + $0xd0] sm:$0xff] %vm1250_vm1, %v1212_v40  ;;  %v1215_v28 = vmul.f32 %v1855_v48, %v2755_v32 }
 0x165   :  { %v1859_v35 = vpop.eup %1858  ;;  %1309 = vst.msk [vmem:[%s2926_s4 + $0x1d0] sm:$0xff] %vm1250_vm1, %v1244_v6  ;;  %v1247_v56 = vmul.f32 %v1857_v50, %v2759_v42 }
 0x166   :  { %v1861_v49 = vpop.eup %1860  ;;  %1280 = vst.msk [vmem:[%s2926_s4 + $0xe8] sm:$0xff] %vm1250_vm1, %v1215_v28  ;;  %v1214_v12 = vmul.f32 %v1859_v35, %v2764_v62 }
 0x167   :  { %v1863_v31 = vpop.eup %1862  ;;  %1312 = vst.msk [vmem:[%s2926_s4 + $0x1e8] sm:$0xff] %vm1250_vm1, %v1247_v56  ;;  %v1246_v32 = vmul.f32 %v1861_v49, %v2776_v2 }
 0x168   :  { %v1865_v5 = vpop.eup %1864  ;;  %1279 = vst.msk [vmem:[%s2926_s4 + $0xe0] sm:$0xff] %vm1250_vm1, %v1214_v12  ;;  %v1217_v42 = vmul.f32 %v1863_v31, %v2786_v24 }
 0x169   :  { %v1867_v20 = vpop.eup %1866  ;;  %1311 = vst.msk [vmem:[%s2926_s4 + $0x1e0] sm:$0xff] %vm1250_vm1, %v1246_v32  ;;  %v1249_v62 = vmul.f32 %v1865_v5, %v2795_v60 }
 0x16a   :  { %v1869_v58 = vpop.eup %1868  ;;  %1282 = vst.msk [vmem:[%s2926_s4 + $0xf8] sm:$0xff] %vm1250_vm1, %v1217_v42  ;;  %v1216_v2 = vmul.f32 %v1867_v20, %v2804_v46 }
 0x16b   :  { %1314 = vst.msk [vmem:[%s2926_s4 + $0x1f8] sm:$0xff] %vm1250_vm1, %v1249_v62  ;;  %v1248_v24 = vmul.f32 %v1869_v58, %v2813_v27 }
 0x16c   :  { %1281 = vst.msk [vmem:[%s2926_s4 + $0xf0] sm:$0xff] %vm1250_vm1, %v1216_v2 }
 0x16d   :  { %1313 = vst.msk [vmem:[%s2926_s4 + $0x1f0] sm:$0xff] %vm1250_vm1, %v1248_v24 }

// kernel: spp_forward.5
= control target key start
LH: loop header
LB: loop body
LE: loop exit
PB: predicated region body
PF: predicated region fallthrough
CT: control target
= control target key end

     0   :  { %vm350_vm0 = vcmask 1043456   ;;  %vm157_vm1 = vcmask 31744   ;;  %vm3329_vm2 = vcmask 64512   ;;  %s6573_s4 = inlined_call_operand.vmem [shape: f32[4,4,8], index: 4, kind: input, shape index: {}]   ;;  %s6574_s1 = inlined_call_operand.vmem [shape: f32[512,4], index: 1, kind: input, shape index: {}]   ;;  %s6575_s2 = inlined_call_operand.vmem [shape: f32[512,4], index: 2, kind: input, shape index: {}]   ;;  %s6576_s0 = inlined_call_operand.vmem [shape: f32[512,4], index: 0, kind: input, shape index: {}]   ;;  %s6577_s3 = inlined_call_operand.vmem [shape: f32[512,4], index: 3, kind: input, shape index: {}]   ;;  %s6578_s5 = inlined_call_operand.vmem [shape: f32[1,8], index: 5, kind: input, shape index: {}]   ;;  %s6579_s6 = inlined_call_operand.vmem [shape: f32[1,8], index: 6, kind: input, shape index: {}]   ;;  %s6580_s7 = inlined_call_operand.vmem [shape: f32[512,8], index: 7, kind: output, shape index: {}]  }
   0x1   :  { %v3398_v0 = vld [vmem:[%s6573_s4 + $0x4] sm:$0xf]  ;;  %v3529_v1 = vld [vmem:[%s6573_s4 + $0x8] sm:$0xf]  ;;  %v90_v5 = vld [vmem:[%s6573_s4] sm:$0xf] }
   0x2   :  { %v91_v2 = vld [vmem:[%s6574_s1] sm:$0xff]  ;;  %3987 = vmatprep.subr.msk.mxu1 %vm350_vm0, %v3398_v0  ;;  %4183 = vmatprep.subr.msk.mxu0 %vm350_vm0, %v3529_v1  ;;  %v92_v4 = vld [vmem:[%s6574_s1 + $0x8] sm:$0xff]  ;;  %v93_v8 = vld [vmem:[%s6574_s1 + $0x10] sm:$0xff] }
   0x3   :  { %v1319_v3 = vld [vmem:[%s6575_s2] sm:$0xff]  ;;  %3988 = vmatpush3.msk.msra.mxu1 %vm350_vm0, %v3398_v0  ;;  %3989 = vmatprep.mubr.msk.f32.mxu1 %vm157_vm1, %v91_v2  ;;  %v1320_v6 = vld [vmem:[%s6575_s2 + $0x8] sm:$0xff]  ;;  %v1321_v9 = vld [vmem:[%s6575_s2 + $0x10] sm:$0xff] }
   0x4   :  { %v3595_v7 = vld [vmem:[%s6573_s4 + $0xc] sm:$0xf]  ;;  %4184 = vmatpush3.msk.msra.mxu0 %vm350_vm0, %v3529_v1  ;;  %4185 = vmatprep.mubr.msk.f32.mxu0 %vm157_vm1, %v1319_v3  ;;  %v94_v10 = vld [vmem:[%s6574_s1 + $0x18] sm:$0xff]  ;;  %v95_v12 = vld [vmem:[%s6574_s1 + $0x20] sm:$0xff] }
   0x5   :  { %3990 = vmatmul.mubr.msk.f32.vlgmr.msra.gmra.mrb[0].mxu1 %vm157_vm1, %v92_v4  ;;  %4085 = vmatprep.subr.msk.mxu1 %vm350_vm0, %v90_v5  ;;  %v1322_v11 = vld [vmem:[%s6575_s2 + $0x18] sm:$0xff]  ;;  %v1323_v13 = vld [vmem:[%s6575_s2 + $0x20] sm:$0xff]  ;;  %v96_v14 = vld [vmem:[%s6574_s1 + $0x28] sm:$0xff] }
   0x6   :  { %4186 = vmatmul.mubr.msk.f32.vlgmr.msra.gmra.mrb[0].mxu0 %vm157_vm1, %v1320_v6  ;;  %4281 = vmatprep.subr.msk.mxu0 %vm350_vm0, %v3595_v7  ;;  %v1324_v15 = vld [vmem:[%s6575_s2 + $0x28] sm:$0xff]  ;;  %v97_v16 = vld [vmem:[%s6574_s1 + $0x30] sm:$0xff]  ;;  %v98_v18 = vld [vmem:[%s6574_s1 + $0x38] sm:$0xff] }
   0x7   :  { %4086 = vmatpush3.msk.msra.mxu1 %vm350_vm0, %v90_v5  ;;  %4282 = vmatpush3.msk.msra.mxu0 %vm350_vm0, %v3595_v7  ;;  %v1325_v17 = vld [vmem:[%s6575_s2 + $0x30] sm:$0xff]  ;;  %v1326_v19 = vld [vmem:[%s6575_s2 + $0x38] sm:$0xff]  ;;  %v99_v20 = vld [vmem:[%s6574_s1 + $0x40] sm:$0xff] }
   0x8   :  { %3992 = vmatprep.mubr.msk.f32.mxu1 %vm157_vm1, %v93_v8  ;;  %4188 = vmatprep.mubr.msk.f32.mxu0 %vm157_vm1, %v1321_v9  ;;  %v1327_v21 = vld [vmem:[%s6575_s2 + $0x40] sm:$0xff]  ;;  %v100_v22 = vld [vmem:[%s6574_s1 + $0x48] sm:$0xff]  ;;  %v101_v24 = vld [vmem:[%s6574_s1 + $0x50] sm:$0xff] }
   0x9   :  { %3993 = vmatmul.mubr.msk.f32.gmra.mrb[2].mxu1 %vm157_vm1, %v94_v10  ;;  %v1328_v23 = vld [vmem:[%s6575_s2 + $0x48] sm:$0xff]  ;;  %v1329_v25 = vld [vmem:[%s6575_s2 + $0x50] sm:$0xff]  ;;  %v102_v26 = vld [vmem:[%s6574_s1 + $0x58] sm:$0xff] }
   0xa   :  { %4189 = vmatmul.mubr.msk.f32.gmra.mrb[2].mxu0 %vm157_vm1, %v1322_v11  ;;  %3995 = vmatprep.mubr.msk.f32.mxu1 %vm157_vm1, %v95_v12  ;;  %v1330_v27 = vld [vmem:[%s6575_s2 + $0x58] sm:$0xff]  ;;  %v103_v28 = vld [vmem:[%s6574_s1 + $0x60] sm:$0xff]  ;;  %v104_v30 = vld [vmem:[%s6574_s1 + $0x68] sm:$0xff] }
   0xb   :  { %4191 = vmatprep.mubr.msk.f32.mxu0 %vm157_vm1, %v1323_v13  ;;  %v1331_v29 = vld [vmem:[%s6575_s2 + $0x60] sm:$0xff]  ;;  %v1332_v31 = vld [vmem:[%s6575_s2 + $0x68] sm:$0xff]  ;;  %v105_v32 = vld [vmem:[%s6574_s1 + $0x70] sm:$0xff] }
   0xc   :  { %v1333_v33 = vld [vmem:[%s6575_s2 + $0x70] sm:$0xff]  ;;  %v106_v34 = vld [vmem:[%s6574_s1 + $0x78] sm:$0xff]  ;;  %v107_v36 = vld [vmem:[%s6574_s1 + $0x80] sm:$0xff] }
   0xd   :  { %3996 = vmatmul.mubr.msk.f32.gmra.mrb[4].mxu1 %vm157_vm1, %v96_v14  ;;  %v1334_v35 = vld [vmem:[%s6575_s2 + $0x78] sm:$0xff]  ;;  %v1335_v37 = vld [vmem:[%s6575_s2 + $0x80] sm:$0xff]  ;;  %v108_v38 = vld [vmem:[%s6574_s1 + $0x88] sm:$0xff] }
   0xe   :  { %4192 = vmatmul.mubr.msk.f32.gmra.mrb[4].mxu0 %vm157_vm1, %v1324_v15  ;;  %3998 = vmatprep.mubr.msk.f32.mxu1 %vm157_vm1, %v97_v16  ;;  %v1336_v39 = vld [vmem:[%s6575_s2 + $0x88] sm:$0xff]  ;;  %v109_v40 = vld [vmem:[%s6574_s1 + $0x90] sm:$0xff]  ;;  %v110_v42 = vld [vmem:[%s6574_s1 + $0x98] sm:$0xff] }
   0xf   :  { %4194 = vmatprep.mubr.msk.f32.mxu0 %vm157_vm1, %v1325_v17  ;;  %v1337_v41 = vld [vmem:[%s6575_s2 + $0x90] sm:$0xff]  ;;  %v1338_v43 = vld [vmem:[%s6575_s2 + $0x98] sm:$0xff]  ;;  %v111_v44 = vld [vmem:[%s6574_s1 + $0xa0] sm:$0xff] }
  0x10   :  { %v1339_v45 = vld [vmem:[%s6575_s2 + $0xa0] sm:$0xff]  ;;  %v112_v46 = vld [vmem:[%s6574_s1 + $0xa8] sm:$0xff]  ;;  %v113_v48 = vld [vmem:[%s6574_s1 + $0xb0] sm:$0xff] }
  0x11   :  { %3999 = vmatmul.mubr.msk.f32.gmra.mrb[6].mxu1 %vm157_vm1, %v98_v18  ;;  %v1340_v47 = vld [vmem:[%s6575_s2 + $0xa8] sm:$0xff]  ;;  %v1341_v49 = vld [vmem:[%s6575_s2 + $0xb0] sm:$0xff]  ;;  %v114_v50 = vld [vmem:[%s6574_s1 + $0xb8] sm:$0xff] }
  0x12   :  { %4195 = vmatmul.mubr.msk.f32.gmra.mrb[6].mxu0 %vm157_vm1, %v1326_v19  ;;  %4001 = vmatprep.mubr.msk.f32.mxu1 %vm157_vm1, %v99_v20  ;;  %v1342_v51 = vld [vmem:[%s6575_s2 + $0xb8] sm:$0xff]  ;;  %v115_v52 = vld [vmem:[%s6574_s1 + $0xc0] sm:$0xff]  ;;  %v116_v54 = vld [vmem:[%s6574_s1 + $0xc8] sm:$0xff] }
  0x13   :  { %4197 = vmatprep.mubr.msk.f32.mxu0 %vm157_vm1, %v1327_v21  ;;  %v1343_v53 = vld [vmem:[%s6575_s2 + $0xc0] sm:$0xff]  ;;  %v1344_v55 = vld [vmem:[%s6575_s2 + $0xc8] sm:$0xff]  ;;  %v117_v56 = vld [vmem:[%s6574_s1 + $0xd0] sm:$0xff] }
  0x14   :  { %v1345_v57 = vld [vmem:[%s6575_s2 + $0xd0] sm:$0xff]  ;;  %v118_v58 = vld [vmem:[%s6574_s1 + $0xd8] sm:$0xff]  ;;  %v119_v60 = vld [vmem:[%s6574_s1 + $0xe0] sm:$0xff] }
  0x15   :  { %4002 = vmatmul.mubr.msk.f32.gmra.mrb[8].mxu1 %vm157_vm1, %v100_v22  ;;  %v1346_v59 = vld [vmem:[%s6575_s2 + $0xd8] sm:$0xff]  ;;  %v1347_v61 = vld [vmem:[%s6575_s2 + $0xe0] sm:$0xff]  ;;  %v120_v62 = vld [vmem:[%s6574_s1 + $0xe8] sm:$0xff] }
  0x16   :  { %4198 = vmatmul.mubr.msk.f32.gmra.mrb[8].mxu0 %vm157_vm1, %v1328_v23  ;;  %4004 = vmatprep.mubr.msk.f32.mxu1 %vm157_vm1, %v101_v24  ;;  %v1348_v63 = vld [vmem:[%s6575_s2 + $0xe8] sm:$0xff]  ;;  %v121_v0 = vld [vmem:[%s6574_s1 + $0xf0] sm:$0xff]  ;;  %v122_v2 = vld [vmem:[%s6574_s1 + $0xf8] sm:$0xff] }
  0x17   :  { %4200 = vmatprep.mubr.msk.f32.mxu0 %vm157_vm1, %v1329_v25  ;;  %v1349_v1 = vld [vmem:[%s6575_s2 + $0xf0] sm:$0xff]  ;;  %v1350_v3 = vld [vmem:[%s6575_s2 + $0xf8] sm:$0xff]  ;;  %v123_v4 = vld [vmem:[%s6574_s1 + $0x100] sm:$0xff] }
  0x18   :  { %v1351_v5 = vld [vmem:[%s6575_s2 + $0x100] sm:$0xff]  ;;  %v124_v6 = vld [vmem:[%s6574_s1 + $0x108] sm:$0xff]  ;;  %v125_v8 = vld [vmem:[%s6574_s1 + $0x110] sm:$0xff] }
  0x19   :  { %4005 = vmatmul.mubr.msk.f32.gmra.mrb[10].mxu1 %vm157_vm1, %v102_v26  ;;  %v1352_v7 = vld [vmem:[%s6575_s2 + $0x108] sm:$0xff]  ;;  %v1353_v9 = vld [vmem:[%s6575_s2 + $0x110] sm:$0xff]  ;;  %v126_v10 = vld [vmem:[%s6574_s1 + $0x118] sm:$0xff] }
  0x1a   :  { %4201 = vmatmul.mubr.msk.f32.gmra.mrb[10].mxu0 %vm157_vm1, %v1330_v27  ;;  %4007 = vmatprep.mubr.msk.f32.mxu1 %vm157_vm1, %v103_v28  ;;  %v1354_v11 = vld [vmem:[%s6575_s2 + $0x118] sm:$0xff]  ;;  %v127_v12 = vld [vmem:[%s6574_s1 + $0x120] sm:$0xff]  ;;  %v128_v14 = vld [vmem:[%s6574_s1 + $0x128] sm:$0xff] }
  0x1b   :  { %4203 = vmatprep.mubr.msk.f32.mxu0 %vm157_vm1, %v1331_v29  ;;  %v1355_v13 = vld [vmem:[%s6575_s2 + $0x120] sm:$0xff]  ;;  %v1356_v15 = vld [vmem:[%s6575_s2 + $0x128] sm:$0xff]  ;;  %v129_v16 = vld [vmem:[%s6574_s1 + $0x130] sm:$0xff] }
  0x1c   :  { %v1357_v17 = vld [vmem:[%s6575_s2 + $0x130] sm:$0xff]  ;;  %v130_v18 = vld [vmem:[%s6574_s1 + $0x138] sm:$0xff]  ;;  %v131_v20 = vld [vmem:[%s6574_s1 + $0x140] sm:$0xff] }
  0x1d   :  { %4008 = vmatmul.mubr.msk.f32.gmra.mrb[12].mxu1 %vm157_vm1, %v104_v30  ;;  %v1358_v19 = vld [vmem:[%s6575_s2 + $0x138] sm:$0xff]  ;;  %v1359_v21 = vld [vmem:[%s6575_s2 + $0x140] sm:$0xff]  ;;  %v132_v22 = vld [vmem:[%s6574_s1 + $0x148] sm:$0xff] }
  0x1e   :  { %4204 = vmatmul.mubr.msk.f32.gmra.mrb[12].mxu0 %vm157_vm1, %v1332_v31  ;;  %4010 = vmatprep.mubr.msk.f32.mxu1 %vm157_vm1, %v105_v32  ;;  %v1360_v23 = vld [vmem:[%s6575_s2 + $0x148] sm:$0xff]  ;;  %v133_v24 = vld [vmem:[%s6574_s1 + $0x150] sm:$0xff]  ;;  %v134_v26 = vld [vmem:[%s6574_s1 + $0x158] sm:$0xff] }
  0x1f   :  { %4206 = vmatprep.mubr.msk.f32.mxu0 %vm157_vm1, %v1333_v33  ;;  %v1361_v25 = vld [vmem:[%s6575_s2 + $0x150] sm:$0xff]  ;;  %v1362_v27 = vld [vmem:[%s6575_s2 + $0x158] sm:$0xff]  ;;  %v135_v28 = vld [vmem:[%s6574_s1 + $0x160] sm:$0xff] }
  0x20   :  { %v1363_v29 = vld [vmem:[%s6575_s2 + $0x160] sm:$0xff]  ;;  %v136_v30 = vld [vmem:[%s6574_s1 + $0x168] sm:$0xff]  ;;  %v137_v32 = vld [vmem:[%s6574_s1 + $0x170] sm:$0xff] }
  0x21   :  { %4011 = vmatmul.mubr.msk.f32.gmra.mrb[14].mxu1 %vm157_vm1, %v106_v34  ;;  %v1364_v31 = vld [vmem:[%s6575_s2 + $0x168] sm:$0xff]  ;;  %v1365_v33 = vld [vmem:[%s6575_s2 + $0x170] sm:$0xff]  ;;  %v138_v34 = vld [vmem:[%s6574_s1 + $0x178] sm:$0xff] }
  0x22   :  { %4207 = vmatmul.mubr.msk.f32.gmra.mrb[14].mxu0 %vm157_vm1, %v1334_v35  ;;  %4013 = vmatprep.mubr.msk.f32.mxu1 %vm157_vm1, %v107_v36  ;;  %v1366_v35 = vld [vmem:[%s6575_s2 + $0x178] sm:$0xff]  ;;  %v139_v36 = vld [vmem:[%s6574_s1 + $0x180] sm:$0xff] }
  0x23   :  { %4209 = vmatprep.mubr.msk.f32.mxu0 %vm157_vm1, %v1335_v37  ;;  %v1367_v37 = vld [vmem:[%s6575_s2 + $0x180] sm:$0xff] }
  0x25   :  { %4014 = vmatmul.mubr.msk.f32.gmra.mrb[16].mxu1 %vm157_vm1, %v108_v38  ;;  %v140_v38 = vld [vmem:[%s6574_s1 + $0x188] sm:$0xff] }
  0x26   :  { %4210 = vmatmul.mubr.msk.f32.gmra.mrb[16].mxu0 %vm157_vm1, %v1336_v39  ;;  %4016 = vmatprep.mubr.msk.f32.mxu1 %vm157_vm1, %v109_v40  ;;  %v1368_v39 = vld [vmem:[%s6575_s2 + $0x188] sm:$0xff]  ;;  %v141_v40 = vld [vmem:[%s6574_s1 + $0x190] sm:$0xff] }
  0x27   :  { %4212 = vmatprep.mubr.msk.f32.mxu0 %vm157_vm1, %v1337_v41  ;;  %v1369_v41 = vld [vmem:[%s6575_s2 + $0x190] sm:$0xff] }
  0x29   :  { %4017 = vmatmul.mubr.msk.f32.gmra.mrb[18].mxu1 %vm157_vm1, %v110_v42  ;;  %v142_v42 = vld [vmem:[%s6574_s1 + $0x198] sm:$0xff] }
  0x2a   :  { %4213 = vmatmul.mubr.msk.f32.gmra.mrb[18].mxu0 %vm157_vm1, %v1338_v43  ;;  %4019 = vmatprep.mubr.msk.f32.mxu1 %vm157_vm1, %v111_v44  ;;  %v1370_v43 = vld [vmem:[%s6575_s2 + $0x198] sm:$0xff]  ;;  %v143_v44 = vld [vmem:[%s6574_s1 + $0x1a0] sm:$0xff] }
  0x2b   :  { %4215 = vmatprep.mubr.msk.f32.mxu0 %vm157_vm1, %v1339_v45  ;;  %v1371_v45 = vld [vmem:[%s6575_s2 + $0x1a0] sm:$0xff] }
  0x2d   :  { %4020 = vmatmul.mubr.msk.f32.gmra.mrb[20].mxu1 %vm157_vm1, %v112_v46  ;;  %v144_v46 = vld [vmem:[%s6574_s1 + $0x1a8] sm:$0xff] }
  0x2e   :  { %4216 = vmatmul.mubr.msk.f32.gmra.mrb[20].mxu0 %vm157_vm1, %v1340_v47  ;;  %4022 = vmatprep.mubr.msk.f32.mxu1 %vm157_vm1, %v113_v48  ;;  %v1372_v47 = vld [vmem:[%s6575_s2 + $0x1a8] sm:$0xff]  ;;  %v145_v48 = vld [vmem:[%s6574_s1 + $0x1b0] sm:$0xff] }
  0x2f   :  { %4218 = vmatprep.mubr.msk.f32.mxu0 %vm157_vm1, %v1341_v49  ;;  %v1373_v49 = vld [vmem:[%s6575_s2 + $0x1b0] sm:$0xff] }
  0x31   :  { %4023 = vmatmul.mubr.msk.f32.gmra.mrb[22].mxu1 %vm157_vm1, %v114_v50  ;;  %v146_v50 = vld [vmem:[%s6574_s1 + $0x1b8] sm:$0xff] }
  0x32   :  { %4219 = vmatmul.mubr.msk.f32.gmra.mrb[22].mxu0 %vm157_vm1, %v1342_v51  ;;  %4025 = vmatprep.mubr.msk.f32.mxu1 %vm157_vm1, %v115_v52  ;;  %v1374_v51 = vld [vmem:[%s6575_s2 + $0x1b8] sm:$0xff]  ;;  %v147_v52 = vld [vmem:[%s6574_s1 + $0x1c0] sm:$0xff] }
  0x33   :  { %4221 = vmatprep.mubr.msk.f32.mxu0 %vm157_vm1, %v1343_v53  ;;  %v1375_v53 = vld [vmem:[%s6575_s2 + $0x1c0] sm:$0xff] }
  0x35   :  { %4026 = vmatmul.mubr.msk.f32.gmra.mrb[24].mxu1 %vm157_vm1, %v116_v54  ;;  %v148_v54 = vld [vmem:[%s6574_s1 + $0x1c8] sm:$0xff] }
  0x36   :  { %4222 = vmatmul.mubr.msk.f32.gmra.mrb[24].mxu0 %vm157_vm1, %v1344_v55  ;;  %4028 = vmatprep.mubr.msk.f32.mxu1 %vm157_vm1, %v117_v56  ;;  %v1376_v55 = vld [vmem:[%s6575_s2 + $0x1c8] sm:$0xff]  ;;  %v149_v56 = vld [vmem:[%s6574_s1 + $0x1d0] sm:$0xff] }
  0x37   :  { %4224 = vmatprep.mubr.msk.f32.mxu0 %vm157_vm1, %v1345_v57  ;;  %v1377_v57 = vld [vmem:[%s6575_s2 + $0x1d0] sm:$0xff] }
  0x39   :  { %4029 = vmatmul.mubr.msk.f32.gmra.mrb[26].mxu1 %vm157_vm1, %v118_v58  ;;  %v150_v58 = vld [vmem:[%s6574_s1 + $0x1d8] sm:$0xff] }
  0x3a   :  { %4225 = vmatmul.mubr.msk.f32.gmra.mrb[26].mxu0 %vm157_vm1, %v1346_v59  ;;  %4031 = vmatprep.mubr.msk.f32.mxu1 %vm157_vm1, %v119_v60  ;;  %v1378_v59 = vld [vmem:[%s6575_s2 + $0x1d8] sm:$0xff]  ;;  %v151_v60 = vld [vmem:[%s6574_s1 + $0x1e0] sm:$0xff] }
  0x3b   :  { %4227 = vmatprep.mubr.msk.f32.mxu0 %vm157_vm1, %v1347_v61  ;;  %v1379_v61 = vld [vmem:[%s6575_s2 + $0x1e0] sm:$0xff] }
  0x3d   :  { %4032 = vmatmul.mubr.msk.f32.gmra.mrb[28].mxu1 %vm157_vm1, %v120_v62  ;;  %v152_v62 = vld [vmem:[%s6574_s1 + $0x1e8] sm:$0xff] }
  0x3e   :  { %4228 = vmatmul.mubr.msk.f32.gmra.mrb[28].mxu0 %vm157_vm1, %v1348_v63  ;;  %4034 = vmatprep.mubr.msk.f32.mxu1 %vm157_vm1, %v121_v0  ;;  %v1380_v63 = vld [vmem:[%s6575_s2 + $0x1e8] sm:$0xff]  ;;  %v153_v0 = vld [vmem:[%s6574_s1 + $0x1f0] sm:$0xff] }
  0x3f   :  { %4230 = vmatprep.mubr.msk.f32.mxu0 %vm157_vm1, %v1349_v1  ;;  %v1381_v1 = vld [vmem:[%s6575_s2 + $0x1f0] sm:$0xff] }
  0x41   :  { %4035 = vmatmul.mubr.msk.f32.gmra.mrb[30].mxu1 %vm157_vm1, %v122_v2  ;;  %v154_v2 = vld [vmem:[%s6574_s1 + $0x1f8] sm:$0xff] }
  0x42   :  { %4231 = vmatmul.mubr.msk.f32.gmra.mrb[30].mxu0 %vm157_vm1, %v1350_v3  ;;  %4037 = vmatprep.mubr.msk.f32.mxu1 %vm157_vm1, %v123_v4  ;;  %v1382_v3 = vld [vmem:[%s6575_s2 + $0x1f8] sm:$0xff]  ;;  %v26_v4 = vld [vmem:[%s6576_s0] sm:$0xff] }
  0x43   :  { %4233 = vmatprep.mubr.msk.f32.mxu0 %vm157_vm1, %v1351_v5  ;;  %v2029_v5 = vld [vmem:[%s6577_s3] sm:$0xff] }
  0x45   :  { %4038 = vmatmul.mubr.msk.f32.gmra.mrb[32].mxu1 %vm157_vm1, %v124_v6  ;;  %v27_v6 = vld [vmem:[%s6576_s0 + $0x8] sm:$0xff] }
  0x46   :  { %4234 = vmatmul.mubr.msk.f32.gmra.mrb[32].mxu0 %vm157_vm1, %v1352_v7  ;;  %4040 = vmatprep.mubr.msk.f32.mxu1 %vm157_vm1, %v125_v8  ;;  %v2030_v7 = vld [vmem:[%s6577_s3 + $0x8] sm:$0xff]  ;;  %v28_v8 = vld [vmem:[%s6576_s0 + $0x10] sm:$0xff] }
  0x47   :  { %4236 = vmatprep.mubr.msk.f32.mxu0 %vm157_vm1, %v1353_v9  ;;  %v2031_v9 = vld [vmem:[%s6577_s3 + $0x10] sm:$0xff] }
  0x49   :  { %4041 = vmatmul.mubr.msk.f32.gmra.mrb[34].mxu1 %vm157_vm1, %v126_v10  ;;  %v29_v10 = vld [vmem:[%s6576_s0 + $0x18] sm:$0xff] }
  0x4a   :  { %4237 = vmatmul.mubr.msk.f32.gmra.mrb[34].mxu0 %vm157_vm1, %v1354_v11  ;;  %4043 = vmatprep.mubr.msk.f32.mxu1 %vm157_vm1, %v127_v12  ;;  %v2032_v11 = vld [vmem:[%s6577_s3 + $0x18] sm:$0xff]  ;;  %v30_v12 = vld [vmem:[%s6576_s0 + $0x20] sm:$0xff] }
  0x4b   :  { %4239 = vmatprep.mubr.msk.f32.mxu0 %vm157_vm1, %v1355_v13  ;;  %v2033_v13 = vld [vmem:[%s6577_s3 + $0x20] sm:$0xff] }
  0x4d   :  { %4044 = vmatmul.mubr.msk.f32.gmra.mrb[36].mxu1 %vm157_vm1, %v128_v14  ;;  %v31_v14 = vld [vmem:[%s6576_s0 + $0x28] sm:$0xff] }
  0x4e   :  { %4240 = vmatmul.mubr.msk.f32.gmra.mrb[36].mxu0 %vm157_vm1, %v1356_v15  ;;  %4046 = vmatprep.mubr.msk.f32.mxu1 %vm157_vm1, %v129_v16  ;;  %v2034_v15 = vld [vmem:[%s6577_s3 + $0x28] sm:$0xff]  ;;  %v32_v16 = vld [vmem:[%s6576_s0 + $0x30] sm:$0xff] }
  0x4f   :  { %4242 = vmatprep.mubr.msk.f32.mxu0 %vm157_vm1, %v1357_v17  ;;  %v2035_v17 = vld [vmem:[%s6577_s3 + $0x30] sm:$0xff] }
  0x51   :  { %4047 = vmatmul.mubr.msk.f32.gmra.mrb[38].mxu1 %vm157_vm1, %v130_v18  ;;  %v33_v18 = vld [vmem:[%s6576_s0 + $0x38] sm:$0xff] }
  0x52   :  { %4243 = vmatmul.mubr.msk.f32.gmra.mrb[38].mxu0 %vm157_vm1, %v1358_v19  ;;  %4049 = vmatprep.mubr.msk.f32.mxu1 %vm157_vm1, %v131_v20  ;;  %v2036_v19 = vld [vmem:[%s6577_s3 + $0x38] sm:$0xff]  ;;  %v34_v20 = vld [vmem:[%s6576_s0 + $0x40] sm:$0xff] }
  0x53   :  { %4245 = vmatprep.mubr.msk.f32.mxu0 %vm157_vm1, %v1359_v21  ;;  %v2037_v21 = vld [vmem:[%s6577_s3 + $0x40] sm:$0xff] }
  0x55   :  { %4050 = vmatmul.mubr.msk.f32.gmra.mrb[40].mxu1 %vm157_vm1, %v132_v22  ;;  %v35_v22 = vld [vmem:[%s6576_s0 + $0x48] sm:$0xff] }
  0x56   :  { %4246 = vmatmul.mubr.msk.f32.gmra.mrb[40].mxu0 %vm157_vm1, %v1360_v23  ;;  %4052 = vmatprep.mubr.msk.f32.mxu1 %vm157_vm1, %v133_v24  ;;  %v2038_v23 = vld [vmem:[%s6577_s3 + $0x48] sm:$0xff]  ;;  %v36_v24 = vld [vmem:[%s6576_s0 + $0x50] sm:$0xff] }
  0x57   :  { %4248 = vmatprep.mubr.msk.f32.mxu0 %vm157_vm1, %v1361_v25  ;;  %v2039_v25 = vld [vmem:[%s6577_s3 + $0x50] sm:$0xff] }
  0x59   :  { %4053 = vmatmul.mubr.msk.f32.gmra.mrb[42].mxu1 %vm157_vm1, %v134_v26  ;;  %v37_v26 = vld [vmem:[%s6576_s0 + $0x58] sm:$0xff] }
  0x5a   :  { %4249 = vmatmul.mubr.msk.f32.gmra.mrb[42].mxu0 %vm157_vm1, %v1362_v27  ;;  %4055 = vmatprep.mubr.msk.f32.mxu1 %vm157_vm1, %v135_v28  ;;  %v2040_v27 = vld [vmem:[%s6577_s3 + $0x58] sm:$0xff]  ;;  %v38_v28 = vld [vmem:[%s6576_s0 + $0x60] sm:$0xff] }
  0x5b   :  { %4251 = vmatprep.mubr.msk.f32.mxu0 %vm157_vm1, %v1363_v29  ;;  %v2041_v29 = vld [vmem:[%s6577_s3 + $0x60] sm:$0xff] }
  0x5d   :  { %4056 = vmatmul.mubr.msk.f32.gmra.mrb[44].mxu1 %vm157_vm1, %v136_v30  ;;  %v39_v30 = vld [vmem:[%s6576_s0 + $0x68] sm:$0xff] }
  0x5e   :  { %4252 = vmatmul.mubr.msk.f32.gmra.mrb[44].mxu0 %vm157_vm1, %v1364_v31  ;;  %4058 = vmatprep.mubr.msk.f32.mxu1 %vm157_vm1, %v137_v32  ;;  %v2042_v31 = vld [vmem:[%s6577_s3 + $0x68] sm:$0xff]  ;;  %v40_v32 = vld [vmem:[%s6576_s0 + $0x70] sm:$0xff] }
  0x5f   :  { %4254 = vmatprep.mubr.msk.f32.mxu0 %vm157_vm1, %v1365_v33  ;;  %v2043_v33 = vld [vmem:[%s6577_s3 + $0x70] sm:$0xff] }
  0x61   :  { %4059 = vmatmul.mubr.msk.f32.gmra.mrb[46].mxu1 %vm157_vm1, %v138_v34  ;;  %v41_v34 = vld [vmem:[%s6576_s0 + $0x78] sm:$0xff] }
  0x62   :  { %4255 = vmatmul.mubr.msk.f32.gmra.mrb[46].mxu0 %vm157_vm1, %v1366_v35  ;;  %4061 = vmatprep.mubr.msk.f32.mxu1 %vm157_vm1, %v139_v36  ;;  %v2044_v35 = vld [vmem:[%s6577_s3 + $0x78] sm:$0xff]  ;;  %v42_v36 = vld [vmem:[%s6576_s0 + $0x80] sm:$0xff] }
  0x63   :  { %4257 = vmatprep.mubr.msk.f32.mxu0 %vm157_vm1, %v1367_v37  ;;  %v2045_v37 = vld [vmem:[%s6577_s3 + $0x80] sm:$0xff] }
  0x65   :  { %4062 = vmatmul.mubr.msk.f32.gmra.mrb[48].mxu1 %vm157_vm1, %v140_v38  ;;  %v43_v38 = vld [vmem:[%s6576_s0 + $0x88] sm:$0xff] }
  0x66   :  { %4258 = vmatmul.mubr.msk.f32.gmra.mrb[48].mxu0 %vm157_vm1, %v1368_v39  ;;  %4064 = vmatprep.mubr.msk.f32.mxu1 %vm157_vm1, %v141_v40  ;;  %v2046_v39 = vld [vmem:[%s6577_s3 + $0x88] sm:$0xff]  ;;  %v44_v40 = vld [vmem:[%s6576_s0 + $0x90] sm:$0xff] }
  0x67   :  { %4260 = vmatprep.mubr.msk.f32.mxu0 %vm157_vm1, %v1369_v41  ;;  %v2047_v41 = vld [vmem:[%s6577_s3 + $0x90] sm:$0xff] }
  0x69   :  { %4065 = vmatmul.mubr.msk.f32.gmra.mrb[50].mxu1 %vm157_vm1, %v142_v42  ;;  %v45_v42 = vld [vmem:[%s6576_s0 + $0x98] sm:$0xff] }
  0x6a   :  { %4261 = vmatmul.mubr.msk.f32.gmra.mrb[50].mxu0 %vm157_vm1, %v1370_v43  ;;  %4067 = vmatprep.mubr.msk.f32.mxu1 %vm157_vm1, %v143_v44  ;;  %v2048_v43 = vld [vmem:[%s6577_s3 + $0x98] sm:$0xff]  ;;  %v46_v44 = vld [vmem:[%s6576_s0 + $0xa0] sm:$0xff] }
  0x6b   :  { %4263 = vmatprep.mubr.msk.f32.mxu0 %vm157_vm1, %v1371_v45  ;;  %v2049_v45 = vld [vmem:[%s6577_s3 + $0xa0] sm:$0xff] }
  0x6d   :  { %4068 = vmatmul.mubr.msk.f32.gmra.mrb[52].mxu1 %vm157_vm1, %v144_v46  ;;  %v47_v46 = vld [vmem:[%s6576_s0 + $0xa8] sm:$0xff] }
  0x6e   :  { %4264 = vmatmul.mubr.msk.f32.gmra.mrb[52].mxu0 %vm157_vm1, %v1372_v47  ;;  %4070 = vmatprep.mubr.msk.f32.mxu1 %vm157_vm1, %v145_v48  ;;  %v2050_v47 = vld [vmem:[%s6577_s3 + $0xa8] sm:$0xff]  ;;  %v48_v48 = vld [vmem:[%s6576_s0 + $0xb0] sm:$0xff] }
  0x6f   :  { %4266 = vmatprep.mubr.msk.f32.mxu0 %vm157_vm1, %v1373_v49  ;;  %v2051_v49 = vld [vmem:[%s6577_s3 + $0xb0] sm:$0xff] }
  0x71   :  { %4071 = vmatmul.mubr.msk.f32.gmra.mrb[54].mxu1 %vm157_vm1, %v146_v50  ;;  %v49_v50 = vld [vmem:[%s6576_s0 + $0xb8] sm:$0xff] }
  0x72   :  { %4267 = vmatmul.mubr.msk.f32.gmra.mrb[54].mxu0 %vm157_vm1, %v1374_v51  ;;  %4073 = vmatprep.mubr.msk.f32.mxu1 %vm157_vm1, %v147_v52  ;;  %v2052_v51 = vld [vmem:[%s6577_s3 + $0xb8] sm:$0xff]  ;;  %v50_v52 = vld [vmem:[%s6576_s0 + $0xc0] sm:$0xff] }
  0x73   :  { %4269 = vmatprep.mubr.msk.f32.mxu0 %vm157_vm1, %v1375_v53  ;;  %v2053_v53 = vld [vmem:[%s6577_s3 + $0xc0] sm:$0xff] }
  0x75   :  { %4074 = vmatmul.mubr.msk.f32.gmra.mrb[56].mxu1 %vm157_vm1, %v148_v54  ;;  %v51_v54 = vld [vmem:[%s6576_s0 + $0xc8] sm:$0xff] }
  0x76   :  { %4270 = vmatmul.mubr.msk.f32.gmra.mrb[56].mxu0 %vm157_vm1, %v1376_v55  ;;  %4076 = vmatprep.mubr.msk.f32.mxu1 %vm157_vm1, %v149_v56  ;;  %v2054_v55 = vld [vmem:[%s6577_s3 + $0xc8] sm:$0xff]  ;;  %v52_v56 = vld [vmem:[%s6576_s0 + $0xd0] sm:$0xff] }
  0x77   :  { %4272 = vmatprep.mubr.msk.f32.mxu0 %vm157_vm1, %v1377_v57  ;;  %v2055_v57 = vld [vmem:[%s6577_s3 + $0xd0] sm:$0xff] }
  0x79   :  { %4077 = vmatmul.mubr.msk.f32.gmra.mrb[58].mxu1 %vm157_vm1, %v150_v58  ;;  %v53_v58 = vld [vmem:[%s6576_s0 + $0xd8] sm:$0xff] }
  0x7a   :  { %4273 = vmatmul.mubr.msk.f32.gmra.mrb[58].mxu0 %vm157_vm1, %v1378_v59  ;;  %4079 = vmatprep.mubr.msk.f32.mxu1 %vm157_vm1, %v151_v60  ;;  %v2056_v59 = vld [vmem:[%s6577_s3 + $0xd8] sm:$0xff]  ;;  %v54_v60 = vld [vmem:[%s6576_s0 + $0xe0] sm:$0xff] }
  0x7b   :  { %4275 = vmatprep.mubr.msk.f32.mxu0 %vm157_vm1, %v1379_v61  ;;  %v2057_v61 = vld [vmem:[%s6577_s3 + $0xe0] sm:$0xff] }
  0x7d   :  { %4080 = vmatmul.mubr.msk.f32.gmra.mrb[60].mxu1 %vm157_vm1, %v152_v62  ;;  %v55_v62 = vld [vmem:[%s6576_s0 + $0xe8] sm:$0xff] }
  0x7e   :  { %4276 = vmatmul.mubr.msk.f32.gmra.mrb[60].mxu0 %vm157_vm1, %v1380_v63  ;;  %4082 = vmatprep.mubr.msk.f32.mxu1 %vm157_vm1, %v153_v0  ;;  %v2058_v63 = vld [vmem:[%s6577_s3 + $0xe8] sm:$0xff]  ;;  %v56_v0 = vld [vmem:[%s6576_s0 + $0xf0] sm:$0xff] }
  0x7f   :  { %4278 = vmatprep.mubr.msk.f32.mxu0 %vm157_vm1, %v1381_v1  ;;  %v2059_v1 = vld [vmem:[%s6577_s3 + $0xf0] sm:$0xff] }
  0x81   :  { %4083 = vmatmul.mubr.msk.f32.gmra.mrb[62].mxu1 %vm157_vm1, %v154_v2  ;;  %v57_v2 = vld [vmem:[%s6576_s0 + $0xf8] sm:$0xff] }
  0x82   :  { %4279 = vmatmul.mubr.msk.f32.gmra.mrb[62].mxu0 %vm157_vm1, %v1382_v3  ;;  %4087 = vmatprep.mubr.msk.f32.mxu1 %vm157_vm1, %v26_v4  ;;  %v2060_v3 = vld [vmem:[%s6577_s3 + $0xf8] sm:$0xff]  ;;  %v58_v4 = vld [vmem:[%s6576_s0 + $0x100] sm:$0xff] }
  0x83   :  { %4283 = vmatprep.mubr.msk.f32.mxu0 %vm157_vm1, %v2029_v5  ;;  %v2061_v5 = vld [vmem:[%s6577_s3 + $0x100] sm:$0xff] }
  0x85   :  { %4088 = vmatmul.mubr.msk.f32.vlgmr.msra.gmra.mrb[0].mxu1 %vm157_vm1, %v27_v6  ;;  %v59_v6 = vld [vmem:[%s6576_s0 + $0x108] sm:$0xff] }
  0x86   :  { %4284 = vmatmul.mubr.msk.f32.vlgmr.msra.gmra.mrb[0].mxu0 %vm157_vm1, %v2030_v7  ;;  %4090 = vmatprep.mubr.msk.f32.mxu1 %vm157_vm1, %v28_v8  ;;  %v2062_v7 = vld [vmem:[%s6577_s3 + $0x108] sm:$0xff]  ;;  %v60_v8 = vld [vmem:[%s6576_s0 + $0x110] sm:$0xff] }
  0x87   :  { %4286 = vmatprep.mubr.msk.f32.mxu0 %vm157_vm1, %v2031_v9  ;;  %v2063_v9 = vld [vmem:[%s6577_s3 + $0x110] sm:$0xff] }
  0x89   :  { %4091 = vmatmul.mubr.msk.f32.gmra.mrb[2].mxu1 %vm157_vm1, %v29_v10  ;;  %v61_v10 = vld [vmem:[%s6576_s0 + $0x118] sm:$0xff] }
  0x8a   :  { %4287 = vmatmul.mubr.msk.f32.gmra.mrb[2].mxu0 %vm157_vm1, %v2032_v11  ;;  %4093 = vmatprep.mubr.msk.f32.mxu1 %vm157_vm1, %v30_v12  ;;  %v2064_v11 = vld [vmem:[%s6577_s3 + $0x118] sm:$0xff]  ;;  %v62_v12 = vld [vmem:[%s6576_s0 + $0x120] sm:$0xff] }
  0x8b   :  { %4289 = vmatprep.mubr.msk.f32.mxu0 %vm157_vm1, %v2033_v13  ;;  %v2065_v13 = vld [vmem:[%s6577_s3 + $0x120] sm:$0xff] }
  0x8d   :  { %4094 = vmatmul.mubr.msk.f32.gmra.mrb[4].mxu1 %vm157_vm1, %v31_v14  ;;  %v63_v14 = vld [vmem:[%s6576_s0 + $0x128] sm:$0xff] }
  0x8e   :  { %4290 = vmatmul.mubr.msk.f32.gmra.mrb[4].mxu0 %vm157_vm1, %v2034_v15  ;;  %4096 = vmatprep.mubr.msk.f32.mxu1 %vm157_vm1, %v32_v16  ;;  %v2066_v15 = vld [vmem:[%s6577_s3 + $0x128] sm:$0xff]  ;;  %v64_v16 = vld [vmem:[%s6576_s0 + $0x130] sm:$0xff] }
  0x8f   :  { %4292 = vmatprep.mubr.msk.f32.mxu0 %vm157_vm1, %v2035_v17  ;;  %v2067_v17 = vld [vmem:[%s6577_s3 + $0x130] sm:$0xff] }
  0x91   :  { %4097 = vmatmul.mubr.msk.f32.gmra.mrb[6].mxu1 %vm157_vm1, %v33_v18  ;;  %v65_v18 = vld [vmem:[%s6576_s0 + $0x138] sm:$0xff] }
  0x92   :  { %4293 = vmatmul.mubr.msk.f32.gmra.mrb[6].mxu0 %vm157_vm1, %v2036_v19  ;;  %4099 = vmatprep.mubr.msk.f32.mxu1 %vm157_vm1, %v34_v20  ;;  %v2068_v19 = vld [vmem:[%s6577_s3 + $0x138] sm:$0xff]  ;;  %v66_v20 = vld [vmem:[%s6576_s0 + $0x140] sm:$0xff] }
  0x93   :  { %4295 = vmatprep.mubr.msk.f32.mxu0 %vm157_vm1, %v2037_v21  ;;  %v2069_v21 = vld [vmem:[%s6577_s3 + $0x140] sm:$0xff] }
  0x95   :  { %4100 = vmatmul.mubr.msk.f32.gmra.mrb[8].mxu1 %vm157_vm1, %v35_v22  ;;  %v67_v22 = vld [vmem:[%s6576_s0 + $0x148] sm:$0xff] }
  0x96   :  { %4296 = vmatmul.mubr.msk.f32.gmra.mrb[8].mxu0 %vm157_vm1, %v2038_v23  ;;  %4102 = vmatprep.mubr.msk.f32.mxu1 %vm157_vm1, %v36_v24  ;;  %v2070_v23 = vld [vmem:[%s6577_s3 + $0x148] sm:$0xff]  ;;  %v68_v24 = vld [vmem:[%s6576_s0 + $0x150] sm:$0xff] }
  0x97   :  { %4298 = vmatprep.mubr.msk.f32.mxu0 %vm157_vm1, %v2039_v25  ;;  %v2071_v25 = vld [vmem:[%s6577_s3 + $0x150] sm:$0xff] }
  0x99   :  { %4103 = vmatmul.mubr.msk.f32.gmra.mrb[10].mxu1 %vm157_vm1, %v37_v26  ;;  %v69_v26 = vld [vmem:[%s6576_s0 + $0x158] sm:$0xff] }
  0x9a   :  { %4299 = vmatmul.mubr.msk.f32.gmra.mrb[10].mxu0 %vm157_vm1, %v2040_v27  ;;  %4105 = vmatprep.mubr.msk.f32.mxu1 %vm157_vm1, %v38_v28  ;;  %v2072_v27 = vld [vmem:[%s6577_s3 + $0x158] sm:$0xff]  ;;  %v70_v28 = vld [vmem:[%s6576_s0 + $0x160] sm:$0xff] }
  0x9b   :  { %4301 = vmatprep.mubr.msk.f32.mxu0 %vm157_vm1, %v2041_v29  ;;  %v2073_v29 = vld [vmem:[%s6577_s3 + $0x160] sm:$0xff] }
  0x9d   :  { %4106 = vmatmul.mubr.msk.f32.gmra.mrb[12].mxu1 %vm157_vm1, %v39_v30  ;;  %v71_v30 = vld [vmem:[%s6576_s0 + $0x168] sm:$0xff] }
  0x9e   :  { %4302 = vmatmul.mubr.msk.f32.gmra.mrb[12].mxu0 %vm157_vm1, %v2042_v31  ;;  %4108 = vmatprep.mubr.msk.f32.mxu1 %vm157_vm1, %v40_v32  ;;  %v2074_v31 = vld [vmem:[%s6577_s3 + $0x168] sm:$0xff]  ;;  %v72_v32 = vld [vmem:[%s6576_s0 + $0x170] sm:$0xff] }
  0x9f   :  { %4304 = vmatprep.mubr.msk.f32.mxu0 %vm157_vm1, %v2043_v33  ;;  %v2075_v33 = vld [vmem:[%s6577_s3 + $0x170] sm:$0xff] }
  0xa1   :  { %4109 = vmatmul.mubr.msk.f32.gmra.mrb[14].mxu1 %vm157_vm1, %v41_v34  ;;  %v73_v34 = vld [vmem:[%s6576_s0 + $0x178] sm:$0xff] }
  0xa2   :  { %4305 = vmatmul.mubr.msk.f32.gmra.mrb[14].mxu0 %vm157_vm1, %v2044_v35  ;;  %4111 = vmatprep.mubr.msk.f32.mxu1 %vm157_vm1, %v42_v36  ;;  %v2076_v35 = vld [vmem:[%s6577_s3 + $0x178] sm:$0xff]  ;;  %v74_v36 = vld [vmem:[%s6576_s0 + $0x180] sm:$0xff] }
  0xa3   :  { %4307 = vmatprep.mubr.msk.f32.mxu0 %vm157_vm1, %v2045_v37  ;;  %v2077_v37 = vld [vmem:[%s6577_s3 + $0x180] sm:$0xff] }
  0xa5   :  { %4112 = vmatmul.mubr.msk.f32.gmra.mrb[16].mxu1 %vm157_vm1, %v43_v38  ;;  %v75_v38 = vld [vmem:[%s6576_s0 + $0x188] sm:$0xff] }
  0xa6   :  { %4308 = vmatmul.mubr.msk.f32.gmra.mrb[16].mxu0 %vm157_vm1, %v2046_v39  ;;  %4114 = vmatprep.mubr.msk.f32.mxu1 %vm157_vm1, %v44_v40  ;;  %v2078_v39 = vld [vmem:[%s6577_s3 + $0x188] sm:$0xff]  ;;  %v76_v40 = vld [vmem:[%s6576_s0 + $0x190] sm:$0xff] }
  0xa7   :  { %4310 = vmatprep.mubr.msk.f32.mxu0 %vm157_vm1, %v2047_v41  ;;  %v2079_v41 = vld [vmem:[%s6577_s3 + $0x190] sm:$0xff] }
  0xa9   :  { %4115 = vmatmul.mubr.msk.f32.gmra.mrb[18].mxu1 %vm157_vm1, %v45_v42  ;;  %v77_v42 = vld [vmem:[%s6576_s0 + $0x198] sm:$0xff] }
  0xaa   :  { %4311 = vmatmul.mubr.msk.f32.gmra.mrb[18].mxu0 %vm157_vm1, %v2048_v43  ;;  %4117 = vmatprep.mubr.msk.f32.mxu1 %vm157_vm1, %v46_v44  ;;  %v2080_v43 = vld [vmem:[%s6577_s3 + $0x198] sm:$0xff]  ;;  %v78_v44 = vld [vmem:[%s6576_s0 + $0x1a0] sm:$0xff] }
  0xab   :  { %4313 = vmatprep.mubr.msk.f32.mxu0 %vm157_vm1, %v2049_v45  ;;  %v2081_v45 = vld [vmem:[%s6577_s3 + $0x1a0] sm:$0xff] }
  0xad   :  { %4118 = vmatmul.mubr.msk.f32.gmra.mrb[20].mxu1 %vm157_vm1, %v47_v46  ;;  %v79_v46 = vld [vmem:[%s6576_s0 + $0x1a8] sm:$0xff] }
  0xae   :  { %4314 = vmatmul.mubr.msk.f32.gmra.mrb[20].mxu0 %vm157_vm1, %v2050_v47  ;;  %4120 = vmatprep.mubr.msk.f32.mxu1 %vm157_vm1, %v48_v48  ;;  %v2082_v47 = vld [vmem:[%s6577_s3 + $0x1a8] sm:$0xff]  ;;  %v80_v48 = vld [vmem:[%s6576_s0 + $0x1b0] sm:$0xff] }
  0xaf   :  { %4316 = vmatprep.mubr.msk.f32.mxu0 %vm157_vm1, %v2051_v49  ;;  %v2083_v49 = vld [vmem:[%s6577_s3 + $0x1b0] sm:$0xff] }
  0xb1   :  { %4121 = vmatmul.mubr.msk.f32.gmra.mrb[22].mxu1 %vm157_vm1, %v49_v50  ;;  %v81_v50 = vld [vmem:[%s6576_s0 + $0x1b8] sm:$0xff] }
  0xb2   :  { %4317 = vmatmul.mubr.msk.f32.gmra.mrb[22].mxu0 %vm157_vm1, %v2052_v51  ;;  %4123 = vmatprep.mubr.msk.f32.mxu1 %vm157_vm1, %v50_v52  ;;  %v2084_v51 = vld [vmem:[%s6577_s3 + $0x1b8] sm:$0xff]  ;;  %v82_v52 = vld [vmem:[%s6576_s0 + $0x1c0] sm:$0xff] }
  0xb3   :  { %4319 = vmatprep.mubr.msk.f32.mxu0 %vm157_vm1, %v2053_v53  ;;  %v2085_v53 = vld [vmem:[%s6577_s3 + $0x1c0] sm:$0xff] }
  0xb5   :  { %4124 = vmatmul.mubr.msk.f32.gmra.mrb[24].mxu1 %vm157_vm1, %v51_v54  ;;  %v83_v54 = vld [vmem:[%s6576_s0 + $0x1c8] sm:$0xff] }
  0xb6   :  { %4320 = vmatmul.mubr.msk.f32.gmra.mrb[24].mxu0 %vm157_vm1, %v2054_v55  ;;  %4126 = vmatprep.mubr.msk.f32.mxu1 %vm157_vm1, %v52_v56  ;;  %v2086_v55 = vld [vmem:[%s6577_s3 + $0x1c8] sm:$0xff]  ;;  %v84_v56 = vld [vmem:[%s6576_s0 + $0x1d0] sm:$0xff] }
  0xb7   :  { %4322 = vmatprep.mubr.msk.f32.mxu0 %vm157_vm1, %v2055_v57  ;;  %v2087_v57 = vld [vmem:[%s6577_s3 + $0x1d0] sm:$0xff] }
  0xb9   :  { %4127 = vmatmul.mubr.msk.f32.gmra.mrb[26].mxu1 %vm157_vm1, %v53_v58  ;;  %v85_v58 = vld [vmem:[%s6576_s0 + $0x1d8] sm:$0xff] }
  0xba   :  { %4323 = vmatmul.mubr.msk.f32.gmra.mrb[26].mxu0 %vm157_vm1, %v2056_v59  ;;  %4129 = vmatprep.mubr.msk.f32.mxu1 %vm157_vm1, %v54_v60  ;;  %v2088_v59 = vld [vmem:[%s6577_s3 + $0x1d8] sm:$0xff]  ;;  %v86_v60 = vld [vmem:[%s6576_s0 + $0x1e0] sm:$0xff] }
  0xbb   :  { %4325 = vmatprep.mubr.msk.f32.mxu0 %vm157_vm1, %v2057_v61  ;;  %v2089_v61 = vld [vmem:[%s6577_s3 + $0x1e0] sm:$0xff] }
  0xbd   :  { %4130 = vmatmul.mubr.msk.f32.gmra.mrb[28].mxu1 %vm157_vm1, %v55_v62  ;;  %v87_v62 = vld [vmem:[%s6576_s0 + $0x1e8] sm:$0xff] }
  0xbe   :  { %4326 = vmatmul.mubr.msk.f32.gmra.mrb[28].mxu0 %vm157_vm1, %v2058_v63  ;;  %4132 = vmatprep.mubr.msk.f32.mxu1 %vm157_vm1, %v56_v0  ;;  %v2090_v63 = vld [vmem:[%s6577_s3 + $0x1e8] sm:$0xff]  ;;  %v88_v0 = vld [vmem:[%s6576_s0 + $0x1f0] sm:$0xff] }
  0xbf   :  { %4328 = vmatprep.mubr.msk.f32.mxu0 %vm157_vm1, %v2059_v1  ;;  %v2091_v1 = vld [vmem:[%s6577_s3 + $0x1f0] sm:$0xff] }
  0xc1   :  { %4133 = vmatmul.mubr.msk.f32.gmra.mrb[30].mxu1 %vm157_vm1, %v57_v2  ;;  %v89_v2 = vld [vmem:[%s6576_s0 + $0x1f8] sm:$0xff] }
  0xc2   :  { %4329 = vmatmul.mubr.msk.f32.gmra.mrb[30].mxu0 %vm157_vm1, %v2060_v3  ;;  %4135 = vmatprep.mubr.msk.f32.mxu1 %vm157_vm1, %v58_v4  ;;  %v2092_v3 = vld [vmem:[%s6577_s3 + $0x1f8] sm:$0xff] }
  0xc3   :  { %4331 = vmatprep.mubr.msk.f32.mxu0 %vm157_vm1, %v2061_v5 }
  0xc5   :  { %4136 = vmatmul.mubr.msk.f32.gmra.mrb[32].mxu1 %vm157_vm1, %v59_v6  ;;  %v5916_v6 = vld [vmem:[%s6578_s5] ss:$0 sm:$0xff] }
  0xc6   :  { %4332 = vmatmul.mubr.msk.f32.gmra.mrb[32].mxu0 %vm157_vm1, %v2062_v7  ;;  %4138 = vmatprep.mubr.msk.f32.mxu1 %vm157_vm1, %v60_v8 }
  0xc7   :  { %4334 = vmatprep.mubr.msk.f32.mxu0 %vm157_vm1, %v2063_v9 }
  0xc9   :  { %4139 = vmatmul.mubr.msk.f32.gmra.mrb[34].mxu1 %vm157_vm1, %v61_v10  ;;  %v5921_v10 = vld [vmem:[%s6579_s6] ss:$0 sm:$0xff] }
  0xca   :  { %4335 = vmatmul.mubr.msk.f32.gmra.mrb[34].mxu0 %vm157_vm1, %v2064_v11  ;;  %4141 = vmatprep.mubr.msk.f32.mxu1 %vm157_vm1, %v62_v12 }
  0xcb   :  { %4337 = vmatprep.mubr.msk.f32.mxu0 %vm157_vm1, %v2065_v13 }
  0xcd   :  { %4142 = vmatmul.mubr.msk.f32.gmra.mrb[36].mxu1 %vm157_vm1, %v63_v14 }
  0xce   :  { %4338 = vmatmul.mubr.msk.f32.gmra.mrb[36].mxu0 %vm157_vm1, %v2066_v15  ;;  %4144 = vmatprep.mubr.msk.f32.mxu1 %vm157_vm1, %v64_v16 }
  0xcf   :  { %4340 = vmatprep.mubr.msk.f32.mxu0 %vm157_vm1, %v2067_v17 }
  0xd1   :  { %4145 = vmatmul.mubr.msk.f32.gmra.mrb[38].mxu1 %vm157_vm1, %v65_v18 }
  0xd2   :  { %4341 = vmatmul.mubr.msk.f32.gmra.mrb[38].mxu0 %vm157_vm1, %v2068_v19  ;;  %4147 = vmatprep.mubr.msk.f32.mxu1 %vm157_vm1, %v66_v20 }
  0xd3   :  { %4343 = vmatprep.mubr.msk.f32.mxu0 %vm157_vm1, %v2069_v21 }
  0xd5   :  { %4148 = vmatmul.mubr.msk.f32.gmra.mrb[40].mxu1 %vm157_vm1, %v67_v22 }
  0xd6   :  { %4344 = vmatmul.mubr.msk.f32.gmra.mrb[40].mxu0 %vm157_vm1, %v2070_v23  ;;  %4150 = vmatprep.mubr.msk.f32.mxu1 %vm157_vm1, %v68_v24 }
  0xd7   :  { %4346 = vmatprep.mubr.msk.f32.mxu0 %vm157_vm1, %v2071_v25 }
  0xd9   :  { %4151 = vmatmul.mubr.msk.f32.gmra.mrb[42].mxu1 %vm157_vm1, %v69_v26 }
  0xda   :  { %4347 = vmatmul.mubr.msk.f32.gmra.mrb[42].mxu0 %vm157_vm1, %v2072_v27  ;;  %4153 = vmatprep.mubr.msk.f32.mxu1 %vm157_vm1, %v70_v28 }
  0xdb   :  { %4349 = vmatprep.mubr.msk.f32.mxu0 %vm157_vm1, %v2073_v29 }
  0xdd   :  { %4154 = vmatmul.mubr.msk.f32.gmra.mrb[44].mxu1 %vm157_vm1, %v71_v30 }
  0xde   :  { %4350 = vmatmul.mubr.msk.f32.gmra.mrb[44].mxu0 %vm157_vm1, %v2074_v31  ;;  %4156 = vmatprep.mubr.msk.f32.mxu1 %vm157_vm1, %v72_v32 }
  0xdf   :  { %4352 = vmatprep.mubr.msk.f32.mxu0 %vm157_vm1, %v2075_v33 }
  0xe1   :  { %4157 = vmatmul.mubr.msk.f32.gmra.mrb[46].mxu1 %vm157_vm1, %v73_v34 }
  0xe2   :  { %4353 = vmatmul.mubr.msk.f32.gmra.mrb[46].mxu0 %vm157_vm1, %v2076_v35  ;;  %4159 = vmatprep.mubr.msk.f32.mxu1 %vm157_vm1, %v74_v36 }
  0xe3   :  { %4355 = vmatprep.mubr.msk.f32.mxu0 %vm157_vm1, %v2077_v37 }
  0xe5   :  { %4160 = vmatmul.mubr.msk.f32.gmra.mrb[48].mxu1 %vm157_vm1, %v75_v38 }
  0xe6   :  { %4356 = vmatmul.mubr.msk.f32.gmra.mrb[48].mxu0 %vm157_vm1, %v2078_v39  ;;  %4162 = vmatprep.mubr.msk.f32.mxu1 %vm157_vm1, %v76_v40 }
  0xe7   :  { %4358 = vmatprep.mubr.msk.f32.mxu0 %vm157_vm1, %v2079_v41 }
  0xe9   :  { %4163 = vmatmul.mubr.msk.f32.gmra.mrb[50].mxu1 %vm157_vm1, %v77_v42 }
  0xea   :  { %4359 = vmatmul.mubr.msk.f32.gmra.mrb[50].mxu0 %vm157_vm1, %v2080_v43  ;;  %4165 = vmatprep.mubr.msk.f32.mxu1 %vm157_vm1, %v78_v44 }
  0xeb   :  { %4361 = vmatprep.mubr.msk.f32.mxu0 %vm157_vm1, %v2081_v45 }
  0xed   :  { %4166 = vmatmul.mubr.msk.f32.gmra.mrb[52].mxu1 %vm157_vm1, %v79_v46 }
  0xee   :  { %4362 = vmatmul.mubr.msk.f32.gmra.mrb[52].mxu0 %vm157_vm1, %v2082_v47  ;;  %4168 = vmatprep.mubr.msk.f32.mxu1 %vm157_vm1, %v80_v48 }
  0xef   :  { %4364 = vmatprep.mubr.msk.f32.mxu0 %vm157_vm1, %v2083_v49 }
  0xf1   :  { %4169 = vmatmul.mubr.msk.f32.gmra.mrb[54].mxu1 %vm157_vm1, %v81_v50 }
  0xf2   :  { %4365 = vmatmul.mubr.msk.f32.gmra.mrb[54].mxu0 %vm157_vm1, %v2084_v51  ;;  %4171 = vmatprep.mubr.msk.f32.mxu1 %vm157_vm1, %v82_v52 }
  0xf3   :  { %4367 = vmatprep.mubr.msk.f32.mxu0 %vm157_vm1, %v2085_v53 }
  0xf5   :  { %4172 = vmatmul.mubr.msk.f32.gmra.mrb[56].mxu1 %vm157_vm1, %v83_v54 }
  0xf6   :  { %4368 = vmatmul.mubr.msk.f32.gmra.mrb[56].mxu0 %vm157_vm1, %v2086_v55  ;;  %4174 = vmatprep.mubr.msk.f32.mxu1 %vm157_vm1, %v84_v56 }
  0xf7   :  { %4370 = vmatprep.mubr.msk.f32.mxu0 %vm157_vm1, %v2087_v57 }
  0xf9   :  { %4175 = vmatmul.mubr.msk.f32.gmra.mrb[58].mxu1 %vm157_vm1, %v85_v58 }
  0xfa   :  { %4371 = vmatmul.mubr.msk.f32.gmra.mrb[58].mxu0 %vm157_vm1, %v2088_v59  ;;  %4177 = vmatprep.mubr.msk.f32.mxu1 %vm157_vm1, %v86_v60 }
  0xfb   :  { %4373 = vmatprep.mubr.msk.f32.mxu0 %vm157_vm1, %v2089_v61 }
  0xfd   :  { %4178 = vmatmul.mubr.msk.f32.gmra.mrb[60].mxu1 %vm157_vm1, %v87_v62 }
  0xfe   :  { %4374 = vmatmul.mubr.msk.f32.gmra.mrb[60].mxu0 %vm157_vm1, %v2090_v63  ;;  %4180 = vmatprep.mubr.msk.f32.mxu1 %vm157_vm1, %v88_v0 }
  0xff   :  { %4376 = vmatprep.mubr.msk.f32.mxu0 %vm157_vm1, %v2091_v1 }
 0x101   :  { %4181 = vmatmul.mubr.msk.f32.gmra.mrb[62].mxu1 %vm157_vm1, %v89_v2 }
 0x102   :  { %4377 = vmatmul.mubr.msk.f32.gmra.mrb[62].mxu0 %vm157_vm1, %v2092_v3 }
 0x158   :  { %v4089_v4 = vpop.f32.mrb[0].mxu1 }
 0x159   :  { %v4285_v5 = vpop.f32.mrb[0].mxu0  ;;  %v1000_v7 = vpop.f32.mrb[1].mxu1 }
 0x15a   :  { %v4379_v8 = vadd.f32 %v4285_v5, %v4089_v4  ;;  %v2356_v9 = vpop.f32.mrb[1].mxu0 }
 0x15b   :  { %v4380_v11 = vadd.f32 %v2356_v9, %v1000_v7 }
 0x15c   :  { %v2747_v12 = vmul.f32 %v4379_v8, %v5916_v6  ;;  %v4092_v13 = vpop.f32.mrb[2].mxu1 }
 0x15d   :  { %v2746_v14 = vmul.f32 %v4380_v11, %v5916_v6  ;;  %v4288_v15 = vpop.f32.mrb[2].mxu0  ;;  %v1010_v16 = vpop.f32.mrb[3].mxu1 }
 0x15e   :  { %v5926_v17 = vadd.f32 %v5921_v10, %v2747_v12  ;;  %v4381_v18 = vadd.f32 %v4288_v15, %v4092_v13  ;;  %v2366_v19 = vpop.f32.mrb[3].mxu0 }
 0x15f   :  { %v5929_v20 = vadd.f32 %v5921_v10, %v2746_v14  ;;  %v4382_v21 = vadd.f32 %v2366_v19, %v1010_v16 }
 0x160   :  { %v3664_v22 = vmul.f32 -1.442695, %v5926_v17  ;;  %v2749_v23 = vmul.f32 %v4381_v18, %v5916_v6  ;;  %v4095_v24 = vpop.f32.mrb[4].mxu1 }
 0x161   :  { %v3663_v25 = vmul.f32 -1.442695, %v5929_v20  ;;  %v2748_v26 = vmul.f32 %v4382_v21, %v5916_v6  ;;  %v4291_v27 = vpop.f32.mrb[4].mxu0  ;;  %v1020_v28 = vpop.f32.mrb[5].mxu1 }
 0x162   :  { %4571 = vpow2.f32 %v3664_v22  ;;  %v5936_v29 = vadd.f32 %v5921_v10, %v2749_v23  ;;  %v4383_v30 = vadd.f32 %v4291_v27, %v4095_v24  ;;  %v2376_v31 = vpop.f32.mrb[5].mxu0 }
 0x163   :  { %4573 = vpow2.f32 %v3663_v25  ;;  %v5939_v32 = vadd.f32 %v5921_v10, %v2748_v26  ;;  %v4384_v33 = vadd.f32 %v2376_v31, %v1020_v28 }
 0x164   :  { %v3666_v34 = vmul.f32 -1.442695, %v5936_v29  ;;  %v2751_v35 = vmul.f32 %v4383_v30, %v5916_v6  ;;  %v4098_v36 = vpop.f32.mrb[6].mxu1 }
 0x165   :  { %v3665_v37 = vmul.f32 -1.442695, %v5939_v32  ;;  %v2750_v38 = vmul.f32 %v4384_v33, %v5916_v6  ;;  %v4294_v39 = vpop.f32.mrb[6].mxu0  ;;  %v1030_v40 = vpop.f32.mrb[7].mxu1 }
 0x166   :  { %4575 = vpow2.f32 %v3666_v34  ;;  %v5946_v41 = vadd.f32 %v5921_v10, %v2751_v35  ;;  %v4385_v42 = vadd.f32 %v4294_v39, %v4098_v36  ;;  %v2386_v43 = vpop.f32.mrb[7].mxu0 }
 0x167   :  { %4577 = vpow2.f32 %v3665_v37  ;;  %v5949_v44 = vadd.f32 %v5921_v10, %v2750_v38  ;;  %v4386_v45 = vadd.f32 %v2386_v43, %v1030_v40 }
 0x168   :  { %v3668_v46 = vmul.f32 -1.442695, %v5946_v41  ;;  %v2753_v47 = vmul.f32 %v4385_v42, %v5916_v6  ;;  %v4101_v48 = vpop.f32.mrb[8].mxu1 }
 0x169   :  { %v3667_v49 = vmul.f32 -1.442695, %v5949_v44  ;;  %v2752_v50 = vmul.f32 %v4386_v45, %v5916_v6  ;;  %v4297_v51 = vpop.f32.mrb[8].mxu0  ;;  %v1040_v52 = vpop.f32.mrb[9].mxu1 }
 0x16a   :  { %4579 = vpow2.f32 %v3668_v46  ;;  %v5956_v53 = vadd.f32 %v5921_v10, %v2753_v47  ;;  %v4387_v54 = vadd.f32 %v4297_v51, %v4101_v48  ;;  %v2396_v55 = vpop.f32.mrb[9].mxu0 }
 0x16b   :  { %4581 = vpow2.f32 %v3667_v49  ;;  %v5959_v56 = vadd.f32 %v5921_v10, %v2752_v50  ;;  %v4388_v57 = vadd.f32 %v2396_v55, %v1040_v52 }
 0x16c   :  { %v4572_v58 = vpop.eup %4571  ;;  %v3670_v59 = vmul.f32 -1.442695, %v5956_v53  ;;  %v2755_v60 = vmul.f32 %v4387_v54, %v5916_v6  ;;  %v4104_v61 = vpop.f32.mrb[10].mxu1 }
 0x16d   :  { %v4574_v62 = vpop.eup %4573  ;;  %v3074_v63 = vadd.f32 1.0, %v4572_v58  ;;  %v3669_v0 = vmul.f32 -1.442695, %v5959_v56  ;;  %v2754_v1 = vmul.f32 %v4388_v57, %v5916_v6  ;;  %v4300_v2 = vpop.f32.mrb[10].mxu0 }
 0x16e   :  { %v1050_v3 = vpop.f32.mrb[11].mxu1  ;;  %v3073_v4 = vadd.f32 1.0, %v4574_v62  ;;  %4583 = vpow2.f32 %v3670_v59  ;;  %v5966_v5 = vadd.f32 %v5921_v10, %v2755_v60  ;;  %v4389_v7 = vadd.f32 %v4300_v2, %v4104_v61  ;;  %v2406_v8 = vpop.f32.mrb[11].mxu0 }
 0x16f   :  { %4585 = vrcp.f32 %v3074_v63  ;;  %v5969_v9 = vadd.f32 %v5921_v10, %v2754_v1  ;;  %v4390_v11 = vadd.f32 %v2406_v8, %v1050_v3 }
 0x170   :  { %v4576_v12 = vpop.eup %4575  ;;  %4587 = vrcp.f32 %v3073_v4  ;;  %v3672_v13 = vmul.f32 -1.442695, %v5966_v5  ;;  %v2757_v14 = vmul.f32 %v4389_v7, %v5916_v6  ;;  %v4107_v15 = vpop.f32.mrb[12].mxu1 }
 0x171   :  { %v4578_v16 = vpop.eup %4577  ;;  %v3076_v18 = vadd.f32 1.0, %v4576_v12  ;;  %4589 = vpow2.f32 %v3669_v0  ;;  %v3671_v19 = vmul.f32 -1.442695, %v5969_v9  ;;  %v2756_v21 = vmul.f32 %v4390_v11, %v5916_v6  ;;  %v4303_v22 = vpop.f32.mrb[12].mxu0 }
 0x172   :  { %v1060_v23 = vpop.f32.mrb[13].mxu1  ;;  %v3075_v24 = vadd.f32 1.0, %v4578_v16  ;;  %4591 = vpow2.f32 %v3672_v13  ;;  %v5976_v25 = vadd.f32 %v5921_v10, %v2757_v14  ;;  %v4391_v26 = vadd.f32 %v4303_v22, %v4107_v15  ;;  %v2416_v27 = vpop.f32.mrb[13].mxu0 }
 0x173   :  { %4593 = vrcp.f32 %v3076_v18  ;;  %v5979_v28 = vadd.f32 %v5921_v10, %v2756_v21  ;;  %v4392_v30 = vadd.f32 %v2416_v27, %v1060_v23 }
 0x174   :  { %v4580_v31 = vpop.eup %4579  ;;  %4595 = vrcp.f32 %v3075_v24  ;;  %v3674_v33 = vmul.f32 -1.442695, %v5976_v25  ;;  %v2759_v34 = vmul.f32 %v4391_v26, %v5916_v6  ;;  %v4110_v35 = vpop.f32.mrb[14].mxu1 }
 0x175   :  { %v4582_v36 = vpop.eup %4581  ;;  %v3078_v37 = vadd.f32 1.0, %v4580_v31  ;;  %4597 = vpow2.f32 %v3671_v19  ;;  %v3673_v38 = vmul.f32 -1.442695, %v5979_v28  ;;  %v2758_v39 = vmul.f32 %v4392_v30, %v5916_v6  ;;  %v4306_v40 = vpop.f32.mrb[14].mxu0 }
 0x176   :  { %v1070_v42 = vpop.f32.mrb[15].mxu1  ;;  %v3077_v43 = vadd.f32 1.0, %v4582_v36  ;;  %4599 = vpow2.f32 %v3674_v33  ;;  %v5986_v45 = vadd.f32 %v5921_v10, %v2759_v34  ;;  %v4393_v46 = vadd.f32 %v4306_v40, %v4110_v35  ;;  %v2426_v47 = vpop.f32.mrb[15].mxu0 }
 0x177   :  { %4601 = vrcp.f32 %v3078_v37  ;;  %v5989_v48 = vadd.f32 %v5921_v10, %v2758_v39  ;;  %v4394_v49 = vadd.f32 %v2426_v47, %v1070_v42 }
 0x178   :  { %v4584_v50 = vpop.eup %4583  ;;  %4603 = vrcp.f32 %v3077_v43  ;;  %v3676_v51 = vmul.f32 -1.442695, %v5986_v45  ;;  %v2761_v52 = vmul.f32 %v4393_v46, %v5916_v6  ;;  %v4113_v54 = vpop.f32.mrb[16].mxu1 }
 0x179   :  { %v4586_v55 = vpop.eup %4585  ;;  %v3080_v57 = vadd.f32 1.0, %v4584_v50  ;;  %4605 = vpow2.f32 %v3673_v38  ;;  %v3675_v58 = vmul.f32 -1.442695, %v5989_v48  ;;  %v2760_v59 = vmul.f32 %v4394_v49, %v5916_v6  ;;  %v4309_v60 = vpop.f32.mrb[16].mxu0 }
 0x17a   :  { %v1080_v61 = vpop.f32.mrb[17].mxu1  ;;  %v4588_v62 = vpop.eup %4587  ;;  %v3266_v63 = vmul.f32 %v4586_v55, %v5926_v17  ;;  %4607 = vpow2.f32 %v3676_v51  ;;  %v5997_v0 = vadd.f32 %v5921_v10, %v2761_v52  ;;  %v4395_v1 = vadd.f32 %v4309_v60, %v4113_v54 }
 0x17b   :  { %v2436_v2 = vpop.f32.mrb[17].mxu0  ;;  %v4590_v3 = vpop.eup %4589  ;;  %v3265_v4 = vmul.f32 %v4588_v62, %v5929_v20  ;;  %4609 = vrcp.f32 %v3080_v57  ;;  %v6001_v7 = vadd.f32 %v5921_v10, %v2760_v59 }
 0x17c   :  { %v4396_v8 = vadd.f32 %v2436_v2, %v1080_v61  ;;  %v4592_v11 = vpop.eup %4591  ;;  %3331 = vst.msk [vmem:[%s6580_s7 + $0x8] sm:$0xff] %vm3329_vm2, %v3266_v63  ;;  %v3079_v17 = vadd.f32 1.0, %v4590_v3  ;;  %4611 = vpow2.f32 %v3675_v58  ;;  %v3678_v12 = vmul.f32 -1.442695, %v5997_v0  ;;  %v4116_v14 = vpop.f32.mrb[18].mxu1 }
 0x17d   :  { %v2763_v13 = vmul.f32 %v4395_v1, %v5916_v6  ;;  %v4594_v15 = vpop.eup %4593  ;;  %3330 = vst.msk [vmem:[%s6580_s7] sm:$0xff] %vm3329_vm2, %v3265_v4  ;;  %v3082_v20 = vadd.f32 1.0, %v4592_v11  ;;  %v3677_v16 = vmul.f32 -1.442695, %v6001_v7  ;;  %v4312_v19 = vpop.f32.mrb[18].mxu0 }
 0x17e   :  { %v2762_v18 = vmul.f32 %v4396_v8, %v5916_v6  ;;  %v1090_v21 = vpop.f32.mrb[19].mxu1  ;;  %v4596_v22 = vpop.eup %4595  ;;  %v3268_v23 = vmul.f32 %v4594_v15, %v5936_v29  ;;  %4613 = vrcp.f32 %v3079_v17  ;;  %v4397_v26 = vadd.f32 %v4312_v19, %v4116_v14 }
 0x17f   :  { %v6017_v24 = vadd.f32 %v5921_v10, %v2763_v13  ;;  %v2446_v27 = vpop.f32.mrb[19].mxu0  ;;  %v4598_v30 = vpop.eup %4597  ;;  %v3267_v31 = vmul.f32 %v4596_v22, %v5939_v32  ;;  %4615 = vrcp.f32 %v3082_v20 }
 0x180   :  { %v6021_v33 = vadd.f32 %v5921_v10, %v2762_v18  ;;  %v4398_v34 = vadd.f32 %v2446_v27, %v1090_v21  ;;  %v4600_v35 = vpop.eup %4599  ;;  %3333 = vst.msk [vmem:[%s6580_s7 + $0x18] sm:$0xff] %vm3329_vm2, %v3268_v23  ;;  %v3081_v29 = vadd.f32 1.0, %v4598_v30  ;;  %4617 = vpow2.f32 %v3678_v12  ;;  %v4119_v38 = vpop.f32.mrb[20].mxu1 }
 0x181   :  { %v3680_v36 = vmul.f32 -1.442695, %v6017_v24  ;;  %v2765_v37 = vmul.f32 %v4397_v26, %v5916_v6  ;;  %v4602_v39 = vpop.eup %4601  ;;  %3332 = vst.msk [vmem:[%s6580_s7 + $0x10] sm:$0xff] %vm3329_vm2, %v3267_v31  ;;  %v3084_v32 = vadd.f32 1.0, %v4600_v35  ;;  %4619 = vpow2.f32 %v3677_v16  ;;  %v4315_v43 = vpop.f32.mrb[20].mxu0 }
 0x182   :  { %v3679_v40 = vmul.f32 -1.442695, %v6021_v33  ;;  %v2764_v42 = vmul.f32 %v4398_v34, %v5916_v6  ;;  %v1100_v46 = vpop.f32.mrb[21].mxu1  ;;  %v4604_v47 = vpop.eup %4603  ;;  %v3270_v49 = vmul.f32 %v4602_v39, %v5946_v41  ;;  %4621 = vrcp.f32 %v3081_v29 }
 0x183   :  { %v6037_v50 = vadd.f32 %v5921_v10, %v2765_v37  ;;  %v4399_v51 = vadd.f32 %v4315_v43, %v4119_v38  ;;  %v2456_v52 = vpop.f32.mrb[21].mxu0  ;;  %v4606_v54 = vpop.eup %4605  ;;  %v3269_v55 = vmul.f32 %v4604_v47, %v5949_v44  ;;  %4623 = vrcp.f32 %v3084_v32 }
 0x184   :  { %v6041_v57 = vadd.f32 %v5921_v10, %v2764_v42  ;;  %v4400_v58 = vadd.f32 %v2456_v52, %v1100_v46  ;;  %v4608_v59 = vpop.eup %4607  ;;  %3335 = vst.msk [vmem:[%s6580_s7 + $0x28] sm:$0xff] %vm3329_vm2, %v3270_v49  ;;  %v3083_v41 = vadd.f32 1.0, %v4606_v54  ;;  %4625 = vpow2.f32 %v3680_v36  ;;  %v4122_v62 = vpop.f32.mrb[22].mxu1 }
 0x185   :  { %v3682_v60 = vmul.f32 -1.442695, %v6037_v50  ;;  %v2767_v61 = vmul.f32 %v4399_v51, %v5916_v6  ;;  %v4610_v63 = vpop.eup %4609  ;;  %3334 = vst.msk [vmem:[%s6580_s7 + $0x20] sm:$0xff] %vm3329_vm2, %v3269_v55  ;;  %v3086_v44 = vadd.f32 1.0, %v4608_v59  ;;  %4627 = vpow2.f32 %v3679_v40  ;;  %v4318_v3 = vpop.f32.mrb[22].mxu0 }
 0x186   :  { %v3681_v1 = vmul.f32 -1.442695, %v6041_v57  ;;  %v2766_v2 = vmul.f32 %v4400_v58, %v5916_v6  ;;  %v1110_v4 = vpop.f32.mrb[23].mxu1  ;;  %v4612_v8 = vpop.eup %4611  ;;  %v3272_v11 = vmul.f32 %v4610_v63, %v5956_v53  ;;  %4629 = vrcp.f32 %v3083_v41 }
 0x187   :  { %v6057_v17 = vadd.f32 %v5921_v10, %v2767_v61  ;;  %v4401_v12 = vadd.f32 %v4318_v3, %v4122_v62  ;;  %v2466_v13 = vpop.f32.mrb[23].mxu0  ;;  %4631 = vrcp.f32 %v3086_v44  ;;  %v3085_v14 = vadd.f32 1.0, %v4612_v8 }
 0x188   :  { %v6060_v15 = vadd.f32 %v5921_v10, %v2766_v2  ;;  %v4402_v20 = vadd.f32 %v2466_v13, %v1110_v4  ;;  %v4614_v16 = vpop.eup %4613  ;;  %3337 = vst.msk [vmem:[%s6580_s7 + $0x38] sm:$0xff] %vm3329_vm2, %v3272_v11  ;;  %4633 = vpow2.f32 %v3682_v60  ;;  %v4125_v19 = vpop.f32.mrb[24].mxu1 }
 0x189   :  { %v3684_v53 = vmul.f32 -1.442695, %v6057_v17  ;;  %v2769_v18 = vmul.f32 %v4401_v12, %v5916_v6  ;;  %v4616_v21 = vpop.eup %4615  ;;  %v3271_v22 = vmul.f32 %v4614_v16, %v5959_v56  ;;  %4635 = vrcp.f32 %v3085_v14  ;;  %v4321_v27 = vpop.f32.mrb[24].mxu0 }
 0x18a   :  { %v3683_v23 = vmul.f32 -1.442695, %v6060_v15  ;;  %v2768_v26 = vmul.f32 %v4402_v20, %v5916_v6  ;;  %v1120_v30 = vpop.f32.mrb[25].mxu1  ;;  %v4618_v31 = vpop.eup %4617  ;;  %v3274_v34 = vmul.f32 %v4616_v21, %v5966_v5  ;;  %4637 = vpow2.f32 %v3681_v1 }
 0x18b   :  { %v6073_v35 = vadd.f32 %v5921_v10, %v2769_v18  ;;  %v4403_v29 = vadd.f32 %v4321_v27, %v4125_v19  ;;  %v2476_v36 = vpop.f32.mrb[25].mxu0  ;;  %v4620_v37 = vpop.eup %4619  ;;  %3336 = vst.msk [vmem:[%s6580_s7 + $0x30] sm:$0xff] %vm3329_vm2, %v3271_v22  ;;  %v3088_v56 = vadd.f32 1.0, %v4618_v31  ;;  %4639 = vpow2.f32 %v3684_v53 }
 0x18c   :  { %v6080_v38 = vadd.f32 %v5921_v10, %v2768_v26  ;;  %v4404_v39 = vadd.f32 %v2476_v36, %v1120_v30  ;;  %v4622_v32 = vpop.eup %4621  ;;  %3339 = vst.msk [vmem:[%s6580_s7 + $0x48] sm:$0xff] %vm3329_vm2, %v3274_v34  ;;  %v3087_v5 = vadd.f32 1.0, %v4620_v37  ;;  %4641 = vpow2.f32 %v3683_v23  ;;  %v4128_v43 = vpop.f32.mrb[26].mxu1 }
 0x18d   :  { %v3686_v40 = vmul.f32 -1.442695, %v6073_v35  ;;  %v2771_v42 = vmul.f32 %v4403_v29, %v5916_v6  ;;  %v4624_v46 = vpop.eup %4623  ;;  %v3273_v47 = vmul.f32 %v4622_v32, %v5969_v9  ;;  %4643 = vrcp.f32 %v3088_v56  ;;  %v4324_v52 = vpop.f32.mrb[26].mxu0 }
 0x18e   :  { %v3685_v49 = vmul.f32 -1.442695, %v6080_v38  ;;  %v2770_v51 = vmul.f32 %v4404_v39, %v5916_v6  ;;  %v1130_v54 = vpop.f32.mrb[27].mxu1  ;;  %v4626_v55 = vpop.eup %4625  ;;  %v3276_v58 = vmul.f32 %v4624_v46, %v5976_v25  ;;  %4645 = vrcp.f32 %v3087_v5 }
 0x18f   :  { %v6093_v59 = vadd.f32 %v5921_v10, %v2771_v42  ;;  %v4405_v41 = vadd.f32 %v4324_v52, %v4128_v43  ;;  %v2486_v60 = vpop.f32.mrb[27].mxu0  ;;  %v4628_v61 = vpop.eup %4627  ;;  %3338 = vst.msk [vmem:[%s6580_s7 + $0x40] sm:$0xff] %vm3329_vm2, %v3273_v47  ;;  %v3090_v9 = vadd.f32 1.0, %v4626_v55  ;;  %4647 = vpow2.f32 %v3686_v40 }
 0x190   :  { %v6100_v62 = vadd.f32 %v5921_v10, %v2770_v51  ;;  %v4406_v63 = vadd.f32 %v2486_v60, %v1130_v54  ;;  %v4630_v44 = vpop.eup %4629  ;;  %3341 = vst.msk [vmem:[%s6580_s7 + $0x58] sm:$0xff] %vm3329_vm2, %v3276_v58  ;;  %v3089_v25 = vadd.f32 1.0, %v4628_v61  ;;  %4649 = vpow2.f32 %v3685_v49  ;;  %v4131_v3 = vpop.f32.mrb[28].mxu1 }
 0x191   :  { %v3688_v1 = vmul.f32 -1.442695, %v6093_v59  ;;  %v2773_v2 = vmul.f32 %v4405_v41, %v5916_v6  ;;  %v4632_v4 = vpop.eup %4631  ;;  %v3275_v8 = vmul.f32 %v4630_v44, %v5979_v28  ;;  %4651 = vrcp.f32 %v3090_v9  ;;  %v4327_v13 = vpop.f32.mrb[28].mxu0 }
 0x192   :  { %v3687_v11 = vmul.f32 -1.442695, %v6100_v62  ;;  %v2772_v12 = vmul.f32 %v4406_v63, %v5916_v6  ;;  %v1140_v14 = vpop.f32.mrb[29].mxu1  ;;  %v4634_v20 = vpop.eup %4633  ;;  %v3278_v16 = vmul.f32 %v4632_v4, %v5986_v45  ;;  %4653 = vrcp.f32 %v3089_v25 }
 0x193   :  { %v6113_v53 = vadd.f32 %v5921_v10, %v2773_v2  ;;  %v4407_v18 = vadd.f32 %v4327_v13, %v4131_v3  ;;  %v2496_v19 = vpop.f32.mrb[29].mxu0  ;;  %v4636_v21 = vpop.eup %4635  ;;  %3340 = vst.msk [vmem:[%s6580_s7 + $0x50] sm:$0xff] %vm3329_vm2, %v3275_v8  ;;  %v3092_v28 = vadd.f32 1.0, %v4634_v20  ;;  %4655 = vpow2.f32 %v3688_v1 }
 0x194   :  { %v6120_v22 = vadd.f32 %v5921_v10, %v2772_v12  ;;  %v4408_v23 = vadd.f32 %v2496_v19, %v1140_v14  ;;  %v4638_v26 = vpop.eup %4637  ;;  %3343 = vst.msk [vmem:[%s6580_s7 + $0x68] sm:$0xff] %vm3329_vm2, %v3278_v16  ;;  %v3277_v45 = vmul.f32 %v4636_v21, %v5989_v48  ;;  %4657 = vpow2.f32 %v3687_v11  ;;  %v4134_v31 = vpop.f32.mrb[30].mxu1 }
 0x195   :  { %v3690_v27 = vmul.f32 -1.442695, %v6113_v53  ;;  %v2775_v30 = vmul.f32 %v4407_v18, %v5916_v6  ;;  %v4640_v34 = vpop.eup %4639  ;;  %4659 = vrcp.f32 %v3092_v28  ;;  %v3091_v29 = vadd.f32 1.0, %v4638_v26  ;;  %v4330_v56 = vpop.f32.mrb[30].mxu0 }
 0x196   :  { %v3689_v36 = vmul.f32 -1.442695, %v6120_v22  ;;  %v2774_v37 = vmul.f32 %v4408_v23, %v5916_v6  ;;  %v1150_v39 = vpop.f32.mrb[31].mxu1  ;;  %v4642_v32 = vpop.eup %4641  ;;  %3342 = vst.msk [vmem:[%s6580_s7 + $0x60] sm:$0xff] %vm3329_vm2, %v3277_v45  ;;  %v3094_v48 = vadd.f32 1.0, %v4640_v34  ;;  %v4409_v40 = vadd.f32 %v4330_v56, %v4134_v31 }
 0x197   :  { %4661 = vpow2.f32 %v3690_v27  ;;  %v6136_v5 = vadd.f32 %v5921_v10, %v2775_v30  ;;  %v2506_v42 = vpop.f32.mrb[31].mxu0  ;;  %v4644_v43 = vpop.eup %4643  ;;  %v3093_v46 = vadd.f32 1.0, %v4642_v32 }
 0x198   :  { %4663 = vrcp.f32 %v3091_v29  ;;  %v6139_v47 = vadd.f32 %v5921_v10, %v2774_v37  ;;  %v4410_v49 = vadd.f32 %v2506_v42, %v1150_v39  ;;  %v4646_v51 = vpop.eup %4645  ;;  %v3280_v52 = vmul.f32 %v4644_v43, %v5997_v0  ;;  %v4137_v58 = vpop.f32.mrb[32].mxu1 }
 0x199   :  { %4665 = vrcp.f32 %v3094_v48  ;;  %v3692_v54 = vmul.f32 -1.442695, %v6136_v5  ;;  %v2777_v55 = vmul.f32 %v4409_v40, %v5916_v6  ;;  %v4648_v41 = vpop.eup %4647  ;;  %v3279_v60 = vmul.f32 %v4646_v51, %v6001_v7  ;;  %v4333_v63 = vpop.f32.mrb[32].mxu0 }
 0x19a   :  { %4667 = vrcp.f32 %v3093_v46  ;;  %v3691_v61 = vmul.f32 -1.442695, %v6139_v47  ;;  %v2776_v9 = vmul.f32 %v4410_v49, %v5916_v6  ;;  %v1160_v44 = vpop.f32.mrb[33].mxu1  ;;  %v4650_v25 = vpop.eup %4649  ;;  %3345 = vst.msk [vmem:[%s6580_s7 + $0x78] sm:$0xff] %vm3329_vm2, %v3280_v52  ;;  %v3096_v0 = vadd.f32 1.0, %v4648_v41 }
 0x19b   :  { %4669 = vpow2.f32 %v3689_v36  ;;  %v6152_v1 = vadd.f32 %v5921_v10, %v2777_v55  ;;  %v4411_v2 = vadd.f32 %v4333_v63, %v4137_v58  ;;  %v2516_v7 = vpop.f32.mrb[33].mxu0  ;;  %v4652_v3 = vpop.eup %4651  ;;  %3344 = vst.msk [vmem:[%s6580_s7 + $0x70] sm:$0xff] %vm3329_vm2, %v3279_v60  ;;  %v3095_v4 = vadd.f32 1.0, %v4650_v25 }
 0x19c   :  { %4671 = vpow2.f32 %v3692_v54  ;;  %v6159_v8 = vadd.f32 %v5921_v10, %v2776_v9  ;;  %v4412_v11 = vadd.f32 %v2516_v7, %v1160_v44  ;;  %v4654_v12 = vpop.eup %4653  ;;  %v3282_v13 = vmul.f32 %v4652_v3, %v6017_v24  ;;  %v4140_v16 = vpop.f32.mrb[34].mxu1 }
 0x19d   :  { %4673 = vrcp.f32 %v3096_v0  ;;  %v3694_v14 = vmul.f32 -1.442695, %v6152_v1  ;;  %v2779_v20 = vmul.f32 %v4411_v2, %v5916_v6  ;;  %v4656_v18 = vpop.eup %4655  ;;  %v3281_v19 = vmul.f32 %v4654_v12, %v6021_v33  ;;  %v4336_v23 = vpop.f32.mrb[34].mxu0 }
 0x19e   :  { %4675 = vrcp.f32 %v3095_v4  ;;  %v3693_v21 = vmul.f32 -1.442695, %v6159_v8  ;;  %v2778_v28 = vmul.f32 %v4412_v11, %v5916_v6  ;;  %v1170_v26 = vpop.f32.mrb[35].mxu1  ;;  %v4658_v45 = vpop.eup %4657  ;;  %3347 = vst.msk [vmem:[%s6580_s7 + $0x88] sm:$0xff] %vm3329_vm2, %v3282_v13  ;;  %v3098_v24 = vadd.f32 1.0, %v4656_v18 }
 0x19f   :  { %4677 = vpow2.f32 %v3691_v61  ;;  %v6172_v27 = vadd.f32 %v5921_v10, %v2779_v20  ;;  %v4413_v30 = vadd.f32 %v4336_v23, %v4140_v16  ;;  %v2526_v33 = vpop.f32.mrb[35].mxu0  ;;  %v4660_v31 = vpop.eup %4659  ;;  %3346 = vst.msk [vmem:[%s6580_s7 + $0x80] sm:$0xff] %vm3329_vm2, %v3281_v19  ;;  %v3097_v34 = vadd.f32 1.0, %v4658_v45 }
 0x1a0   :  { %4679 = vpow2.f32 %v3694_v14  ;;  %v6179_v29 = vadd.f32 %v5921_v10, %v2778_v28  ;;  %v4414_v36 = vadd.f32 %v2526_v33, %v1170_v26  ;;  %v3284_v56 = vmul.f32 %v4660_v31, %v6037_v50  ;;  %v4143_v48 = vpop.f32.mrb[36].mxu1 }
 0x1a1   :  { %v4662_v37 = vpop.eup %4661  ;;  %4681 = vrcp.f32 %v3098_v24  ;;  %v3696_v39 = vmul.f32 -1.442695, %v6172_v27  ;;  %v2781_v32 = vmul.f32 %v4413_v30, %v5916_v6  ;;  %v4339_v49 = vpop.f32.mrb[36].mxu0 }
 0x1a2   :  { %v4664_v40 = vpop.eup %4663  ;;  %4683 = vrcp.f32 %v3097_v34  ;;  %v3100_v42 = vadd.f32 1.0, %v4662_v37  ;;  %v3695_v43 = vmul.f32 -1.442695, %v6179_v29  ;;  %v2780_v46 = vmul.f32 %v4414_v36, %v5916_v6  ;;  %v1180_v51 = vpop.f32.mrb[37].mxu1  ;;  %3349 = vst.msk [vmem:[%s6580_s7 + $0x98] sm:$0xff] %vm3329_vm2, %v3284_v56 }
 0x1a3   :  { %v4666_v52 = vpop.eup %4665  ;;  %v3283_v50 = vmul.f32 %v4664_v40, %v6041_v57  ;;  %4685 = vpow2.f32 %v3693_v21  ;;  %v6192_v54 = vadd.f32 %v5921_v10, %v2781_v32  ;;  %v4415_v55 = vadd.f32 %v4339_v49, %v4143_v48  ;;  %v2536_v58 = vpop.f32.mrb[37].mxu0 }
 0x1a4   :  { %v4668_v41 = vpop.eup %4667  ;;  %v3286_v60 = vmul.f32 %v4666_v52, %v6057_v17  ;;  %4687 = vrcp.f32 %v3100_v42  ;;  %v6196_v61 = vadd.f32 %v5921_v10, %v2780_v46  ;;  %v4416_v9 = vadd.f32 %v2536_v58, %v1180_v51  ;;  %v4146_v0 = vpop.f32.mrb[38].mxu1 }
 0x1a5   :  { %v4670_v63 = vpop.eup %4669  ;;  %3348 = vst.msk [vmem:[%s6580_s7 + $0x90] sm:$0xff] %vm3329_vm2, %v3283_v50  ;;  %v3285_v57 = vmul.f32 %v4668_v41, %v6060_v15  ;;  %4689 = vpow2.f32 %v3696_v39  ;;  %v3698_v44 = vmul.f32 -1.442695, %v6192_v54  ;;  %v2783_v25 = vmul.f32 %v4415_v55, %v5916_v6  ;;  %v4342_v4 = vpop.f32.mrb[38].mxu0 }
 0x1a6   :  { %v4672_v17 = vpop.eup %4671  ;;  %3351 = vst.msk [vmem:[%s6580_s7 + $0xa8] sm:$0xff] %vm3329_vm2, %v3286_v60  ;;  %v3099_v2 = vadd.f32 1.0, %v4670_v63  ;;  %4691 = vpow2.f32 %v3695_v43  ;;  %v3697_v7 = vmul.f32 -1.442695, %v6196_v61  ;;  %v2782_v3 = vmul.f32 %v4416_v9, %v5916_v6  ;;  %v1190_v15 = vpop.f32.mrb[39].mxu1 }
 0x1a7   :  { %v4674_v11 = vpop.eup %4673  ;;  %3350 = vst.msk [vmem:[%s6580_s7 + $0xa0] sm:$0xff] %vm3329_vm2, %v3285_v57  ;;  %v3102_v12 = vadd.f32 1.0, %v4672_v17  ;;  %4693 = vpow2.f32 %v3698_v44  ;;  %v6216_v13 = vadd.f32 %v5921_v10, %v2783_v25  ;;  %v4417_v14 = vadd.f32 %v4342_v4, %v4146_v0  ;;  %v2546_v20 = vpop.f32.mrb[39].mxu0 }
 0x1a8   :  { %v4676_v16 = vpop.eup %4675  ;;  %v3288_v18 = vmul.f32 %v4674_v11, %v6073_v35  ;;  %4695 = vrcp.f32 %v3099_v2  ;;  %v6220_v19 = vadd.f32 %v5921_v10, %v2782_v3  ;;  %v4418_v21 = vadd.f32 %v2546_v20, %v1190_v15  ;;  %v4149_v24 = vpop.f32.mrb[40].mxu1 }
 0x1a9   :  { %v4678_v28 = vpop.eup %4677  ;;  %v3287_v23 = vmul.f32 %v4676_v16, %v6080_v38  ;;  %4697 = vrcp.f32 %v3102_v12  ;;  %v3700_v26 = vmul.f32 -1.442695, %v6216_v13  ;;  %v2785_v45 = vmul.f32 %v4417_v14, %v5916_v6  ;;  %v4345_v34 = vpop.f32.mrb[40].mxu0 }
 0x1aa   :  { %v4680_v30 = vpop.eup %4679  ;;  %3353 = vst.msk [vmem:[%s6580_s7 + $0xb8] sm:$0xff] %vm3329_vm2, %v3288_v18  ;;  %v3101_v35 = vadd.f32 1.0, %v4678_v28  ;;  %4699 = vpow2.f32 %v3697_v7  ;;  %v3699_v33 = vmul.f32 -1.442695, %v6220_v19  ;;  %v2784_v31 = vmul.f32 %v4418_v21, %v5916_v6  ;;  %v1200_v38 = vpop.f32.mrb[41].mxu1 }
 0x1ab   :  { %v4682_v36 = vpop.eup %4681  ;;  %3352 = vst.msk [vmem:[%s6580_s7 + $0xb0] sm:$0xff] %vm3329_vm2, %v3287_v23  ;;  %v3104_v37 = vadd.f32 1.0, %v4680_v30  ;;  %4701 = vpow2.f32 %v3700_v26  ;;  %v6236_v56 = vadd.f32 %v5921_v10, %v2785_v45  ;;  %v4419_v39 = vadd.f32 %v4345_v34, %v4149_v24  ;;  %v2556_v32 = vpop.f32.mrb[41].mxu0 }
 0x1ac   :  { %v4684_v48 = vpop.eup %4683  ;;  %v3290_v40 = vmul.f32 %v4682_v36, %v6093_v59  ;;  %4703 = vrcp.f32 %v3101_v35  ;;  %v6240_v42 = vadd.f32 %v5921_v10, %v2784_v31  ;;  %v4420_v43 = vadd.f32 %v2556_v32, %v1200_v38  ;;  %v4152_v50 = vpop.f32.mrb[42].mxu1  ;;  %v6292_v32 = vld [vmem:[%s6578_s5] ss:$0 sm:$0xff] }
 0x1ad   :  { %v4686_v46 = vpop.eup %4685  ;;  %v3289_v49 = vmul.f32 %v4684_v48, %v6100_v62  ;;  %4705 = vrcp.f32 %v3104_v37  ;;  %v3702_v51 = vmul.f32 -1.442695, %v6236_v56  ;;  %v2787_v52 = vmul.f32 %v4419_v39, %v5916_v6  ;;  %v4348_v60 = vpop.f32.mrb[42].mxu0 }
 0x1ae   :  { %v4688_v55 = vpop.eup %4687  ;;  %3355 = vst.msk [vmem:[%s6580_s7 + $0xc8] sm:$0xff] %vm3329_vm2, %v3290_v40  ;;  %v3103_v59 = vadd.f32 1.0, %v4686_v46  ;;  %4707 = vpow2.f32 %v3699_v33  ;;  %v3701_v58 = vmul.f32 -1.442695, %v6240_v42  ;;  %v2786_v41 = vmul.f32 %v4420_v43, %v5916_v6  ;;  %v1210_v62 = vpop.f32.mrb[43].mxu1 }
 0x1af   :  { %v4690_v9 = vpop.eup %4689  ;;  %3354 = vst.msk [vmem:[%s6580_s7 + $0xc0] sm:$0xff] %vm3329_vm2, %v3289_v49  ;;  %v3292_v63 = vmul.f32 %v4688_v55, %v6113_v53  ;;  %4709 = vpow2.f32 %v3702_v51  ;;  %v6257_v57 = vadd.f32 %v5921_v10, %v2787_v52  ;;  %v4421_v44 = vadd.f32 %v4348_v60, %v4152_v50  ;;  %v2566_v25 = vpop.f32.mrb[43].mxu0  ;;  %v6299_v49 = vld [vmem:[%s6579_s6] ss:$0 sm:$0xff] }
 0x1b0   :  { %v4692_v0 = vpop.eup %4691  ;;  %4711 = vrcp.f32 %v3103_v59  ;;  %v3106_v17 = vadd.f32 1.0, %v4690_v9  ;;  %v6260_v2 = vadd.f32 %v5921_v10, %v2786_v41  ;;  %v4422_v7 = vadd.f32 %v2566_v25, %v1210_v62  ;;  %v4155_v11 = vpop.f32.mrb[44].mxu1 }
 0x1b1   :  { %v4694_v3 = vpop.eup %4693  ;;  %3357 = vst.msk [vmem:[%s6580_s7 + $0xd8] sm:$0xff] %vm3329_vm2, %v3292_v63  ;;  %v3105_v53 = vadd.f32 1.0, %v4692_v0  ;;  %4713 = vpow2.f32 %v3701_v58  ;;  %v3704_v4 = vmul.f32 -1.442695, %v6257_v57  ;;  %v2789_v15 = vmul.f32 %v4421_v44, %v5916_v6  ;;  %v4351_v18 = vpop.f32.mrb[44].mxu0 }
 0x1b2   :  { %v4696_v12 = vpop.eup %4695  ;;  %4715 = vrcp.f32 %v3106_v17  ;;  %v3108_v14 = vadd.f32 1.0, %v4694_v3  ;;  %v3703_v20 = vmul.f32 -1.442695, %v6260_v2  ;;  %v2788_v16 = vmul.f32 %v4422_v7, %v5916_v6  ;;  %v1220_v21 = vpop.f32.mrb[45].mxu1 }
 0x1b3   :  { %v4698_v28 = vpop.eup %4697  ;;  %v3291_v23 = vmul.f32 %v4696_v12, %v6120_v22  ;;  %4717 = vrcp.f32 %v3105_v53  ;;  %v6272_v26 = vadd.f32 %v5921_v10, %v2789_v15  ;;  %v4423_v45 = vadd.f32 %v4351_v18, %v4155_v11  ;;  %v2576_v24 = vpop.f32.mrb[45].mxu0 }
 0x1b4   :  { %v4700_v30 = vpop.eup %4699  ;;  %v3294_v35 = vmul.f32 %v4698_v28, %v6136_v5  ;;  %4719 = vrcp.f32 %v3108_v14  ;;  %v6276_v33 = vadd.f32 %v5921_v10, %v2788_v16  ;;  %v4424_v31 = vadd.f32 %v2576_v24, %v1220_v21  ;;  %v4158_v37 = vpop.f32.mrb[46].mxu1 }
 0x1b5   :  { %v4702_v34 = vpop.eup %4701  ;;  %3356 = vst.msk [vmem:[%s6580_s7 + $0xd0] sm:$0xff] %vm3329_vm2, %v3291_v23  ;;  %v3107_v22 = vadd.f32 1.0, %v4700_v30  ;;  %4721 = vpow2.f32 %v3704_v4  ;;  %v3706_v38 = vmul.f32 -1.442695, %v6272_v26  ;;  %v2791_v36 = vmul.f32 %v4423_v45, %v5916_v6  ;;  %v4354_v40 = vpop.f32.mrb[46].mxu0 }
 0x1b6   :  { %v4704_v39 = vpop.eup %4703  ;;  %3359 = vst.msk [vmem:[%s6580_s7 + $0xe8] sm:$0xff] %vm3329_vm2, %v3294_v35  ;;  %v3110_v10 = vadd.f32 1.0, %v4702_v34  ;;  %4723 = vpow2.f32 %v3703_v20  ;;  %v3705_v5 = vmul.f32 -1.442695, %v6276_v33  ;;  %v2790_v48 = vmul.f32 %v6292_v32, %v4424_v31  ;;  %v1230_v6 = vpop.f32.mrb[47].mxu1 }
 0x1b7   :  { %v4706_v43 = vpop.eup %4705  ;;  %v3293_v46 = vmul.f32 %v4704_v39, %v6139_v47  ;;  %4725 = vrcp.f32 %v3107_v22  ;;  %v6302_v51 = vadd.f32 %v6299_v49, %v2791_v36  ;;  %v4425_v52 = vadd.f32 %v4354_v40, %v4158_v37  ;;  %v2586_v50 = vpop.f32.mrb[47].mxu0 }
 0x1b8   :  { %v4708_v55 = vpop.eup %4707  ;;  %v3296_v59 = vmul.f32 %v4706_v43, %v6152_v1  ;;  %4727 = vrcp.f32 %v3110_v10  ;;  %v6306_v58 = vadd.f32 %v6299_v49, %v2790_v48  ;;  %v4426_v41 = vadd.f32 %v2586_v50, %v1230_v6  ;;  %v4161_v63 = vpop.f32.mrb[48].mxu1 }
 0x1b9   :  { %v4710_v47 = vpop.eup %4709  ;;  %3358 = vst.msk [vmem:[%s6580_s7 + $0xe0] sm:$0xff] %vm3329_vm2, %v3293_v46  ;;  %v3109_v60 = vadd.f32 1.0, %v4708_v55  ;;  %4729 = vpow2.f32 %v3706_v38  ;;  %v3708_v62 = vmul.f32 -1.442695, %v6302_v51  ;;  %v2793_v9 = vmul.f32 %v6292_v32, %v4425_v52  ;;  %v4357_v17 = vpop.f32.mrb[48].mxu0 }
 0x1ba   :  { %v4712_v44 = vpop.eup %4711  ;;  %3361 = vst.msk [vmem:[%s6580_s7 + $0xf8] sm:$0xff] %vm3329_vm2, %v3296_v59  ;;  %v3112_v1 = vadd.f32 1.0, %v4710_v47  ;;  %4731 = vpow2.f32 %v3705_v5  ;;  %v3707_v25 = vmul.f32 -1.442695, %v6306_v58  ;;  %v2792_v0 = vmul.f32 %v6292_v32, %v4426_v41  ;;  %v1240_v7 = vpop.f32.mrb[49].mxu1 }
 0x1bb   :  { %v4714_v3 = vpop.eup %4713  ;;  %v3295_v53 = vmul.f32 %v4712_v44, %v6159_v8  ;;  %4733 = vrcp.f32 %v3109_v60  ;;  %v6322_v4 = vadd.f32 %v6299_v49, %v2793_v9  ;;  %v4427_v15 = vadd.f32 %v4357_v17, %v4161_v63  ;;  %v2596_v11 = vpop.f32.mrb[49].mxu0 }
 0x1bc   :  { %v4716_v12 = vpop.eup %4715  ;;  %4735 = vrcp.f32 %v3112_v1  ;;  %v3111_v14 = vadd.f32 1.0, %v4714_v3  ;;  %v6325_v20 = vadd.f32 %v6299_v49, %v2792_v0  ;;  %v4428_v16 = vadd.f32 %v2596_v11, %v1240_v7  ;;  %v4164_v23 = vpop.f32.mrb[50].mxu1 }
 0x1bd   :  { %v4718_v18 = vpop.eup %4717  ;;  %3360 = vst.msk [vmem:[%s6580_s7 + $0xf0] sm:$0xff] %vm3329_vm2, %v3295_v53  ;;  %v3298_v8 = vmul.f32 %v4716_v12, %v6172_v27  ;;  %4737 = vpow2.f32 %v3708_v62  ;;  %v3710_v21 = vmul.f32 -1.442695, %v6322_v4  ;;  %v2795_v28 = vmul.f32 %v6292_v32, %v4427_v15  ;;  %v4360_v31 = vpop.f32.mrb[50].mxu0 }
 0x1be   :  { %v4720_v45 = vpop.eup %4719  ;;  %v3297_v24 = vmul.f32 %v4718_v18, %v6179_v29  ;;  %4739 = vrcp.f32 %v3111_v14  ;;  %v3709_v30 = vmul.f32 -1.442695, %v6325_v20  ;;  %v2794_v35 = vmul.f32 %v6292_v32, %v4428_v16  ;;  %v1250_v34 = vpop.f32.mrb[51].mxu1 }
 0x1bf   :  { %v4722_v22 = vpop.eup %4721  ;;  %3363 = vst.msk [vmem:[%s6580_s7 + $0x108] sm:$0xff] %vm3329_vm2, %v3298_v8  ;;  %v3300_v27 = vmul.f32 %v4720_v45, %v6192_v54  ;;  %4741 = vpow2.f32 %v3707_v25  ;;  %v6343_v38 = vadd.f32 %v6299_v49, %v2795_v28  ;;  %v4429_v29 = vadd.f32 %v4360_v31, %v4164_v23  ;;  %v2606_v36 = vpop.f32.mrb[51].mxu0 }
 0x1c0   :  { %v4724_v37 = vpop.eup %4723  ;;  %3362 = vst.msk [vmem:[%s6580_s7 + $0x100] sm:$0xff] %vm3329_vm2, %v3297_v24  ;;  %v3114_v39 = vadd.f32 1.0, %v4722_v22  ;;  %4743 = vpow2.f32 %v3710_v21  ;;  %v6350_v10 = vadd.f32 %v6299_v49, %v2794_v35  ;;  %v4430_v5 = vadd.f32 %v2606_v36, %v1250_v34  ;;  %v4167_v43 = vpop.f32.mrb[52].mxu1 }
 0x1c1   :  { %v4726_v48 = vpop.eup %4725  ;;  %3365 = vst.msk [vmem:[%s6580_s7 + $0x118] sm:$0xff] %vm3329_vm2, %v3300_v27  ;;  %v3113_v54 = vadd.f32 1.0, %v4724_v37  ;;  %4745 = vpow2.f32 %v3709_v30  ;;  %v3712_v40 = vmul.f32 -1.442695, %v6343_v38  ;;  %v2797_v6 = vmul.f32 %v6292_v32, %v4429_v29  ;;  %v4363_v59 = vpop.f32.mrb[52].mxu0 }
 0x1c2   :  { %v4728_v46 = vpop.eup %4727  ;;  %v3299_v52 = vmul.f32 %v4726_v48, %v6196_v61  ;;  %4747 = vrcp.f32 %v3114_v39  ;;  %v3711_v50 = vmul.f32 -1.442695, %v6350_v10  ;;  %v2796_v55 = vmul.f32 %v6292_v32, %v4430_v5  ;;  %v1260_v41 = vpop.f32.mrb[53].mxu1 }
 0x1c3   :  { %v4730_v47 = vpop.eup %4729  ;;  %v3302_v60 = vmul.f32 %v4728_v46, %v6216_v13  ;;  %4749 = vrcp.f32 %v3113_v54  ;;  %v6363_v62 = vadd.f32 %v6299_v49, %v2797_v6  ;;  %v4431_v9 = vadd.f32 %v4363_v59, %v4167_v43  ;;  %v2616_v63 = vpop.f32.mrb[53].mxu0 }
 0x1c4   :  { %v4732_v44 = vpop.eup %4731  ;;  %3364 = vst.msk [vmem:[%s6580_s7 + $0x110] sm:$0xff] %vm3329_vm2, %v3299_v52  ;;  %v3116_v61 = vadd.f32 1.0, %v4730_v47  ;;  %4751 = vpow2.f32 %v3712_v40  ;;  %v6370_v1 = vadd.f32 %v6299_v49, %v2796_v55  ;;  %v4432_v25 = vadd.f32 %v2616_v63, %v1260_v41  ;;  %v4170_v3 = vpop.f32.mrb[54].mxu1 }
 0x1c5   :  { %v4734_v0 = vpop.eup %4733  ;;  %3367 = vst.msk [vmem:[%s6580_s7 + $0x128] sm:$0xff] %vm3329_vm2, %v3302_v60  ;;  %v3115_v13 = vadd.f32 1.0, %v4732_v44  ;;  %4753 = vpow2.f32 %v3711_v50  ;;  %v3714_v17 = vmul.f32 -1.442695, %v6363_v62  ;;  %v2799_v7 = vmul.f32 %v6292_v32, %v4431_v9  ;;  %v4366_v14 = vpop.f32.mrb[54].mxu0 }
 0x1c6   :  { %v4736_v53 = vpop.eup %4735  ;;  %v3301_v15 = vmul.f32 %v4734_v0, %v6220_v19  ;;  %4755 = vrcp.f32 %v3116_v61  ;;  %v3713_v11 = vmul.f32 -1.442695, %v6370_v1  ;;  %v2798_v12 = vmul.f32 %v6292_v32, %v4432_v25  ;;  %v1270_v16 = vpop.f32.mrb[55].mxu1 }
 0x1c7   :  { %v4738_v18 = vpop.eup %4737  ;;  %v3304_v8 = vmul.f32 %v4736_v53, %v6236_v56  ;;  %4757 = vrcp.f32 %v3115_v13  ;;  %v6383_v21 = vadd.f32 %v6299_v49, %v2799_v7  ;;  %v4433_v28 = vadd.f32 %v4366_v14, %v4170_v3  ;;  %v2626_v23 = vpop.f32.mrb[55].mxu0 }
 0x1c8   :  { %v4740_v45 = vpop.eup %4739  ;;  %3366 = vst.msk [vmem:[%s6580_s7 + $0x120] sm:$0xff] %vm3329_vm2, %v3301_v15  ;;  %v3118_v19 = vadd.f32 1.0, %v4738_v18  ;;  %4759 = vpow2.f32 %v3714_v17  ;;  %v6390_v24 = vadd.f32 %v6299_v49, %v2798_v12  ;;  %v4434_v30 = vadd.f32 %v2626_v23, %v1270_v16  ;;  %v4173_v22 = vpop.f32.mrb[56].mxu1 }
 0x1c9   :  { %v4742_v35 = vpop.eup %4741  ;;  %3369 = vst.msk [vmem:[%s6580_s7 + $0x138] sm:$0xff] %vm3329_vm2, %v3304_v8  ;;  %v3303_v56 = vmul.f32 %v4740_v45, %v6240_v42  ;;  %4761 = vpow2.f32 %v3713_v11  ;;  %v3716_v31 = vmul.f32 -1.442695, %v6383_v21  ;;  %v2801_v34 = vmul.f32 %v6292_v32, %v4433_v28  ;;  %v4369_v39 = vpop.f32.mrb[56].mxu0 }
 0x1ca   :  { %v4744_v27 = vpop.eup %4743  ;;  %4763 = vrcp.f32 %v3118_v19  ;;  %v3117_v29 = vadd.f32 1.0, %v4742_v35  ;;  %v3715_v36 = vmul.f32 -1.442695, %v6390_v24  ;;  %v2800_v37 = vmul.f32 %v6292_v32, %v4434_v30  ;;  %v1280_v5 = vpop.f32.mrb[57].mxu1 }
 0x1cb   :  { %v4746_v48 = vpop.eup %4745  ;;  %3368 = vst.msk [vmem:[%s6580_s7 + $0x130] sm:$0xff] %vm3329_vm2, %v3303_v56  ;;  %v3120_v42 = vadd.f32 1.0, %v4744_v27  ;;  %4765 = vpow2.f32 %v3716_v31  ;;  %v6406_v54 = vadd.f32 %v6299_v49, %v2801_v34  ;;  %v4435_v40 = vadd.f32 %v4369_v39, %v4173_v22  ;;  %v2636_v6 = vpop.f32.mrb[57].mxu0 }
 0x1cc   :  { %v4748_v43 = vpop.eup %4747  ;;  %4767 = vrcp.f32 %v3117_v29  ;;  %v3119_v46 = vadd.f32 1.0, %v4746_v48  ;;  %v6409_v52 = vadd.f32 %v6299_v49, %v2800_v37  ;;  %v4436_v50 = vadd.f32 %v2636_v6, %v1280_v5  ;;  %v4176_v60 = vpop.f32.mrb[58].mxu1 }
 0x1cd   :  { %v4750_v55 = vpop.eup %4749  ;;  %v3306_v59 = vmul.f32 %v4748_v43, %v6257_v57  ;;  %4769 = vrcp.f32 %v3120_v42  ;;  %v3718_v41 = vmul.f32 -1.442695, %v6406_v54  ;;  %v2803_v47 = vmul.f32 %v6292_v32, %v4435_v40  ;;  %v4372_v25 = vpop.f32.mrb[58].mxu0 }
 0x1ce   :  { %v4752_v9 = vpop.eup %4751  ;;  %v3305_v63 = vmul.f32 %v4750_v55, %v6260_v2  ;;  %4771 = vrcp.f32 %v3119_v46  ;;  %v3717_v44 = vmul.f32 -1.442695, %v6409_v52  ;;  %v2802_v61 = vmul.f32 %v6292_v32, %v4436_v50  ;;  %v1290_v0 = vpop.f32.mrb[59].mxu1 }
 0x1cf   :  { %v4754_v13 = vpop.eup %4753  ;;  %3371 = vst.msk [vmem:[%s6580_s7 + $0x148] sm:$0xff] %vm3329_vm2, %v3306_v59  ;;  %v3122_v57 = vadd.f32 1.0, %v4752_v9  ;;  %4773 = vpow2.f32 %v3715_v36  ;;  %v6422_v17 = vadd.f32 %v6299_v49, %v2803_v47  ;;  %v4437_v7 = vadd.f32 %v4372_v25, %v4176_v60  ;;  %v2646_v2 = vpop.f32.mrb[59].mxu0 }
 0x1d0   :  { %v4756_v3 = vpop.eup %4755  ;;  %3370 = vst.msk [vmem:[%s6580_s7 + $0x140] sm:$0xff] %vm3329_vm2, %v3305_v63  ;;  %v3121_v53 = vadd.f32 1.0, %v4754_v13  ;;  %4775 = vpow2.f32 %v3718_v41  ;;  %v6429_v15 = vadd.f32 %v6299_v49, %v2802_v61  ;;  %v4438_v11 = vadd.f32 %v2646_v2, %v1290_v0  ;;  %v4179_v8 = vpop.f32.mrb[60].mxu1 }
 0x1d1   :  { %v4758_v12 = vpop.eup %4757  ;;  %v3308_v14 = vmul.f32 %v4756_v3, %v6272_v26  ;;  %4777 = vrcp.f32 %v3122_v57  ;;  %v3720_v16 = vmul.f32 -1.442695, %v6422_v17  ;;  %v2805_v18 = vmul.f32 %v6292_v32, %v4437_v7  ;;  %v4375_v30 = vpop.f32.mrb[60].mxu0 }
 0x1d2   :  { %v4760_v28 = vpop.eup %4759  ;;  %v3307_v23 = vmul.f32 %v4758_v12, %v6276_v33  ;;  %4779 = vrcp.f32 %v3121_v53  ;;  %v3719_v45 = vmul.f32 -1.442695, %v6429_v15  ;;  %v2804_v19 = vmul.f32 %v6292_v32, %v4438_v11  ;;  %v1300_v35 = vpop.f32.mrb[61].mxu1 }
 0x1d3   :  { %v4762_v56 = vpop.eup %4761  ;;  %3373 = vst.msk [vmem:[%s6580_s7 + $0x158] sm:$0xff] %vm3329_vm2, %v3308_v14  ;;  %v3124_v26 = vadd.f32 1.0, %v4760_v28  ;;  %4781 = vpow2.f32 %v3717_v44  ;;  %v6442_v31 = vadd.f32 %v6299_v49, %v2805_v18  ;;  %v4439_v34 = vadd.f32 %v4375_v30, %v4179_v8  ;;  %v2656_v33 = vpop.f32.mrb[61].mxu0 }
 0x1d4   :  { %v4764_v22 = vpop.eup %4763  ;;  %3372 = vst.msk [vmem:[%s6580_s7 + $0x150] sm:$0xff] %vm3329_vm2, %v3307_v23  ;;  %v3123_v27 = vadd.f32 1.0, %v4762_v56  ;;  %4783 = vpow2.f32 %v3720_v16  ;;  %v6449_v29 = vadd.f32 %v6299_v49, %v2804_v19  ;;  %v4440_v36 = vadd.f32 %v2656_v33, %v1300_v35  ;;  %v4182_v42 = vpop.f32.mrb[62].mxu1 }
 0x1d5   :  { %v4766_v37 = vpop.eup %4765  ;;  %v3310_v39 = vmul.f32 %v4764_v22, %v6302_v51  ;;  %4785 = vrcp.f32 %v3124_v26  ;;  %v3722_v5 = vmul.f32 -1.442695, %v6442_v31  ;;  %v2807_v48 = vmul.f32 %v6292_v32, %v4439_v34  ;;  %v4378_v50 = vpop.f32.mrb[62].mxu0 }
 0x1d6   :  { %v4768_v40 = vpop.eup %4767  ;;  %4787 = vrcp.f32 %v3123_v27  ;;  %v3126_v6 = vadd.f32 1.0, %v4766_v37  ;;  %v3721_v43 = vmul.f32 -1.442695, %v6449_v29  ;;  %v2806_v46 = vmul.f32 %v6292_v32, %v4440_v36  ;;  %v1310_v55 = vpop.f32.mrb[63].mxu1 }
 0x1d7   :  { %v4770_v59 = vpop.eup %4769  ;;  %3375 = vst.msk [vmem:[%s6580_s7 + $0x168] sm:$0xff] %vm3329_vm2, %v3310_v39  ;;  %v3309_v51 = vmul.f32 %v4768_v40, %v6306_v58  ;;  %4789 = vpow2.f32 %v3719_v45  ;;  %v6462_v41 = vadd.f32 %v6299_v49, %v2807_v48  ;;  %v4441_v47 = vadd.f32 %v4378_v50, %v4182_v42  ;;  %v2666_v60 = vpop.f32.mrb[63].mxu0 }
 0x1d8   :  { %v4772_v9 = vpop.eup %4771  ;;  %v3312_v63 = vmul.f32 %v4770_v59, %v6322_v4  ;;  %4791 = vrcp.f32 %v3126_v6  ;;  %v6466_v44 = vadd.f32 %v6299_v49, %v2806_v46  ;;  %v4442_v61 = vadd.f32 %v2666_v60, %v1310_v55 }
 0x1d9   :  { %v4774_v25 = vpop.eup %4773  ;;  %3374 = vst.msk [vmem:[%s6580_s7 + $0x160] sm:$0xff] %vm3329_vm2, %v3309_v51  ;;  %v3311_v58 = vmul.f32 %v4772_v9, %v6325_v20  ;;  %4793 = vpow2.f32 %v3722_v5  ;;  %v3724_v0 = vmul.f32 -1.442695, %v6462_v41  ;;  %v2809_v13 = vmul.f32 %v6292_v32, %v4441_v47 }
 0x1da   :  { %v4776_v57 = vpop.eup %4775  ;;  %3377 = vst.msk [vmem:[%s6580_s7 + $0x178] sm:$0xff] %vm3329_vm2, %v3312_v63  ;;  %v3125_v4 = vadd.f32 1.0, %v4774_v25  ;;  %4795 = vpow2.f32 %v3721_v43  ;;  %v3723_v7 = vmul.f32 -1.442695, %v6466_v44  ;;  %v2808_v2 = vmul.f32 %v6292_v32, %v4442_v61 }
 0x1db   :  { %v4778_v3 = vpop.eup %4777  ;;  %3376 = vst.msk [vmem:[%s6580_s7 + $0x170] sm:$0xff] %vm3329_vm2, %v3311_v58  ;;  %v3128_v20 = vadd.f32 1.0, %v4776_v57  ;;  %4797 = vpow2.f32 %v3724_v0  ;;  %v6486_v53 = vadd.f32 %v6299_v49, %v2809_v13 }
 0x1dc   :  { %v4780_v11 = vpop.eup %4779  ;;  %v3314_v12 = vmul.f32 %v4778_v3, %v6343_v38  ;;  %4799 = vrcp.f32 %v3125_v4  ;;  %v6490_v14 = vadd.f32 %v6299_v49, %v2808_v2 }
 0x1dd   :  { %v4782_v16 = vpop.eup %4781  ;;  %v3313_v32 = vmul.f32 %v4780_v11, %v6350_v10  ;;  %4801 = vrcp.f32 %v3128_v20  ;;  %v3726_v18 = vmul.f32 -1.442695, %v6486_v53 }
 0x1de   :  { %v4784_v8 = vpop.eup %4783  ;;  %3379 = vst.msk [vmem:[%s6580_s7 + $0x188] sm:$0xff] %vm3329_vm2, %v3314_v12  ;;  %v3127_v28 = vadd.f32 1.0, %v4782_v16  ;;  %4803 = vpow2.f32 %v3723_v7  ;;  %v3725_v38 = vmul.f32 -1.442695, %v6490_v14 }
 0x1df   :  { %v4786_v23 = vpop.eup %4785  ;;  %3378 = vst.msk [vmem:[%s6580_s7 + $0x180] sm:$0xff] %vm3329_vm2, %v3313_v32  ;;  %v3130_v49 = vadd.f32 1.0, %v4784_v8  ;;  %4805 = vpow2.f32 %v3726_v18 }
 0x1e0   :  { %v4788_v10 = vpop.eup %4787  ;;  %v3316_v45 = vmul.f32 %v4786_v23, %v6363_v62  ;;  %4807 = vrcp.f32 %v3127_v28 }
 0x1e1   :  { %v4790_v19 = vpop.eup %4789  ;;  %v3315_v30 = vmul.f32 %v4788_v10, %v6370_v1  ;;  %4809 = vrcp.f32 %v3130_v49 }
 0x1e2   :  { %v4792_v35 = vpop.eup %4791  ;;  %3381 = vst.msk [vmem:[%s6580_s7 + $0x198] sm:$0xff] %vm3329_vm2, %v3316_v45  ;;  %v3129_v56 = vadd.f32 1.0, %v4790_v19  ;;  %4811 = vpow2.f32 %v3725_v38 }
 0x1e3   :  { %v4794_v26 = vpop.eup %4793  ;;  %3380 = vst.msk [vmem:[%s6580_s7 + $0x190] sm:$0xff] %vm3329_vm2, %v3315_v30  ;;  %v3318_v62 = vmul.f32 %v4792_v35, %v6383_v21 }
 0x1e4   :  { %v4796_v34 = vpop.eup %4795  ;;  %4813 = vrcp.f32 %v3129_v56  ;;  %v3132_v1 = vadd.f32 1.0, %v4794_v26 }
 0x1e5   :  { %v4798_v33 = vpop.eup %4797  ;;  %3383 = vst.msk [vmem:[%s6580_s7 + $0x1a8] sm:$0xff] %vm3329_vm2, %v3318_v62  ;;  %v3131_v22 = vadd.f32 1.0, %v4796_v34 }
 0x1e6   :  { %v4800_v27 = vpop.eup %4799  ;;  %4815 = vrcp.f32 %v3132_v1  ;;  %v3134_v36 = vadd.f32 1.0, %v4798_v33 }
 0x1e7   :  { %v4802_v37 = vpop.eup %4801  ;;  %v3317_v39 = vmul.f32 %v4800_v27, %v6390_v24  ;;  %4817 = vrcp.f32 %v3131_v22 }
 0x1e8   :  { %v4804_v5 = vpop.eup %4803  ;;  %v3320_v21 = vmul.f32 %v4802_v37, %v6406_v54  ;;  %4819 = vrcp.f32 %v3134_v36 }
 0x1e9   :  { %v4806_v48 = vpop.eup %4805  ;;  %3382 = vst.msk [vmem:[%s6580_s7 + $0x1a0] sm:$0xff] %vm3329_vm2, %v3317_v39  ;;  %v3133_v42 = vadd.f32 1.0, %v4804_v5 }
 0x1ea   :  { %v4808_v40 = vpop.eup %4807  ;;  %3385 = vst.msk [vmem:[%s6580_s7 + $0x1b8] sm:$0xff] %vm3329_vm2, %v3320_v21  ;;  %v3136_v6 = vadd.f32 1.0, %v4806_v48 }
 0x1eb   :  { %v4810_v24 = vpop.eup %4809  ;;  %v3319_v43 = vmul.f32 %v4808_v40, %v6409_v52  ;;  %4821 = vrcp.f32 %v3133_v42 }
 0x1ec   :  { %v4812_v54 = vpop.eup %4811  ;;  %v3322_v46 = vmul.f32 %v4810_v24, %v6422_v17  ;;  %4823 = vrcp.f32 %v3136_v6 }
 0x1ed   :  { %3384 = vst.msk [vmem:[%s6580_s7 + $0x1b0] sm:$0xff] %vm3329_vm2, %v3319_v43  ;;  %v3135_v50 = vadd.f32 1.0, %v4812_v54 }
 0x1ee   :  { %v4814_v55 = vpop.eup %4813  ;;  %3387 = vst.msk [vmem:[%s6580_s7 + $0x1c8] sm:$0xff] %vm3329_vm2, %v3322_v46 }
 0x1ef   :  { %v3321_v59 = vmul.f32 %v4814_v55, %v6429_v15  ;;  %4825 = vrcp.f32 %v3135_v50 }
 0x1f0   :  { %v4816_v52 = vpop.eup %4815 }
 0x1f1   :  { %v4818_v51 = vpop.eup %4817  ;;  %3386 = vst.msk [vmem:[%s6580_s7 + $0x1c0] sm:$0xff] %vm3329_vm2, %v3321_v59  ;;  %v3324_v17 = vmul.f32 %v4816_v52, %v6442_v31 }
 0x1f2   :  { %v4820_v47 = vpop.eup %4819  ;;  %v3323_v60 = vmul.f32 %v4818_v51, %v6449_v29 }
 0x1f3   :  { %3389 = vst.msk [vmem:[%s6580_s7 + $0x1d8] sm:$0xff] %vm3329_vm2, %v3324_v17  ;;  %v3326_v15 = vmul.f32 %v4820_v47, %v6462_v41 }
 0x1f4   :  { %3388 = vst.msk [vmem:[%s6580_s7 + $0x1d0] sm:$0xff] %vm3329_vm2, %v3323_v60 }
 0x1f5   :  { %v4822_v9 = vpop.eup %4821  ;;  %3391 = vst.msk [vmem:[%s6580_s7 + $0x1e8] sm:$0xff] %vm3329_vm2, %v3326_v15 }
 0x1f6   :  { %v4824_v31 = vpop.eup %4823  ;;  %v3325_v29 = vmul.f32 %v4822_v9, %v6466_v44 }
 0x1f7   :  { %v3328_v63 = vmul.f32 %v4824_v31, %v6486_v53 }
 0x1f8   :  { %3390 = vst.msk [vmem:[%s6580_s7 + $0x1e0] sm:$0xff] %vm3329_vm2, %v3325_v29 }
 0x1f9   :  { %v4826_v41 = vpop.eup %4825  ;;  %3393 = vst.msk [vmem:[%s6580_s7 + $0x1f8] sm:$0xff] %vm3329_vm2, %v3328_v63 }
 0x1fa   :  { %v3327_v61 = vmul.f32 %v4826_v41, %v6490_v14 }
 0x1fc   :  { %3392 = vst.msk [vmem:[%s6580_s7 + $0x1f0] sm:$0xff] %vm3329_vm2, %v3327_v61 }

// kernel: spp_forward.4
= control target key start
LH: loop header
LB: loop body
LE: loop exit
PB: predicated region body
PF: predicated region fallthrough
CT: control target
= control target key end

     0   :  { %s4125_s12 = smov 0   ;;  %s4127_s13 = smov 0   ;;  %s7282_s0 = inlined_call_operand.vmem [shape: f32[2,16,16,4], index: 0, kind: input, shape index: {}]   ;;  %s7283_s1 = inlined_call_operand.vmem [shape: f32[2,16,16,4], index: 1, kind: output, shape index: {0}]   ;;  %s7284_s2 = inlined_call_operand.vmem [shape: f32[2,16,16,4], index: 2, kind: output, shape index: {1}]   ;;  %s7285_s3 = inlined_call_operand.vmem [shape: f32[2,16,16,4], index: 3, kind: output, shape index: {2}]  }
   0x1   :  { %s4129_s14 = smov 0  }
   0x2 LB: > { %s26_s15 = sadd.s32 1, %s4098_s13  ;;  %p4040_p0 = scmp.ge.s32.totalorder %s4102_s14, 1  ;;  %s4102_s14 = sphi %s4129_s14, %s14_s14   ;;  %s4098_s13 = sphi %s4127_s13, %s7787_s13   ;;  %s4094_s12 = sphi %s4125_s12, %s7786_s12  }
   0x3   : > { %p28_p1 = scmp.ge.s32.totalorder %s26_s15, 2  ;;  %p165_p2 = scmp.lt.s32.totalorder %s4102_s14, 3 }
   0x5   : > { %s7789_s15 = smov (%p28_p1, %s26_s15), 0  ;;  %p166_p3 = pnand %p4040_p0, %p165_p2 }
   0x7   : > { %169 = sbr.rel (%p166_p3) target bundleno = 690 (0x2b2), region = 24 }
   0xe   : > { %p211_p4 = scmp.lt.s32.totalorder %s4094_s12, 1  ;;  %vm308_vm0 = vcmask 1045504   ;;  %v4104_v0 = vmov -inf   ;;  %vm728_vm1 = vcmask 1046528   ;;  %vm1234_vm2 = vcmask 1044480  }
   0xf   : > { %v4143_v1 = vrot.slane %v4104_v0, 2  ;;  %vm1488_vm3 = vcmask 1043456   ;;  %v4145_v2 = vrot.slane %v4104_v0, 1  ;;  %v4171_v13 = vrot.slane %v4104_v0, 3 }
  0x10   : > { %s7791_s12 = smov (!%p211_p4, %s4094_s12), 1  ;;  %v4173_v14 = vrot.slane %v4104_v0, 4  ;;  %vm3726_vm4 = vcmask 31748   ;;  %vm3728_vm5 = vcmask 31744   ;;  %vm3730_vm6 = vcmask 27648  }
  0x11   : > { %7464 = vst [vmem:[#allocation2_spill] sm:$0xff] %v4143_v1  ;;  %7465 = vst [vmem:[#allocation3_spill] sm:$0xff] %v4145_v2  ;;  %v4149_v3 = vsel %vm308_vm0, -inf, %v4143_v1  ;;  %v730_v4 = vrot.slane %v4143_v1, 1  ;;  %v983_v5 = vrot.slane %v4143_v1, 2  ;;  %v1236_v6 = vrot.slane %v4143_v1, 3 }
  0x12   : > { %7466 = vst [vmem:[#allocation4_spill] sm:$0xff] %v4149_v3  ;;  %s4154_s16 = sshll.u32 %s7791_s12, 8  ;;  %v729_v7 = vrot.slane %v4149_v3, 1  ;;  %v982_v8 = vrot.slane %v4149_v3, 2  ;;  %v1235_v9 = vrot.slane %v4149_v3, 3  ;;  %v1489_v10 = vrot.slane %v4149_v3, 4 }
  0x13   : > { %s4164_s19 = scalar_lea.vmem %s7282_s0, %s4154_s16  ;;  %v1490_v11 = vrot.slane %v4143_v1, 4  ;;  %v4169_v12 = vsel %vm308_vm0, %v4143_v1, -inf  ;;  %7468 = vst [vmem:[#allocation6_spill] sm:$0xff] %v4171_v13  ;;  %7469 = vst [vmem:[#allocation7_spill] sm:$0xff] %v4173_v14  ;;  %s4306_s22 = scalar_lea.vmem %s7283_s1, %s4154_s16  ;;  %vm3777_vm7 = vcmask 31746   ;;  %vm3780_vm8 = vcmask 25600  }
  0x14   : > { %7467 = vst [vmem:[#allocation5_spill] sm:$0xff] %v4169_v12  ;;  %v243_v15 = vld [vmem:[%s4164_s19] sm:$0xff]  ;;  %v244_v16 = vld [vmem:[%s4164_s19 + $0x8] sm:$0xff]  ;;  %v245_v17 = vld [vmem:[%s4164_s19 + $0x10] sm:$0xff]  ;;  %v731_v18 = vsel %vm728_vm1, %v729_v7, %v730_v4  ;;  %v984_v19 = vsel %vm308_vm0, %v982_v8, %v983_v5  ;;  %v4187_v20 = vsel %vm1234_vm2, %v1235_v9, %v1236_v6  ;;  %v732_v21 = vrot.slane %v4169_v12, 1  ;;  %s5890_s25 = scalar_lea.vmem %s7284_s2, %s4154_s16  ;;  %s6870_s28 = scalar_lea.vmem %s7285_s3, %s4154_s16 }
  0x15   : > { %v246_v22 = vld [vmem:[%s4164_s19 + $0x18] sm:$0xff]  ;;  %v247_v23 = vld [vmem:[%s4164_s19 + $0x20] sm:$0xff]  ;;  %v4193_v24 = vld [vmem:[%s4164_s19 + $0x28] sm:$0xff]  ;;  %v311_v25 = vrot.slane %v243_v15, 2  ;;  %v312_v26 = vrot.slane %v244_v16, 2  ;;  %v314_v27 = vrot.slane %v245_v17, 2  ;;  %v919_v28 = vmax.f32 %v4149_v3, %v731_v18 }
  0x16   : > { %v315_v29 = vrot.slane %v246_v22, 2  ;;  %v317_v30 = vrot.slane %v247_v23, 2  ;;  %v318_v31 = vrot.slane %v4193_v24, 2  ;;  %v1491_v32 = vsel %vm1488_vm3, %v1489_v10, %v1490_v11 }
  0x17   : > { %v4201_v33 = vsel %vm308_vm0, %v311_v25, %v312_v26  ;;  %v4204_v34 = vsel %vm308_vm0, -inf, %v311_v25  ;;  %v4207_v35 = vsel %vm308_vm0, -inf, %v314_v27  ;;  %v1171_v36 = vmax.f32 %v919_v28, %v984_v19 }
  0x18   : > { %v4210_v37 = vsel %vm308_vm0, %v314_v27, %v315_v29  ;;  %v4213_v38 = vsel %vm308_vm0, %v317_v30, %v318_v31  ;;  %v4216_v39 = vsel %vm308_vm0, -inf, %v317_v30  ;;  %v443_v40 = vmax.f32 %v4149_v3, %v4204_v34 }
  0x19   : > { %v4222_v41 = vmax.f32 %v4143_v1, %v4201_v33  ;;  %v1425_v42 = vmax.f32 %v1171_v36, %v4187_v20  ;;  %v4226_v43 = vsel %vm308_vm0, %v312_v26, -inf  ;;  %v4229_v44 = vsel %vm308_vm0, %v315_v29, -inf }
  0x1a   : > { %v497_v45 = vmax.f32 %v443_v40, %v4207_v35  ;;  %v736_v46 = vrot.slane %v443_v40, 1  ;;  %v988_v47 = vrot.slane %v443_v40, 2  ;;  %v1242_v48 = vrot.slane %v443_v40, 3 }
  0x1b   : > { %v4234_v49 = vmax.f32 %v4222_v41, %v4210_v37  ;;  %v737_v50 = vrot.slane %v4222_v41, 1  ;;  %v989_v51 = vrot.slane %v4222_v41, 2  ;;  %v1243_v52 = vrot.slane %v4222_v41, 3 }
  0x1c   : > { %v4240_v53 = vmax.f32 %v497_v45, %v4216_v39  ;;  %v742_v54 = vrot.slane %v497_v45, 1  ;;  %v994_v55 = vrot.slane %v497_v45, 2  ;;  %v1248_v56 = vrot.slane %v497_v45, 3 }
  0x1d   : > { %v4244_v57 = vmax.f32 %v4234_v49, %v4213_v38  ;;  %v738_v58 = vsel %vm728_vm1, %v736_v46, %v737_v50  ;;  %v743_v59 = vrot.slane %v4234_v49, 1  ;;  %v990_v60 = vsel %vm308_vm0, %v988_v47, %v989_v51 }
  0x1e   : > { %v748_v61 = vrot.slane %v4240_v53, 1  ;;  %v922_v62 = vmax.f32 %v443_v40, %v738_v58  ;;  %v995_v63 = vrot.slane %v4234_v49, 2  ;;  %v1000_v0 = vrot.slane %v4240_v53, 2 }
  0x1f   : > { %v744_v7 = vsel %vm728_vm1, %v742_v54, %v743_v59  ;;  %v749_v8 = vrot.slane %v4244_v57, 1  ;;  %v1001_v9 = vrot.slane %v4244_v57, 2  ;;  %v1244_v10 = vsel %vm1234_vm2, %v1242_v48, %v1243_v52 }
  0x20   : > { %v925_v15 = vmax.f32 %v497_v45, %v744_v7  ;;  %v996_v16 = vsel %vm308_vm0, %v994_v55, %v995_v63  ;;  %v1174_v17 = vmax.f32 %v922_v62, %v990_v60  ;;  %v1249_v18 = vrot.slane %v4234_v49, 3 }
  0x21   : > { %v750_v19 = vsel %vm728_vm1, %v748_v61, %v749_v8  ;;  %v1002_v20 = vsel %vm308_vm0, %v1000_v0, %v1001_v9  ;;  %v1254_v22 = vrot.slane %v4240_v53, 3  ;;  %v1255_v23 = vrot.slane %v4244_v57, 3 }
  0x22   : > { %v928_v24 = vmax.f32 %v4240_v53, %v750_v19  ;;  %v1177_v25 = vmax.f32 %v925_v15, %v996_v16  ;;  %v1250_v26 = vsel %vm1234_vm2, %v1248_v56, %v1249_v18  ;;  %v1428_v27 = vmax.f32 %v1174_v17, %v1244_v10 }
  0x23   : > { %v1256_v28 = vsel %vm1234_vm2, %v1254_v22, %v1255_v23  ;;  %v1496_v29 = vrot.slane %v443_v40, 4  ;;  %v1497_v30 = vrot.slane %v4222_v41, 4  ;;  %v1502_v36 = vrot.slane %v497_v45, 4 }
  0x24   : > { %v1180_v46 = vmax.f32 %v928_v24, %v1002_v20  ;;  %v1431_v47 = vmax.f32 %v1177_v25, %v1250_v26  ;;  %v1503_v48 = vrot.slane %v4234_v49, 4  ;;  %v1508_v54 = vrot.slane %v4240_v53, 4 }
  0x25   : > { %v1498_v55 = vsel %vm1488_vm3, %v1496_v29, %v1497_v30  ;;  %v1509_v56 = vrot.slane %v4244_v57, 4  ;;  %v4290_v58 = vmax.f32 %v1425_v42, %v1491_v32  ;;  %v4293_v60 = vsel %vm308_vm0, %v318_v31, -inf }
  0x26   : > { %v1434_v40 = vmax.f32 %v1180_v46, %v1256_v28  ;;  %v1504_v45 = vsel %vm1488_vm3, %v1502_v36, %v1503_v48  ;;  %v1682_v61 = vmax.f32 %v1428_v27, %v1498_v55  ;;  %v4300_v62 = vmax.f32 %v4169_v12, %v4226_v43 }
  0x27   : > { %7470 = vst [vmem:[#allocation8_spill] sm:$0xff] %v4290_v58  ;;  %v1510_v31 = vsel %vm1488_vm3, %v1508_v54, %v1509_v56  ;;  %v4311_v32 = vmax.f32 %v1431_v47, %v1504_v45  ;;  %v733_v42 = vsel %vm728_vm1, %v730_v4, %v732_v21  ;;  %v985_v0 = vrot.slane %v4169_v12, 2 }
  0x28   : > { %v4319_v7 = vmax.f32 %v1434_v40, %v1510_v31  ;;  %v1742_v10 = vmax.f32 %v4290_v58, %v1682_v61  ;;  %v4324_v15 = vmax.f32 %v4300_v62, %v4229_v44  ;;  %v739_v16 = vrot.slane %v4300_v62, 1 }
  0x29   : > { %7471 = vst [vmem:[#allocation9_spill] sm:$0xff] %v4311_v32  ;;  %v1745_v17 = vmax.f32 %v1682_v61, %v4311_v32  ;;  %v920_v19 = vmax.f32 %v4143_v1, %v733_v42  ;;  %v986_v4 = vsel %vm308_vm0, %v983_v5, %v985_v0  ;;  %v991_v20 = vrot.slane %v4300_v62, 2 }
  0x2a   : > { %7472 = vst [vmem:[#allocation10_spill] sm:$0xff] %v4319_v7  ;;  %v1799_v24 = vmax.f32 %v1742_v10, %v4311_v32  ;;  %3727 = vst.msk [vmem:[%s4306_s22 - $0x4] sm:$0xf0] %vm3726_vm4, %v4319_v7  ;;  %v4343_v25 = vmax.f32 %v4324_v15, %v4293_v60  ;;  %v740_v26 = vsel %vm728_vm1, %v737_v50, %v739_v16  ;;  %v745_v27 = vrot.slane %v4324_v15, 1 }
  0x2b   : > { %v4349_v5 = vmax.f32 %v1745_v17, %v4319_v7  ;;  %v923_v28 = vmax.f32 %v4222_v41, %v740_v26  ;;  %v992_v29 = vsel %vm308_vm0, %v989_v51, %v991_v20  ;;  %v997_v50 = vrot.slane %v4324_v15, 2 }
  0x2c   : > { %v4359_v36 = vmax.f32 %v1799_v24, %v4319_v7  ;;  %v751_v46 = vrot.slane %v4343_v25, 1  ;;  %v1003_v47 = vrot.slane %v4343_v25, 2  ;;  %v746_v54 = vsel %vm728_vm1, %v743_v59, %v745_v27 }
  0x2d   : > { %v1172_v55 = vmax.f32 %v920_v19, %v986_v4  ;;  %v1175_v40 = vmax.f32 %v923_v28, %v992_v29  ;;  %v1238_v45 = vrot.slane %v4169_v12, 3  ;;  %v926_v61 = vmax.f32 %v4234_v49, %v746_v54 }
  0x2e   : > { %v752_v51 = vsel %vm728_vm1, %v749_v8, %v751_v46  ;;  %v998_v31 = vsel %vm308_vm0, %v995_v63, %v997_v50  ;;  %v1004_v42 = vsel %vm308_vm0, %v1001_v9, %v1003_v47  ;;  %v1245_v17 = vrot.slane %v4300_v62, 3 }
  0x2f   : > { %v929_v59 = vmax.f32 %v4244_v57, %v752_v51  ;;  %v1239_v10 = vsel %vm1234_vm2, %v1236_v6, %v1238_v45  ;;  %v1251_v8 = vrot.slane %v4324_v15, 3  ;;  %v1178_v19 = vmax.f32 %v926_v61, %v998_v31 }
  0x30   : > { %v1257_v4 = vrot.slane %v4343_v25, 3  ;;  %v1426_v24 = vmax.f32 %v1172_v55, %v1239_v10  ;;  %v1492_v63 = vrot.slane %v4169_v12, 4  ;;  %v1246_v9 = vsel %vm1234_vm2, %v1243_v52, %v1245_v17 }
  0x31   : > { %v1181_v26 = vmax.f32 %v929_v59, %v1004_v42  ;;  %v1252_v28 = vsel %vm1234_vm2, %v1249_v18, %v1251_v8  ;;  %v1499_v6 = vrot.slane %v4300_v62, 4  ;;  %v1429_v54 = vmax.f32 %v1175_v40, %v1246_v9 }
  0x32   : > { %v1258_v29 = vsel %vm1234_vm2, %v1255_v23, %v1257_v4  ;;  %v1432_v51 = vmax.f32 %v1178_v19, %v1252_v28  ;;  %v1493_v55 = vsel %vm1488_vm3, %v1490_v11, %v1492_v63  ;;  %v1505_v31 = vrot.slane %v4324_v15, 4 }
  0x33   : > { %v1435_v61 = vmax.f32 %v1181_v26, %v1258_v29  ;;  %v1500_v52 = vsel %vm1488_vm3, %v1497_v30, %v1499_v6  ;;  %v1511_v18 = vrot.slane %v4343_v25, 4  ;;  %v4404_v42 = vmax.f32 %v1426_v24, %v1493_v55 }
  0x34   : > { %v1683_v59 = vmax.f32 %v1429_v54, %v1500_v52  ;;  %v735_v23 = vsel %vm728_vm1, %v732_v21, %v4145_v2  ;;  %v741_v11 = vsel %vm728_vm1, %v739_v16, %v4145_v2  ;;  %v1506_v41 = vsel %vm1488_vm3, %v1503_v48, %v1505_v31 }
  0x35   : > { %7473 = vst [vmem:[#allocation11_spill] sm:$0xff] %v4404_v42  ;;  %v1512_v30 = vsel %vm1488_vm3, %v1509_v56, %v1511_v18  ;;  %v747_v40 = vsel %vm728_vm1, %v745_v27, %v4145_v2  ;;  %v753_v10 = vsel %vm728_vm1, %v751_v46, %v4145_v2  ;;  %v4422_v21 = vmax.f32 %v1432_v51, %v1506_v41 }
  0x36   : > { %v4424_v19 = vmax.f32 %v1435_v61, %v1512_v30  ;;  %v1743_v49 = vmax.f32 %v4404_v42, %v1683_v59  ;;  %v921_v48 = vmax.f32 %v4169_v12, %v735_v23  ;;  %v924_v16 = vmax.f32 %v4300_v62, %v741_v11 }
  0x37   : > { %7474 = vst [vmem:[#allocation12_spill] sm:$0xff] %v4422_v21  ;;  %v927_v24 = vmax.f32 %v4324_v15, %v747_v40  ;;  %v930_v56 = vmax.f32 %v4343_v25, %v753_v10  ;;  %v987_v27 = vsel %vm308_vm0, %v985_v0, %v4143_v1  ;;  %v1746_v46 = vmax.f32 %v1683_v59, %v4422_v21  ;;  %v249_v59 = vld [vmem:[%s4164_s19 + $0x30] sm:$0xff]  ;;  %v250_v40 = vld [vmem:[%s4164_s19 + $0x38] sm:$0xff]  ;;  %v251_v10 = vld [vmem:[%s4164_s19 + $0x40] sm:$0xff] }
  0x38   : > { %7475 = vst [vmem:[#allocation13_spill] sm:$0xff] %v4424_v19  ;;  %v1800_v9 = vmax.f32 %v1743_v49, %v4422_v21  ;;  %3729 = vst.msk [vmem:[%s4306_s22 + $0x4] sm:$0xff] %vm3728_vm5, %v4424_v19  ;;  %v993_v15 = vsel %vm308_vm0, %v991_v20, %v4143_v1  ;;  %v999_v28 = vsel %vm308_vm0, %v997_v50, %v4143_v1  ;;  %v4468_v49 = vld [vmem:[%s4164_s19 + $0x48] sm:$0xff] }
  0x39   : > { %v1005_v0 = vsel %vm308_vm0, %v1003_v47, %v4143_v1  ;;  %v1173_v29 = vmax.f32 %v921_v48, %v987_v27  ;;  %v1176_v54 = vmax.f32 %v924_v16, %v993_v15  ;;  %v4451_v51 = vmax.f32 %v1746_v46, %v4424_v19 }
  0x3a   : > { %v4454_v55 = vmax.f32 %v1800_v9, %v4424_v19  ;;  %v1179_v62 = vmax.f32 %v927_v24, %v999_v28  ;;  %v1182_v61 = vmax.f32 %v930_v56, %v1005_v0  ;;  %v1241_v20 = vsel %vm1234_vm2, %v1238_v45, %v4171_v13 }
  0x3b   : > { %v1247_v50 = vsel %vm1234_vm2, %v1245_v17, %v4171_v13  ;;  %v1253_v47 = vsel %vm1234_vm2, %v1251_v8, %v4171_v13  ;;  %v1259_v52 = vsel %vm1234_vm2, %v1257_v4, %v4171_v13  ;;  %v1427_v23 = vmax.f32 %v1173_v29, %v1241_v20 }
  0x3c   : > { %v1430_v11 = vmax.f32 %v1176_v54, %v1247_v50  ;;  %v1433_v41 = vmax.f32 %v1179_v62, %v1253_v47  ;;  %v1436_v30 = vmax.f32 %v1182_v61, %v1259_v52  ;;  %v1495_v45 = vsel %vm1488_vm3, %v1492_v63, %v4173_v14 }
  0x3d   : > { %v1501_v17 = vsel %vm1488_vm3, %v1499_v6, %v4173_v14  ;;  %v1507_v8 = vsel %vm1488_vm3, %v1505_v31, %v4173_v14  ;;  %v1513_v4 = vsel %vm1488_vm3, %v1511_v18, %v4173_v14  ;;  %v4478_v48 = vmax.f32 %v1427_v23, %v1495_v45 }
  0x3e   : > { %v1684_v16 = vmax.f32 %v1430_v11, %v1501_v17  ;;  %v4480_v24 = vmax.f32 %v1433_v41, %v1507_v8  ;;  %v4482_v56 = vmax.f32 %v1436_v30, %v1513_v4  ;;  %v320_v27 = vrot.slane %v249_v59, 2 }
  0x3f   : > { %7476 = vst [vmem:[#allocation14_spill] sm:$0xff] %v4478_v48  ;;  %v321_v46 = vrot.slane %v250_v40, 2  ;;  %v323_v9 = vrot.slane %v251_v10, 2  ;;  %v324_v63 = vrot.slane %v4468_v49, 2  ;;  %v446_v18 = vmax.f32 %v4204_v34, %v4207_v35 }
  0x40   : > { %7477 = vst [vmem:[#allocation15_spill] sm:$0xff] %v4480_v24  ;;  %7478 = vst [vmem:[#allocation16_spill] sm:$0xff] %v4482_v56  ;;  %v1744_v6 = vmax.f32 %v4478_v48, %v1684_v16  ;;  %v1747_v15 = vmax.f32 %v1684_v16, %v4480_v24  ;;  %v4498_v0 = vsel %vm308_vm0, -inf, %v320_v27  ;;  %v447_v52 = vmax.f32 %v4201_v33, %v4210_v37 }
  0x41   : > { %3731 = vst.msk [vmem:[%s4306_s22 + $0xc] sm:$0xf] %vm3730_vm6, %v4482_v56  ;;  %v4495_v28 = vsel %vm308_vm0, %v320_v27, %v321_v46  ;;  %v4501_v29 = vsel %vm308_vm0, %v321_v46, -inf  ;;  %v4504_v54 = vsel %vm308_vm0, %v323_v9, %v324_v63  ;;  %v614_v34 = vmax.f32 %v4240_v53, %v4498_v0 }
  0x42   : > { %v1801_v62 = vmax.f32 %v1744_v6, %v4480_v24  ;;  %v4508_v61 = vmax.f32 %v1747_v15, %v4482_v56  ;;  %v615_v20 = vmax.f32 %v4244_v57, %v4495_v28  ;;  %v616_v50 = vmax.f32 %v4343_v25, %v4501_v29 }
  0x43   : > { %v4517_v47 = vsel %vm308_vm0, -inf, %v323_v9  ;;  %v500_v59 = vmax.f32 %v446_v18, %v4216_v39  ;;  %v754_v11 = vrot.slane %v614_v34, 1  ;;  %v1006_v53 = vrot.slane %v614_v34, 2 }
  0x44   : > { %7479 = vst [vmem:[#allocation17_spill] sm:$0xff] %v4508_v61  ;;  %v4523_v23 = vmax.f32 %v1801_v62, %v4482_v56  ;;  %v755_v41 = vrot.slane %v615_v20, 1  ;;  %v1007_v30 = vrot.slane %v615_v20, 2  ;;  %v1260_v40 = vrot.slane %v614_v34, 3 }
  0x45   : > { %v1261_v57 = vrot.slane %v615_v20, 3  ;;  %v1514_v10 = vrot.slane %v614_v34, 4  ;;  %v1515_v49 = vrot.slane %v615_v20, 4  ;;  %v757_v45 = vrot.slane %v616_v50, 1 }
  0x46   : > { %7480 = vst [vmem:[#allocation18_spill] sm:$0xff] %v4523_v23  ;;  %v756_v25 = vsel %vm728_vm1, %v754_v11, %v755_v41  ;;  %v1009_v17 = vrot.slane %v616_v50, 2  ;;  %v1008_v33 = vsel %vm308_vm0, %v1006_v53, %v1007_v30  ;;  %v1263_v16 = vrot.slane %v616_v50, 3 }
  0x47   : > { %v931_v8 = vmax.f32 %v614_v34, %v756_v25  ;;  %v1262_v4 = vsel %vm1234_vm2, %v1260_v40, %v1261_v57  ;;  %v1516_v27 = vsel %vm1488_vm3, %v1514_v10, %v1515_v49  ;;  %v758_v46 = vsel %vm728_vm1, %v755_v41, %v757_v45  ;;  %v253_v10 = vld [vmem:[%s4164_s19 + $0x50] sm:$0xff] }
  0x48   : > { %v1010_v9 = vsel %vm308_vm0, %v1007_v30, %v1009_v17  ;;  %v1517_v6 = vrot.slane %v616_v50, 4  ;;  %v932_v18 = vmax.f32 %v615_v20, %v758_v46  ;;  %v1264_v62 = vsel %vm1234_vm2, %v1261_v57, %v1263_v16 }
  0x49   : > { %v1183_v15 = vmax.f32 %v931_v8, %v1008_v33  ;;  %v759_v34 = vsel %vm728_vm1, %v757_v45, %v4145_v2  ;;  %v1011_v40 = vsel %vm308_vm0, %v1009_v17, %v4143_v1  ;;  %v1265_v41 = vsel %vm1234_vm2, %v1263_v16, %v4171_v13  ;;  %v254_v8 = vld [vmem:[%s4164_s19 + $0x58] sm:$0xff] }
  0x4a   : > { %v1518_v11 = vsel %vm1488_vm3, %v1515_v49, %v1517_v6  ;;  %v933_v53 = vmax.f32 %v616_v50, %v759_v34  ;;  %v1184_v30 = vmax.f32 %v932_v18, %v1010_v9  ;;  %v1519_v20 = vsel %vm1488_vm3, %v1517_v6, %v4173_v14 }
  0x4b   : > { %v1437_v25 = vmax.f32 %v1183_v15, %v1262_v4  ;;  %v501_v57 = vmax.f32 %v447_v52, %v4213_v38  ;;  %v557_v49 = vmax.f32 %v500_v59, %v4498_v0  ;;  %v4546_v50 = vsel %vm308_vm0, %v324_v63, -inf }
  0x4c   : > { %v1185_v45 = vmax.f32 %v933_v53, %v1011_v40  ;;  %v448_v17 = vmax.f32 %v4226_v43, %v4229_v44  ;;  %v1438_v4 = vmax.f32 %v1184_v30, %v1264_v62  ;;  %v326_v46 = vrot.slane %v253_v10, 2 }
  0x4d   : > { %v4550_v33 = vmax.f32 %v1437_v25, %v1516_v27  ;;  %v558_v16 = vmax.f32 %v501_v57, %v4495_v28  ;;  %v617_v52 = vmax.f32 %v557_v49, %v4517_v47  ;;  %v327_v15 = vrot.slane %v254_v8, 2  ;;  %v255_v8 = vld [vmem:[%s4164_s19 + $0x60] sm:$0xff] }
  0x4e   : > { %v1439_v9 = vmax.f32 %v1185_v45, %v1265_v41  ;;  %v502_v6 = vmax.f32 %v448_v17, %v4293_v60  ;;  %v4560_v43 = vmax.f32 %v1438_v4, %v1518_v11  ;;  %v4564_v27 = vsel %vm308_vm0, -inf, %v326_v46 }
  0x4f   : > { %v1751_v63 = vmax.f32 %v4319_v7, %v4550_v33  ;;  %3732 = vst.msk [vmem:[%s4306_s22 + $0xc] sm:$0xf0] %vm3726_vm4, %v4550_v33  ;;  %v618_v59 = vmax.f32 %v558_v16, %v4504_v54  ;;  %v760_v62 = vrot.slane %v617_v52, 1  ;;  %v1012_v34 = vrot.slane %v617_v52, 2 }
  0x50   : > { %v4566_v18 = vmax.f32 %v1439_v9, %v1519_v20  ;;  %v1266_v53 = vrot.slane %v617_v52, 3  ;;  %3733 = vst.msk [vmem:[%s4306_s22 + $0x14] sm:$0xff] %vm3728_vm5, %v4560_v43  ;;  %v1520_v30 = vrot.slane %v617_v52, 4  ;;  %v559_v57 = vmax.f32 %v502_v6, %v4501_v29 }
  0x51   : > { %v761_v41 = vrot.slane %v618_v59, 1  ;;  %v1013_v11 = vrot.slane %v618_v59, 2  ;;  %v1267_v10 = vrot.slane %v618_v59, 3  ;;  %v1521_v20 = vrot.slane %v618_v59, 4 }
  0x52   : > { %7481 = vst [vmem:[#allocation19_spill] sm:$0xff] %v4566_v18  ;;  %3734 = vst.msk [vmem:[%s4306_s22 + $0x1c] sm:$0xf] %vm3730_vm6, %v4566_v18  ;;  %v4584_v4 = vsel %vm308_vm0, %v326_v46, %v327_v15  ;;  %v619_v31 = vmax.f32 %v559_v57, %v4546_v50  ;;  %v449_v26 = vmax.f32 %v4207_v35, %v4216_v39 }
  0x53   : > { %v762_v45 = vsel %vm728_vm1, %v760_v62, %v761_v41  ;;  %v1014_v49 = vsel %vm308_vm0, %v1012_v34, %v1013_v11  ;;  %v1268_v17 = vsel %vm1234_vm2, %v1266_v53, %v1267_v10  ;;  %v1522_v9 = vsel %vm1488_vm3, %v1520_v30, %v1521_v20 }
  0x54   : > { %v934_v16 = vmax.f32 %v617_v52, %v762_v45  ;;  %v450_v6 = vmax.f32 %v4210_v37, %v4213_v38  ;;  %v4593_v62 = vsel %vm308_vm0, %v327_v15, -inf  ;;  %v451_v34 = vmax.f32 %v4229_v44, %v4293_v60 }
  0x55   : > { %v329_v53 = vrot.slane %v255_v8, 2  ;;  %v763_v52 = vrot.slane %v619_v31, 1  ;;  %v1015_v45 = vrot.slane %v619_v31, 2  ;;  %v1269_v30 = vrot.slane %v619_v31, 3 }
  0x56   : > { %v1186_v46 = vmax.f32 %v934_v16, %v1014_v49  ;;  %v1523_v22 = vrot.slane %v619_v31, 4  ;;  %v503_v57 = vmax.f32 %v449_v26, %v4498_v0  ;;  %v504_v35 = vmax.f32 %v450_v6, %v4495_v28  ;;  %v4609_v6 = vld [vmem:[%s4164_s19 + $0x68] sm:$0xff] }
  0x57   : > { %v505_v25 = vmax.f32 %v451_v34, %v4501_v29  ;;  %v764_v15 = vsel %vm728_vm1, %v761_v41, %v763_v52  ;;  %v1016_v40 = vsel %vm308_vm0, %v1013_v11, %v1015_v45  ;;  %v1270_v44 = vsel %vm1234_vm2, %v1267_v10, %v1269_v30 }
  0x58   : > { %v1440_v37 = vmax.f32 %v1186_v46, %v1268_v17  ;;  %v935_v8 = vmax.f32 %v618_v59, %v764_v15  ;;  %v1524_v49 = vsel %vm1488_vm3, %v1521_v20, %v1523_v22  ;;  %v765_v16 = vsel %vm728_vm1, %v763_v52, %v4145_v2 }
  0x59   : > { %v1017_v26 = vsel %vm308_vm0, %v1015_v45, %v4143_v1  ;;  %v936_v17 = vmax.f32 %v619_v31, %v765_v16  ;;  %v1271_v41 = vsel %vm1234_vm2, %v1269_v30, %v4171_v13  ;;  %v1525_v11 = vsel %vm1488_vm3, %v1523_v22, %v4173_v14 }
  0x5a   : > { %v4611_v34 = vmax.f32 %v1440_v37, %v1522_v9  ;;  %v1187_v59 = vmax.f32 %v935_v8, %v1016_v40  ;;  %v560_v10 = vmax.f32 %v503_v57, %v4517_v47  ;;  %v561_v20 = vmax.f32 %v504_v35, %v4504_v54 }
  0x5b   : > { %v562_v46 = vmax.f32 %v505_v25, %v4546_v50  ;;  %v1188_v31 = vmax.f32 %v936_v17, %v1017_v26  ;;  %v330_v45 = vrot.slane %v4609_v6, 2  ;;  %v452_v37 = vmax.f32 %v4216_v39, %v4498_v0 }
  0x5c   : > { %v1754_v52 = vmax.f32 %v4550_v33, %v4611_v34  ;;  %v4623_v9 = vmax.f32 %v1751_v63, %v4611_v34  ;;  %3735 = vst.msk [vmem:[%s4306_s22 + $0x1c] sm:$0xf0] %vm3726_vm4, %v4611_v34  ;;  %v1441_v22 = vmax.f32 %v1187_v59, %v1270_v44  ;;  %v620_v40 = vmax.f32 %v560_v10, %v4564_v27 }
  0x5d   : > { %v621_v30 = vmax.f32 %v561_v20, %v4584_v4  ;;  %v622_v25 = vmax.f32 %v562_v46, %v4593_v62  ;;  %v1442_v57 = vmax.f32 %v1188_v31, %v1271_v41  ;;  %v4633_v35 = vsel %vm308_vm0, %v329_v53, %v330_v45 }
  0x5e   : > { %7482 = vst [vmem:[#allocation20_spill] sm:$0xff] %v4623_v9  ;;  %v4636_v63 = vsel %vm308_vm0, -inf, %v329_v53  ;;  %v4640_v15 = vmax.f32 %v1441_v22, %v1524_v49  ;;  %v766_v44 = vrot.slane %v620_v40, 1  ;;  %v1018_v16 = vrot.slane %v620_v40, 2 }
  0x5f   : > { %v767_v8 = vrot.slane %v621_v30, 1  ;;  %v4642_v26 = vmax.f32 %v1442_v57, %v1525_v11  ;;  %v1019_v6 = vrot.slane %v621_v30, 2  ;;  %v1272_v17 = vrot.slane %v620_v40, 3 }
  0x60   : > { %7483 = vst [vmem:[#allocation21_spill] sm:$0xff] %v4640_v15  ;;  %v1273_v41 = vrot.slane %v621_v30, 3  ;;  %v1755_v59 = vmax.f32 %v4560_v43, %v4640_v15  ;;  %v7485_v53 = vmax.f32 %v4424_v19, %v4560_v43  ;;  %3736 = vst.msk [vmem:[%s4306_s22 + $0x24] sm:$0xff] %vm3728_vm5, %v4640_v15  ;;  %v1526_v49 = vrot.slane %v620_v40, 4 }
  0x61   : > { %7484 = vst [vmem:[#allocation22_spill] sm:$0xff] %v4642_v26  ;;  %v768_v39 = vsel %vm728_vm1, %v766_v44, %v767_v8  ;;  %v1756_v11 = vmax.f32 %v4566_v18, %v4642_v26  ;;  %v7487_v20 = vmax.f32 %v4482_v56, %v4566_v18  ;;  %3737 = vst.msk [vmem:[%s4306_s22 + $0x2c] sm:$0xf] %vm3730_vm6, %v4642_v26  ;;  %v1527_v44 = vrot.slane %v621_v30, 4 }
  0x62   : > { %v4650_v10 = vmax.f32 %v7485_v53, %v4640_v15  ;;  %v937_v31 = vmax.f32 %v620_v40, %v768_v39  ;;  %v1020_v22 = vsel %vm308_vm0, %v1018_v16, %v1019_v6  ;;  %v1274_v57 = vsel %vm1234_vm2, %v1272_v17, %v1273_v41 }
  0x63   : > { %v4662_v46 = vmax.f32 %v7487_v20, %v4642_v26  ;;  %v769_v53 = vrot.slane %v622_v25, 1  ;;  %v1021_v48 = vrot.slane %v622_v25, 2  ;;  %v1275_v58 = vrot.slane %v622_v25, 3 }
  0x64   : > { %7486 = vst [vmem:[#allocation23_spill] sm:$0xff] %v4650_v10  ;;  %v1189_v42 = vmax.f32 %v937_v31, %v1020_v22  ;;  %v1529_v24 = vrot.slane %v622_v25, 4  ;;  %v453_v56 = vmax.f32 %v4213_v38, %v4495_v28  ;;  %v1528_v20 = vsel %vm1488_vm3, %v1526_v49, %v1527_v44  ;;  %v257_v22 = vld [vmem:[%s4164_s19 + $0x70] sm:$0xff] }
  0x65   : > { %7488 = vst [vmem:[#allocation24_spill] sm:$0xff] %v4662_v46  ;;  %v770_v19 = vsel %vm728_vm1, %v767_v8, %v769_v53  ;;  %v1022_v40 = vsel %vm308_vm0, %v1019_v6, %v1021_v48  ;;  %v771_v16 = vsel %vm728_vm1, %v769_v53, %v4145_v2  ;;  %v1276_v21 = vsel %vm1234_vm2, %v1273_v41, %v1275_v58 }
  0x66   : > { %v1443_v17 = vmax.f32 %v1189_v42, %v1274_v57  ;;  %v938_v39 = vmax.f32 %v621_v30, %v770_v19  ;;  %v1530_v31 = vsel %vm1488_vm3, %v1527_v44, %v1529_v24  ;;  %v939_v7 = vmax.f32 %v622_v25, %v771_v16  ;;  %v4695_v57 = vld [vmem:[%s4164_s19 + $0x78] sm:$0xff] }
  0x67   : > { %v1023_v38 = vsel %vm308_vm0, %v1021_v48, %v4143_v1  ;;  %v1277_v8 = vsel %vm1234_vm2, %v1275_v58, %v4171_v13  ;;  %v1531_v6 = vsel %vm1488_vm3, %v1529_v24, %v4173_v14  ;;  %v506_v19 = vmax.f32 %v452_v37, %v4517_v47 }
  0x68   : > { %v4685_v49 = vmax.f32 %v1443_v17, %v1528_v20  ;;  %v1190_v42 = vmax.f32 %v938_v39, %v1022_v40  ;;  %v507_v30 = vmax.f32 %v453_v56, %v4504_v54  ;;  %v1191_v41 = vmax.f32 %v939_v7, %v1023_v38 }
  0x69   : > { %v4690_v25 = vsel %vm308_vm0, %v330_v45, -inf  ;;  %v454_v48 = vmax.f32 %v4293_v60, %v4501_v29  ;;  %v332_v58 = vrot.slane %v257_v22, 2  ;;  %v563_v60 = vmax.f32 %v506_v19, %v4564_v27 }
  0x6a   : > { %7489 = vst [vmem:[#allocation25_spill] sm:$0xff] %v4685_v49  ;;  %v4700_v44 = vmax.f32 %v1754_v52, %v4685_v49  ;;  %3738 = vst.msk [vmem:[%s4306_s22 + $0x2c] sm:$0xf0] %vm3726_vm4, %v4685_v49  ;;  %v1444_v7 = vmax.f32 %v1190_v42, %v1276_v21  ;;  %v1445_v56 = vmax.f32 %v1191_v41, %v1277_v8  ;;  %v333_v52 = vrot.slane %v4695_v57, 2 }
  0x6b   : > { %v564_v45 = vmax.f32 %v507_v30, %v4584_v4  ;;  %v508_v53 = vmax.f32 %v454_v48, %v4546_v50  ;;  %v4714_v40 = vsel %vm308_vm0, -inf, %v332_v58  ;;  %v455_v16 = vmax.f32 %v4498_v0, %v4517_v47 }
  0x6c   : > { %7490 = vst [vmem:[#allocation26_spill] sm:$0xff] %v4700_v44  ;;  %v4710_v20 = vmax.f32 %v1444_v7, %v1530_v31  ;;  %v4718_v21 = vmax.f32 %v1445_v56, %v1531_v6  ;;  %v623_v17 = vmax.f32 %v563_v60, %v4636_v63  ;;  %v4734_v0 = vsel %vm308_vm0, %v332_v58, %v333_v52 }
  0x6d   : > { %v624_v39 = vmax.f32 %v564_v45, %v4633_v35  ;;  %v565_v22 = vmax.f32 %v508_v53, %v4593_v62  ;;  %v456_v53 = vmax.f32 %v4495_v28, %v4504_v54  ;;  %v509_v19 = vmax.f32 %v455_v16, %v4564_v27 }
  0x6e   : > { %7491 = vst [vmem:[#allocation27_spill] sm:$0xff] %v4710_v20  ;;  %7492 = vst [vmem:[#allocation28_spill] sm:$0xff] %v4718_v21  ;;  %v4726_v38 = vmax.f32 %v1755_v59, %v4710_v20  ;;  %v4739_v42 = vmax.f32 %v1756_v11, %v4718_v21  ;;  %v772_v59 = vrot.slane %v623_v17, 1  ;;  %v1024_v41 = vrot.slane %v623_v17, 2 }
  0x6f   : > { %3739 = vst.msk [vmem:[%s4306_s22 + $0x34] sm:$0xff] %vm3728_vm5, %v4710_v20  ;;  %v773_v30 = vrot.slane %v624_v39, 1  ;;  %v1025_v48 = vrot.slane %v624_v39, 2  ;;  %v1278_v57 = vrot.slane %v623_v17, 3  ;;  %v1279_v7 = vrot.slane %v624_v39, 3 }
  0x70   : > { %7493 = vst [vmem:[#allocation29_spill] sm:$0xff] %v4726_v38  ;;  %7494 = vst [vmem:[#allocation30_spill] sm:$0xff] %v4739_v42  ;;  %v1532_v58 = vrot.slane %v623_v17, 4  ;;  %v1533_v56 = vrot.slane %v624_v39, 4  ;;  %v625_v60 = vmax.f32 %v565_v22, %v4690_v25  ;;  %v510_v22 = vmax.f32 %v456_v53, %v4584_v4 }
  0x71   : > { %3740 = vst.msk [vmem:[%s4306_s22 + $0x3c] sm:$0xf] %vm3730_vm6, %v4718_v21  ;;  %v774_v45 = vsel %vm728_vm1, %v772_v59, %v773_v30  ;;  %v1026_v11 = vsel %vm308_vm0, %v1024_v41, %v1025_v48  ;;  %v1280_v37 = vsel %vm1234_vm2, %v1278_v57, %v1279_v7  ;;  %v566_v28 = vmax.f32 %v509_v19, %v4636_v63 }
  0x72   : > { %v940_v8 = vmax.f32 %v623_v17, %v774_v45  ;;  %v1534_v6 = vsel %vm1488_vm3, %v1532_v58, %v1533_v56  ;;  %v775_v31 = vrot.slane %v625_v60, 1  ;;  %v1027_v24 = vrot.slane %v625_v60, 2 }
  0x73   : > { %v1281_v46 = vrot.slane %v625_v60, 3  ;;  %v1535_v10 = vrot.slane %v625_v60, 4  ;;  %v626_v19 = vmax.f32 %v566_v28, %v4714_v40 }
  0x74   : > { %v1192_v9 = vmax.f32 %v940_v8, %v1026_v11  ;;  %v776_v59 = vsel %vm728_vm1, %v773_v30, %v775_v31  ;;  %v777_v41 = vsel %vm728_vm1, %v775_v31, %v4145_v2  ;;  %v1028_v17 = vsel %vm308_vm0, %v1025_v48, %v1027_v24 }
  0x75   : > { %v941_v16 = vmax.f32 %v624_v39, %v776_v59  ;;  %v1282_v57 = vsel %vm1234_vm2, %v1279_v7, %v1281_v46  ;;  %v1536_v58 = vsel %vm1488_vm3, %v1533_v56, %v1535_v10  ;;  %v942_v32 = vmax.f32 %v625_v60, %v777_v41 }
  0x76   : > { %v1446_v45 = vmax.f32 %v1192_v9, %v1280_v37  ;;  %v1029_v53 = vsel %vm308_vm0, %v1027_v24, %v4143_v1  ;;  %v1283_v8 = vsel %vm1234_vm2, %v1281_v46, %v4171_v13  ;;  %v1537_v31 = vsel %vm1488_vm3, %v1535_v10, %v4173_v14 }
  0x77   : > { %v1193_v30 = vmax.f32 %v941_v16, %v1028_v17  ;;  %v567_v39 = vmax.f32 %v510_v22, %v4633_v35  ;;  %v1194_v7 = vmax.f32 %v942_v32, %v1029_v53  ;;  %v4773_v9 = vsel %vm308_vm0, %v333_v52, -inf }
  0x78   : > { %v4770_v48 = vmax.f32 %v1446_v45, %v1534_v6  ;;  %v457_v24 = vmax.f32 %v4501_v29, %v4546_v50  ;;  %v778_v56 = vrot.slane %v626_v19, 1  ;;  %v1030_v60 = vrot.slane %v626_v19, 2 }
  0x79   : > { %v1447_v37 = vmax.f32 %v1193_v30, %v1282_v57  ;;  %v4778_v46 = vmax.f32 %v567_v39, %v4734_v0  ;;  %v7496_v6 = vmax.f32 %v4611_v34, %v4685_v49  ;;  %v1448_v29 = vmax.f32 %v1194_v7, %v1283_v8  ;;  %v260_v39 = vld [vmem:[%s4164_s19 + $0x88] sm:$0xff] }
  0x7a   : > { %7495 = vst [vmem:[#allocation31_spill] sm:$0xff] %v4770_v48  ;;  %v1760_v10 = vmax.f32 %v4685_v49, %v4770_v48  ;;  %3741 = vst.msk [vmem:[%s4306_s22 + $0x3c] sm:$0xf0] %vm3726_vm4, %v4770_v48  ;;  %v1284_v41 = vrot.slane %v626_v19, 3  ;;  %v1538_v17 = vrot.slane %v626_v19, 4  ;;  %v511_v45 = vmax.f32 %v457_v24, %v4593_v62 }
  0x7b   : > { %v4786_v32 = vmax.f32 %v7496_v6, %v4770_v48  ;;  %v4793_v11 = vmax.f32 %v1447_v37, %v1536_v58  ;;  %v779_v22 = vrot.slane %v4778_v46, 1  ;;  %v1031_v59 = vrot.slane %v4778_v46, 2 }
  0x7c   : > { %v4797_v28 = vmax.f32 %v1448_v29, %v1537_v31  ;;  %v1285_v16 = vrot.slane %v4778_v46, 3  ;;  %v1539_v57 = vrot.slane %v4778_v46, 4  ;;  %v7500_v58 = vmax.f32 %v4640_v15, %v4710_v20  ;;  %v259_v31 = vld [vmem:[%s4164_s19 + $0x80] sm:$0xff] }
  0x7d   : > { %7497 = vst [vmem:[#allocation32_spill] sm:$0xff] %v4786_v32  ;;  %7498 = vst [vmem:[#allocation33_spill] sm:$0xff] %v4793_v11  ;;  %v780_v30 = vsel %vm728_vm1, %v778_v56, %v779_v22  ;;  %v7502_v37 = vmax.f32 %v4642_v26, %v4718_v21  ;;  %v261_v56 = vld [vmem:[%s4164_s19 + $0x90] sm:$0xff]  ;;  %v1032_v8 = vsel %vm308_vm0, %v1030_v60, %v1031_v59  ;;  %v336_v44 = vrot.slane %v260_v39, 2 }
  0x7e   : > { %7499 = vst [vmem:[#allocation34_spill] sm:$0xff] %v4797_v28  ;;  %v4807_v53 = vmax.f32 %v7500_v58, %v4793_v11  ;;  %3742 = vst.msk [vmem:[%s4306_s22 + $0x44] sm:$0xff] %vm3728_vm5, %v4793_v11  ;;  %v943_v58 = vmax.f32 %v626_v19, %v780_v30  ;;  %v1286_v52 = vsel %vm1234_vm2, %v1284_v41, %v1285_v16  ;;  %v4843_v30 = vld [vmem:[%s4164_s19 + $0x98] sm:$0xff]  ;;  %v338_v41 = vrot.slane %v261_v56, 2 }
  0x7f   : > { %v4823_v6 = vmax.f32 %v7502_v37, %v4797_v28  ;;  %3743 = vst.msk [vmem:[%s4306_s22 + $0x4c] sm:$0xf] %vm3730_vm6, %v4797_v28  ;;  %v1540_v7 = vsel %vm1488_vm3, %v1538_v17, %v1539_v57  ;;  %v335_v37 = vrot.slane %v259_v31, 2  ;;  %v458_v49 = vmax.f32 %v4517_v47, %v4564_v27 }
  0x80   : > { %7501 = vst [vmem:[#allocation35_spill] sm:$0xff] %v4807_v53  ;;  %v1195_v38 = vmax.f32 %v943_v58, %v1032_v8  ;;  %v568_v29 = vmax.f32 %v511_v45, %v4690_v25  ;;  %v459_v19 = vmax.f32 %v4504_v54, %v4584_v4  ;;  %v460_v60 = vmax.f32 %v4546_v50, %v4593_v62 }
  0x81   : > { %7503 = vst [vmem:[#allocation36_spill] sm:$0xff] %v4823_v6  ;;  %v4846_v24 = vsel %vm308_vm0, %v335_v37, %v336_v44  ;;  %v4849_v8 = vsel %vm308_vm0, -inf, %v335_v37  ;;  %v512_v47 = vmax.f32 %v458_v49, %v4636_v63  ;;  %v4855_v31 = vsel %vm308_vm0, %v336_v44, -inf }
  0x82   : > { %v1449_v17 = vmax.f32 %v1195_v38, %v1286_v52  ;;  %v628_v45 = vmax.f32 %v568_v29, %v4773_v9  ;;  %v513_v54 = vmax.f32 %v459_v19, %v4633_v35  ;;  %v514_v50 = vmax.f32 %v460_v60, %v4690_v25 }
  0x83   : > { %v569_v38 = vmax.f32 %v512_v47, %v4714_v40  ;;  %v4863_v58 = vsel %vm308_vm0, -inf, %v338_v41 }
  0x84   : > { %v4858_v39 = vmax.f32 %v1449_v17, %v1540_v7  ;;  %v781_v49 = vrot.slane %v628_v45, 1  ;;  %v1033_v56 = vrot.slane %v628_v45, 2  ;;  %v1287_v37 = vrot.slane %v628_v45, 3 }
  0x85   : > { %v1541_v29 = vrot.slane %v628_v45, 4  ;;  %v570_v60 = vmax.f32 %v513_v54, %v4734_v0 }
  0x86   : > { %7504 = vst [vmem:[#allocation37_spill] sm:$0xff] %v4858_v39  ;;  %v4868_v44 = vmax.f32 %v1760_v10, %v4858_v39  ;;  %3744 = vst.msk [vmem:[%s4306_s22 + $0x4c] sm:$0xf0] %vm3726_vm4, %v4858_v39  ;;  %v782_v17 = vsel %vm728_vm1, %v779_v22, %v781_v49  ;;  %v1034_v47 = vsel %vm308_vm0, %v1031_v59, %v1033_v56 }
  0x87   : > { %v1288_v52 = vsel %vm1234_vm2, %v1285_v16, %v1287_v37  ;;  %v1542_v42 = vsel %vm1488_vm3, %v1539_v57, %v1541_v29  ;;  %v944_v19 = vmax.f32 %v4778_v46, %v782_v17  ;;  %v783_v10 = vsel %vm728_vm1, %v781_v49, %v4145_v2 }
  0x88   : > { %7505 = vst [vmem:[#allocation38_spill] sm:$0xff] %v4868_v44  ;;  %v1035_v7 = vsel %vm308_vm0, %v1033_v56, %v4143_v1  ;;  %v1289_v32 = vsel %vm1234_vm2, %v1287_v37, %v4171_v13  ;;  %v945_v54 = vmax.f32 %v628_v45, %v783_v10  ;;  %v1543_v22 = vsel %vm1488_vm3, %v1541_v29, %v4173_v14 }
  0x89   : > { %v629_v59 = vmax.f32 %v569_v38, %v4849_v8  ;;  %v630_v16 = vmax.f32 %v570_v60, %v4846_v24  ;;  %v1196_v57 = vmax.f32 %v944_v19, %v1034_v47  ;;  %v571_v46 = vmax.f32 %v514_v50, %v4773_v9 }
  0x8a   : > { %v7506_v17 = vrot.slane %v4843_v30, 2  ;;  %v461_v56 = vmax.f32 %v4564_v27, %v4636_v63  ;;  %v1197_v37 = vmax.f32 %v945_v54, %v1035_v7 }
  0x8b   : > { %v784_v45 = vrot.slane %v629_v59, 1  ;;  %v785_v10 = vrot.slane %v630_v16, 1  ;;  %v1036_v26 = vrot.slane %v629_v59, 2  ;;  %v1450_v29 = vmax.f32 %v1196_v57, %v1288_v52 }
  0x8c   : > { %v4895_v49 = vsel %vm308_vm0, %v338_v41, %v7506_v17  ;;  %v1037_v23 = vrot.slane %v630_v16, 2  ;;  %v1290_v38 = vrot.slane %v629_v59, 3  ;;  %v1291_v61 = vrot.slane %v630_v16, 3 }
  0x8d   : > { %v1451_v19 = vmax.f32 %v1197_v37, %v1289_v32  ;;  %v786_v50 = vsel %vm728_vm1, %v784_v45, %v785_v10  ;;  %v1544_v60 = vrot.slane %v629_v59, 4  ;;  %v1545_v47 = vrot.slane %v630_v16, 4 }
  0x8e   : > { %v4900_v18 = vmax.f32 %v1450_v29, %v1542_v42  ;;  %v946_v41 = vmax.f32 %v629_v59, %v786_v50  ;;  %v1038_v27 = vsel %vm308_vm0, %v1036_v26, %v1037_v23  ;;  %v1292_v7 = vsel %vm1234_vm2, %v1290_v38, %v1291_v61 }
  0x8f   : > { %v4904_v54 = vmax.f32 %v1451_v19, %v1543_v22  ;;  %v1546_v52 = vsel %vm1488_vm3, %v1544_v60, %v1545_v47  ;;  %v631_v57 = vmax.f32 %v571_v46, %v4855_v31  ;;  %v462_v32 = vmax.f32 %v4584_v4, %v4633_v35 }
  0x90   : > { %v1764_v17 = vmax.f32 %v4793_v11, %v4900_v18  ;;  %v7507_v42 = vmax.f32 %v4710_v20, %v4793_v11  ;;  %3745 = vst.msk [vmem:[%s4306_s22 + $0x54] sm:$0xff] %vm3728_vm5, %v4900_v18  ;;  %v1198_v22 = vmax.f32 %v946_v41, %v1038_v27  ;;  %v7509_v4 = vmax.f32 %v4718_v21, %v4797_v28 }
  0x91   : > { %v1765_v46 = vmax.f32 %v4797_v28, %v4904_v54  ;;  %3746 = vst.msk [vmem:[%s4306_s22 + $0x5c] sm:$0xf] %vm3730_vm6, %v4904_v54  ;;  %v787_v29 = vrot.slane %v631_v57, 1  ;;  %v1039_v19 = vrot.slane %v631_v57, 2  ;;  %v1293_v50 = vrot.slane %v631_v57, 3 }
  0x92   : > { %v4916_v59 = vmax.f32 %v7507_v42, %v4900_v18  ;;  %v4929_v37 = vmax.f32 %v7509_v4, %v4904_v54  ;;  %v1452_v38 = vmax.f32 %v1198_v22, %v1292_v7  ;;  %v1547_v60 = vrot.slane %v631_v57, 4 }
  0x93   : > { %v788_v41 = vsel %vm728_vm1, %v785_v10, %v787_v29  ;;  %v789_v27 = vsel %vm728_vm1, %v787_v29, %v4145_v2  ;;  %v515_v42 = vmax.f32 %v461_v56, %v4714_v40  ;;  %v516_v4 = vmax.f32 %v462_v32, %v4734_v0  ;;  %v263_v56 = vld [vmem:[%s4164_s19 + $0xa0] sm:$0xff] }
  0x94   : > { %7508 = vst [vmem:[#allocation39_spill] sm:$0xff] %v4916_v59  ;;  %7510 = vst [vmem:[#allocation40_spill] sm:$0xff] %v4929_v37  ;;  %v4941_v45 = vmax.f32 %v1452_v38, %v1546_v52  ;;  %v947_v26 = vmax.f32 %v630_v16, %v788_v41  ;;  %v1040_v7 = vsel %vm308_vm0, %v1037_v23, %v1039_v19  ;;  %v264_v52 = vld [vmem:[%s4164_s19 + $0xa8] sm:$0xff]  ;;  %v341_v32 = vrot.slane %v263_v56, 2 }
  0x95   : > { %v1294_v22 = vsel %vm1234_vm2, %v1291_v61, %v1293_v50  ;;  %v1548_v6 = vsel %vm1488_vm3, %v1545_v47, %v1547_v60  ;;  %v948_v53 = vmax.f32 %v631_v57, %v789_v27  ;;  %v1041_v10 = vsel %vm308_vm0, %v1039_v19, %v4143_v1 }
  0x96   : > { %7511 = vst [vmem:[#allocation41_spill] sm:$0xff] %v4941_v45  ;;  %v1295_v29 = vsel %vm1234_vm2, %v1293_v50, %v4171_v13  ;;  %v7512_v16 = vmax.f32 %v4770_v48, %v4858_v39  ;;  %3747 = vst.msk [vmem:[%s4306_s22 + $0x5c] sm:$0xf0] %vm3726_vm4, %v4941_v45  ;;  %v1199_v47 = vmax.f32 %v947_v26, %v1040_v7  ;;  %v7514_v27 = vrot.slane %v4843_v30, 2 }
  0x97   : > { %v1200_v57 = vmax.f32 %v948_v53, %v1041_v10  ;;  %v1549_v38 = vsel %vm1488_vm3, %v1547_v60, %v4173_v14  ;;  %v572_v19 = vmax.f32 %v515_v42, %v4849_v8  ;;  %v573_v50 = vmax.f32 %v516_v4, %v4846_v24 }
  0x98   : > { %v4957_v23 = vmax.f32 %v7512_v16, %v4941_v45  ;;  %v1453_v41 = vmax.f32 %v1199_v47, %v1294_v22  ;;  %v4972_v16 = vsel %vm308_vm0, %v7514_v27, -inf  ;;  %v463_v61 = vmax.f32 %v4593_v62, %v4690_v25 }
  0x99   : > { %v1454_v26 = vmax.f32 %v1200_v57, %v1295_v29  ;;  %v632_v53 = vmax.f32 %v572_v19, %v4863_v58  ;;  %v4978_v60 = vmax.f32 %v573_v50, %v4895_v49  ;;  %v342_v42 = vrot.slane %v264_v52, 2 }
  0x9a   : > { %7513 = vst [vmem:[#allocation42_spill] sm:$0xff] %v4957_v23  ;;  %v4980_v7 = vmax.f32 %v1453_v41, %v1548_v6  ;;  %v517_v30 = vmax.f32 %v463_v61, %v4773_v9  ;;  %v4984_v4 = vsel %vm308_vm0, -inf, %v341_v32  ;;  %v464_v62 = vmax.f32 %v4636_v63, %v4714_v40  ;;  %v266_v23 = vld [vmem:[%s4164_s19 + $0xb8] sm:$0xff] }
  0x9b   : > { %v4988_v22 = vmax.f32 %v1454_v26, %v1549_v38  ;;  %v790_v10 = vrot.slane %v632_v53, 1  ;;  %v791_v29 = vrot.slane %v4978_v60, 1  ;;  %v1042_v56 = vrot.slane %v632_v53, 2  ;;  %v5021_v38 = vld [vmem:[%s4164_s19 + $0xb0] sm:$0xff] }
  0x9c   : > { %7515 = vst [vmem:[#allocation43_spill] sm:$0xff] %v4980_v7  ;;  %v4994_v6 = vmax.f32 %v1764_v17, %v4980_v7  ;;  %3748 = vst.msk [vmem:[%s4306_s22 + $0x64] sm:$0xff] %vm3728_vm5, %v4980_v7  ;;  %v1043_v63 = vrot.slane %v4978_v60, 2  ;;  %v1296_v41 = vrot.slane %v632_v53, 3  ;;  %v1297_v27 = vrot.slane %v4978_v60, 3 }
  0x9d   : > { %7516 = vst [vmem:[#allocation44_spill] sm:$0xff] %v4988_v22  ;;  %v5005_v57 = vmax.f32 %v1765_v46, %v4988_v22  ;;  %3749 = vst.msk [vmem:[%s4306_s22 + $0x6c] sm:$0xf] %vm3730_vm6, %v4988_v22  ;;  %v792_v17 = vsel %vm728_vm1, %v790_v10, %v791_v29  ;;  %v1550_v26 = vrot.slane %v632_v53, 4  ;;  %v1551_v61 = vrot.slane %v4978_v60, 4 }
  0x9e   : > { %7517 = vst [vmem:[#allocation45_spill] sm:$0xff] %v4994_v6  ;;  %v949_v19 = vmax.f32 %v632_v53, %v792_v17  ;;  %v1044_v50 = vsel %vm308_vm0, %v1042_v56, %v1043_v63  ;;  %v574_v46 = vmax.f32 %v517_v30, %v4855_v31  ;;  %v5018_v52 = vsel %vm308_vm0, %v341_v32, %v342_v42 }
  0x9f   : > { %7518 = vst [vmem:[#allocation46_spill] sm:$0xff] %v5005_v57  ;;  %v1298_v37 = vsel %vm1234_vm2, %v1296_v41, %v1297_v27  ;;  %v465_v10 = vmax.f32 %v4633_v35, %v4734_v0  ;;  %v518_v56 = vmax.f32 %v464_v62, %v4849_v8  ;;  %v1552_v17 = vsel %vm1488_vm3, %v1550_v26, %v1551_v61 }
  0xa0   : > { %v1201_v47 = vmax.f32 %v949_v19, %v1044_v50  ;;  %v634_v53 = vmax.f32 %v574_v46, %v4972_v16  ;;  %v5030_v59 = vsel %vm308_vm0, %v342_v42, -inf  ;;  %v466_v32 = vmax.f32 %v4690_v25, %v4773_v9 }
  0xa1   : > { %v519_v19 = vmax.f32 %v465_v10, %v4846_v24  ;;  %v575_v50 = vmax.f32 %v518_v56, %v4863_v58 }
  0xa2   : > { %v1455_v30 = vmax.f32 %v1201_v47, %v1298_v37  ;;  %v793_v35 = vrot.slane %v634_v53, 1  ;;  %v1045_v62 = vrot.slane %v634_v53, 2  ;;  %v1299_v44 = vrot.slane %v634_v53, 3 }
  0xa3   : > { %v1553_v26 = vrot.slane %v634_v53, 4  ;;  %v576_v42 = vmax.f32 %v519_v19, %v4895_v49  ;;  %v635_v46 = vmax.f32 %v575_v50, %v4984_v4  ;;  %v520_v25 = vmax.f32 %v466_v32, %v4855_v31 }
  0xa4   : > { %v5037_v28 = vmax.f32 %v1455_v30, %v1552_v17  ;;  %v794_v37 = vsel %vm728_vm1, %v791_v29, %v793_v35  ;;  %v1046_v47 = vsel %vm308_vm0, %v1043_v63, %v1045_v62  ;;  %v1300_v10 = vsel %vm1234_vm2, %v1297_v27, %v1299_v44 }
  0xa5   : > { %v1554_v56 = vsel %vm1488_vm3, %v1551_v61, %v1553_v26  ;;  %v7520_v17 = vmax.f32 %v4858_v39, %v4941_v45  ;;  %v950_v29 = vmax.f32 %v4978_v60, %v794_v37  ;;  %v795_v61 = vsel %vm728_vm1, %v793_v35, %v4145_v2 }
  0xa6   : > { %7519 = vst [vmem:[#allocation47_spill] sm:$0xff] %v5037_v28  ;;  %3750 = vst.msk [vmem:[%s4306_s22 + $0x6c] sm:$0xf0] %vm3726_vm4, %v5037_v28  ;;  %v1047_v63 = vsel %vm308_vm0, %v1045_v62, %v4143_v1  ;;  %v1301_v27 = vsel %vm1234_vm2, %v1299_v44, %v4171_v13  ;;  %v1555_v19 = vsel %vm1488_vm3, %v1553_v26, %v4173_v14  ;;  %v796_v41 = vrot.slane %v635_v46, 1 }
  0xa7   : > { %v5052_v30 = vmax.f32 %v7520_v17, %v5037_v28  ;;  %v1202_v50 = vmax.f32 %v950_v29, %v1046_v47  ;;  %v951_v17 = vmax.f32 %v634_v53, %v795_v61  ;;  %v636_v32 = vmax.f32 %v576_v42, %v5018_v52 }
  0xa8   : > { %v1048_v39 = vrot.slane %v635_v46, 2  ;;  %v1302_v60 = vrot.slane %v635_v46, 3  ;;  %v1556_v37 = vrot.slane %v635_v46, 4  ;;  %v577_v35 = vmax.f32 %v520_v25, %v4972_v16 }
  0xa9   : > { %7521 = vst [vmem:[#allocation48_spill] sm:$0xff] %v5052_v30  ;;  %v1456_v21 = vmax.f32 %v1202_v50, %v1300_v10  ;;  %v1203_v11 = vmax.f32 %v951_v17, %v1047_v63  ;;  %v797_v62 = vrot.slane %v636_v32, 1  ;;  %v1049_v20 = vrot.slane %v636_v32, 2 }
  0xaa   : > { %v1303_v44 = vrot.slane %v636_v32, 3  ;;  %v1557_v48 = vrot.slane %v636_v32, 4  ;;  %v637_v26 = vmax.f32 %v577_v35, %v5030_v59  ;;  %v345_v47 = vrot.slane %v266_v23, 2 }
  0xab   : > { %v5072_v53 = vmax.f32 %v1456_v21, %v1554_v56  ;;  %v1457_v42 = vmax.f32 %v1203_v11, %v1301_v27  ;;  %v798_v29 = vsel %vm728_vm1, %v796_v41, %v797_v62  ;;  %v1050_v61 = vsel %vm308_vm0, %v1048_v39, %v1049_v20 }
  0xac   : > { %v952_v15 = vmax.f32 %v635_v46, %v798_v29  ;;  %v1304_v25 = vsel %vm1234_vm2, %v1302_v60, %v1303_v44  ;;  %v1558_v10 = vsel %vm1488_vm3, %v1556_v37, %v1557_v48  ;;  %v799_v63 = vrot.slane %v637_v26, 1 }
  0xad   : > { %7522 = vst [vmem:[#allocation49_spill] sm:$0xff] %v5072_v53  ;;  %v1770_v50 = vmax.f32 %v4980_v7, %v5072_v53  ;;  %v7523_v21 = vmax.f32 %v4900_v18, %v4980_v7  ;;  %3751 = vst.msk [vmem:[%s4306_s22 + $0x74] sm:$0xff] %vm3728_vm5, %v5072_v53  ;;  %v5091_v39 = vmax.f32 %v1457_v42, %v1555_v19  ;;  %v1051_v56 = vrot.slane %v637_v26, 2 }
  0xae   : > { %v1204_v41 = vmax.f32 %v952_v15, %v1050_v61  ;;  %v800_v46 = vsel %vm728_vm1, %v797_v62, %v799_v63  ;;  %v1305_v27 = vrot.slane %v637_v26, 3  ;;  %v7526_v60 = vmax.f32 %v4904_v54, %v4988_v22 }
  0xaf   : > { %v5084_v23 = vmax.f32 %v7523_v21, %v5072_v53  ;;  %7525 = vst [vmem:[#allocation51_spill] sm:$0xff] %v5091_v39  ;;  %v1771_v17 = vmax.f32 %v4988_v22, %v5091_v39  ;;  %3752 = vst.msk [vmem:[%s4306_s22 + $0x7c] sm:$0xf] %vm3730_vm6, %v5091_v39  ;;  %v953_v15 = vmax.f32 %v636_v32, %v800_v46  ;;  %v1559_v29 = vrot.slane %v637_v26, 4 }
  0xb0   : > { %v5100_v37 = vmax.f32 %v7526_v60, %v5091_v39  ;;  %v1458_v19 = vmax.f32 %v1204_v41, %v1304_v25  ;;  %v1052_v62 = vsel %vm308_vm0, %v1049_v20, %v1051_v56  ;;  %v1306_v42 = vsel %vm1234_vm2, %v1303_v44, %v1305_v27 }
  0xb1   : > { %7524 = vst [vmem:[#allocation50_spill] sm:$0xff] %v5084_v23  ;;  %v1205_v61 = vmax.f32 %v953_v15, %v1052_v62  ;;  %v801_v21 = vsel %vm728_vm1, %v799_v63, %v4145_v2  ;;  %v1053_v60 = vsel %vm308_vm0, %v1051_v56, %v4143_v1  ;;  %v1307_v35 = vsel %vm1234_vm2, %v1305_v27, %v4171_v13  ;;  %v267_v27 = vld [vmem:[%s4164_s19 + $0xc0] sm:$0xff] }
  0xb2   : > { %7527 = vst [vmem:[#allocation52_spill] sm:$0xff] %v5100_v37  ;;  %v5115_v32 = vmax.f32 %v1458_v19, %v1558_v10  ;;  %v1560_v25 = vsel %vm1488_vm3, %v1557_v48, %v1559_v29  ;;  %v954_v20 = vmax.f32 %v637_v26, %v801_v21  ;;  %v1561_v44 = vsel %vm1488_vm3, %v1559_v29, %v4173_v14  ;;  %v268_v48 = vld [vmem:[%s4164_s19 + $0xc8] sm:$0xff] }
  0xb3   : > { %v1459_v41 = vmax.f32 %v1205_v61, %v1306_v42  ;;  %v7529_v46 = vrot.slane %v5021_v38, 2  ;;  %v467_v10 = vmax.f32 %v4714_v40, %v4849_v8  ;;  %v7531_v19 = vmax.f32 %v4941_v45, %v5037_v28 }
  0xb4   : > { %7528 = vst [vmem:[#allocation53_spill] sm:$0xff] %v5115_v32  ;;  %3753 = vst.msk [vmem:[%s4306_s22 + $0x7c] sm:$0xf0] %vm3726_vm4, %v5115_v32  ;;  %v1206_v42 = vmax.f32 %v954_v20, %v1053_v60  ;;  %v468_v29 = vmax.f32 %v4734_v0, %v4846_v24  ;;  %v5153_v21 = vsel %vm308_vm0, %v345_v47, -inf  ;;  %v348_v38 = vrot.slane %v268_v48, 2 }
  0xb5   : > { %v5123_v63 = vsel %vm308_vm0, %v7529_v46, %v345_v47  ;;  %v7530_v15 = vmov %v7529_v46  ;;  %v5140_v62 = vmax.f32 %v7531_v19, %v5115_v32  ;;  %v5147_v40 = vmax.f32 %v1459_v41, %v1560_v25 }
  0xb6   : > { %v5128_v56 = vsel %vm308_vm0, -inf, %v7530_v15  ;;  %v521_v61 = vmax.f32 %v467_v10, %v4863_v58  ;;  %v1460_v46 = vmax.f32 %v1206_v42, %v1307_v35  ;;  %v469_v15 = vmax.f32 %v4773_v9, %v4855_v31 }
  0xb7   : > { %7532 = vst [vmem:[#allocation54_spill] sm:$0xff] %v5140_v62  ;;  %7533 = vst [vmem:[#allocation55_spill] sm:$0xff] %v5147_v40  ;;  %v347_v19 = vrot.slane %v267_v27, 2  ;;  %v5160_v60 = vmax.f32 %v1770_v50, %v5147_v40  ;;  %v522_v47 = vmax.f32 %v468_v29, %v4895_v49  ;;  %v470_v10 = vmax.f32 %v4849_v8, %v4863_v58 }
  0xb8   : > { %3754 = vst.msk [vmem:[%s4306_s22 + $0x84] sm:$0xff] %vm3728_vm5, %v5147_v40  ;;  %v5168_v35 = vmax.f32 %v1460_v46, %v1561_v44  ;;  %v578_v9 = vmax.f32 %v521_v61, %v4984_v4  ;;  %v523_v25 = vmax.f32 %v469_v15, %v4972_v16  ;;  %v471_v27 = vmax.f32 %v4846_v24, %v4895_v49 }
  0xb9   : > { %7534 = vst [vmem:[#allocation56_spill] sm:$0xff] %v5160_v60  ;;  %v5173_v20 = vsel %vm308_vm0, %v347_v19, %v348_v38  ;;  %v579_v50 = vmax.f32 %v522_v47, %v5018_v52  ;;  %v5177_v41 = vsel %vm308_vm0, -inf, %v347_v19  ;;  %v524_v24 = vmax.f32 %v470_v10, %v4984_v4 }
  0xba   : > { %7535 = vst [vmem:[#allocation57_spill] sm:$0xff] %v5168_v35  ;;  %v5186_v48 = vmax.f32 %v1771_v17, %v5168_v35  ;;  %3755 = vst.msk [vmem:[%s4306_s22 + $0x8c] sm:$0xf] %vm3730_vm6, %v5168_v35  ;;  %v638_v29 = vmax.f32 %v578_v9, %v5128_v56  ;;  %v580_v8 = vmax.f32 %v523_v25, %v5030_v59  ;;  %v5202_v25 = vsel %vm308_vm0, %v348_v38, -inf }
  0xbb   : > { %v639_v61 = vmax.f32 %v579_v50, %v5123_v63  ;;  %v525_v46 = vmax.f32 %v471_v27, %v5018_v52  ;;  %v581_v9 = vmax.f32 %v524_v24, %v5128_v56  ;;  %v472_v38 = vmax.f32 %v4855_v31, %v4972_v16 }
  0xbc   : > { %7536 = vst [vmem:[#allocation58_spill] sm:$0xff] %v5186_v48  ;;  %v802_v15 = vrot.slane %v638_v29, 1  ;;  %v1054_v19 = vrot.slane %v638_v29, 2  ;;  %v1308_v17 = vrot.slane %v638_v29, 3  ;;  %v1562_v47 = vrot.slane %v638_v29, 4 }
  0xbd   : > { %v803_v0 = vrot.slane %v639_v61, 1  ;;  %v1055_v44 = vrot.slane %v639_v61, 2  ;;  %v1309_v42 = vrot.slane %v639_v61, 3  ;;  %v1563_v11 = vrot.slane %v639_v61, 4 }
  0xbe   : > { %v640_v26 = vmax.f32 %v580_v8, %v5153_v21  ;;  %v582_v50 = vmax.f32 %v525_v46, %v5123_v63  ;;  %v641_v24 = vmax.f32 %v581_v9, %v5177_v41 }
  0xbf   : > { %v804_v10 = vsel %vm728_vm1, %v802_v15, %v803_v0  ;;  %v1056_v27 = vsel %vm308_vm0, %v1054_v19, %v1055_v44  ;;  %v1310_v37 = vsel %vm1234_vm2, %v1308_v17, %v1309_v42  ;;  %v1564_v23 = vsel %vm1488_vm3, %v1562_v47, %v1563_v11 }
  0xc0   : > { %v955_v30 = vmax.f32 %v638_v29, %v804_v10  ;;  %v805_v57 = vrot.slane %v640_v26, 1  ;;  %v1057_v6 = vrot.slane %v640_v26, 2  ;;  %v1311_v22 = vrot.slane %v640_v26, 3 }
  0xc1   : > { %v1565_v8 = vrot.slane %v640_v26, 4  ;;  %v5210_v46 = vmax.f32 %v582_v50, %v5173_v20 }
  0xc2   : > { %v1207_v15 = vmax.f32 %v955_v30, %v1056_v27  ;;  %v806_v19 = vsel %vm728_vm1, %v803_v0, %v805_v57  ;;  %v1058_v17 = vsel %vm308_vm0, %v1055_v44, %v1057_v6  ;;  %v1312_v47 = vsel %vm1234_vm2, %v1309_v42, %v1311_v22 }
  0xc3   : > { %v956_v29 = vmax.f32 %v639_v61, %v806_v19  ;;  %v1566_v10 = vsel %vm1488_vm3, %v1563_v11, %v1565_v8  ;;  %v807_v7 = vsel %vm728_vm1, %v805_v57, %v4145_v2  ;;  %v1059_v9 = vsel %vm308_vm0, %v1057_v6, %v4143_v1  ;;  %v270_v19 = vld [vmem:[%s4164_s19 + $0xd8] sm:$0xff] }
  0xc4   : > { %v1461_v50 = vmax.f32 %v1207_v15, %v1310_v37  ;;  %v957_v45 = vmax.f32 %v640_v26, %v807_v7  ;;  %v1313_v31 = vsel %vm1234_vm2, %v1311_v22, %v4171_v13  ;;  %v1567_v30 = vsel %vm1488_vm3, %v1565_v8, %v4173_v14  ;;  %v269_v8 = vld [vmem:[%s4164_s19 + $0xd0] sm:$0xff] }
  0xc5   : > { %v1208_v0 = vmax.f32 %v956_v29, %v1058_v17  ;;  %v808_v44 = vrot.slane %v641_v24, 1  ;;  %v7343_v11 = vrot.slane %v5210_v46, 1  ;;  %v1060_v42 = vrot.slane %v641_v24, 2 }
  0xc6   : > { %v5227_v61 = vmax.f32 %v1461_v50, %v1564_v23  ;;  %v1209_v57 = vmax.f32 %v957_v45, %v1059_v9  ;;  %v7344_v6 = vrot.slane %v5210_v46, 2  ;;  %v1314_v37 = vrot.slane %v641_v24, 3 }
  0xc7   : > { %v1462_v27 = vmax.f32 %v1208_v0, %v1312_v47  ;;  %v810_v7 = vsel %vm728_vm1, %v808_v44, %v7343_v11  ;;  %v1315_v22 = vrot.slane %v5210_v46, 3  ;;  %v1568_v26 = vrot.slane %v641_v24, 4 }
  0xc8   : > { %7537 = vst [vmem:[#allocation59_spill] sm:$0xff] %v5227_v61  ;;  %v1775_v15 = vmax.f32 %v5115_v32, %v5227_v61  ;;  %v7538_v45 = vmax.f32 %v5037_v28, %v5115_v32  ;;  %3756 = vst.msk [vmem:[%s4306_s22 + $0x8c] sm:$0xf0] %vm3726_vm4, %v5227_v61  ;;  %v1463_v17 = vmax.f32 %v1209_v57, %v1313_v31  ;;  %v1569_v44 = vrot.slane %v5210_v46, 4 }
  0xc9   : > { %v5248_v47 = vmax.f32 %v1462_v27, %v1566_v10  ;;  %v958_v29 = vmax.f32 %v641_v24, %v810_v7  ;;  %v1062_v9 = vsel %vm308_vm0, %v1060_v42, %v7344_v6  ;;  %v1316_v50 = vsel %vm1234_vm2, %v1314_v37, %v1315_v22 }
  0xca   : > { %v5241_v23 = vmax.f32 %v7538_v45, %v5227_v61  ;;  %v5254_v0 = vmax.f32 %v1463_v17, %v1567_v30  ;;  %v526_v45 = vmax.f32 %v472_v38, %v5030_v59  ;;  %v350_v11 = vrot.slane %v269_v8, 2  ;;  %v271_v38 = vld [vmem:[%s4164_s19 + $0xe0] sm:$0xff]  ;;  %v5292_v30 = vld [vmem:[%s4164_s19 + $0xe8] sm:$0xff] }
  0xcb   : > { %7540 = vst [vmem:[#allocation61_spill] sm:$0xff] %v5248_v47  ;;  %v7542_v24 = vmax.f32 %v5072_v53, %v5147_v40  ;;  %3757 = vst.msk [vmem:[%s4306_s22 + $0x94] sm:$0xff] %vm3728_vm5, %v5248_v47  ;;  %v1210_v42 = vmax.f32 %v958_v29, %v1062_v9  ;;  %v7544_v37 = vmax.f32 %v5091_v39, %v5168_v35  ;;  %v351_v9 = vrot.slane %v270_v19, 2 }
  0xcc   : > { %7539 = vst [vmem:[#allocation60_spill] sm:$0xff] %v5241_v23  ;;  %7541 = vst [vmem:[#allocation62_spill] sm:$0xff] %v5254_v0  ;;  %v1570_v8 = vsel %vm1488_vm3, %v1568_v26, %v1569_v44  ;;  %v583_v29 = vmax.f32 %v526_v45, %v5153_v21  ;;  %v474_v7 = vmax.f32 %v4895_v49, %v5018_v52  ;;  %v353_v26 = vrot.slane %v271_v38, 2 }
  0xcd   : > { %v5265_v31 = vmax.f32 %v7542_v24, %v5248_v47  ;;  %v5279_v27 = vmax.f32 %v7544_v37, %v5254_v0  ;;  %3758 = vst.msk [vmem:[%s4306_s22 + $0x9c] sm:$0xf] %vm3730_vm6, %v5254_v0  ;;  %v1464_v17 = vmax.f32 %v1210_v42, %v1316_v50  ;;  %v5289_v24 = vsel %vm308_vm0, -inf, %v350_v11 }
  0xce   : > { %v473_v37 = vmax.f32 %v4863_v58, %v4984_v4  ;;  %v475_v57 = vmax.f32 %v4972_v16, %v5030_v59  ;;  %v643_v19 = vmax.f32 %v583_v29, %v5202_v25  ;;  %v5304_v45 = vsel %vm308_vm0, %v350_v11, %v351_v9 }
  0xcf   : > { %7543 = vst [vmem:[#allocation63_spill] sm:$0xff] %v5265_v31  ;;  %7545 = vst [vmem:[#allocation64_spill] sm:$0xff] %v5279_v27  ;;  %v5300_v50 = vmax.f32 %v1464_v17, %v1570_v8  ;;  %v5307_v42 = vsel %vm308_vm0, %v351_v9, -inf  ;;  %v528_v58 = vmax.f32 %v474_v7, %v5123_v63  ;;  %v7547_v9 = vrot.slane %v5210_v46, 1 }
  0xd0   : > { %v527_v10 = vmax.f32 %v473_v37, %v5128_v56  ;;  %v529_v49 = vmax.f32 %v475_v57, %v5153_v21  ;;  %v811_v8 = vrot.slane %v643_v19, 1  ;;  %v1063_v17 = vrot.slane %v643_v19, 2 }
  0xd1   : > { %v5316_v38 = vmax.f32 %v1775_v15, %v5300_v50  ;;  %3759 = vst.msk [vmem:[%s4306_s22 + $0x9c] sm:$0xf0] %vm3726_vm4, %v5300_v50  ;;  %v1317_v29 = vrot.slane %v643_v19, 3  ;;  %v1571_v7 = vrot.slane %v643_v19, 4  ;;  %v585_v16 = vmax.f32 %v528_v58, %v5173_v20 }
  0xd2   : > { %v584_v57 = vmax.f32 %v527_v10, %v5177_v41  ;;  %v812_v37 = vsel %vm728_vm1, %v7547_v9, %v811_v8  ;;  %v813_v15 = vsel %vm728_vm1, %v811_v8, %v4145_v2  ;;  %v586_v11 = vmax.f32 %v529_v49, %v5202_v25 }
  0xd3   : > { %7546 = vst [vmem:[#allocation65_spill] sm:$0xff] %v5316_v38  ;;  %v959_v6 = vmax.f32 %v5210_v46, %v812_v37  ;;  %v7548_v23 = vrot.slane %v5210_v46, 2  ;;  %v1318_v60 = vsel %vm1234_vm2, %v1315_v22, %v1317_v29  ;;  %v1572_v10 = vsel %vm1488_vm3, %v1569_v44, %v1571_v7 }
  0xd4   : > { %v960_v62 = vmax.f32 %v643_v19, %v813_v15  ;;  %v1065_v9 = vsel %vm308_vm0, %v1063_v17, %v4143_v1  ;;  %v1319_v8 = vsel %vm1234_vm2, %v1317_v29, %v4171_v13  ;;  %v1573_v58 = vsel %vm1488_vm3, %v1571_v7, %v4173_v14 }
  0xd5   : > { %v1064_v48 = vsel %vm308_vm0, %v7548_v23, %v1063_v17  ;;  %v644_v37 = vmax.f32 %v584_v57, %v5289_v24  ;;  %v645_v46 = vmax.f32 %v585_v16, %v5304_v45  ;;  %v646_v23 = vmax.f32 %v586_v11, %v5307_v42 }
  0xd6   : > { %v1211_v49 = vmax.f32 %v959_v6, %v1064_v48  ;;  %v1212_v22 = vmax.f32 %v960_v62, %v1065_v9  ;;  %v7549_v44 = vrot.slane %v5292_v30, 2  ;;  %v5352_v17 = vsel %vm308_vm0, -inf, %v353_v26 }
  0xd7   : > { %v476_v29 = vmax.f32 %v4984_v4, %v5128_v56  ;;  %v814_v48 = vrot.slane %v644_v37, 1  ;;  %v815_v6 = vrot.slane %v645_v46, 1  ;;  %v1066_v57 = vrot.slane %v644_v37, 2 }
  0xd8   : > { %v5349_v19 = vsel %vm308_vm0, %v353_v26, %v7549_v44  ;;  %v1465_v7 = vmax.f32 %v1211_v49, %v1318_v60  ;;  %v1466_v16 = vmax.f32 %v1212_v22, %v1319_v8  ;;  %v1067_v15 = vrot.slane %v645_v46, 2 }
  0xd9   : > { %v1320_v11 = vrot.slane %v644_v37, 3  ;;  %v1321_v62 = vrot.slane %v645_v46, 3  ;;  %v816_v44 = vsel %vm728_vm1, %v814_v48, %v815_v6  ;;  %v1574_v32 = vrot.slane %v644_v37, 4 }
  0xda   : > { %v5356_v9 = vmax.f32 %v1465_v7, %v1572_v10  ;;  %v1575_v26 = vrot.slane %v645_v46, 4  ;;  %v5359_v39 = vmax.f32 %v1466_v16, %v1573_v58  ;;  %v961_v53 = vmax.f32 %v644_v37, %v816_v44 }
  0xdb   : > { %v1068_v4 = vsel %vm308_vm0, %v1066_v57, %v1067_v15  ;;  %v1322_v60 = vsel %vm1234_vm2, %v1320_v11, %v1321_v62  ;;  %v7550_v10 = vmax.f32 %v5147_v40, %v5248_v47  ;;  %v7552_v7 = vmax.f32 %v5168_v35, %v5254_v0 }
  0xdc   : > { %v1779_v8 = vmax.f32 %v5248_v47, %v5356_v9  ;;  %3760 = vst.msk [vmem:[%s4306_s22 + $0xa4] sm:$0xff] %vm3728_vm5, %v5356_v9  ;;  %v1576_v58 = vsel %vm1488_vm3, %v1574_v32, %v1575_v26  ;;  %v1780_v37 = vmax.f32 %v5254_v0, %v5359_v39  ;;  %v1213_v16 = vmax.f32 %v961_v53, %v1068_v4  ;;  %v273_v47 = vld [vmem:[%s4164_s19 + $0xf0] sm:$0xff] }
  0xdd   : > { %v5369_v49 = vmax.f32 %v7550_v10, %v5356_v9  ;;  %v5383_v48 = vmax.f32 %v7552_v7, %v5359_v39  ;;  %3761 = vst.msk [vmem:[%s4306_s22 + $0xac] sm:$0xf] %vm3730_vm6, %v5359_v39  ;;  %v817_v11 = vrot.slane %v646_v23, 1  ;;  %v1069_v44 = vrot.slane %v646_v23, 2 }
  0xde   : > { %v1323_v10 = vrot.slane %v646_v23, 3  ;;  %v1577_v32 = vrot.slane %v646_v23, 4  ;;  %v1467_v22 = vmax.f32 %v1213_v16, %v1322_v60  ;;  %v477_v31 = vmax.f32 %v5018_v52, %v5123_v63 }
  0xdf   : > { %7551 = vst [vmem:[#allocation66_spill] sm:$0xff] %v5369_v49  ;;  %7553 = vst [vmem:[#allocation67_spill] sm:$0xff] %v5383_v48  ;;  %v530_v7 = vmax.f32 %v476_v29, %v5177_v41  ;;  %v7554_v0 = vrot.slane %v5292_v30, 2  ;;  %v818_v27 = vsel %vm728_vm1, %v815_v6, %v817_v11  ;;  %v1070_v53 = vsel %vm308_vm0, %v1067_v15, %v1069_v44 }
  0xe0   : > { %v1324_v4 = vsel %vm1234_vm2, %v1321_v62, %v1323_v10  ;;  %v1578_v60 = vsel %vm1488_vm3, %v1575_v26, %v1577_v32  ;;  %v5402_v16 = vmax.f32 %v1467_v22, %v1576_v58  ;;  %v962_v52 = vmax.f32 %v645_v46, %v818_v27  ;;  %v5415_v26 = vld [vmem:[%s4164_s19 + $0xf8] sm:$0xff] }
  0xe1   : > { %v5396_v57 = vsel %vm308_vm0, %v7554_v0, -inf  ;;  %v819_v29 = vsel %vm728_vm1, %v817_v11, %v4145_v2  ;;  %v1071_v30 = vsel %vm308_vm0, %v1069_v44, %v4143_v1  ;;  %v1325_v6 = vsel %vm1234_vm2, %v1323_v10, %v4171_v13 }
  0xe2   : > { %v963_v0 = vmax.f32 %v646_v23, %v819_v29  ;;  %v1579_v15 = vsel %vm1488_vm3, %v1577_v32, %v4173_v14  ;;  %v531_v62 = vmax.f32 %v477_v31, %v5173_v20  ;;  %v7555_v46 = vmax.f32 %v5227_v61, %v5300_v50  ;;  %3762 = vst.msk [vmem:[%s4306_s22 + $0xac] sm:$0xf0] %vm3726_vm4, %v5402_v16 }
  0xe3   : > { %v1214_v58 = vmax.f32 %v962_v52, %v1070_v53  ;;  %v587_v11 = vmax.f32 %v530_v7, %v5289_v24  ;;  %v478_v10 = vmax.f32 %v5030_v59, %v5153_v21  ;;  %v356_v29 = vrot.slane %v273_v47, 2 }
  0xe4   : > { %v5423_v22 = vmax.f32 %v7555_v46, %v5402_v16  ;;  %v1215_v31 = vmax.f32 %v963_v0, %v1071_v30  ;;  %v588_v44 = vmax.f32 %v531_v62, %v5304_v45  ;;  %v7362_v46 = vrot.slane %v5415_v26, 2 }
  0xe5   : > { %v1468_v32 = vmax.f32 %v1214_v58, %v1324_v4  ;;  %v479_v27 = vmax.f32 %v5128_v56, %v5177_v41  ;;  %v647_v38 = vmax.f32 %v587_v11, %v5352_v17  ;;  %v532_v7 = vmax.f32 %v478_v10, %v5202_v25 }
  0xe6   : > { %7556 = vst [vmem:[#allocation68_spill] sm:$0xff] %v5423_v22  ;;  %v1469_v23 = vmax.f32 %v1215_v31, %v1325_v6  ;;  %v648_v53 = vmax.f32 %v588_v44, %v5349_v19  ;;  %v5445_v59 = vsel %vm308_vm0, %v356_v29, %v7362_v46  ;;  %v5448_v47 = vsel %vm308_vm0, -inf, %v356_v29 }
  0xe7   : > { %v5440_v52 = vmax.f32 %v1468_v32, %v1578_v60  ;;  %v480_v56 = vmax.f32 %v5123_v63, %v5173_v20  ;;  %v820_v30 = vrot.slane %v647_v38, 1  ;;  %v1072_v6 = vrot.slane %v647_v38, 2 }
  0xe8   : > { %v5452_v4 = vmax.f32 %v1469_v23, %v1579_v15  ;;  %v821_v0 = vrot.slane %v648_v53, 1  ;;  %v1073_v31 = vrot.slane %v648_v53, 2  ;;  %v1326_v10 = vrot.slane %v647_v38, 3 }
  0xe9   : > { %v5457_v62 = vmax.f32 %v1779_v8, %v5440_v52  ;;  %3763 = vst.msk [vmem:[%s4306_s22 + $0xb4] sm:$0xff] %vm3728_vm5, %v5440_v52  ;;  %v1327_v32 = vrot.slane %v648_v53, 3  ;;  %v1580_v29 = vrot.slane %v647_v38, 4  ;;  %v1581_v58 = vrot.slane %v648_v53, 4 }
  0xea   : > { %v5467_v15 = vmax.f32 %v1780_v37, %v5452_v4  ;;  %3764 = vst.msk [vmem:[%s4306_s22 + $0xbc] sm:$0xf] %vm3730_vm6, %v5452_v4  ;;  %v822_v8 = vsel %vm728_vm1, %v820_v30, %v821_v0  ;;  %v1074_v44 = vsel %vm308_vm0, %v1072_v6, %v1073_v31  ;;  %v589_v63 = vmax.f32 %v532_v7, %v5307_v42 }
  0xeb   : > { %7557 = vst [vmem:[#allocation69_spill] sm:$0xff] %v5457_v62  ;;  %v964_v11 = vmax.f32 %v647_v38, %v822_v8  ;;  %v488_v37 = vmax.f32 %v5352_v17, %v5448_v47  ;;  %v1328_v23 = vsel %vm1234_vm2, %v1326_v10, %v1327_v32  ;;  %v489_v46 = vmax.f32 %v5349_v19, %v5445_v59 }
  0xec   : > { %7558 = vst [vmem:[#allocation70_spill] sm:$0xff] %v5467_v15  ;;  %v491_v30 = vmax.f32 %v5448_v47, %v4149_v3  ;;  %v1582_v6 = vsel %vm1488_vm3, %v1580_v29, %v1581_v58  ;;  %v649_v8 = vmax.f32 %v589_v63, %v5396_v57  ;;  %v492_v38 = vmax.f32 %v5445_v59, %v4143_v1 }
  0xed   : > { %v1216_v60 = vmax.f32 %v964_v11, %v1074_v44  ;;  %v533_v7 = vmax.f32 %v479_v27, %v5289_v24  ;;  %v534_v11 = vmax.f32 %v480_v56, %v5304_v45  ;;  %v542_v44 = vmax.f32 %v488_v37, %v4149_v3 }
  0xee   : > { %v543_v10 = vmax.f32 %v489_v46, %v4143_v1  ;;  %v823_v49 = vrot.slane %v649_v8, 1  ;;  %v1075_v61 = vrot.slane %v649_v8, 2  ;;  %v1329_v35 = vrot.slane %v649_v8, 3 }
  0xef   : > { %v1470_v48 = vmax.f32 %v1216_v60, %v1328_v23  ;;  %v1583_v40 = vrot.slane %v649_v8, 4  ;;  %v5495_v63 = vmax.f32 %v491_v30, %v4149_v3  ;;  %v5498_v28 = vmax.f32 %v492_v38, %v4143_v1 }
  0xf0   : > { %v590_v27 = vmax.f32 %v533_v7, %v5352_v17  ;;  %v824_v56 = vsel %vm728_vm1, %v821_v0, %v823_v49  ;;  %v1076_v60 = vsel %vm308_vm0, %v1073_v31, %v1075_v61  ;;  %v1330_v46 = vsel %vm1234_vm2, %v1327_v32, %v1329_v35 }
  0xf1   : > { %v5492_v29 = vmax.f32 %v1470_v48, %v1582_v6  ;;  %7559 = vst [vmem:[#allocation71_spill] sm:$0xff] %v5495_v63  ;;  %7560 = vst [vmem:[#allocation72_spill] sm:$0xff] %v5498_v28  ;;  %v1584_v23 = vsel %vm1488_vm3, %v1581_v58, %v1583_v40  ;;  %v7561_v37 = vmax.f32 %v5300_v50, %v5402_v16 }
  0xf2   : > { %v965_v0 = vmax.f32 %v648_v53, %v824_v56  ;;  %v825_v31 = vsel %vm728_vm1, %v823_v49, %v4145_v2  ;;  %v1077_v58 = vsel %vm308_vm0, %v1075_v61, %v4143_v1  ;;  %v1331_v32 = vsel %vm1234_vm2, %v1329_v35, %v4171_v13 }
  0xf3   : > { %v5511_v30 = vmax.f32 %v7561_v37, %v5492_v29  ;;  %3765 = vst.msk [vmem:[%s4306_s22 + $0xbc] sm:$0xf0] %vm3726_vm4, %v5492_v29  ;;  %v1585_v38 = vsel %vm1488_vm3, %v1583_v40, %v4173_v14  ;;  %v966_v37 = vmax.f32 %v649_v8, %v825_v31  ;;  %v591_v6 = vmax.f32 %v534_v11, %v5349_v19 }
  0xf4   : > { %v1217_v7 = vmax.f32 %v965_v0, %v1076_v60  ;;  %v599_v48 = vmax.f32 %v542_v44, %v4149_v3  ;;  %v600_v53 = vmax.f32 %v543_v10, %v4143_v1  ;;  %v650_v56 = vmax.f32 %v590_v27, %v5448_v47 }
  0xf5   : > { %7562 = vst [vmem:[#allocation73_spill] sm:$0xff] %v5511_v30  ;;  %v7563_v49 = vrot.slane %v5415_v26, 2  ;;  %v481_v35 = vmax.f32 %v5153_v21, %v5202_v25  ;;  %v1218_v40 = vmax.f32 %v966_v37, %v1077_v58  ;;  %v5538_v8 = vmax.f32 %v591_v6, %v5445_v59 }
  0xf6   : > { %v1471_v28 = vmax.f32 %v1217_v7, %v1330_v46  ;;  %v5541_v11 = vmax.f32 %v599_v48, %v4149_v3  ;;  %v5544_v44 = vmax.f32 %v600_v53, %v4143_v1  ;;  %v826_v10 = vrot.slane %v650_v56, 1 }
  0xf7   : > { %v5533_v61 = vsel %vm308_vm0, %v7563_v49, -inf  ;;  %v1078_v26 = vrot.slane %v650_v56, 2  ;;  %v1332_v27 = vrot.slane %v650_v56, 3  ;;  %v1472_v0 = vmax.f32 %v1218_v40, %v1331_v32 }
  0xf8   : > { %v5546_v60 = vmax.f32 %v1471_v28, %v1584_v23  ;;  %v827_v21 = vrot.slane %v5538_v8, 1  ;;  %v1079_v46 = vrot.slane %v5538_v8, 2  ;;  %v1333_v6 = vrot.slane %v5538_v8, 3 }
  0xf9   : > { %v1586_v31 = vrot.slane %v650_v56, 4  ;;  %v1587_v48 = vrot.slane %v5538_v8, 4  ;;  %v490_v58 = vmax.f32 %v5396_v57, %v5533_v61  ;;  %v7564_v28 = vmax.f32 %v5356_v9, %v5440_v52 }
  0xfa   : > { %3766 = vst.msk [vmem:[%s4306_s22 + $0xc4] sm:$0xff] %vm3728_vm5, %v5546_v60  ;;  %v5567_v37 = vmax.f32 %v1472_v0, %v1585_v38  ;;  %v828_v53 = vsel %vm728_vm1, %v826_v10, %v827_v21  ;;  %v1080_v49 = vsel %vm308_vm0, %v1078_v26, %v1079_v46  ;;  %v1334_v40 = vsel %vm1234_vm2, %v1332_v27, %v1333_v6 }
  0xfb   : > { %v5560_v23 = vmax.f32 %v7564_v28, %v5546_v60  ;;  %v1588_v7 = vsel %vm1488_vm3, %v1586_v31, %v1587_v48  ;;  %v7565_v32 = vmax.f32 %v5359_v39, %v5452_v4  ;;  %v967_v10 = vmax.f32 %v650_v56, %v828_v53 }
  0xfc   : > { %3767 = vst.msk [vmem:[%s4306_s22 + $0xcc] sm:$0xf] %vm3730_vm6, %v5567_v37  ;;  %v493_v26 = vmax.f32 %v5533_v61, %v4169_v12  ;;  %v535_v27 = vmax.f32 %v481_v35, %v5307_v42  ;;  %v544_v0 = vmax.f32 %v490_v58, %v4169_v12  ;;  %v482_v31 = vmax.f32 %v5177_v41, %v5289_v24 }
  0xfd   : > { %v5579_v63 = vmax.f32 %v7565_v32, %v5567_v37  ;;  %v1219_v28 = vmax.f32 %v967_v10, %v1080_v49  ;;  %v483_v32 = vmax.f32 %v5173_v20, %v5304_v45  ;;  %v484_v38 = vmax.f32 %v5202_v25, %v5307_v42 }
  0xfe   : > { %v485_v56 = vmax.f32 %v5289_v24, %v5352_v17  ;;  %v5599_v53 = vmax.f32 %v493_v26, %v4169_v12  ;;  %v592_v35 = vmax.f32 %v535_v27, %v5396_v57  ;;  %v601_v58 = vmax.f32 %v544_v0, %v4169_v12 }
  0xff   : > { %v536_v15 = vmax.f32 %v482_v31, %v5352_v17  ;;  %v1473_v41 = vmax.f32 %v1219_v28, %v1334_v40  ;;  %v537_v49 = vmax.f32 %v483_v32, %v5349_v19  ;;  %v538_v20 = vmax.f32 %v484_v38, %v5396_v57 }
 0x100   : > { %7566 = vst [vmem:[#allocation74_spill] sm:$0xff] %v5599_v53  ;;  %v486_v25 = vmax.f32 %v5304_v45, %v5349_v19  ;;  %v652_v24 = vmax.f32 %v592_v35, %v5533_v61  ;;  %v5610_v10 = vmax.f32 %v601_v58, %v4169_v12  ;;  %v5614_v27 = vmax.f32 %v485_v56, %v5448_v47 }
 0x101   : > { %v593_v26 = vmax.f32 %v536_v15, %v5448_v47  ;;  %v5616_v17 = vmax.f32 %v1473_v41, %v1588_v7  ;;  %v594_v40 = vmax.f32 %v537_v49, %v5445_v59  ;;  %v595_v28 = vmax.f32 %v538_v20, %v5533_v61 }
 0x102   : > { %v5621_v38 = vmax.f32 %v486_v25, %v5445_v59  ;;  %v829_v45 = vrot.slane %v652_v24, 1  ;;  %v1081_v19 = vrot.slane %v652_v24, 2  ;;  %v1335_v0 = vrot.slane %v652_v24, 3 }
 0x103   : > { %v1589_v31 = vrot.slane %v652_v24, 4  ;;  %v7567_v47 = vmax.f32 %v5402_v16, %v5492_v29  ;;  %3768 = vst.msk [vmem:[%s4306_s22 + $0xcc] sm:$0xf0] %vm3726_vm4, %v5616_v17  ;;  %v653_v59 = vmax.f32 %v593_v26, %v4149_v3  ;;  %v655_v22 = vmax.f32 %v595_v28, %v4169_v12 }
 0x104   : > { %v830_v56 = vsel %vm728_vm1, %v827_v21, %v829_v45  ;;  %v1082_v35 = vsel %vm308_vm0, %v1079_v46, %v1081_v19  ;;  %v1336_v58 = vsel %vm1234_vm2, %v1333_v6, %v1335_v0  ;;  %v831_v20 = vsel %vm728_vm1, %v829_v45, %v4145_v2 }
 0x105   : > { %v5629_v15 = vmax.f32 %v7567_v47, %v5616_v17  ;;  %v1590_v41 = vsel %vm1488_vm3, %v1587_v48, %v1589_v31  ;;  %v968_v49 = vmax.f32 %v5538_v8, %v830_v56  ;;  %v1083_v25 = vsel %vm308_vm0, %v1081_v19, %v4143_v1 }
 0x106   : > { %v1337_v47 = vsel %vm1234_vm2, %v1335_v0, %v4171_v13  ;;  %v969_v26 = vmax.f32 %v652_v24, %v831_v20  ;;  %v1591_v21 = vsel %vm1488_vm3, %v1589_v31, %v4173_v14  ;;  %v654_v46 = vmax.f32 %v594_v40, %v4143_v1 }
 0x107   : > { %7568 = vst [vmem:[#allocation75_spill] sm:$0xff] %v5629_v15  ;;  %v832_v6 = vrot.slane %v653_v59, 1  ;;  %v1220_v32 = vmax.f32 %v968_v49, %v1082_v35  ;;  %v1084_v48 = vrot.slane %v653_v59, 2  ;;  %v1338_v7 = vrot.slane %v653_v59, 3 }
 0x108   : > { %v1592_v8 = vrot.slane %v653_v59, 4  ;;  %v1221_v56 = vmax.f32 %v969_v26, %v1083_v25  ;;  %v833_v53 = vrot.slane %v654_v46, 1  ;;  %v1085_v45 = vrot.slane %v654_v46, 2 }
 0x109   : > { %v1339_v30 = vrot.slane %v654_v46, 3  ;;  %v1474_v62 = vmax.f32 %v1220_v32, %v1336_v58  ;;  %v1593_v19 = vrot.slane %v654_v46, 4  ;;  %v596_v24 = vmax.f32 %v5614_v27, %v4149_v3 }
 0x10a   : > { %v1475_v0 = vmax.f32 %v1221_v56, %v1337_v47  ;;  %v834_v40 = vsel %vm728_vm1, %v832_v6, %v833_v53  ;;  %v1086_v31 = vsel %vm308_vm0, %v1084_v48, %v1085_v45  ;;  %v835_v58 = vrot.slane %v655_v22, 1 }
 0x10b   : > { %v1340_v35 = vsel %vm1234_vm2, %v1338_v7, %v1339_v30  ;;  %v5657_v49 = vmax.f32 %v1474_v62, %v1590_v41  ;;  %v970_v20 = vmax.f32 %v653_v59, %v834_v40  ;;  %v1594_v32 = vsel %vm1488_vm3, %v1592_v8, %v1593_v19 }
 0x10c   : > { %v5660_v25 = vmax.f32 %v1475_v0, %v1591_v21  ;;  %v1087_v28 = vrot.slane %v655_v22, 2  ;;  %v1341_v26 = vrot.slane %v655_v22, 3  ;;  %v1595_v27 = vrot.slane %v655_v22, 4 }
 0x10d   : > { %v7569_v6 = vmax.f32 %v5440_v52, %v5546_v60  ;;  %3769 = vst.msk [vmem:[%s4306_s22 + $0xd4] sm:$0xff] %vm3728_vm5, %v5657_v49  ;;  %v1222_v59 = vmax.f32 %v970_v20, %v1086_v31  ;;  %v7571_v21 = vmax.f32 %v5452_v4, %v5567_v37  ;;  %v836_v56 = vsel %vm728_vm1, %v833_v53, %v835_v58 }
 0x10e   : > { %3770 = vst.msk [vmem:[%s4306_s22 + $0xdc] sm:$0xf] %vm3730_vm6, %v5660_v25  ;;  %v971_v40 = vmax.f32 %v654_v46, %v836_v56  ;;  %v1088_v31 = vsel %vm308_vm0, %v1085_v45, %v1087_v28  ;;  %v1342_v20 = vsel %vm1234_vm2, %v1339_v30, %v1341_v26  ;;  %v1089_v41 = vsel %vm308_vm0, %v1087_v28, %v4143_v1 }
 0x10f   : > { %v5668_v7 = vmax.f32 %v7569_v6, %v5657_v49  ;;  %v5681_v48 = vmax.f32 %v7571_v21, %v5660_v25  ;;  %v1476_v0 = vmax.f32 %v1222_v59, %v1340_v35  ;;  %v1596_v6 = vsel %vm1488_vm3, %v1593_v19, %v1595_v27 }
 0x110   : > { %v837_v21 = vsel %vm728_vm1, %v835_v58, %v4145_v2  ;;  %v1343_v47 = vsel %vm1234_vm2, %v1341_v26, %v4171_v13  ;;  %v1223_v53 = vmax.f32 %v971_v40, %v1088_v31  ;;  %v1597_v45 = vsel %vm1488_vm3, %v1595_v27, %v4173_v14 }
 0x111   : > { %7570 = vst [vmem:[#allocation76_spill] sm:$0xff] %v5668_v7  ;;  %7572 = vst [vmem:[#allocation77_spill] sm:$0xff] %v5681_v48  ;;  %v5698_v8 = vmax.f32 %v1476_v0, %v1594_v32  ;;  %v972_v46 = vmax.f32 %v655_v22, %v837_v21  ;;  %v597_v30 = vmax.f32 %v5621_v38, %v4143_v1  ;;  %v844_v35 = vrot.slane %v5541_v11, 1 }
 0x112   : > { %v656_v19 = vmax.f32 %v596_v24, %v4149_v3  ;;  %v845_v58 = vrot.slane %v5544_v44, 1  ;;  %v1477_v32 = vmax.f32 %v1223_v53, %v1342_v20  ;;  %v1096_v26 = vrot.slane %v5541_v11, 2 }
 0x113   : > { %3771 = vst.msk [vmem:[%s4306_s22 + $0xdc] sm:$0xf0] %vm3726_vm4, %v5698_v8  ;;  %v1224_v22 = vmax.f32 %v972_v46, %v1089_v41  ;;  %v5714_v27 = vmax.f32 %v597_v30, %v4143_v1  ;;  %v1097_v31 = vrot.slane %v5544_v44, 2  ;;  %v1350_v30 = vrot.slane %v5541_v11, 3 }
 0x114   : > { %v838_v38 = vrot.slane %v656_v19, 1  ;;  %v846_v24 = vsel %vm728_vm1, %v844_v35, %v845_v58  ;;  %v1090_v59 = vrot.slane %v656_v19, 2  ;;  %v5717_v56 = vmax.f32 %v1477_v32, %v1596_v6 }
 0x115   : > { %v1478_v0 = vmax.f32 %v1224_v22, %v1343_v47  ;;  %v976_v40 = vmax.f32 %v5541_v11, %v846_v24  ;;  %v839_v20 = vrot.slane %v5714_v27, 1  ;;  %v1091_v41 = vrot.slane %v5714_v27, 2 }
 0x116   : > { %v1344_v21 = vrot.slane %v656_v19, 3  ;;  %v1345_v53 = vrot.slane %v5714_v27, 3  ;;  %3772 = vst.msk [vmem:[%s4306_s22 + $0xe4] sm:$0xff] %vm3728_vm5, %v5717_v56  ;;  %v1098_v47 = vsel %vm308_vm0, %v1096_v26, %v1097_v31  ;;  %v1599_v26 = vrot.slane %v5714_v27, 4 }
 0x117   : > { %v5729_v6 = vmax.f32 %v1478_v0, %v1597_v45  ;;  %v840_v35 = vsel %vm728_vm1, %v838_v38, %v839_v20  ;;  %v1092_v32 = vsel %vm308_vm0, %v1090_v59, %v1091_v41  ;;  %v1228_v22 = vmax.f32 %v976_v40, %v1098_v47 }
 0x118   : > { %v1346_v24 = vsel %vm1234_vm2, %v1344_v21, %v1345_v53  ;;  %v973_v46 = vmax.f32 %v656_v19, %v840_v35  ;;  %v1351_v45 = vrot.slane %v5544_v44, 3  ;;  %v1598_v0 = vrot.slane %v656_v19, 4 }
 0x119   : > { %3773 = vst.msk [vmem:[%s4306_s22 + $0xec] sm:$0xf] %vm3730_vm6, %v5729_v6  ;;  %v1604_v62 = vrot.slane %v5541_v11, 4  ;;  %v1605_v38 = vrot.slane %v5544_v44, 4  ;;  %v487_v59 = vmax.f32 %v5307_v42, %v5396_v57  ;;  %v847_v47 = vrot.slane %v5610_v10, 1 }
 0x11a   : > { %v1225_v40 = vmax.f32 %v973_v46, %v1092_v32  ;;  %v1352_v21 = vsel %vm1234_vm2, %v1350_v30, %v1351_v45  ;;  %v1099_v28 = vrot.slane %v5610_v10, 2  ;;  %v1600_v3 = vsel %vm1488_vm3, %v1598_v0, %v1599_v26 }
 0x11b   : > { %v1482_v35 = vmax.f32 %v1228_v22, %v1352_v21  ;;  %v1606_v19 = vsel %vm1488_vm3, %v1604_v62, %v1605_v38  ;;  %v541_v48 = vmax.f32 %v487_v59, %v5533_v61  ;;  %v848_v7 = vsel %vm728_vm1, %v845_v58, %v847_v47 }
 0x11c   : > { %v1479_v11 = vmax.f32 %v1225_v40, %v1346_v24  ;;  %v1100_v15 = vsel %vm308_vm0, %v1097_v31, %v1099_v28  ;;  %v1353_v42 = vrot.slane %v5610_v10, 3  ;;  %v977_v30 = vmax.f32 %v5544_v44, %v848_v7 }
 0x11d   : > { %v5756_v57 = vmax.f32 %v1482_v35, %v1606_v19  ;;  %v598_v46 = vmax.f32 %v541_v48, %v4169_v12  ;;  %v1607_v32 = vrot.slane %v5610_v10, 4  ;;  %v849_v62 = vsel %vm728_vm1, %v847_v47, %v4145_v2 }
 0x11e   : > { %v5761_v22 = vmax.f32 %v1479_v11, %v1600_v3  ;;  %v1354_v61 = vsel %vm1234_vm2, %v1351_v45, %v1353_v42  ;;  %v1101_v58 = vsel %vm308_vm0, %v1099_v28, %v4143_v1  ;;  %v1229_v24 = vmax.f32 %v977_v30, %v1100_v15 }
 0x11f   : > { %7573 = vst [vmem:[#allocation78_spill] sm:$0xff] %v5756_v57  ;;  %v658_v31 = vmax.f32 %v598_v46, %v4169_v12  ;;  %v1608_v0 = vsel %vm1488_vm3, %v1605_v38, %v1607_v32  ;;  %v978_v48 = vmax.f32 %v5610_v10, %v849_v62  ;;  %v1355_v7 = vsel %vm1234_vm2, %v1353_v42, %v4171_v13 }
 0x120   : > { %3774 = vst.msk [vmem:[%s4306_s22 + $0xec] sm:$0xf0] %vm3726_vm4, %v5761_v22  ;;  %v1609_v28 = vsel %vm1488_vm3, %v1607_v32, %v4173_v14  ;;  %v1483_v59 = vmax.f32 %v1229_v24, %v1354_v61  ;;  %v1859_v21 = vmax.f32 %v4349_v5, %v4550_v33  ;;  %v1860_v47 = vmax.f32 %v4451_v51, %v4560_v43  ;;  %v7576_v24 = vld [vmem:[#allocation21_spill] sm:$0xff] }
 0x121   : > { %v841_v15 = vrot.slane %v658_v31, 1  ;;  %v1093_v45 = vrot.slane %v658_v31, 2  ;;  %v1347_v38 = vrot.slane %v658_v31, 3  ;;  %v1601_v10 = vrot.slane %v658_v31, 4 }
 0x122   : > { %v1230_v40 = vmax.f32 %v978_v48, %v1101_v58  ;;  %v5789_v42 = vmax.f32 %v1483_v59, %v1608_v0  ;;  %v5810_v62 = vmax.f32 %v1859_v21, %v4611_v34  ;;  %v5815_v0 = vmax.f32 %v1860_v47, %v7576_v24 }
 0x123   : > { %v842_v35 = vsel %vm728_vm1, %v839_v20, %v841_v15  ;;  %v1094_v19 = vsel %vm308_vm0, %v1091_v41, %v1093_v45  ;;  %v1348_v11 = vsel %vm1234_vm2, %v1345_v53, %v1347_v38  ;;  %v1602_v30 = vsel %vm1488_vm3, %v1599_v26, %v1601_v10 }
 0x124   : > { %7574 = vst [vmem:[#allocation79_spill] sm:$0xff] %v5789_v42  ;;  %v974_v46 = vmax.f32 %v5714_v27, %v842_v35  ;;  %v843_v32 = vsel %vm728_vm1, %v841_v15, %v4145_v2  ;;  %v1095_v5 = vsel %vm308_vm0, %v1093_v45, %v4143_v1  ;;  %v1349_v51 = vsel %vm1234_vm2, %v1347_v38, %v4171_v13 }
 0x125   : > { %v975_v61 = vmax.f32 %v658_v31, %v843_v32  ;;  %v1484_v20 = vmax.f32 %v1230_v40, %v1355_v7  ;;  %v1603_v41 = vsel %vm1488_vm3, %v1601_v10, %v4173_v14  ;;  %v5803_v27 = vmax.f32 %v4359_v36, %v4550_v33 }
 0x126   : > { %v1226_v53 = vmax.f32 %v974_v46, %v1094_v19  ;;  %v5807_v26 = vmax.f32 %v4454_v55, %v4560_v43  ;;  %v2030_v48 = vrot.slane %v4359_v36, 1  ;;  %v7384_v15 = vrot.slane %v4454_v55, 1 }
 0x127   : > { %v1227_v58 = vmax.f32 %v975_v61, %v1095_v5  ;;  %v5812_v31 = vmax.f32 %v1484_v20, %v1609_v28  ;;  %v2035_v45 = vrot.slane %v5803_v27, 1  ;;  %v2040_v10 = vrot.slane %v5810_v62, 1 }
 0x128   : > { %v1480_v7 = vmax.f32 %v1226_v53, %v1348_v11  ;;  %v7383_v38 = vrot.slane %v5807_v26, 1  ;;  %v7382_v40 = vrot.slane %v5815_v0, 1  ;;  %v2250_v28 = vrot.slane %v4359_v36, 2 }
 0x129   : > { %7575 = vst [vmem:[#allocation80_spill] sm:$0xff] %v5812_v31  ;;  %v1481_v59 = vmax.f32 %v1227_v58, %v1349_v51  ;;  %v2032_v47 = vsel %vm728_vm1, %v2030_v48, %v7384_v15  ;;  %v2251_v19 = vrot.slane %v4454_v55, 2  ;;  %v2255_v58 = vrot.slane %v5803_v27, 2 }
 0x12a   : > { %v5824_v21 = vmax.f32 %v1480_v7, %v1602_v30  ;;  %v2037_v35 = vsel %vm728_vm1, %v2035_v45, %v7383_v38  ;;  %v2042_v46 = vsel %vm728_vm1, %v2040_v10, %v7382_v40  ;;  %v2190_v32 = vmax.f32 %v4359_v36, %v2032_v47 }
 0x12b   : > { %v5833_v11 = vmax.f32 %v1481_v59, %v1603_v41  ;;  %v2193_v30 = vmax.f32 %v5803_v27, %v2037_v35  ;;  %v2196_v51 = vmax.f32 %v5810_v62, %v2042_v46  ;;  %v2252_v20 = vsel %vm308_vm0, %v2250_v28, %v2251_v19 }
 0x12c   : > { %7577 = vst [vmem:[#allocation21_spill] sm:$0xff] %v5824_v21  ;;  %3775 = vst.msk [vmem:[%s4306_s22 + $0xf4] sm:$0xff] %vm3728_vm5, %v5824_v21  ;;  %v2256_v48 = vrot.slane %v5807_v26, 2  ;;  %v2260_v7 = vrot.slane %v5810_v62, 2  ;;  %v2261_v45 = vrot.slane %v5815_v0, 2  ;;  %v2410_v59 = vmax.f32 %v2190_v32, %v2252_v20 }
 0x12d   : > { %7578 = vst [vmem:[#allocation81_spill] sm:$0xff] %v5833_v11  ;;  %3776 = vst.msk [vmem:[%s4306_s22 + $0xfc] sm:$0xf] %vm3730_vm6, %v5833_v11  ;;  %v2470_v10 = vrot.slane %v4359_v36, 3  ;;  %v2471_v47 = vrot.slane %v4454_v55, 3  ;;  %v2475_v35 = vrot.slane %v5803_v27, 3 }
 0x12e   : > { %v2257_v28 = vsel %vm308_vm0, %v2255_v58, %v2256_v48  ;;  %v2476_v46 = vrot.slane %v5807_v26, 3  ;;  %v2262_v53 = vsel %vm308_vm0, %v2260_v7, %v2261_v45  ;;  %v2480_v61 = vrot.slane %v5810_v62, 3 }
 0x12f   : > { %v2413_v41 = vmax.f32 %v2193_v30, %v2257_v28  ;;  %v2481_v3 = vrot.slane %v5815_v0, 3  ;;  %v2416_v5 = vmax.f32 %v2196_v51, %v2262_v53  ;;  %v2472_v32 = vsel %vm1234_vm2, %v2470_v10, %v2471_v47 }
 0x130   : > { %v2477_v20 = vsel %vm1234_vm2, %v2475_v35, %v2476_v46  ;;  %v2690_v58 = vrot.slane %v4359_v36, 4  ;;  %v2630_v40 = vmax.f32 %v2410_v59, %v2472_v32  ;;  %v2691_v15 = vrot.slane %v4454_v55, 4  ;;  %v7579_v36 = vld [vmem:[#allocation19_spill] sm:$0xff]  ;;  %v7580_v35 = vld [vmem:[#allocation17_spill] sm:$0xff]  ;;  %v7581_v32 = vld [vmem:[#allocation18_spill] sm:$0xff] }
 0x131   : > { %v2482_v44 = vsel %vm1234_vm2, %v2480_v61, %v2481_v3  ;;  %v2633_v38 = vmax.f32 %v2413_v41, %v2477_v20  ;;  %v2695_v30 = vrot.slane %v5803_v27, 4  ;;  %v2696_v28 = vrot.slane %v5807_v26, 4  ;;  %v7582_v20 = vld [vmem:[#allocation22_spill] sm:$0xff] }
 0x132   : > { %v2636_v7 = vmax.f32 %v2416_v5, %v2482_v44  ;;  %v2700_v51 = vrot.slane %v5810_v62, 4  ;;  %v2692_v53 = vsel %vm1488_vm3, %v2690_v58, %v2691_v15  ;;  %v2701_v10 = vrot.slane %v5815_v0, 4 }
 0x133   : > { %v1861_v61 = vmax.f32 %v7580_v35, %v7579_v36  ;;  %v2697_v59 = vsel %vm1488_vm3, %v2695_v30, %v2696_v28  ;;  %v2850_v41 = vmax.f32 %v2630_v40, %v2692_v53  ;;  %v5883_v44 = vmax.f32 %v7581_v32, %v7579_v36 }
 0x134   : > { %v2033_v27 = vrot.slane %v7581_v32, 1  ;;  %v2702_v62 = vsel %vm1488_vm3, %v2700_v51, %v2701_v10  ;;  %v5893_v5 = vmax.f32 %v2633_v38, %v2697_v59  ;;  %v2253_v40 = vrot.slane %v7581_v32, 2 }
 0x135   : > { %v5896_v58 = vmax.f32 %v1861_v61, %v7582_v20  ;;  %v5899_v30 = vmax.f32 %v2636_v7, %v2702_v62  ;;  %v7584_v53 = vrot.slane %v4454_v55, 1  ;;  %v2038_v14 = vrot.slane %v5883_v44, 1 }
 0x136   : > { %v2258_v13 = vrot.slane %v5883_v44, 2  ;;  %v2910_v2 = vmax.f32 %v2850_v41, %v5893_v5  ;;  %v2254_v61 = vsel %vm308_vm0, %v2251_v19, %v2253_v40  ;;  %v7585_v59 = vrot.slane %v5807_v26, 1 }
 0x137   : > { %7583 = vst [vmem:[#allocation19_spill] sm:$0xff] %v5899_v30  ;;  %v2034_v35 = vsel %vm728_vm1, %v7584_v53, %v2033_v27  ;;  %v2043_v38 = vrot.slane %v5896_v58, 1  ;;  %3778 = vst.msk [vmem:[%s5890_s25 - $0x2] sm:$0xfc] %vm3777_vm7, %v5899_v30  ;;  %v2263_v41 = vrot.slane %v5896_v58, 2  ;;  %v2483_v1 = vrot.slane %v5896_v58, 3 }
 0x138   : > { %v2191_v51 = vmax.f32 %v4454_v55, %v2034_v35  ;;  %v2039_v62 = vsel %vm728_vm1, %v7585_v59, %v2038_v14  ;;  %v2259_v53 = vsel %vm308_vm0, %v2256_v48, %v2258_v13  ;;  %v5921_v31 = vmax.f32 %v2910_v2, %v5899_v30 }
 0x139   : > { %v7587_v55 = vrot.slane %v5815_v0, 1  ;;  %v2194_v35 = vmax.f32 %v5807_v26, %v2039_v62  ;;  %v2264_v57 = vsel %vm308_vm0, %v2261_v45, %v2263_v41  ;;  %v2473_v59 = vrot.slane %v7581_v32, 3 }
 0x13a   : > { %7586 = vst [vmem:[#allocation17_spill] sm:$0xff] %v5921_v31  ;;  %v2411_v7 = vmax.f32 %v2191_v51, %v2254_v61  ;;  %v2478_v48 = vrot.slane %v5883_v44, 3  ;;  %v2693_v2 = vrot.slane %v7581_v32, 4  ;;  %v2698_v31 = vrot.slane %v5883_v44, 4 }
 0x13b   : > { %v2044_v19 = vsel %vm728_vm1, %v7587_v55, %v2043_v38  ;;  %v2414_v12 = vmax.f32 %v2194_v35, %v2259_v53  ;;  %v2474_v55 = vsel %vm1234_vm2, %v2471_v47, %v2473_v59  ;;  %v2484_v45 = vsel %vm1234_vm2, %v2481_v3, %v2483_v1 }
 0x13c   : > { %v2197_v42 = vmax.f32 %v5815_v0, %v2044_v19  ;;  %v2479_v26 = vsel %vm1234_vm2, %v2476_v46, %v2478_v48  ;;  %v2703_v0 = vrot.slane %v5896_v58, 4  ;;  %v2631_v51 = vmax.f32 %v2411_v7, %v2474_v55 }
 0x13d   : > { %v2634_v61 = vmax.f32 %v2414_v12, %v2479_v26  ;;  %v2694_v62 = vsel %vm1488_vm3, %v2691_v15, %v2693_v2  ;;  %v2699_v19 = vsel %vm1488_vm3, %v2696_v28, %v2698_v31  ;;  %v2195_v46 = vmax.f32 %v5883_v44, %v2038_v14  ;;  %v7589_v15 = vld [vmem:[#allocation9_spill] sm:$0xff] }
 0x13e   : > { %v2417_v11 = vmax.f32 %v2197_v42, %v2264_v57  ;;  %v2704_v35 = vsel %vm1488_vm3, %v2701_v10, %v2703_v0  ;;  %v2192_v57 = vmax.f32 %v7581_v32, %v2033_v27  ;;  %v2851_v42 = vmax.f32 %v2631_v51, %v2694_v62  ;;  %v7592_v27 = vld [vmem:[#allocation12_spill] sm:$0xff]  ;;  %v7593_v26 = vld [vmem:[#allocation13_spill] sm:$0xff] }
 0x13f   : > { %v5942_v47 = vmax.f32 %v2634_v61, %v2699_v19  ;;  %v2198_v21 = vmax.f32 %v5896_v58, %v2043_v38  ;;  %v2415_v55 = vmax.f32 %v2195_v46, %v2258_v13  ;;  %v7596_v38 = vld [vmem:[#allocation16_spill] sm:$0xff] }
 0x140   : > { %v2637_v53 = vmax.f32 %v2417_v11, %v2484_v45  ;;  %v2412_v12 = vmax.f32 %v2192_v57, %v2253_v40  ;;  %v7590_v11 = vld [vmem:[#allocation10_spill] sm:$0xff]  ;;  %v7594_v45 = vmax.f32 %v7592_v27, %v7593_v26  ;;  %v7606_v26 = vld [vmem:[#allocation28_spill] sm:$0xff] }
 0x141   : > { %v7591_v28 = vmax.f32 %v7589_v15, %v7590_v11  ;;  %v2911_v10 = vmax.f32 %v2851_v42, %v5942_v47  ;;  %v2418_v32 = vmax.f32 %v2198_v21, %v2263_v41  ;;  %v2635_v41 = vmax.f32 %v2415_v55, %v2478_v48  ;;  %v7604_v15 = vld [vmem:[#allocation23_spill] sm:$0xff] }
 0x142   : > { %v5946_v3 = vmax.f32 %v2637_v53, %v2704_v35  ;;  %v1806_v14 = vmax.f32 %v7594_v45, %v4560_v43  ;;  %v2632_v58 = vmax.f32 %v2412_v12, %v2473_v59  ;;  %v7598_v53 = vld [vmem:[#allocation25_spill] sm:$0xff]  ;;  %v7599_v35 = vld [vmem:[#allocation31_spill] sm:$0xff] }
 0x143   : > { %v1805_v7 = vmax.f32 %v7591_v28, %v4550_v33  ;;  %v7595_v33 = vld [vmem:[#allocation15_spill] sm:$0xff]  ;;  %v2638_v61 = vmax.f32 %v2418_v32, %v2483_v1  ;;  %v5977_v46 = vmax.f32 %v2635_v41, %v2698_v31  ;;  %v7603_v1 = vld [vmem:[#allocation33_spill] sm:$0xff] }
 0x144   : > { %7588 = vst [vmem:[#allocation18_spill] sm:$0xff] %v5946_v3  ;;  %v2914_v44 = vmax.f32 %v5942_v47, %v5946_v3  ;;  %3779 = vst.msk [vmem:[%s5890_s25 + $0x6] sm:$0xff] %vm3728_vm5, %v5946_v3  ;;  %v7597_v51 = vmax.f32 %v7595_v33, %v7596_v38  ;;  %v5968_v21 = vmax.f32 %v2911_v10, %v5946_v3  ;;  %v7602_v12 = vld [vmem:[#allocation27_spill] sm:$0xff] }
 0x145   : > { %v1862_v40 = vmax.f32 %v1805_v7, %v4611_v34  ;;  %v1863_v43 = vmax.f32 %v1806_v14, %v7576_v24  ;;  %v2852_v62 = vmax.f32 %v2632_v58, %v2693_v2  ;;  %v7600_v34 = vld [vmem:[#allocation20_spill] sm:$0xff]  ;;  %v7605_v24 = vmax.f32 %v7604_v15, %v7602_v12 }
 0x146   : > { %v1807_v13 = vmax.f32 %v7597_v51, %v7579_v36  ;;  %v7601_v57 = vmax.f32 %v7600_v34, %v7598_v53  ;;  %v5979_v36 = vmax.f32 %v2638_v61, %v2703_v0 }
 0x147   : > { %v1919_v19 = vmax.f32 %v1862_v40, %v7598_v53  ;;  %v1920_v48 = vmax.f32 %v1863_v43, %v7602_v12  ;;  %v5986_v2 = vmax.f32 %v7605_v24, %v7603_v1  ;;  %v2912_v10 = vmax.f32 %v2852_v62, %v5977_v46 }
 0x148   : > { %v1864_v59 = vmax.f32 %v1807_v13, %v7582_v20  ;;  %v1922_v42 = vmax.f32 %v7601_v57, %v7599_v35  ;;  %3781 = vst.msk [vmem:[%s5890_s25 + $0xe] sm:$0x3] %vm3780_vm8, %v5979_v36 }
 0x149   : > { %v2045_v11 = vrot.slane %v1919_v19, 1  ;;  %v2265_v28 = vrot.slane %v1919_v19, 2  ;;  %v2485_v20 = vrot.slane %v1919_v19, 3  ;;  %v2705_v7 = vrot.slane %v1919_v19, 4 }
 0x14a   : > { %v2046_v0 = vrot.slane %v1920_v48, 1  ;;  %v2266_v55 = vrot.slane %v1920_v48, 2  ;;  %v2486_v32 = vrot.slane %v1920_v48, 3  ;;  %v2706_v27 = vrot.slane %v1920_v48, 4 }
 0x14b   : > { %v1921_v45 = vmax.f32 %v1864_v59, %v7606_v26  ;;  %v2050_v14 = vrot.slane %v1922_v42, 1  ;;  %v5996_v58 = vmax.f32 %v2912_v10, %v5979_v36  ;;  %v2051_v38 = vrot.slane %v5986_v2, 1 }
 0x14c   : > { %v2047_v40 = vsel %vm728_vm1, %v2045_v11, %v2046_v0  ;;  %v2267_v33 = vsel %vm308_vm0, %v2265_v28, %v2266_v55  ;;  %v2487_v13 = vsel %vm1234_vm2, %v2485_v20, %v2486_v32  ;;  %v2707_v41 = vsel %vm1488_vm3, %v2705_v7, %v2706_v27 }
 0x14d   : > { %v2199_v51 = vmax.f32 %v1919_v19, %v2047_v40  ;;  %v2048_v61 = vrot.slane %v1921_v45, 1  ;;  %v2268_v43 = vrot.slane %v1921_v45, 2  ;;  %v2488_v62 = vrot.slane %v1921_v45, 3 }
 0x14e   : > { %v2708_v53 = vrot.slane %v1921_v45, 4  ;;  %v2052_v59 = vsel %vm728_vm1, %v2050_v14, %v2051_v38  ;;  %v2270_v10 = vrot.slane %v1922_v42, 2  ;;  %v2271_v40 = vrot.slane %v5986_v2, 2 }
 0x14f   : > { %v2419_v34 = vmax.f32 %v2199_v51, %v2267_v33  ;;  %v2049_v57 = vsel %vm728_vm1, %v2046_v0, %v2048_v61  ;;  %v2201_v12 = vmax.f32 %v1921_v45, %v2048_v61  ;;  %v2202_v15 = vmax.f32 %v1922_v42, %v2052_v59  ;;  %v7607_v61 = vld [vmem:[#allocation34_spill] sm:$0xff] }
 0x150   : > { %v2200_v24 = vmax.f32 %v1920_v48, %v2049_v57  ;;  %v2269_v11 = vsel %vm308_vm0, %v2266_v55, %v2268_v43  ;;  %v2489_v19 = vsel %vm1234_vm2, %v2486_v32, %v2488_v62  ;;  %v2709_v28 = vsel %vm1488_vm3, %v2706_v27, %v2708_v53 }
 0x151   : > { %v2639_v20 = vmax.f32 %v2419_v34, %v2487_v13  ;;  %v2421_v7 = vmax.f32 %v2201_v12, %v2268_v43  ;;  %v2490_v14 = vrot.slane %v1922_v42, 3  ;;  %v2491_v33 = vrot.slane %v5986_v2, 3  ;;  %v7608_v43 = vld [vmem:[#allocation24_spill] sm:$0xff] }
 0x152   : > { %v2420_v31 = vmax.f32 %v2200_v24, %v2269_v11  ;;  %v2710_v0 = vrot.slane %v1922_v42, 4  ;;  %v2272_v55 = vsel %vm308_vm0, %v2270_v10, %v2271_v40  ;;  %v2711_v32 = vrot.slane %v5986_v2, 4 }
 0x153   : > { %v6010_v45 = vmax.f32 %v2639_v20, %v2707_v41  ;;  %v2641_v48 = vmax.f32 %v2421_v7, %v2488_v62  ;;  %v2422_v51 = vmax.f32 %v2202_v15, %v2272_v55  ;;  %v2492_v13 = vsel %vm1234_vm2, %v2490_v14, %v2491_v33  ;;  %v7612_v20 = vld [vmem:[#allocation26_spill] sm:$0xff] }
 0x154   : > { %v2640_v27 = vmax.f32 %v2420_v31, %v2489_v19  ;;  %v7609_v59 = vmax.f32 %v7608_v43, %v7606_v26  ;;  %v7610_v41 = vmax.f32 %v5893_v5, %v5899_v30  ;;  %v2712_v57 = vsel %vm1488_vm3, %v2710_v0, %v2711_v32  ;;  %v7611_v19 = vld [vmem:[#allocation37_spill] sm:$0xff] }
 0x155   : > { %3782 = vst.msk [vmem:[%s5890_s25 + $0xe] sm:$0xfc] %vm3777_vm7, %v6010_v45  ;;  %v6030_v31 = vmax.f32 %v2641_v48, %v2708_v53  ;;  %v2642_v26 = vmax.f32 %v2422_v51, %v2492_v13  ;;  %v7613_v7 = vmax.f32 %v7612_v20, %v7599_v35  ;;  %v7614_v53 = vld [vmem:[#allocation29_spill] sm:$0xff] }
 0x156   : > { %v1924_v34 = vmax.f32 %v7609_v59, %v7607_v61  ;;  %v6025_v62 = vmax.f32 %v7610_v41, %v6010_v45  ;;  %v6033_v12 = vmax.f32 %v2640_v27, %v2709_v28  ;;  %v7615_v14 = vmax.f32 %v7614_v53, %v7603_v1 }
 0x157   : > { %3784 = vst.msk [vmem:[%s5890_s25 + $0x1e] sm:$0x3] %vm3780_vm8, %v6030_v31  ;;  %v1925_v10 = vmax.f32 %v7613_v7, %v7611_v19  ;;  %v6057_v55 = vmax.f32 %v2642_v26, %v2712_v57 }
 0x158   : > { %v2053_v15 = vrot.slane %v1924_v34, 1  ;;  %v2273_v24 = vrot.slane %v1924_v34, 2  ;;  %v2493_v5 = vrot.slane %v1924_v34, 3  ;;  %v2713_v11 = vrot.slane %v1924_v34, 4  ;;  %3783 = vst.msk [vmem:[%s5890_s25 + $0x16] sm:$0xff] %vm3728_vm5, %v6033_v12 }
 0x159   : > { %v1926_v28 = vmax.f32 %v7615_v14, %v4900_v18  ;;  %v6052_v48 = vmax.f32 %v2914_v44, %v6033_v12  ;;  %3785 = vst.msk [vmem:[%s5890_s25 + $0x1e] sm:$0xfc] %vm3777_vm7, %v6057_v55  ;;  %v2055_v44 = vrot.slane %v1925_v10, 1  ;;  %v2275_v59 = vrot.slane %v1925_v10, 2 }
 0x15a   : > { %v2054_v35 = vsel %vm728_vm1, %v2051_v38, %v2053_v15  ;;  %v2274_v1 = vsel %vm308_vm0, %v2271_v40, %v2273_v24  ;;  %v2494_v51 = vsel %vm1234_vm2, %v2491_v33, %v2493_v5  ;;  %v2714_v13 = vsel %vm1488_vm3, %v2711_v32, %v2713_v11 }
 0x15b   : > { %v2203_v27 = vmax.f32 %v5986_v2, %v2054_v35  ;;  %v2204_v47 = vmax.f32 %v1924_v34, %v2053_v15  ;;  %v2056_v43 = vrot.slane %v1926_v28, 1  ;;  %v2276_v57 = vrot.slane %v1926_v28, 2  ;;  %v7616_v35 = vld [vmem:[#allocation30_spill] sm:$0xff] }
 0x15c   : > { %v2495_v26 = vrot.slane %v1925_v10, 3  ;;  %v2496_v20 = vrot.slane %v1926_v28, 3  ;;  %v2715_v7 = vrot.slane %v1925_v10, 4  ;;  %v2716_v40 = vrot.slane %v1926_v28, 4 }
 0x15d   : > { %v2423_v41 = vmax.f32 %v2203_v27, %v2274_v1  ;;  %v2424_v38 = vmax.f32 %v2204_v47, %v2273_v24  ;;  %v2057_v2 = vsel %vm728_vm1, %v2055_v44, %v2056_v43  ;;  %v2277_v32 = vsel %vm308_vm0, %v2275_v59, %v2276_v57  ;;  %v7618_v1 = vld [vmem:[#allocation41_spill] sm:$0xff]  ;;  %v7619_v47 = vld [vmem:[#allocation32_spill] sm:$0xff]  ;;  %v7621_v59 = vld [vmem:[#allocation43_spill] sm:$0xff] }
 0x15e   : > { %v2205_v33 = vmax.f32 %v1925_v10, %v2057_v2  ;;  %v2497_v14 = vsel %vm1234_vm2, %v2495_v26, %v2496_v20  ;;  %v2717_v15 = vsel %vm1488_vm3, %v2715_v7, %v2716_v40  ;;  %v7617_v27 = vmax.f32 %v7616_v35, %v7607_v61  ;;  %v7622_v2 = vld [vmem:[#allocation35_spill] sm:$0xff]  ;;  %v7625_v7 = vld [vmem:[#allocation36_spill] sm:$0xff] }
 0x15f   : > { %v2643_v53 = vmax.f32 %v2423_v41, %v2494_v51  ;;  %v2644_v34 = vmax.f32 %v2424_v38, %v2493_v5  ;;  %v7620_v44 = vmax.f32 %v7619_v47, %v7611_v19  ;;  %v7623_v5 = vmax.f32 %v7622_v2, %v4900_v18  ;;  %v7624_v38 = vld [vmem:[#allocation44_spill] sm:$0xff] }
 0x160   : > { %v1927_v24 = vmax.f32 %v7617_v27, %v4904_v54  ;;  %v2425_v10 = vmax.f32 %v2205_v33, %v2277_v32  ;;  %v7626_v0 = vmax.f32 %v7625_v7, %v4904_v54 }
 0x161   : > { %v1928_v51 = vmax.f32 %v7620_v44, %v7618_v1  ;;  %v6079_v41 = vmax.f32 %v2643_v53, %v2714_v13  ;;  %v1929_v26 = vmax.f32 %v7623_v5, %v7621_v59  ;;  %v6091_v35 = vmax.f32 %v2644_v34, %v2713_v11 }
 0x162   : > { %v6089_v61 = vmax.f32 %v7626_v0, %v7624_v38  ;;  %v2058_v27 = vrot.slane %v1927_v24, 1  ;;  %v2278_v42 = vrot.slane %v1927_v24, 2  ;;  %v2498_v19 = vrot.slane %v1927_v24, 3 }
 0x163   : > { %7627 = vst [vmem:[#allocation22_spill] sm:$0xff] %v6091_v35  ;;  %3786 = vst.msk [vmem:[%s5890_s25 + $0x26] sm:$0xff] %vm3728_vm5, %v6079_v41  ;;  %v2645_v13 = vmax.f32 %v2425_v10, %v2497_v14  ;;  %v2718_v53 = vrot.slane %v1927_v24, 4  ;;  %v2060_v33 = vrot.slane %v1928_v51, 1  ;;  %v2061_v18 = vrot.slane %v1929_v26, 1 }
 0x164   : > { %3787 = vst.msk [vmem:[%s5890_s25 + $0x2e] sm:$0x3] %vm3780_vm8, %v6091_v35  ;;  %v2059_v54 = vsel %vm728_vm1, %v2056_v43, %v2058_v27  ;;  %v2279_v0 = vsel %vm308_vm0, %v2276_v57, %v2278_v42  ;;  %v2499_v11 = vsel %vm1234_vm2, %v2496_v20, %v2498_v19  ;;  %v2207_v32 = vmax.f32 %v1927_v24, %v2058_v27 }
 0x165   : > { %v6102_v34 = vmax.f32 %v2645_v13, %v2717_v15  ;;  %v2206_v47 = vmax.f32 %v1926_v28, %v2059_v54  ;;  %v2719_v44 = vsel %vm1488_vm3, %v2716_v40, %v2718_v53  ;;  %v2062_v14 = vsel %vm728_vm1, %v2060_v33, %v2061_v18 }
 0x166   : > { %v2427_v10 = vmax.f32 %v2207_v32, %v2278_v42  ;;  %v2208_v2 = vmax.f32 %v1928_v51, %v2062_v14  ;;  %v2280_v5 = vrot.slane %v1928_v51, 2  ;;  %v2281_v7 = vrot.slane %v1929_v26, 2  ;;  %v7631_v14 = vld [vmem:[#allocation47_spill] sm:$0xff] }
 0x167   : > { %7628 = vst [vmem:[#allocation9_spill] sm:$0xff] %v6102_v34  ;;  %3788 = vst.msk [vmem:[%s5890_s25 + $0x2e] sm:$0xfc] %vm3777_vm7, %v6102_v34  ;;  %v2426_v43 = vmax.f32 %v2206_v47, %v2279_v0  ;;  %v2500_v3 = vrot.slane %v1928_v51, 3  ;;  %v2501_v57 = vrot.slane %v1929_v26, 3  ;;  %v2720_v35 = vrot.slane %v1928_v51, 4 }
 0x168   : > { %v2647_v20 = vmax.f32 %v2427_v10, %v2498_v19  ;;  %v2282_v15 = vsel %vm308_vm0, %v2280_v5, %v2281_v7  ;;  %v2721_v28 = vrot.slane %v1929_v26, 4  ;;  %v2063_v40 = vrot.slane %v6089_v61, 1  ;;  %v7635_v5 = vld [vmem:[#allocation49_spill] sm:$0xff] }
 0x169   : > { %v2646_v24 = vmax.f32 %v2426_v43, %v2499_v11  ;;  %v2428_v27 = vmax.f32 %v2208_v2, %v2282_v15  ;;  %v2502_v42 = vsel %vm1234_vm2, %v2500_v3, %v2501_v57  ;;  %v2283_v13 = vrot.slane %v6089_v61, 2  ;;  %v7639_v15 = vld [vmem:[#allocation40_spill] sm:$0xff] }
 0x16a   : > { %v6113_v33 = vmax.f32 %v2647_v20, %v2718_v53  ;;  %v2722_v54 = vsel %vm1488_vm3, %v2720_v35, %v2721_v28  ;;  %v2064_v51 = vsel %vm728_vm1, %v2061_v18, %v2063_v40  ;;  %v2503_v19 = vrot.slane %v6089_v61, 3  ;;  %v7632_v18 = vld [vmem:[#allocation38_spill] sm:$0xff]  ;;  %v7638_v20 = vld [vmem:[#allocation51_spill] sm:$0xff] }
 0x16b   : > { %v6118_v0 = vmax.f32 %v2646_v24, %v2719_v44  ;;  %v2648_v32 = vmax.f32 %v2428_v27, %v2502_v42  ;;  %v2209_v47 = vmax.f32 %v1929_v26, %v2064_v51  ;;  %v2284_v11 = vsel %vm308_vm0, %v2281_v7, %v2283_v13  ;;  %v7636_v7 = vld [vmem:[#allocation39_spill] sm:$0xff] }
 0x16c   : > { %7629 = vst [vmem:[#allocation10_spill] sm:$0xff] %v6113_v33  ;;  %3790 = vst.msk [vmem:[%s5890_s25 + $0x3e] sm:$0x3] %vm3780_vm8, %v6113_v33  ;;  %v2504_v3 = vsel %vm1234_vm2, %v2501_v57, %v2503_v19  ;;  %v2723_v53 = vrot.slane %v6089_v61, 4  ;;  %v2210_v35 = vmax.f32 %v6089_v61, %v2063_v40  ;;  %v7633_v10 = vmax.f32 %v7632_v18, %v7618_v1 }
 0x16d   : > { %7630 = vst [vmem:[#allocation12_spill] sm:$0xff] %v6118_v0  ;;  %3789 = vst.msk [vmem:[%s5890_s25 + $0x36] sm:$0xff] %vm3728_vm5, %v6118_v0  ;;  %v6134_v26 = vmax.f32 %v2648_v32, %v2722_v54  ;;  %v2429_v2 = vmax.f32 %v2209_v47, %v2284_v11  ;;  %v7637_v43 = vmax.f32 %v7636_v7, %v7621_v59 }
 0x16e   : > { %v1931_v44 = vmax.f32 %v7633_v10, %v7631_v14  ;;  %v7640_v61 = vmax.f32 %v7639_v15, %v7624_v38  ;;  %v2724_v24 = vsel %vm1488_vm3, %v2721_v28, %v2723_v53  ;;  %v2430_v1 = vmax.f32 %v2210_v35, %v2283_v13 }
 0x16f   : > { %7634 = vst [vmem:[#allocation13_spill] sm:$0xff] %v6134_v26  ;;  %v1932_v57 = vmax.f32 %v7637_v43, %v7635_v5  ;;  %3791 = vst.msk [vmem:[%s5890_s25 + $0x3e] sm:$0xfc] %vm3777_vm7, %v6134_v26  ;;  %v2649_v54 = vmax.f32 %v2429_v2, %v2504_v3 }
 0x170   : > { %v1933_v40 = vmax.f32 %v7640_v61, %v7638_v20  ;;  %v2065_v27 = vrot.slane %v1931_v44, 1  ;;  %v2285_v42 = vrot.slane %v1931_v44, 2  ;;  %v2505_v47 = vrot.slane %v1931_v44, 3 }
 0x171   : > { %v2066_v51 = vrot.slane %v1932_v57, 1  ;;  %v2286_v32 = vrot.slane %v1932_v57, 2  ;;  %v2650_v59 = vmax.f32 %v2430_v1, %v2503_v19  ;;  %v2506_v11 = vrot.slane %v1932_v57, 3 }
 0x172   : > { %v2725_v18 = vrot.slane %v1931_v44, 4  ;;  %v2726_v10 = vrot.slane %v1932_v57, 4  ;;  %v6148_v38 = vmax.f32 %v2649_v54, %v2724_v24  ;;  %v2068_v35 = vrot.slane %v1933_v40, 1 }
 0x173   : > { %v2067_v28 = vsel %vm728_vm1, %v2065_v27, %v2066_v51  ;;  %v2287_v13 = vsel %vm308_vm0, %v2285_v42, %v2286_v32  ;;  %v6152_v7 = vmax.f32 %v2650_v59, %v2723_v53  ;;  %v2507_v3 = vsel %vm1234_vm2, %v2505_v47, %v2506_v11  ;;  %v7643_v42 = vld [vmem:[#allocation53_spill] sm:$0xff] }
 0x174   : > { %7641 = vst [vmem:[#allocation15_spill] sm:$0xff] %v6148_v38  ;;  %v2211_v43 = vmax.f32 %v1931_v44, %v2067_v28  ;;  %v2727_v2 = vsel %vm1488_vm3, %v2725_v18, %v2726_v10  ;;  %3792 = vst.msk [vmem:[%s5890_s25 + $0x46] sm:$0xff] %vm3728_vm5, %v6148_v38  ;;  %v2069_v19 = vsel %vm728_vm1, %v2066_v51, %v2068_v35  ;;  %v2288_v15 = vrot.slane %v1933_v40, 2  ;;  %v7644_v44 = vld [vmem:[#allocation42_spill] sm:$0xff]  ;;  %v7646_v28 = vld [vmem:[#allocation55_spill] sm:$0xff] }
 0x175   : > { %7642 = vst [vmem:[#allocation16_spill] sm:$0xff] %v6152_v7  ;;  %v2508_v61 = vrot.slane %v1933_v40, 3  ;;  %v2728_v24 = vrot.slane %v1933_v40, 4  ;;  %3793 = vst.msk [vmem:[%s5890_s25 + $0x4e] sm:$0x3] %vm3780_vm8, %v6152_v7  ;;  %v2212_v27 = vmax.f32 %v1932_v57, %v2069_v19  ;;  %v2213_v53 = vmax.f32 %v1933_v40, %v2068_v35  ;;  %v7647_v38 = vld [vmem:[#allocation45_spill] sm:$0xff] }
 0x176   : > { %v2431_v1 = vmax.f32 %v2211_v43, %v2287_v13  ;;  %v7645_v54 = vmax.f32 %v7644_v44, %v7631_v14  ;;  %v2289_v59 = vsel %vm308_vm0, %v2286_v32, %v2288_v15  ;;  %v7648_v26 = vmax.f32 %v7647_v38, %v7635_v5 }
 0x177   : > { %v2509_v18 = vsel %vm1234_vm2, %v2506_v11, %v2508_v61  ;;  %v2729_v51 = vsel %vm1488_vm3, %v2726_v10, %v2728_v24  ;;  %v2432_v57 = vmax.f32 %v2212_v27, %v2289_v59  ;;  %v2433_v40 = vmax.f32 %v2213_v53, %v2288_v15  ;;  %v7653_v27 = vld [vmem:[#allocation46_spill] sm:$0xff] }
 0x178   : > { %v1934_v47 = vmax.f32 %v7645_v54, %v7643_v42  ;;  %v1935_v33 = vmax.f32 %v7648_v26, %v7646_v28  ;;  %v2651_v7 = vmax.f32 %v2431_v1, %v2507_v3  ;;  %v7652_v1 = vld [vmem:[#allocation57_spill] sm:$0xff]  ;;  %v7654_v53 = vmax.f32 %v7653_v27, %v7638_v20  ;;  %v7662_v20 = vld [vmem:[#allocation52_spill] sm:$0xff] }
 0x179   : > { %v2652_v32 = vmax.f32 %v2432_v57, %v2509_v18  ;;  %v2653_v11 = vmax.f32 %v2433_v40, %v2508_v61  ;;  %v7655_v18 = vld [vmem:[#allocation59_spill] sm:$0xff]  ;;  %v7656_v57 = vld [vmem:[#allocation48_spill] sm:$0xff] }
 0x17a   : > { %v2070_v13 = vrot.slane %v1934_v47, 1  ;;  %v2071_v35 = vrot.slane %v1935_v33, 1  ;;  %v2290_v43 = vrot.slane %v1934_v47, 2  ;;  %v2291_v14 = vrot.slane %v1935_v33, 2 }
 0x17b   : > { %v2510_v19 = vrot.slane %v1934_v47, 3  ;;  %v6174_v44 = vmax.f32 %v2651_v7, %v2727_v2  ;;  %v2511_v10 = vrot.slane %v1935_v33, 3  ;;  %v2730_v5 = vrot.slane %v1934_v47, 4 }
 0x17c   : > { %v2072_v54 = vsel %vm728_vm1, %v2070_v13, %v2071_v35  ;;  %v2292_v26 = vsel %vm308_vm0, %v2290_v43, %v2291_v14  ;;  %v2731_v38 = vrot.slane %v1935_v33, 4  ;;  %v6181_v3 = vmax.f32 %v2652_v32, %v2729_v51  ;;  %v7658_v43 = vld [vmem:[#allocation61_spill] sm:$0xff]  ;;  %v7659_v51 = vld [vmem:[#allocation50_spill] sm:$0xff] }
 0x17d   : > { %7649 = vst [vmem:[#allocation25_spill] sm:$0xff] %v6174_v44  ;;  %3794 = vst.msk [vmem:[%s5890_s25 + $0x4e] sm:$0xfc] %vm3777_vm7, %v6174_v44  ;;  %v6183_v15 = vmax.f32 %v2653_v11, %v2728_v24  ;;  %v2214_v7 = vmax.f32 %v1934_v47, %v2072_v54  ;;  %v2512_v2 = vsel %vm1234_vm2, %v2510_v19, %v2511_v10  ;;  %v7661_v19 = vld [vmem:[#allocation62_spill] sm:$0xff] }
 0x17e   : > { %7650 = vst [vmem:[#allocation31_spill] sm:$0xff] %v6181_v3  ;;  %v2732_v61 = vsel %vm1488_vm3, %v2730_v5, %v2731_v38  ;;  %v1936_v59 = vmax.f32 %v7654_v53, %v7652_v1  ;;  %v7657_v40 = vmax.f32 %v7656_v57, %v7643_v42  ;;  %v7660_v24 = vmax.f32 %v7659_v51, %v7646_v28  ;;  %v7664_v42 = vld [vmem:[#allocation54_spill] sm:$0xff]  ;;  %v7666_v28 = vld [vmem:[#allocation56_spill] sm:$0xff] }
 0x17f   : > { %7651 = vst [vmem:[#allocation20_spill] sm:$0xff] %v6183_v15  ;;  %3795 = vst.msk [vmem:[%s5890_s25 + $0x56] sm:$0xff] %vm3728_vm5, %v6181_v3  ;;  %v2434_v47 = vmax.f32 %v2214_v7, %v2292_v26  ;;  %v7663_v11 = vmax.f32 %v7662_v20, %v7652_v1  ;;  %v7665_v5 = vmax.f32 %v7664_v42, %v7655_v18 }
 0x180   : > { %v1937_v13 = vmax.f32 %v7657_v40, %v7655_v18  ;;  %v1938_v32 = vmax.f32 %v7660_v24, %v7658_v43  ;;  %3796 = vst.msk [vmem:[%s5890_s25 + $0x5e] sm:$0x3] %vm3780_vm8, %v6183_v15  ;;  %v7667_v53 = vmax.f32 %v7666_v28, %v7658_v43  ;;  %v2073_v40 = vrot.slane %v1936_v59, 1 }
 0x181   : > { %v6209_v54 = vmax.f32 %v7663_v11, %v7661_v19  ;;  %v6215_v27 = vmax.f32 %v7665_v5, %v5300_v50  ;;  %v2293_v26 = vrot.slane %v1936_v59, 2  ;;  %v2513_v7 = vrot.slane %v1936_v59, 3 }
 0x182   : > { %v6221_v57 = vmax.f32 %v7667_v53, %v5356_v9  ;;  %v2733_v51 = vrot.slane %v1936_v59, 4  ;;  %v2654_v24 = vmax.f32 %v2434_v47, %v2512_v2  ;;  %v2075_v1 = vrot.slane %v1937_v13, 1 }
 0x183   : > { %v2076_v20 = vrot.slane %v1938_v32, 1  ;;  %v2295_v11 = vrot.slane %v1937_v13, 2  ;;  %v2074_v15 = vsel %vm728_vm1, %v2071_v35, %v2073_v40  ;;  %v2294_v18 = vsel %vm308_vm0, %v2291_v14, %v2293_v26 }
 0x184   : > { %v2514_v42 = vsel %vm1234_vm2, %v2511_v10, %v2513_v7  ;;  %v2734_v5 = vsel %vm1488_vm3, %v2731_v38, %v2733_v51  ;;  %v6227_v43 = vmax.f32 %v2654_v24, %v2732_v61  ;;  %v2215_v28 = vmax.f32 %v1935_v33, %v2074_v15 }
 0x185   : > { %v2216_v53 = vmax.f32 %v1936_v59, %v2073_v40  ;;  %v2077_v3 = vsel %vm728_vm1, %v2075_v1, %v2076_v20  ;;  %v2296_v2 = vrot.slane %v1938_v32, 2  ;;  %v2515_v47 = vrot.slane %v1937_v13, 3 }
 0x186   : > { %v2217_v44 = vmax.f32 %v1937_v13, %v2077_v3  ;;  %v2516_v0 = vrot.slane %v1938_v32, 3  ;;  %3797 = vst.msk [vmem:[%s5890_s25 + $0x5e] sm:$0xfc] %vm3777_vm7, %v6227_v43  ;;  %v2435_v35 = vmax.f32 %v2215_v28, %v2294_v18  ;;  %v2735_v14 = vrot.slane %v1937_v13, 4 }
 0x187   : > { %v2436_v34 = vmax.f32 %v2216_v53, %v2293_v26  ;;  %v2736_v30 = vrot.slane %v1938_v32, 4  ;;  %v2297_v10 = vsel %vm308_vm0, %v2295_v11, %v2296_v2  ;;  %v2078_v33 = vrot.slane %v6209_v54, 1 }
 0x188   : > { %v2517_v38 = vsel %vm1234_vm2, %v2515_v47, %v2516_v0  ;;  %v2298_v15 = vrot.slane %v6209_v54, 2  ;;  %v2655_v61 = vmax.f32 %v2435_v35, %v2514_v42  ;;  %v2437_v59 = vmax.f32 %v2217_v44, %v2297_v10 }
 0x189   : > { %v2656_v3 = vmax.f32 %v2436_v34, %v2513_v7  ;;  %v2737_v40 = vsel %vm1488_vm3, %v2735_v14, %v2736_v30  ;;  %v2079_v24 = vsel %vm728_vm1, %v2076_v20, %v2078_v33  ;;  %v2518_v26 = vrot.slane %v6209_v54, 3 }
 0x18a   : > { %v2299_v13 = vsel %vm308_vm0, %v2296_v2, %v2298_v15  ;;  %v2738_v1 = vrot.slane %v6209_v54, 4  ;;  %v6242_v11 = vmax.f32 %v2655_v61, %v2734_v5  ;;  %v2657_v28 = vmax.f32 %v2437_v59, %v2517_v38 }
 0x18b   : > { %v6244_v18 = vmax.f32 %v2656_v3, %v2733_v51  ;;  %v2218_v42 = vmax.f32 %v1938_v32, %v2079_v24  ;;  %v2519_v34 = vsel %vm1234_vm2, %v2516_v0, %v2518_v26  ;;  %v2219_v7 = vmax.f32 %v6209_v54, %v2078_v33 }
 0x18c   : > { %7668 = vst [vmem:[#allocation27_spill] sm:$0xff] %v6242_v11  ;;  %v2739_v44 = vsel %vm1488_vm3, %v2736_v30, %v2738_v1  ;;  %v2080_v20 = vrot.slane %v6215_v27, 1  ;;  %3798 = vst.msk [vmem:[%s5890_s25 + $0x66] sm:$0xff] %vm3728_vm5, %v6242_v11  ;;  %v6256_v5 = vmax.f32 %v2657_v28, %v2737_v40  ;;  %v2081_v53 = vrot.slane %v6221_v57, 1  ;;  %v7672_v40 = vld [vmem:[#allocation58_spill] sm:$0xff]  ;;  %v7674_v28 = vld [vmem:[#allocation60_spill] sm:$0xff] }
 0x18d   : > { %7669 = vst [vmem:[#allocation33_spill] sm:$0xff] %v6244_v18  ;;  %3799 = vst.msk [vmem:[%s5890_s25 + $0x6e] sm:$0x3] %vm3780_vm8, %v6244_v18  ;;  %v2438_v51 = vmax.f32 %v2218_v42, %v2299_v13  ;;  %v2300_v32 = vrot.slane %v6215_v27, 2  ;;  %v2439_v0 = vmax.f32 %v2219_v7, %v2298_v15  ;;  %v2301_v30 = vrot.slane %v6221_v57, 2  ;;  %v7677_v7 = vld [vmem:[#allocation63_spill] sm:$0xff] }
 0x18e   : > { %7670 = vst [vmem:[#allocation23_spill] sm:$0xff] %v6256_v5  ;;  %v2520_v54 = vrot.slane %v6215_v27, 3  ;;  %v2521_v2 = vrot.slane %v6221_v57, 3  ;;  %3800 = vst.msk [vmem:[%s5890_s25 + $0x6e] sm:$0xfc] %vm3777_vm7, %v6256_v5  ;;  %v2082_v35 = vsel %vm728_vm1, %v2080_v20, %v2081_v53  ;;  %v2740_v14 = vrot.slane %v6215_v27, 4 }
 0x18f   : > { %v2658_v47 = vmax.f32 %v2438_v51, %v2519_v34  ;;  %v2741_v10 = vrot.slane %v6221_v57, 4  ;;  %v2659_v38 = vmax.f32 %v2439_v0, %v2518_v26  ;;  %v2220_v33 = vmax.f32 %v6215_v27, %v2082_v35  ;;  %v7679_v51 = vld [vmem:[#allocation64_spill] sm:$0xff] }
 0x190   : > { %v2302_v15 = vsel %vm308_vm0, %v2300_v32, %v2301_v30  ;;  %v2522_v61 = vsel %vm1234_vm2, %v2520_v54, %v2521_v2  ;;  %v7673_v24 = vmax.f32 %v7672_v40, %v7661_v19  ;;  %v7675_v26 = vmax.f32 %v7674_v28, %v5300_v50 }
 0x191   : > { %v6272_v3 = vmax.f32 %v2658_v47, %v2739_v44  ;;  %v2742_v59 = vsel %vm1488_vm3, %v2740_v14, %v2741_v10  ;;  %v6283_v27 = vmax.f32 %v2659_v38, %v2738_v1  ;;  %v2440_v34 = vmax.f32 %v2220_v33, %v2302_v15 }
 0x192   : > { %v1942_v13 = vmax.f32 %v7673_v24, %v5359_v39  ;;  %v1943_v42 = vmax.f32 %v7675_v26, %v5402_v16  ;;  %v7678_v44 = vmax.f32 %v7677_v7, %v5356_v9  ;;  %v7680_v32 = vmax.f32 %v7679_v51, %v5359_v39 }
 0x193   : > { %7671 = vst [vmem:[#allocation28_spill] sm:$0xff] %v6272_v3  ;;  %7676 = vst [vmem:[#allocation34_spill] sm:$0xff] %v6283_v27  ;;  %v2660_v47 = vmax.f32 %v2440_v34, %v2522_v61 }
 0x194   : > { %v1944_v20 = vmax.f32 %v7678_v44, %v5440_v52  ;;  %v6293_v0 = vmax.f32 %v7680_v32, %v5452_v4  ;;  %3801 = vst.msk [vmem:[%s5890_s25 + $0x76] sm:$0xff] %vm3728_vm5, %v6272_v3  ;;  %v2083_v19 = vrot.slane %v1942_v13, 1  ;;  %v2303_v50 = vrot.slane %v1942_v13, 2 }
 0x195   : > { %v2523_v54 = vrot.slane %v1942_v13, 3  ;;  %v2743_v1 = vrot.slane %v1942_v13, 4  ;;  %3802 = vst.msk [vmem:[%s5890_s25 + $0x7e] sm:$0x3] %vm3780_vm8, %v6283_v27  ;;  %v2085_v9 = vrot.slane %v1943_v42, 1  ;;  %v2305_v14 = vrot.slane %v1943_v42, 2 }
 0x196   : > { %v2086_v35 = vrot.slane %v1944_v20, 1  ;;  %v2084_v38 = vsel %vm728_vm1, %v2081_v53, %v2083_v19  ;;  %v2304_v39 = vsel %vm308_vm0, %v2301_v30, %v2303_v50  ;;  %v6305_v40 = vmax.f32 %v2660_v47, %v2742_v59 }
 0x197   : > { %v2524_v33 = vsel %vm1234_vm2, %v2521_v2, %v2523_v54  ;;  %v2744_v15 = vsel %vm1488_vm3, %v2741_v10, %v2743_v1  ;;  %v2221_v24 = vmax.f32 %v6221_v57, %v2084_v38  ;;  %v2222_v28 = vmax.f32 %v1942_v13, %v2083_v19 }
 0x198   : > { %7681 = vst [vmem:[#allocation24_spill] sm:$0xff] %v6305_v40  ;;  %v2087_v26 = vsel %vm728_vm1, %v2085_v9, %v2086_v35  ;;  %v2306_v34 = vrot.slane %v1944_v20, 2  ;;  %v2525_v7 = vrot.slane %v1943_v42, 3  ;;  %v2526_v44 = vrot.slane %v1944_v20, 3  ;;  %3803 = vst.msk [vmem:[%s5890_s25 + $0x7e] sm:$0xfc] %vm3777_vm7, %v6305_v40 }
 0x199   : > { %v2223_v61 = vmax.f32 %v1943_v42, %v2087_v26  ;;  %v2441_v53 = vmax.f32 %v2221_v24, %v2304_v39  ;;  %v2442_v30 = vmax.f32 %v2222_v28, %v2303_v50  ;;  %v2745_v51 = vrot.slane %v1943_v42, 4 }
 0x19a   : > { %v2746_v2 = vrot.slane %v1944_v20, 4  ;;  %v2307_v10 = vsel %vm308_vm0, %v2305_v14, %v2306_v34  ;;  %v2527_v59 = vsel %vm1234_vm2, %v2525_v7, %v2526_v44  ;;  %v2088_v57 = vrot.slane %v6293_v0, 1 }
 0x19b   : > { %v2308_v13 = vrot.slane %v6293_v0, 2  ;;  %v2661_v32 = vmax.f32 %v2441_v53, %v2524_v33  ;;  %v2662_v19 = vmax.f32 %v2442_v30, %v2523_v54  ;;  %v2443_v47 = vmax.f32 %v2223_v61, %v2307_v10 }
 0x19c   : > { %v2747_v9 = vsel %vm1488_vm3, %v2745_v51, %v2746_v2  ;;  %v2089_v38 = vsel %vm728_vm1, %v2086_v35, %v2088_v57  ;;  %v2528_v50 = vrot.slane %v6293_v0, 3  ;;  %v2748_v14 = vrot.slane %v6293_v0, 4  ;;  %v7684_v35 = vld [vmem:[#allocation65_spill] sm:$0xff] }
 0x19d   : > { %v2309_v42 = vsel %vm308_vm0, %v2306_v34, %v2308_v13  ;;  %v6321_v39 = vmax.f32 %v2661_v32, %v2744_v15  ;;  %v6323_v24 = vmax.f32 %v2662_v19, %v2743_v1  ;;  %v2663_v28 = vmax.f32 %v2443_v47, %v2527_v59  ;;  %v7687_v15 = vld [vmem:[#allocation66_spill] sm:$0xff] }
 0x19e   : > { %v2224_v33 = vmax.f32 %v1944_v20, %v2089_v38  ;;  %v2529_v54 = vsel %vm1234_vm2, %v2526_v44, %v2528_v50  ;;  %v2749_v26 = vsel %vm1488_vm3, %v2746_v2, %v2748_v14  ;;  %v2225_v61 = vmax.f32 %v6293_v0, %v2088_v57  ;;  %v7689_v0 = vld [vmem:[#allocation67_spill] sm:$0xff] }
 0x19f   : > { %7682 = vst [vmem:[#allocation37_spill] sm:$0xff] %v6321_v39  ;;  %7683 = vst [vmem:[#allocation26_spill] sm:$0xff] %v6323_v24  ;;  %v7685_v34 = vmax.f32 %v7684_v35, %v5402_v16  ;;  %v6338_v1 = vmax.f32 %v2663_v28, %v2747_v9  ;;  %v7688_v44 = vmax.f32 %v7687_v15, %v5440_v52 }
 0x1a0   : > { %3804 = vst.msk [vmem:[%s5890_s25 + $0x86] sm:$0xff] %vm3728_vm5, %v6321_v39  ;;  %v2444_v20 = vmax.f32 %v2224_v33, %v2309_v42  ;;  %v7690_v30 = vmax.f32 %v7689_v0, %v5452_v4  ;;  %v2445_v51 = vmax.f32 %v2225_v61, %v2308_v13 }
 0x1a1   : > { %v1946_v7 = vmax.f32 %v7685_v34, %v5492_v29  ;;  %3805 = vst.msk [vmem:[%s5890_s25 + $0x8e] sm:$0x3] %vm3780_vm8, %v6323_v24  ;;  %7686 = vst [vmem:[#allocation29_spill] sm:$0xff] %v6338_v1  ;;  %v1947_v53 = vmax.f32 %v7688_v44, %v5546_v60 }
 0x1a2   : > { %v1948_v16 = vmax.f32 %v7690_v30, %v5567_v37  ;;  %3806 = vst.msk [vmem:[%s5890_s25 + $0x8e] sm:$0xfc] %vm3777_vm7, %v6338_v1  ;;  %v2664_v57 = vmax.f32 %v2444_v20, %v2529_v54  ;;  %v2665_v9 = vmax.f32 %v2445_v51, %v2528_v50  ;;  %v7695_v51 = vld [vmem:[#allocation69_spill] sm:$0xff] }
 0x1a3   : > { %v2090_v2 = vrot.slane %v1946_v7, 1  ;;  %v2310_v10 = vrot.slane %v1946_v7, 2  ;;  %v2530_v59 = vrot.slane %v1946_v7, 3  ;;  %v2091_v32 = vrot.slane %v1947_v53, 1 }
 0x1a4   : > { %v2311_v19 = vrot.slane %v1947_v53, 2  ;;  %v2531_v47 = vrot.slane %v1947_v53, 3  ;;  %v2750_v52 = vrot.slane %v1946_v7, 4  ;;  %v2751_v38 = vrot.slane %v1947_v53, 4 }
 0x1a5   : > { %v2093_v42 = vrot.slane %v1948_v16, 1  ;;  %v6351_v28 = vmax.f32 %v2664_v57, %v2749_v26  ;;  %v2092_v4 = vsel %vm728_vm1, %v2090_v2, %v2091_v32  ;;  %v6356_v61 = vmax.f32 %v2665_v9, %v2748_v14  ;;  %v7693_v14 = vld [vmem:[#allocation68_spill] sm:$0xff] }
 0x1a6   : > { %v2312_v13 = vsel %vm308_vm0, %v2310_v10, %v2311_v19  ;;  %v2532_v33 = vsel %vm1234_vm2, %v2530_v59, %v2531_v47  ;;  %v2226_v54 = vmax.f32 %v1946_v7, %v2092_v4  ;;  %v2752_v35 = vsel %vm1488_vm3, %v2750_v52, %v2751_v38 }
 0x1a7   : > { %7691 = vst [vmem:[#allocation30_spill] sm:$0xff] %v6351_v28  ;;  %7692 = vst [vmem:[#allocation41_spill] sm:$0xff] %v6356_v61  ;;  %v2094_v34 = vsel %vm728_vm1, %v2091_v32, %v2093_v42  ;;  %v2313_v20 = vrot.slane %v1948_v16, 2  ;;  %v2533_v26 = vrot.slane %v1948_v16, 3  ;;  %v2753_v15 = vrot.slane %v1948_v16, 4  ;;  %v7697_v32 = vld [vmem:[#allocation70_spill] sm:$0xff] }
 0x1a8   : > { %3807 = vst.msk [vmem:[%s5890_s25 + $0x96] sm:$0xff] %vm3728_vm5, %v6351_v28  ;;  %v2227_v50 = vmax.f32 %v1947_v53, %v2094_v34  ;;  %v2446_v44 = vmax.f32 %v2226_v54, %v2312_v13  ;;  %v2228_v0 = vmax.f32 %v1948_v16, %v2093_v42  ;;  %v7694_v7 = vmax.f32 %v7693_v14, %v5492_v29 }
 0x1a9   : > { %3808 = vst.msk [vmem:[%s5890_s25 + $0x9e] sm:$0x3] %vm3780_vm8, %v6356_v61  ;;  %v7696_v2 = vmax.f32 %v7695_v51, %v5546_v60  ;;  %v2314_v53 = vsel %vm308_vm0, %v2311_v19, %v2313_v20  ;;  %v2534_v59 = vsel %vm1234_vm2, %v2531_v47, %v2533_v26  ;;  %v2754_v57 = vsel %vm1488_vm3, %v2751_v38, %v2753_v15 }
 0x1aa   : > { %v1949_v30 = vmax.f32 %v7694_v7, %v5616_v17  ;;  %v7698_v16 = vmax.f32 %v7697_v32, %v5567_v37  ;;  %v2666_v52 = vmax.f32 %v2446_v44, %v2532_v33  ;;  %v2447_v42 = vmax.f32 %v2227_v50, %v2314_v53 }
 0x1ab   : > { %v1950_v10 = vmax.f32 %v7696_v2, %v5657_v49  ;;  %v2448_v4 = vmax.f32 %v2228_v0, %v2313_v20 }
 0x1ac   : > { %v1951_v9 = vmax.f32 %v7698_v16, %v5660_v25  ;;  %v2095_v13 = vrot.slane %v1949_v30, 1  ;;  %v2315_v34 = vrot.slane %v1949_v30, 2  ;;  %v2535_v7 = vrot.slane %v1949_v30, 3 }
 0x1ad   : > { %v2096_v54 = vrot.slane %v1950_v10, 1  ;;  %v2316_v14 = vrot.slane %v1950_v10, 2  ;;  %v6381_v51 = vmax.f32 %v2666_v52, %v2752_v35  ;;  %v2667_v19 = vmax.f32 %v2447_v42, %v2534_v59 }
 0x1ae   : > { %v2668_v47 = vmax.f32 %v2448_v4, %v2533_v26  ;;  %v2536_v38 = vrot.slane %v1950_v10, 3  ;;  %v2755_v33 = vrot.slane %v1949_v30, 4  ;;  %v2756_v44 = vrot.slane %v1950_v10, 4 }
 0x1af   : > { %7699 = vst [vmem:[#allocation32_spill] sm:$0xff] %v6381_v51  ;;  %v2097_v2 = vsel %vm728_vm1, %v2095_v13, %v2096_v54  ;;  %v2317_v32 = vsel %vm308_vm0, %v2315_v34, %v2316_v14  ;;  %3809 = vst.msk [vmem:[%s5890_s25 + $0x9e] sm:$0xfc] %vm3777_vm7, %v6381_v51  ;;  %v6388_v50 = vmax.f32 %v2667_v19, %v2754_v57  ;;  %v2098_v53 = vrot.slane %v1951_v9, 1  ;;  %v7702_v57 = vld [vmem:[#allocation73_spill] sm:$0xff] }
 0x1b0   : > { %v6390_v20 = vmax.f32 %v2668_v47, %v2753_v15  ;;  %v2229_v35 = vmax.f32 %v1949_v30, %v2097_v2  ;;  %v2537_v0 = vsel %vm1234_vm2, %v2535_v7, %v2536_v38  ;;  %v2757_v26 = vsel %vm1488_vm3, %v2755_v33, %v2756_v44 }
 0x1b1   : > { %7700 = vst [vmem:[#allocation43_spill] sm:$0xff] %v6388_v50  ;;  %v2318_v59 = vrot.slane %v1951_v9, 2  ;;  %v2538_v16 = vrot.slane %v1951_v9, 3  ;;  %3810 = vst.msk [vmem:[%s5890_s25 + $0xa6] sm:$0xff] %vm3728_vm5, %v6388_v50  ;;  %v2758_v42 = vrot.slane %v1951_v9, 4  ;;  %v7703_v15 = vmax.f32 %v7702_v57, %v5616_v17 }
 0x1b2   : > { %7701 = vst [vmem:[#allocation35_spill] sm:$0xff] %v6390_v20  ;;  %3811 = vst.msk [vmem:[%s5890_s25 + $0xae] sm:$0x3] %vm3780_vm8, %v6390_v20  ;;  %v2449_v52 = vmax.f32 %v2229_v35, %v2317_v32  ;;  %v7704_v4 = vmax.f32 %v5560_v23, %v5657_v49  ;;  %v2099_v34 = vsel %vm728_vm1, %v2096_v54, %v2098_v53 }
 0x1b3   : > { %v1952_v30 = vmax.f32 %v7703_v15, %v5698_v8  ;;  %v2319_v7 = vsel %vm308_vm0, %v2316_v14, %v2318_v59  ;;  %v2539_v19 = vsel %vm1234_vm2, %v2536_v38, %v2538_v16  ;;  %v2231_v47 = vmax.f32 %v1951_v9, %v2098_v53 }
 0x1b4   : > { %v1953_v13 = vmax.f32 %v7704_v4, %v5717_v56  ;;  %v2669_v2 = vmax.f32 %v2449_v52, %v2537_v0  ;;  %v2230_v32 = vmax.f32 %v1950_v10, %v2099_v34  ;;  %v2759_v33 = vsel %vm1488_vm3, %v2756_v44, %v2758_v42  ;;  %v7706_v52 = vld [vmem:[#allocation75_spill] sm:$0xff] }
 0x1b5   : > { %v2100_v35 = vrot.slane %v1952_v30, 1  ;;  %v2451_v57 = vmax.f32 %v2231_v47, %v2318_v59  ;;  %v2320_v20 = vrot.slane %v1952_v30, 2  ;;  %v2540_v4 = vrot.slane %v1952_v30, 3  ;;  %v7709_v47 = vld [vmem:[#allocation76_spill] sm:$0xff] }
 0x1b6   : > { %v2101_v15 = vrot.slane %v1953_v13, 1  ;;  %v2321_v50 = vrot.slane %v1953_v13, 2  ;;  %v6412_v51 = vmax.f32 %v2669_v2, %v2757_v26  ;;  %v2450_v23 = vmax.f32 %v2230_v32, %v2319_v7  ;;  %v7708_v7 = vld [vmem:[#allocation21_spill] sm:$0xff] }
 0x1b7   : > { %v2541_v54 = vrot.slane %v1953_v13, 3  ;;  %v2671_v61 = vmax.f32 %v2451_v57, %v2538_v16  ;;  %v2760_v38 = vrot.slane %v1952_v30, 4  ;;  %v2761_v26 = vrot.slane %v1953_v13, 4 }
 0x1b8   : > { %v2102_v14 = vsel %vm728_vm1, %v2100_v35, %v2101_v15  ;;  %v2322_v9 = vsel %vm308_vm0, %v2320_v20, %v2321_v50  ;;  %3812 = vst.msk [vmem:[%s5890_s25 + $0xae] sm:$0xfc] %vm3777_vm7, %v6412_v51  ;;  %v2670_v10 = vmax.f32 %v2450_v23, %v2539_v19  ;;  %v7705_v59 = vmax.f32 %v5579_v63, %v5660_v25  ;;  %v7712_v35 = vld [vmem:[#allocation77_spill] sm:$0xff] }
 0x1b9   : > { %v2232_v44 = vmax.f32 %v1952_v30, %v2102_v14  ;;  %v2542_v0 = vsel %vm1234_vm2, %v2540_v4, %v2541_v54  ;;  %v6420_v53 = vmax.f32 %v2671_v61, %v2758_v42  ;;  %v7707_v20 = vmax.f32 %v7706_v52, %v5698_v8  ;;  %v7711_v42 = vld [vmem:[#allocation81_spill] sm:$0xff] }
 0x1ba   : > { %v1954_v16 = vmax.f32 %v7705_v59, %v5729_v6  ;;  %v7710_v30 = vmax.f32 %v7709_v47, %v5717_v56  ;;  %v6434_v2 = vmax.f32 %v2670_v10, %v2759_v33  ;;  %v2762_v61 = vsel %vm1488_vm3, %v2760_v38, %v2761_v26 }
 0x1bb   : > { %v1955_v34 = vmax.f32 %v7707_v20, %v5761_v22  ;;  %v2452_v32 = vmax.f32 %v2232_v44, %v2322_v9  ;;  %v7713_v63 = vmax.f32 %v7712_v35, %v5729_v6  ;;  %3814 = vst.msk [vmem:[%s5890_s25 + $0xbe] sm:$0x3] %vm3780_vm8, %v6420_v53 }
 0x1bc   : > { %v1956_v19 = vmax.f32 %v7710_v30, %v7708_v7  ;;  %v2103_v23 = vrot.slane %v1954_v16, 1  ;;  %v2323_v4 = vrot.slane %v1954_v16, 2  ;;  %v2543_v14 = vrot.slane %v1954_v16, 3  ;;  %3813 = vst.msk [vmem:[%s5890_s25 + $0xb6] sm:$0xff] %vm3728_vm5, %v6434_v2 }
 0x1bd   : > { %v6441_v57 = vmax.f32 %v7713_v63, %v7711_v42  ;;  %v2763_v59 = vrot.slane %v1954_v16, 4  ;;  %v2672_v33 = vmax.f32 %v2452_v32, %v2542_v0  ;;  %v2105_v9 = vrot.slane %v1955_v34, 1 }
 0x1be   : > { %v2106_v38 = vrot.slane %v1956_v19, 1  ;;  %v2325_v10 = vrot.slane %v1955_v34, 2  ;;  %v2104_v44 = vsel %vm728_vm1, %v2101_v15, %v2103_v23  ;;  %v2324_v52 = vsel %vm308_vm0, %v2321_v50, %v2323_v4 }
 0x1bf   : > { %v2544_v20 = vsel %vm1234_vm2, %v2541_v54, %v2543_v14  ;;  %v2764_v47 = vsel %vm1488_vm3, %v2761_v26, %v2763_v59  ;;  %v6453_v30 = vmax.f32 %v2672_v33, %v2762_v61  ;;  %v2233_v35 = vmax.f32 %v1953_v13, %v2104_v44 }
 0x1c0   : > { %v2234_v63 = vmax.f32 %v1954_v16, %v2103_v23  ;;  %v2107_v28 = vsel %vm728_vm1, %v2105_v9, %v2106_v38  ;;  %v2326_v0 = vrot.slane %v1956_v19, 2  ;;  %v2545_v32 = vrot.slane %v1955_v34, 3 }
 0x1c1   : > { %v2235_v1 = vmax.f32 %v1955_v34, %v2107_v28  ;;  %v2546_v24 = vrot.slane %v1956_v19, 3  ;;  %3815 = vst.msk [vmem:[%s5890_s25 + $0xbe] sm:$0xfc] %vm3777_vm7, %v6453_v30  ;;  %v2453_v15 = vmax.f32 %v2233_v35, %v2324_v52  ;;  %v2765_v50 = vrot.slane %v1955_v34, 4 }
 0x1c2   : > { %v2454_v39 = vmax.f32 %v2234_v63, %v2323_v4  ;;  %v2766_v40 = vrot.slane %v1956_v19, 4  ;;  %v2327_v54 = vsel %vm308_vm0, %v2325_v10, %v2326_v0  ;;  %v2108_v13 = vrot.slane %v6441_v57, 1 }
 0x1c3   : > { %v2547_v26 = vsel %vm1234_vm2, %v2545_v32, %v2546_v24  ;;  %v2328_v16 = vrot.slane %v6441_v57, 2  ;;  %v2673_v61 = vmax.f32 %v2453_v15, %v2544_v20  ;;  %v2455_v23 = vmax.f32 %v2235_v1, %v2327_v54  ;;  %v7717_v32 = vld [vmem:[#allocation4_spill] sm:$0xff]  ;;  %v7718_v15 = vld [vmem:[#allocation71_spill] sm:$0xff]  ;;  %v7719_v54 = vld [vmem:[#allocation2_spill] sm:$0xff] }
 0x1c4   : > { %v2674_v28 = vmax.f32 %v2454_v39, %v2543_v14  ;;  %v2767_v33 = vsel %vm1488_vm3, %v2765_v50, %v2766_v40  ;;  %v2109_v9 = vsel %vm728_vm1, %v2106_v38, %v2108_v13  ;;  %v2548_v4 = vrot.slane %v6441_v57, 3 }
 0x1c5   : > { %v2329_v34 = vsel %vm308_vm0, %v2326_v0, %v2328_v16  ;;  %v2768_v10 = vrot.slane %v6441_v57, 4  ;;  %v6468_v44 = vmax.f32 %v2673_v61, %v2764_v47  ;;  %v2675_v35 = vmax.f32 %v2455_v23, %v2547_v26  ;;  %v7720_v26 = vld [vmem:[#allocation72_spill] sm:$0xff]  ;;  %v7722_v23 = vld [vmem:[#allocation74_spill] sm:$0xff] }
 0x1c6   : > { %v6470_v52 = vmax.f32 %v2674_v28, %v2763_v59  ;;  %v2236_v20 = vmax.f32 %v1956_v19, %v2109_v9  ;;  %v2549_v39 = vsel %vm1234_vm2, %v2546_v24, %v2548_v4  ;;  %v2237_v14 = vmax.f32 %v6441_v57, %v2108_v13  ;;  %v7723_v9 = vld [vmem:[#allocation78_spill] sm:$0xff] }
 0x1c7   : > { %v2769_v1 = vsel %vm1488_vm3, %v2766_v40, %v2768_v10  ;;  %v7714_v38 = vmax.f32 %v5492_v29, %v5616_v17  ;;  %3816 = vst.msk [vmem:[%s5890_s25 + $0xc6] sm:$0xff] %vm3728_vm5, %v6468_v44  ;;  %v6485_v59 = vmax.f32 %v2675_v35, %v2767_v33  ;;  %v7715_v40 = vmax.f32 %v5546_v60, %v5657_v49 }
 0x1c8   : > { %3817 = vst.msk [vmem:[%s5890_s25 + $0xce] sm:$0x3] %vm3780_vm8, %v6470_v52  ;;  %v2456_v19 = vmax.f32 %v2236_v20, %v2329_v34  ;;  %v7716_v57 = vmax.f32 %v5567_v37, %v5660_v25  ;;  %v2457_v47 = vmax.f32 %v2237_v14, %v2328_v16  ;;  %v602_v50 = vmax.f32 %v7718_v15, %v7717_v32  ;;  %v7721_v37 = vld [vmem:[#allocation5_spill] sm:$0xff] }
 0x1c9   : > { %v1844_v63 = vmax.f32 %v7714_v38, %v5698_v8  ;;  %v1845_v24 = vmax.f32 %v7715_v40, %v5717_v56  ;;  %v603_v13 = vmax.f32 %v7720_v26, %v7719_v54  ;;  %3818 = vst.msk [vmem:[%s5890_s25 + $0xce] sm:$0xfc] %vm3777_vm7, %v6485_v59  ;;  %v604_v16 = vmax.f32 %v7722_v23, %v7721_v37 }
 0x1ca   : > { %v1846_v29 = vmax.f32 %v7716_v57, %v5729_v6  ;;  %v2676_v61 = vmax.f32 %v2456_v19, %v2549_v39  ;;  %v2677_v33 = vmax.f32 %v2457_v47, %v2548_v4  ;;  %v6509_v35 = vmax.f32 %v602_v50, %v7717_v32  ;;  %v7724_v39 = vld [vmem:[#allocation79_spill] sm:$0xff] }
 0x1cb   : > { %v1901_v0 = vmax.f32 %v1844_v63, %v5761_v22  ;;  %v1902_v60 = vmax.f32 %v1845_v24, %v7708_v7  ;;  %v6512_v20 = vmax.f32 %v603_v13, %v7719_v54  ;;  %v7725_v63 = vld [vmem:[#allocation80_spill] sm:$0xff]  ;;  %v6519_v40 = vmax.f32 %v604_v16, %v7721_v37 }
 0x1cc   : > { %v1903_v28 = vmax.f32 %v1846_v29, %v7711_v42  ;;  %v6514_v14 = vmax.f32 %v2676_v61, %v2769_v1  ;;  %v6521_v24 = vmax.f32 %v2677_v33, %v2768_v10 }
 0x1cd   : > { %v1958_v34 = vmax.f32 %v1901_v0, %v7723_v9  ;;  %v1959_v38 = vmax.f32 %v1902_v60, %v7724_v39 }
 0x1ce   : > { %v1960_v19 = vmax.f32 %v1903_v28, %v7725_v63  ;;  %3819 = vst.msk [vmem:[%s5890_s25 + $0xd6] sm:$0xff] %vm3728_vm5, %v6514_v14 }
 0x1cf   : > { %v2110_v4 = vrot.slane %v1958_v34, 1  ;;  %v2330_v57 = vrot.slane %v1958_v34, 2  ;;  %v2550_v29 = vrot.slane %v1958_v34, 3  ;;  %v2111_v47 = vrot.slane %v1959_v38, 1  ;;  %3820 = vst.msk [vmem:[%s5890_s25 + $0xde] sm:$0x3] %vm3780_vm8, %v6521_v24 }
 0x1d0   : > { %v2331_v0 = vrot.slane %v1959_v38, 2  ;;  %v2551_v32 = vrot.slane %v1959_v38, 3  ;;  %v2770_v1 = vrot.slane %v1958_v34, 4  ;;  %v2771_v15 = vrot.slane %v1959_v38, 4 }
 0x1d1   : > { %v2113_v50 = vrot.slane %v1960_v19, 1  ;;  %v2333_v26 = vrot.slane %v1960_v19, 2  ;;  %v2553_v13 = vrot.slane %v1960_v19, 3  ;;  %v2112_v10 = vsel %vm728_vm1, %v2110_v4, %v2111_v47 }
 0x1d2   : > { %v2332_v61 = vsel %vm308_vm0, %v2330_v57, %v2331_v0  ;;  %v2552_v60 = vsel %vm1234_vm2, %v2550_v29, %v2551_v32  ;;  %v2773_v28 = vrot.slane %v1960_v19, 4  ;;  %v2238_v37 = vmax.f32 %v1958_v34, %v2112_v10 }
 0x1d3   : > { %v2772_v23 = vsel %vm1488_vm3, %v2770_v1, %v2771_v15  ;;  %v2114_v16 = vsel %vm728_vm1, %v2111_v47, %v2113_v50  ;;  %v2334_v33 = vsel %vm308_vm0, %v2331_v0, %v2333_v26  ;;  %v2554_v3 = vsel %vm1234_vm2, %v2551_v32, %v2553_v13 }
 0x1d4   : > { %v2239_v27 = vmax.f32 %v1959_v38, %v2114_v16  ;;  %v2774_v5 = vsel %vm1488_vm3, %v2771_v15, %v2773_v28  ;;  %v2240_v18 = vmax.f32 %v1960_v19, %v2113_v50  ;;  %v2458_v11 = vmax.f32 %v2238_v37, %v2332_v61 }
 0x1d5   : > { %v850_v4 = vrot.slane %v6509_v35, 1  ;;  %v851_v57 = vrot.slane %v6512_v20, 1  ;;  %v853_v29 = vrot.slane %v6519_v40, 1  ;;  %v1102_v1 = vrot.slane %v6509_v35, 2 }
 0x1d6   : > { %v2459_v34 = vmax.f32 %v2239_v27, %v2334_v33  ;;  %v2460_v10 = vmax.f32 %v2240_v18, %v2333_v26  ;;  %v1103_v47 = vrot.slane %v6512_v20, 2  ;;  %v2678_v0 = vmax.f32 %v2458_v11, %v2552_v60 }
 0x1d7   : > { %v852_v38 = vsel %vm728_vm1, %v850_v4, %v851_v57  ;;  %v854_v32 = vsel %vm728_vm1, %v851_v57, %v853_v29  ;;  %v1105_v19 = vrot.slane %v6519_v40, 2  ;;  %v1356_v60 = vrot.slane %v6509_v35, 3 }
 0x1d8   : > { %v2679_v15 = vmax.f32 %v2459_v34, %v2554_v3  ;;  %v2680_v50 = vmax.f32 %v2460_v10, %v2553_v13  ;;  %v979_v61 = vmax.f32 %v6509_v35, %v852_v38  ;;  %v980_v18 = vmax.f32 %v6512_v20, %v854_v32 }
 0x1d9   : > { %v6547_v27 = vmax.f32 %v2678_v0, %v2772_v23  ;;  %v1104_v26 = vsel %vm308_vm0, %v1102_v1, %v1103_v47  ;;  %v1106_v11 = vsel %vm308_vm0, %v1103_v47, %v1105_v19  ;;  %v1357_v33 = vrot.slane %v6512_v20, 3 }
 0x1da   : > { %v6552_v37 = vmax.f32 %v2679_v15, %v2774_v5  ;;  %v6554_v16 = vmax.f32 %v2680_v50, %v2773_v28  ;;  %v1231_v3 = vmax.f32 %v979_v61, %v1104_v26  ;;  %v1232_v13 = vmax.f32 %v980_v18, %v1106_v11 }
 0x1db   : > { %3821 = vst.msk [vmem:[%s5890_s25 + $0xde] sm:$0xfc] %vm3777_vm7, %v6547_v27  ;;  %v1359_v23 = vrot.slane %v6519_v40, 3  ;;  %v1610_v4 = vrot.slane %v6509_v35, 4  ;;  %v1611_v57 = vrot.slane %v6512_v20, 4  ;;  %v1613_v5 = vrot.slane %v6519_v40, 4 }
 0x1dc   : > { %7726 = vst [vmem:[#allocation44_spill] sm:$0xff] %v6552_v37  ;;  %3822 = vst.msk [vmem:[%s5890_s25 + $0xe6] sm:$0xff] %vm3728_vm5, %v6552_v37  ;;  %v1790_v28 = vmax.f32 %v5616_v17, %v5698_v8  ;;  %v1791_v34 = vmax.f32 %v5657_v49, %v5717_v56  ;;  %v7727_v35 = vmax.f32 %v5698_v8, %v5761_v22 }
 0x1dd   : > { %3823 = vst.msk [vmem:[%s5890_s25 + $0xee] sm:$0x3] %vm3780_vm8, %v6554_v16  ;;  %v1358_v20 = vsel %vm1234_vm2, %v1356_v60, %v1357_v33  ;;  %v1360_v1 = vsel %vm1234_vm2, %v1357_v33, %v1359_v23  ;;  %v1612_v47 = vsel %vm1488_vm3, %v1610_v4, %v1611_v57  ;;  %v7728_v17 = vmax.f32 %v5717_v56, %v7708_v7  ;;  %v7729_v60 = vld [vmem:[#allocation3_spill] sm:$0xff] }
 0x1de   : > { %v1850_v10 = vmax.f32 %v7727_v35, %v7723_v9  ;;  %v1485_v38 = vmax.f32 %v1231_v3, %v1358_v20  ;;  %v1486_v49 = vmax.f32 %v1232_v13, %v1360_v1  ;;  %v1614_v8 = vsel %vm1488_vm3, %v1611_v57, %v1613_v5 }
 0x1df   : > { %v1851_v0 = vmax.f32 %v7728_v17, %v7724_v39  ;;  %v1847_v32 = vmax.f32 %v1790_v28, %v5761_v22  ;;  %v1848_v15 = vmax.f32 %v1791_v34, %v7708_v7  ;;  %v2949_v50 = vmax.f32 %v6412_v51, %v6453_v30 }
 0x1e0   : > { %v2952_v61 = vmax.f32 %v6453_v30, %v6485_v59  ;;  %v2955_v56 = vmax.f32 %v6485_v59, %v6547_v27  ;;  %v1739_v18 = vmax.f32 %v1485_v38, %v1612_v47  ;;  %v1740_v26 = vmax.f32 %v1486_v49, %v1614_v8  ;;  %v7732_v8 = vld [vmem:[#allocation8_spill] sm:$0xff] }
 0x1e1   : > { %v1904_v11 = vmax.f32 %v1847_v32, %v7723_v9  ;;  %v6601_v3 = vsel %vm728_vm1, %v853_v29, %v7729_v60  ;;  %v1905_v13 = vmax.f32 %v1848_v15, %v7724_v39  ;;  %v6605_v33 = vmax.f32 %v2949_v50, %v6485_v59  ;;  %v7733_v15 = vld [vmem:[#allocation11_spill] sm:$0xff] }
 0x1e2   : > { %v6608_v4 = vmax.f32 %v2952_v61, %v6547_v27  ;;  %v981_v57 = vmax.f32 %v6519_v40, %v6601_v3  ;;  %v7730_v28 = vmax.f32 %v5761_v22, %v7723_v9  ;;  %v7731_v35 = vmax.f32 %v7708_v7, %v7724_v39 }
 0x1e3   : > { %v1907_v20 = vmax.f32 %v1850_v10, %v1739_v18  ;;  %v1908_v1 = vmax.f32 %v1851_v0, %v1740_v26  ;;  %v1961_v47 = vmax.f32 %v1904_v11, %v1739_v18  ;;  %v6618_v17 = vmax.f32 %v1905_v13, %v1740_v26 }
 0x1e4   : > { %v1853_v34 = vmax.f32 %v7730_v28, %v1739_v18  ;;  %v1854_v29 = vmax.f32 %v7731_v35, %v1740_v26  ;;  %v3045_v38 = vmax.f32 %v6605_v33, %v6547_v27  ;;  %v1107_v49 = vsel %vm308_vm0, %v1105_v19, %v7719_v54 }
 0x1e5   : > { %v1964_v9 = vmax.f32 %v1907_v20, %v7732_v8  ;;  %v6628_v7 = vmax.f32 %v1908_v1, %v7733_v15  ;;  %v2115_v39 = vrot.slane %v1961_v47, 1  ;;  %v2116_v10 = vrot.slane %v6618_v17, 1 }
 0x1e6   : > { %v1910_v32 = vmax.f32 %v1853_v34, %v7732_v8  ;;  %v1911_v22 = vmax.f32 %v1854_v29, %v7733_v15  ;;  %v2335_v0 = vrot.slane %v1961_v47, 2  ;;  %v2336_v50 = vrot.slane %v6618_v17, 2 }
 0x1e7   : > { %v2120_v54 = vrot.slane %v1964_v9, 1  ;;  %v7455_v19 = vrot.slane %v6628_v7, 1  ;;  %v2117_v26 = vsel %vm728_vm1, %v2115_v39, %v2116_v10  ;;  %v2340_v60 = vrot.slane %v1964_v9, 2 }
 0x1e8   : > { %v1967_v61 = vmax.f32 %v1910_v32, %v7732_v8  ;;  %v6634_v18 = vmax.f32 %v1911_v22, %v7733_v15  ;;  %v2337_v11 = vsel %vm308_vm0, %v2335_v0, %v2336_v50  ;;  %v7452_v3 = vrot.slane %v6628_v7, 2 }
 0x1e9   : > { %v2122_v13 = vsel %vm728_vm1, %v2120_v54, %v7455_v19  ;;  %v2241_v34 = vmax.f32 %v1961_v47, %v2117_v26  ;;  %v2555_v15 = vrot.slane %v1961_v47, 3  ;;  %v2556_v22 = vrot.slane %v6618_v17, 3 }
 0x1ea   : > { %v2125_v33 = vrot.slane %v1967_v61, 1  ;;  %v7453_v28 = vrot.slane %v6634_v18, 1  ;;  %v2244_v35 = vmax.f32 %v1964_v9, %v2122_v13  ;;  %v2342_v29 = vsel %vm308_vm0, %v2340_v60, %v7452_v3 }
 0x1eb   : > { %v2345_v20 = vrot.slane %v1967_v61, 2  ;;  %v7454_v1 = vrot.slane %v6634_v18, 2  ;;  %v2461_v32 = vmax.f32 %v2241_v34, %v2337_v11  ;;  %v2560_v26 = vrot.slane %v1964_v9, 3 }
 0x1ec   : > { %v2127_v8 = vsel %vm728_vm1, %v2125_v33, %v7453_v28  ;;  %v2464_v54 = vmax.f32 %v2244_v35, %v2342_v29  ;;  %v2557_v60 = vsel %vm1234_vm2, %v2555_v15, %v2556_v22  ;;  %v2561_v13 = vrot.slane %v6628_v7, 3 }
 0x1ed   : > { %v2247_v39 = vmax.f32 %v1967_v61, %v2127_v8  ;;  %v2347_v0 = vsel %vm308_vm0, %v2345_v20, %v7454_v1  ;;  %v2565_v3 = vrot.slane %v1967_v61, 3  ;;  %v2566_v33 = vrot.slane %v6634_v18, 3 }
 0x1ee   : > { %v2681_v34 = vmax.f32 %v2461_v32, %v2557_v60  ;;  %v2775_v28 = vrot.slane %v1961_v47, 4  ;;  %v2776_v8 = vrot.slane %v6618_v17, 4  ;;  %v2562_v20 = vsel %vm1234_vm2, %v2560_v26, %v2561_v13 }
 0x1ef   : > { %v2467_v11 = vmax.f32 %v2247_v39, %v2347_v0  ;;  %v2567_v35 = vsel %vm1234_vm2, %v2565_v3, %v2566_v33  ;;  %v2780_v29 = vrot.slane %v1964_v9, 4  ;;  %v7457_v15 = vrot.slane %v6628_v7, 4  ;;  %v7734_v9 = vld [vmem:[#allocation6_spill] sm:$0xff] }
 0x1f0   : > { %v2684_v1 = vmax.f32 %v2464_v54, %v2562_v20  ;;  %v2777_v47 = vsel %vm1488_vm3, %v2775_v28, %v2776_v8  ;;  %v2785_v32 = vrot.slane %v1967_v61, 4  ;;  %v7456_v0 = vrot.slane %v6634_v18, 4 }
 0x1f1   : > { %v2687_v19 = vmax.f32 %v2467_v11, %v2567_v35  ;;  %v2782_v39 = vsel %vm1488_vm3, %v2780_v29, %v7457_v15  ;;  %v2901_v26 = vmax.f32 %v2681_v34, %v2777_v47  ;;  %v1233_v60 = vmax.f32 %v981_v57, %v1107_v49  ;;  %v7735_v11 = vld [vmem:[#allocation7_spill] sm:$0xff] }
 0x1f2   : > { %v2904_v3 = vmax.f32 %v2684_v1, %v2782_v39  ;;  %v1361_v54 = vsel %vm1234_vm2, %v1359_v23, %v7734_v9  ;;  %v1615_v28 = vsel %vm1488_vm3, %v1613_v5, %v7735_v11  ;;  %v1792_v61 = vmax.f32 %v5660_v25, %v5729_v6 }
 0x1f3   : > { %v2787_v20 = vsel %vm1488_vm3, %v2785_v32, %v7456_v0  ;;  %v3003_v57 = vmax.f32 %v2955_v56, %v2901_v26  ;;  %v3048_v49 = vmax.f32 %v6608_v4, %v2901_v26  ;;  %v6696_v1 = vmax.f32 %v3045_v38, %v2901_v26  ;;  %3824 = vst.msk [vmem:[%s5890_s25 + $0xee] sm:$0xfc] %vm3777_vm7, %v2901_v26 }
 0x1f4   : > { %v2907_v40 = vmax.f32 %v2687_v19, %v2787_v20  ;;  %v1487_v23 = vmax.f32 %v1233_v60, %v1361_v54  ;;  %v1849_v5 = vmax.f32 %v1792_v61, %v7711_v42  ;;  %v7737_v25 = vmax.f32 %v5729_v6, %v7711_v42 }
 0x1f5   : > { %7736 = vst [vmem:[#allocation36_spill] sm:$0xff] %v6696_v1  ;;  %v3051_v35 = vmax.f32 %v3003_v57, %v2904_v3  ;;  %v6705_v29 = vmax.f32 %v3048_v49, %v2904_v3  ;;  %v2950_v56 = vmax.f32 %v6434_v2, %v6468_v44  ;;  %v2953_v4 = vmax.f32 %v6468_v44, %v6514_v14  ;;  %v7741_v49 = vld [vmem:[#allocation17_spill] sm:$0xff] }
 0x1f6   : > { %v1852_v34 = vmax.f32 %v7737_v25, %v7725_v63  ;;  %v1741_v38 = vmax.f32 %v1487_v23, %v1615_v28  ;;  %v1906_v19 = vmax.f32 %v1849_v5, %v7725_v63  ;;  %v2956_v47 = vmax.f32 %v6514_v14, %v6552_v37  ;;  %v7742_v23 = vld [vmem:[#allocation14_spill] sm:$0xff] }
 0x1f7   : > { %7738 = vst [vmem:[#allocation47_spill] sm:$0xff] %v6705_v29  ;;  %v2951_v32 = vmax.f32 %v6420_v53, %v6470_v52  ;;  %v6716_v6 = vmax.f32 %v3051_v35, %v2907_v40  ;;  %v2998_v39 = vmax.f32 %v2950_v56, %v6514_v14  ;;  %v6720_v26 = vmax.f32 %v2953_v4, %v6552_v37 }
 0x1f8   : > { %v2954_v60 = vmax.f32 %v6470_v52, %v6521_v24  ;;  %v7740_v3 = vmax.f32 %v7711_v42, %v7725_v63  ;;  %v1909_v54 = vmax.f32 %v1852_v34, %v1741_v38  ;;  %v6727_v11 = vmax.f32 %v1906_v19, %v1741_v38 }
 0x1f9   : > { %7739 = vst [vmem:[#allocation38_spill] sm:$0xff] %v6716_v6  ;;  %v3046_v61 = vmax.f32 %v2998_v39, %v6552_v37  ;;  %v6733_v20 = vmax.f32 %v2951_v32, %v6521_v24  ;;  %v3006_v40 = vmax.f32 %v7741_v49, %v6010_v45  ;;  %v3007_v4 = vmax.f32 %v5968_v21, %v6033_v12 }
 0x1fa   : > { %v1855_v9 = vmax.f32 %v7740_v3, %v1741_v38  ;;  %v6736_v57 = vmax.f32 %v2954_v60, %v6554_v16  ;;  %v1966_v63 = vmax.f32 %v1909_v54, %v7742_v23  ;;  %v2118_v5 = vrot.slane %v6727_v11, 1 }
 0x1fb   : > { %v2338_v25 = vrot.slane %v6727_v11, 2  ;;  %v2558_v34 = vrot.slane %v6727_v11, 3  ;;  %v2778_v35 = vrot.slane %v6727_v11, 4  ;;  %v3047_v56 = vmax.f32 %v6733_v20, %v6554_v16 }
 0x1fc   : > { %v1912_v42 = vmax.f32 %v1855_v9, %v7742_v23  ;;  %v2119_v19 = vsel %vm728_vm1, %v2116_v10, %v2118_v5  ;;  %v2123_v32 = vrot.slane %v1966_v63, 1  ;;  %v2343_v3 = vrot.slane %v1966_v63, 2 }
 0x1fd   : > { %v2339_v39 = vsel %vm308_vm0, %v2336_v50, %v2338_v25  ;;  %v2242_v60 = vmax.f32 %v6618_v17, %v2119_v19  ;;  %v2559_v9 = vsel %vm1234_vm2, %v2556_v22, %v2558_v34  ;;  %v2563_v21 = vrot.slane %v1966_v63, 3 }
 0x1fe   : > { %v6751_v38 = vmax.f32 %v1912_v42, %v7742_v23  ;;  %v7743_v54 = vrot.slane %v6628_v7, 1  ;;  %v7744_v42 = vrot.slane %v6628_v7, 2  ;;  %v7746_v15 = vrot.slane %v6634_v18, 2 }
 0x1ff   : > { %v2462_v28 = vmax.f32 %v2242_v60, %v2339_v39  ;;  %v2564_v22 = vsel %vm1234_vm2, %v2561_v13, %v2563_v21  ;;  %v2779_v13 = vsel %vm1488_vm3, %v2776_v8, %v2778_v35  ;;  %v3054_v29 = vmax.f32 %v3006_v40, %v6057_v55 }
 0x200   : > { %v2124_v20 = vsel %vm728_vm1, %v7743_v54, %v2123_v32  ;;  %v7458_v49 = vrot.slane %v6751_v38, 1  ;;  %v7460_v10 = vrot.slane %v6751_v38, 2  ;;  %v2568_v23 = vrot.slane %v6751_v38, 3 }
 0x201   : > { %v2245_v50 = vmax.f32 %v6628_v7, %v2124_v20  ;;  %v2344_v19 = vsel %vm308_vm0, %v7744_v42, %v2343_v3  ;;  %v7745_v54 = vrot.slane %v6634_v18, 1  ;;  %v2788_v6 = vrot.slane %v6751_v38, 4 }
 0x202   : > { %v2349_v20 = vsel %vm308_vm0, %v7746_v15, %v7460_v10  ;;  %v2569_v39 = vsel %vm1234_vm2, %v2566_v33, %v2568_v23  ;;  %v2243_v15 = vmax.f32 %v6727_v11, %v2118_v5  ;;  %v2246_v10 = vmax.f32 %v1966_v63, %v2123_v32 }
 0x203   : > { %v2129_v0 = vsel %vm728_vm1, %v7745_v54, %v7458_v49  ;;  %v2465_v42 = vmax.f32 %v2245_v50, %v2344_v19  ;;  %v2682_v54 = vmax.f32 %v2462_v28, %v2559_v9  ;;  %v2783_v49 = vrot.slane %v1966_v63, 4 }
 0x204   : > { %v2248_v60 = vmax.f32 %v6634_v18, %v2129_v0  ;;  %v7747_v33 = vrot.slane %v6628_v7, 4  ;;  %v7748_v0 = vrot.slane %v6634_v18, 4  ;;  %v2463_v9 = vmax.f32 %v2243_v15, %v2338_v25 }
 0x205   : > { %v2685_v37 = vmax.f32 %v2465_v42, %v2564_v22  ;;  %v2902_v8 = vmax.f32 %v2682_v54, %v2779_v13  ;;  %v2466_v50 = vmax.f32 %v2246_v10, %v2343_v3  ;;  %v6807_v11 = vmax.f32 %v3007_v4, %v6079_v41 }
 0x206   : > { %v2468_v1 = vmax.f32 %v2248_v60, %v2349_v20  ;;  %v2784_v17 = vsel %vm1488_vm3, %v7747_v33, %v2783_v49  ;;  %v2789_v28 = vsel %vm1488_vm3, %v7748_v0, %v2788_v6  ;;  %v2683_v19 = vmax.f32 %v2463_v9, %v2558_v34 }
 0x207   : > { %v2905_v40 = vmax.f32 %v2685_v37, %v2784_v17  ;;  %v3004_v5 = vmax.f32 %v2956_v47, %v2902_v8  ;;  %v3049_v32 = vmax.f32 %v6720_v26, %v2902_v8  ;;  %3825 = vst.msk [vmem:[%s5890_s25 + $0xf6] sm:$0xff] %vm3728_vm5, %v2902_v8  ;;  %v6812_v7 = vmax.f32 %v3046_v61, %v2902_v8 }
 0x208   : > { %v2688_v63 = vmax.f32 %v2468_v1, %v2569_v39  ;;  %v2686_v22 = vmax.f32 %v2466_v50, %v2563_v21  ;;  %v3150_v20 = vrot.slane %v3054_v29, 1  ;;  %v3151_v4 = vrot.slane %v6807_v11, 1 }
 0x209   : > { %v3052_v13 = vmax.f32 %v3004_v5, %v2905_v40  ;;  %v6814_v25 = vmax.f32 %v3049_v32, %v2905_v40  ;;  %v6817_v3 = vmax.f32 %v2683_v19, %v2778_v35  ;;  %v3294_v1 = vrot.slane %v3054_v29, 2 }
 0x20a   : > { %v2908_v18 = vmax.f32 %v2688_v63, %v2789_v28  ;;  %v6819_v37 = vmax.f32 %v2686_v22, %v2783_v49  ;;  %v3295_v47 = vrot.slane %v6807_v11, 2  ;;  %v3152_v61 = vsel %vm728_vm1, %v3150_v20, %v3151_v4  ;;  %v7751_v63 = vld [vmem:[#allocation19_spill] sm:$0xff]  ;;  %v7754_v22 = vld [vmem:[#allocation9_spill] sm:$0xff]  ;;  %v7755_v20 = vld [vmem:[#allocation18_spill] sm:$0xff] }
 0x20b   : > { %v3438_v34 = vrot.slane %v3054_v29, 3  ;;  %v3439_v21 = vrot.slane %v6807_v11, 3  ;;  %v7749_v10 = vmax.f32 %v6521_v24, %v6554_v16  ;;  %v3050_v35 = vmax.f32 %v6736_v57, %v6817_v3  ;;  %3826 = vst.msk [vmem:[%s5890_s25 + $0xfe] sm:$0x3] %vm3780_vm8, %v6817_v3 }
 0x20c   : > { %v6822_v26 = vmax.f32 %v3052_v13, %v2908_v18  ;;  %v6835_v49 = vmax.f32 %v3047_v56, %v6817_v3  ;;  %v3262_v60 = vmax.f32 %v3054_v29, %v3152_v61  ;;  %v3296_v42 = vsel %vm308_vm0, %v3294_v1, %v3295_v47 }
 0x20d   : > { %v6830_v39 = vmax.f32 %v7749_v10, %v6817_v3  ;;  %v3440_v54 = vsel %vm1234_vm2, %v3438_v34, %v3439_v21  ;;  %v3582_v15 = vrot.slane %v3054_v29, 4  ;;  %v3583_v33 = vrot.slane %v6807_v11, 4 }
 0x20e   : > { %v3406_v8 = vmax.f32 %v3262_v60, %v3296_v42  ;;  %v3008_v56 = vmax.f32 %v5996_v58, %v6030_v31  ;;  %v3009_v0 = vmax.f32 %v6025_v62, %v6057_v55  ;;  %v3010_v9 = vmax.f32 %v6052_v48, %v6079_v41  ;;  %v7753_v58 = vld [vmem:[#allocation22_spill] sm:$0xff] }
 0x20f   : > { %v3584_v28 = vsel %vm1488_vm3, %v3582_v15, %v3583_v33  ;;  %v7750_v29 = vmax.f32 %v5977_v46, %v5979_v36  ;;  %v7752_v40 = vmax.f32 %v7751_v63, %v6010_v45  ;;  %v7756_v18 = vmax.f32 %v7755_v20, %v6033_v12  ;;  %v7757_v46 = vld [vmem:[#allocation12_spill] sm:$0xff] }
 0x210   : > { %v3550_v32 = vmax.f32 %v3406_v8, %v3440_v54  ;;  %v3056_v19 = vmax.f32 %v3008_v56, %v7753_v58  ;;  %v3057_v62 = vmax.f32 %v3009_v0, %v7754_v22  ;;  %v3058_v13 = vmax.f32 %v3010_v9, %v7757_v46 }
 0x211   : > { %v2963_v50 = vmax.f32 %v7750_v29, %v6030_v31  ;;  %v2964_v5 = vmax.f32 %v7752_v40, %v6057_v55  ;;  %v2965_v48 = vmax.f32 %v7756_v18, %v6079_v41  ;;  %v2918_v34 = vmax.f32 %v5979_v36, %v6030_v31 }
 0x212   : > { %v3694_v10 = vmax.f32 %v3550_v32, %v3584_v28  ;;  %v3153_v60 = vrot.slane %v3056_v19, 1  ;;  %v3297_v42 = vrot.slane %v3056_v19, 2  ;;  %v3441_v54 = vrot.slane %v3056_v19, 3 }
 0x213   : > { %v3011_v1 = vmax.f32 %v2963_v50, %v7753_v58  ;;  %v3012_v61 = vmax.f32 %v2964_v5, %v7754_v22  ;;  %v3585_v15 = vrot.slane %v3056_v19, 4  ;;  %v3155_v8 = vrot.slane %v3057_v62, 1 }
 0x214   : > { %v3156_v56 = vrot.slane %v3058_v13, 1  ;;  %v3299_v0 = vrot.slane %v3057_v62, 2  ;;  %3827 = vst.msk [vmem:[%s6870_s28] sm:$0xff] %vm3728_vm5, %v3694_v10  ;;  %v3154_v29 = vsel %vm728_vm1, %v3151_v4, %v3153_v60  ;;  %v3298_v9 = vsel %vm308_vm0, %v3295_v47, %v3297_v42  ;;  %v7758_v4 = vld [vmem:[#allocation10_spill] sm:$0xff] }
 0x215   : > { %v3442_v50 = vsel %vm1234_vm2, %v3439_v21, %v3441_v54  ;;  %v3300_v63 = vrot.slane %v3058_v13, 2  ;;  %v3263_v40 = vmax.f32 %v6807_v11, %v3154_v29  ;;  %v3586_v36 = vsel %vm1488_vm3, %v3583_v33, %v3585_v15  ;;  %v7759_v11 = vld [vmem:[#allocation13_spill] sm:$0xff] }
 0x216   : > { %v3157_v28 = vsel %vm728_vm1, %v3155_v8, %v3156_v56  ;;  %v3443_v5 = vrot.slane %v3057_v62, 3  ;;  %v3444_v20 = vrot.slane %v3058_v13, 3  ;;  %v3587_v18 = vrot.slane %v3057_v62, 4 }
 0x217   : > { %v3264_v32 = vmax.f32 %v3057_v62, %v3157_v28  ;;  %v3301_v19 = vsel %vm308_vm0, %v3299_v0, %v3300_v63  ;;  %v3407_v10 = vmax.f32 %v3263_v40, %v3298_v9  ;;  %v3588_v17 = vrot.slane %v3058_v13, 4 }
 0x218   : > { %v3059_v60 = vmax.f32 %v3011_v1, %v7758_v4  ;;  %v3013_v47 = vmax.f32 %v2965_v48, %v7757_v46  ;;  %v3445_v42 = vsel %vm1234_vm2, %v3443_v5, %v3444_v20  ;;  %v3060_v54 = vmax.f32 %v3012_v61, %v7759_v11  ;;  %v7760_v1 = vld [vmem:[#allocation15_spill] sm:$0xff] }
 0x219   : > { %v3408_v21 = vmax.f32 %v3264_v32, %v3301_v19  ;;  %v2966_v33 = vmax.f32 %v2918_v34, %v7753_v58  ;;  %v3551_v15 = vmax.f32 %v3407_v10, %v3442_v50  ;;  %v3589_v8 = vsel %vm1488_vm3, %v3587_v18, %v3588_v17 }
 0x21a   : > { %v3158_v0 = vrot.slane %v3059_v60, 1  ;;  %v3302_v29 = vrot.slane %v3059_v60, 2  ;;  %v3446_v9 = vrot.slane %v3059_v60, 3  ;;  %v3590_v40 = vrot.slane %v3059_v60, 4 }
 0x21b   : > { %v3552_v62 = vmax.f32 %v3408_v21, %v3445_v42  ;;  %v3061_v28 = vmax.f32 %v3013_v47, %v7760_v1  ;;  %v3695_v48 = vmax.f32 %v3551_v15, %v3586_v36  ;;  %v3160_v61 = vrot.slane %v3060_v54, 1 }
 0x21c   : > { %v3159_v32 = vsel %vm728_vm1, %v3156_v56, %v3158_v0  ;;  %v3303_v5 = vsel %vm308_vm0, %v3300_v63, %v3302_v29  ;;  %v3447_v50 = vsel %vm1234_vm2, %v3444_v20, %v3446_v9  ;;  %v3591_v18 = vsel %vm1488_vm3, %v3588_v17, %v3590_v40  ;;  %v7761_v9 = vld [vmem:[#allocation16_spill] sm:$0xff] }
 0x21d   : > { %v3696_v19 = vmax.f32 %v3552_v62, %v3589_v8  ;;  %v3265_v34 = vmax.f32 %v3058_v13, %v3159_v32  ;;  %3828 = vst.msk [vmem:[%s6870_s28 + $0x8] sm:$0xff] %vm3728_vm5, %v3695_v48  ;;  %v3161_v10 = vrot.slane %v3061_v28, 1  ;;  %v3304_v21 = vrot.slane %v3060_v54, 2 }
 0x21e   : > { %v3305_v42 = vrot.slane %v3061_v28, 2  ;;  %v3448_v60 = vrot.slane %v3060_v54, 3  ;;  %v3449_v47 = vrot.slane %v3061_v28, 3  ;;  %v3592_v56 = vrot.slane %v3060_v54, 4 }
 0x21f   : > { %3829 = vst.msk [vmem:[%s6870_s28 + $0x10] sm:$0xff] %vm3728_vm5, %v3696_v19  ;;  %v3409_v36 = vmax.f32 %v3265_v34, %v3303_v5  ;;  %v3593_v15 = vrot.slane %v3061_v28, 4  ;;  %v3162_v63 = vsel %vm728_vm1, %v3160_v61, %v3161_v10  ;;  %v3014_v20 = vmax.f32 %v2966_v33, %v7758_v4 }
 0x220   : > { %v3306_v13 = vsel %vm308_vm0, %v3304_v21, %v3305_v42  ;;  %v2919_v17 = vmax.f32 %v6010_v45, %v6057_v55  ;;  %v3266_v0 = vmax.f32 %v3060_v54, %v3162_v63  ;;  %v3450_v29 = vsel %vm1234_vm2, %v3448_v60, %v3449_v47 }
 0x221   : > { %v3553_v8 = vmax.f32 %v3409_v36, %v3447_v50  ;;  %v3594_v62 = vsel %vm1488_vm3, %v3592_v56, %v3593_v15  ;;  %v3062_v40 = vmax.f32 %v3014_v20, %v7761_v9  ;;  %v2920_v48 = vmax.f32 %v6033_v12, %v6079_v41 }
 0x222   : > { %v2967_v32 = vmax.f32 %v2919_v17, %v7754_v22  ;;  %v2921_v33 = vmax.f32 %v6030_v31, %v7753_v58  ;;  %v3410_v61 = vmax.f32 %v3266_v0, %v3306_v13  ;;  %v2922_v45 = vmax.f32 %v6057_v55, %v7754_v22  ;;  %v7762_v17 = vld [vmem:[#allocation25_spill] sm:$0xff] }
 0x223   : > { %v3697_v5 = vmax.f32 %v3553_v8, %v3591_v18  ;;  %v2923_v54 = vmax.f32 %v6079_v41, %v7757_v46  ;;  %v3163_v19 = vrot.slane %v3062_v40, 1  ;;  %v3307_v34 = vrot.slane %v3062_v40, 2 }
 0x224   : > { %v3451_v50 = vrot.slane %v3062_v40, 3  ;;  %v3595_v21 = vrot.slane %v3062_v40, 4  ;;  %v3554_v12 = vmax.f32 %v3410_v61, %v3450_v29  ;;  %v2968_v60 = vmax.f32 %v2920_v48, %v7757_v46 }
 0x225   : > { %3830 = vst.msk [vmem:[%s6870_s28 + $0x18] sm:$0xff] %vm3728_vm5, %v3697_v5  ;;  %v3015_v31 = vmax.f32 %v2967_v32, %v7759_v11  ;;  %v2969_v18 = vmax.f32 %v2921_v33, %v7758_v4  ;;  %v3164_v36 = vsel %vm728_vm1, %v3161_v10, %v3163_v19  ;;  %v3308_v55 = vsel %vm308_vm0, %v3305_v42, %v3307_v34  ;;  %v7764_v33 = vld [vmem:[#allocation20_spill] sm:$0xff] }
 0x226   : > { %v3452_v41 = vsel %vm1234_vm2, %v3449_v47, %v3451_v50  ;;  %v3596_v56 = vsel %vm1488_vm3, %v3593_v15, %v3595_v21  ;;  %v3698_v63 = vmax.f32 %v3554_v12, %v3594_v62  ;;  %v3267_v13 = vmax.f32 %v3061_v28, %v3164_v36  ;;  %v7763_v47 = vld [vmem:[#allocation31_spill] sm:$0xff] }
 0x227   : > { %v3016_v20 = vmax.f32 %v2968_v60, %v7760_v1  ;;  %v3063_v8 = vmax.f32 %v3015_v31, %v7762_v17  ;;  %v3017_v0 = vmax.f32 %v2969_v18, %v7761_v9  ;;  %v2970_v29 = vmax.f32 %v2922_v45, %v7759_v11 }
 0x228   : > { %v2971_v40 = vmax.f32 %v2923_v54, %v7760_v1  ;;  %v2924_v10 = vmax.f32 %v7753_v58, %v7758_v4  ;;  %3831 = vst.msk [vmem:[%s6870_s28 + $0x20] sm:$0xff] %vm3728_vm5, %v3698_v63  ;;  %v3411_v42 = vmax.f32 %v3267_v13, %v3308_v55 }
 0x229   : > { %v3064_v15 = vmax.f32 %v3016_v20, %v7763_v47  ;;  %v3165_v62 = vrot.slane %v3063_v8, 1  ;;  %v3309_v28 = vrot.slane %v3063_v8, 2  ;;  %v3453_v48 = vrot.slane %v3063_v8, 3 }
 0x22a   : > { %v3597_v32 = vrot.slane %v3063_v8, 4  ;;  %v3065_v5 = vmax.f32 %v3017_v0, %v7764_v33  ;;  %v3018_v61 = vmax.f32 %v2970_v29, %v7762_v17  ;;  %v3555_v19 = vmax.f32 %v3411_v42, %v3452_v41 }
 0x22b   : > { %v3166_v45 = vrot.slane %v3064_v15, 1  ;;  %v3310_v54 = vrot.slane %v3064_v15, 2  ;;  %v3454_v34 = vrot.slane %v3064_v15, 3  ;;  %v3598_v50 = vrot.slane %v3064_v15, 4 }
 0x22c   : > { %v3168_v58 = vrot.slane %v3065_v5, 1  ;;  %v3312_v21 = vrot.slane %v3065_v5, 2  ;;  %v3456_v12 = vrot.slane %v3065_v5, 3  ;;  %v3699_v60 = vmax.f32 %v3555_v19, %v3596_v56  ;;  %v7765_v19 = vld [vmem:[#allocation27_spill] sm:$0xff] }
 0x22d   : > { %v3167_v31 = vsel %vm728_vm1, %v3165_v62, %v3166_v45  ;;  %v3311_v18 = vsel %vm308_vm0, %v3309_v28, %v3310_v54  ;;  %v3455_v36 = vsel %vm1234_vm2, %v3453_v48, %v3454_v34  ;;  %v3599_v63 = vsel %vm1488_vm3, %v3597_v32, %v3598_v50 }
 0x22e   : > { %v3268_v55 = vmax.f32 %v3063_v8, %v3167_v31  ;;  %v3169_v41 = vsel %vm728_vm1, %v3166_v45, %v3168_v58  ;;  %v3313_v13 = vsel %vm308_vm0, %v3310_v54, %v3312_v21  ;;  %3832 = vst.msk [vmem:[%s6870_s28 + $0x28] sm:$0xff] %vm3728_vm5, %v3699_v60  ;;  %v3457_v0 = vsel %vm1234_vm2, %v3454_v34, %v3456_v12 }
 0x22f   : > { %v3269_v20 = vmax.f32 %v3064_v15, %v3169_v41  ;;  %v3600_v29 = vrot.slane %v3065_v5, 4  ;;  %v3019_v56 = vmax.f32 %v2971_v40, %v7763_v47  ;;  %v3066_v62 = vmax.f32 %v3018_v61, %v6227_v43 }
 0x230   : > { %v3412_v42 = vmax.f32 %v3268_v55, %v3311_v18  ;;  %v2972_v28 = vmax.f32 %v2924_v10, %v7761_v9  ;;  %v2925_v8 = vmax.f32 %v7754_v22, %v7759_v11  ;;  %v2926_v15 = vmax.f32 %v7757_v46, %v7760_v1 }
 0x231   : > { %v3413_v48 = vmax.f32 %v3269_v20, %v3313_v13  ;;  %v3601_v32 = vsel %vm1488_vm3, %v3598_v50, %v3600_v29  ;;  %v3067_v45 = vmax.f32 %v3019_v56, %v7765_v19  ;;  %v3170_v5 = vrot.slane %v3066_v62, 1  ;;  %v7766_v13 = vld [vmem:[#allocation33_spill] sm:$0xff] }
 0x232   : > { %v3556_v54 = vmax.f32 %v3412_v42, %v3455_v36  ;;  %v3314_v40 = vrot.slane %v3066_v62, 2  ;;  %v3458_v34 = vrot.slane %v3066_v62, 3  ;;  %v3602_v22 = vrot.slane %v3066_v62, 4 }
 0x233   : > { %v3557_v58 = vmax.f32 %v3413_v48, %v3457_v0  ;;  %v3171_v61 = vrot.slane %v3067_v45, 1  ;;  %v3315_v10 = vrot.slane %v3067_v45, 2  ;;  %v3459_v21 = vrot.slane %v3067_v45, 3 }
 0x234   : > { %v3700_v12 = vmax.f32 %v3556_v54, %v3599_v63  ;;  %v3603_v60 = vrot.slane %v3067_v45, 4  ;;  %v3020_v50 = vmax.f32 %v2972_v28, %v7764_v33  ;;  %v2973_v63 = vmax.f32 %v2925_v8, %v7762_v17 }
 0x235   : > { %v3701_v31 = vmax.f32 %v3557_v58, %v3601_v32  ;;  %v3172_v18 = vsel %vm728_vm1, %v3170_v5, %v3171_v61  ;;  %v3316_v46 = vsel %vm308_vm0, %v3314_v40, %v3315_v10  ;;  %v3460_v36 = vsel %vm1234_vm2, %v3458_v34, %v3459_v21 }
 0x236   : > { %3833 = vst.msk [vmem:[%s6870_s28 + $0x30] sm:$0xff] %vm3728_vm5, %v3700_v12  ;;  %v3270_v55 = vmax.f32 %v3066_v62, %v3172_v18  ;;  %v3604_v41 = vsel %vm1488_vm3, %v3602_v22, %v3603_v60  ;;  %v3068_v20 = vmax.f32 %v3020_v50, %v7766_v13  ;;  %v2974_v0 = vmax.f32 %v2926_v15, %v7763_v47  ;;  %v7767_v12 = vld [vmem:[#allocation23_spill] sm:$0xff]  ;;  %v7768_v50 = vld [vmem:[#allocation28_spill] sm:$0xff] }
 0x237   : > { %3834 = vst.msk [vmem:[%s6870_s28 + $0x38] sm:$0xff] %vm3728_vm5, %v3701_v31  ;;  %v2927_v29 = vmax.f32 %v7758_v4, %v7761_v9  ;;  %v2928_v56 = vmax.f32 %v7759_v11, %v7762_v17  ;;  %v2929_v42 = vmax.f32 %v7760_v1, %v7763_v47  ;;  %v3021_v8 = vmax.f32 %v2973_v63, %v6227_v43 }
 0x238   : > { %v3414_v62 = vmax.f32 %v3270_v55, %v3316_v46  ;;  %v3173_v28 = vrot.slane %v3068_v20, 1  ;;  %v3317_v48 = vrot.slane %v3068_v20, 2  ;;  %v3461_v32 = vrot.slane %v3068_v20, 3 }
 0x239   : > { %v3605_v54 = vrot.slane %v3068_v20, 4  ;;  %v3022_v5 = vmax.f32 %v2974_v0, %v7765_v19  ;;  %v2975_v15 = vmax.f32 %v2927_v29, %v7764_v33  ;;  %v3069_v22 = vmax.f32 %v3021_v8, %v7767_v12 }
 0x23a   : > { %v3558_v40 = vmax.f32 %v3414_v62, %v3460_v36  ;;  %v3174_v4 = vsel %vm728_vm1, %v3171_v61, %v3173_v28  ;;  %v3318_v11 = vsel %vm308_vm0, %v3315_v10, %v3317_v48  ;;  %v3462_v34 = vsel %vm1234_vm2, %v3459_v21, %v3461_v32  ;;  %v7769_v28 = vld [vmem:[#allocation34_spill] sm:$0xff] }
 0x23b   : > { %v3271_v1 = vmax.f32 %v3067_v45, %v3174_v4  ;;  %v3606_v58 = vsel %vm1488_vm3, %v3603_v60, %v3605_v54  ;;  %v3070_v31 = vmax.f32 %v3022_v5, %v7768_v50  ;;  %v3023_v46 = vmax.f32 %v2975_v15, %v7766_v13 }
 0x23c   : > { %v3702_v18 = vmax.f32 %v3558_v40, %v3604_v41  ;;  %v2976_v55 = vmax.f32 %v2928_v56, %v6227_v43  ;;  %v2977_v36 = vmax.f32 %v2929_v42, %v7765_v19  ;;  %v3175_v61 = vrot.slane %v3069_v22, 1 }
 0x23d   : > { %v3415_v20 = vmax.f32 %v3271_v1, %v3318_v11  ;;  %v3176_v63 = vrot.slane %v3070_v31, 1  ;;  %v3319_v10 = vrot.slane %v3069_v22, 2  ;;  %v3320_v45 = vrot.slane %v3070_v31, 2 }
 0x23e   : > { %3835 = vst.msk [vmem:[%s6870_s28 + $0x40] sm:$0xff] %vm3728_vm5, %v3702_v18  ;;  %v3463_v21 = vrot.slane %v3069_v22, 3  ;;  %v3464_v60 = vrot.slane %v3070_v31, 3  ;;  %v3607_v0 = vrot.slane %v3069_v22, 4  ;;  %v3608_v62 = vrot.slane %v3070_v31, 4 }
 0x23f   : > { %v3559_v29 = vmax.f32 %v3415_v20, %v3462_v34  ;;  %v3177_v41 = vsel %vm728_vm1, %v3175_v61, %v3176_v63  ;;  %v3071_v48 = vmax.f32 %v3023_v46, %v7769_v28  ;;  %v3321_v42 = vsel %vm308_vm0, %v3319_v10, %v3320_v45  ;;  %v7770_v46 = vld [vmem:[#allocation24_spill] sm:$0xff] }
 0x240   : > { %v3272_v56 = vmax.f32 %v3069_v22, %v3177_v41  ;;  %v3465_v32 = vsel %vm1234_vm2, %v3463_v21, %v3464_v60  ;;  %v3024_v54 = vmax.f32 %v2976_v55, %v7767_v12  ;;  %v3609_v5 = vsel %vm1488_vm3, %v3607_v0, %v3608_v62  ;;  %v7771_v0 = vld [vmem:[#allocation37_spill] sm:$0xff] }
 0x241   : > { %v3703_v8 = vmax.f32 %v3559_v29, %v3606_v58  ;;  %v3178_v15 = vrot.slane %v3071_v48, 1  ;;  %v3322_v40 = vrot.slane %v3071_v48, 2  ;;  %v3466_v11 = vrot.slane %v3071_v48, 3 }
 0x242   : > { %v3416_v4 = vmax.f32 %v3272_v56, %v3321_v42  ;;  %v3610_v34 = vrot.slane %v3071_v48, 4  ;;  %v3025_v1 = vmax.f32 %v2977_v36, %v7768_v50  ;;  %v3072_v20 = vmax.f32 %v3024_v54, %v7770_v46 }
 0x243   : > { %3836 = vst.msk [vmem:[%s6870_s28 + $0x48] sm:$0xff] %vm3728_vm5, %v3703_v8  ;;  %v3179_v22 = vsel %vm728_vm1, %v3176_v63, %v3178_v15  ;;  %v3323_v18 = vsel %vm308_vm0, %v3320_v45, %v3322_v40  ;;  %v2930_v58 = vmax.f32 %v7761_v9, %v7764_v33  ;;  %v3467_v10 = vsel %vm1234_vm2, %v3464_v60, %v3466_v11 }
 0x244   : > { %v3560_v55 = vmax.f32 %v3416_v4, %v3465_v32  ;;  %v3273_v61 = vmax.f32 %v3070_v31, %v3179_v22  ;;  %v3611_v21 = vsel %vm1488_vm3, %v3608_v62, %v3610_v34  ;;  %v3073_v36 = vmax.f32 %v3025_v1, %v7771_v0  ;;  %v7772_v22 = vld [vmem:[#allocation26_spill] sm:$0xff] }
 0x245   : > { %v3180_v29 = vrot.slane %v3072_v20, 1  ;;  %v3324_v41 = vrot.slane %v3072_v20, 2  ;;  %v3468_v48 = vrot.slane %v3072_v20, 3  ;;  %v3612_v45 = vrot.slane %v3072_v20, 4 }
 0x246   : > { %v3704_v63 = vmax.f32 %v3560_v55, %v3609_v5  ;;  %v3417_v56 = vmax.f32 %v3273_v61, %v3323_v18  ;;  %v2978_v42 = vmax.f32 %v2930_v58, %v7766_v13  ;;  %v3181_v54 = vrot.slane %v3073_v36, 1 }
 0x247   : > { %v3325_v8 = vrot.slane %v3073_v36, 2  ;;  %v3469_v9 = vrot.slane %v3073_v36, 3  ;;  %v3613_v32 = vrot.slane %v3073_v36, 4  ;;  %v2931_v62 = vmax.f32 %v7762_v17, %v6227_v43 }
 0x248   : > { %3837 = vst.msk [vmem:[%s6870_s28 + $0x50] sm:$0xff] %vm3728_vm5, %v3704_v63  ;;  %v3561_v31 = vmax.f32 %v3417_v56, %v3467_v10  ;;  %v3026_v60 = vmax.f32 %v2978_v42, %v7769_v28  ;;  %v2932_v5 = vmax.f32 %v7763_v47, %v7765_v19  ;;  %v3182_v15 = vsel %vm728_vm1, %v3180_v29, %v3181_v54 }
 0x249   : > { %v3326_v40 = vsel %vm308_vm0, %v3324_v41, %v3325_v8  ;;  %v3470_v4 = vsel %vm1234_vm2, %v3468_v48, %v3469_v9  ;;  %v3614_v11 = vsel %vm1488_vm3, %v3612_v45, %v3613_v32  ;;  %v3274_v1 = vmax.f32 %v3072_v20, %v3182_v15 }
 0x24a   : > { %v3705_v34 = vmax.f32 %v3561_v31, %v3611_v21  ;;  %v3074_v18 = vmax.f32 %v3026_v60, %v7772_v22  ;;  %v2979_v58 = vmax.f32 %v2931_v62, %v7767_v12  ;;  %v2980_v55 = vmax.f32 %v2932_v5, %v7768_v50  ;;  %v7773_v60 = vld [vmem:[#allocation29_spill] sm:$0xff]  ;;  %v7774_v5 = vld [vmem:[#allocation30_spill] sm:$0xff] }
 0x24b   : > { %v2933_v17 = vmax.f32 %v7764_v33, %v7766_v13  ;;  %v2934_v47 = vmax.f32 %v6227_v43, %v7767_v12  ;;  %v2935_v61 = vmax.f32 %v7765_v19, %v7768_v50  ;;  %v3418_v10 = vmax.f32 %v3274_v1, %v3326_v40 }
 0x24c   : > { %3838 = vst.msk [vmem:[%s6870_s28 + $0x58] sm:$0xff] %vm3728_vm5, %v3705_v34  ;;  %v3183_v21 = vrot.slane %v3074_v18, 1  ;;  %v3327_v20 = vrot.slane %v3074_v18, 2  ;;  %v3471_v29 = vrot.slane %v3074_v18, 3  ;;  %v3615_v41 = vrot.slane %v3074_v18, 4 }
 0x24d   : > { %v3027_v48 = vmax.f32 %v2979_v58, %v7770_v46  ;;  %v3028_v63 = vmax.f32 %v2980_v55, %v7771_v0  ;;  %v2981_v56 = vmax.f32 %v2933_v17, %v7769_v28  ;;  %v3562_v33 = vmax.f32 %v3418_v10, %v3470_v4 }
 0x24e   : > { %v3184_v43 = vsel %vm728_vm1, %v3181_v54, %v3183_v21  ;;  %v3328_v45 = vsel %vm308_vm0, %v3325_v8, %v3327_v20  ;;  %v3472_v19 = vsel %vm1234_vm2, %v3469_v9, %v3471_v29  ;;  %v3616_v31 = vsel %vm1488_vm3, %v3613_v32, %v3615_v41  ;;  %v7775_v21 = vld [vmem:[#allocation41_spill] sm:$0xff] }
 0x24f   : > { %v3275_v42 = vmax.f32 %v3073_v36, %v3184_v43  ;;  %v3075_v62 = vmax.f32 %v3027_v48, %v7773_v60  ;;  %v3076_v15 = vmax.f32 %v3028_v63, %v7774_v5  ;;  %v3706_v40 = vmax.f32 %v3562_v33, %v3614_v11 }
 0x250   : > { %v3029_v34 = vmax.f32 %v2981_v56, %v7772_v22  ;;  %v2982_v1 = vmax.f32 %v2934_v47, %v7770_v46  ;;  %v2983_v4 = vmax.f32 %v2935_v61, %v7771_v0 }
 0x251   : > { %v3419_v18 = vmax.f32 %v3275_v42, %v3328_v45  ;;  %v3185_v54 = vrot.slane %v3075_v62, 1  ;;  %v3186_v58 = vrot.slane %v3076_v15, 1  ;;  %v3329_v8 = vrot.slane %v3075_v62, 2  ;;  %3839 = vst.msk [vmem:[%s6870_s28 + $0x60] sm:$0xff] %vm3728_vm5, %v3706_v40 }
 0x252   : > { %v3330_v36 = vrot.slane %v3076_v15, 2  ;;  %v3473_v9 = vrot.slane %v3075_v62, 3  ;;  %v3474_v32 = vrot.slane %v3076_v15, 3  ;;  %v3617_v55 = vrot.slane %v3075_v62, 4 }
 0x253   : > { %v3563_v17 = vmax.f32 %v3419_v18, %v3472_v19  ;;  %v3187_v11 = vsel %vm728_vm1, %v3185_v54, %v3186_v58  ;;  %v3618_v10 = vrot.slane %v3076_v15, 4  ;;  %v3077_v20 = vmax.f32 %v3029_v34, %v7775_v21  ;;  %v7776_v34 = vld [vmem:[#allocation32_spill] sm:$0xff] }
 0x254   : > { %v3276_v47 = vmax.f32 %v3075_v62, %v3187_v11  ;;  %v3331_v61 = vsel %vm308_vm0, %v3329_v8, %v3330_v36  ;;  %v3475_v29 = vsel %vm1234_vm2, %v3473_v9, %v3474_v32  ;;  %v3030_v41 = vmax.f32 %v2982_v1, %v7773_v60 }
 0x255   : > { %v3707_v48 = vmax.f32 %v3563_v17, %v3616_v31  ;;  %v3619_v63 = vsel %vm1488_vm3, %v3617_v55, %v3618_v10  ;;  %v3188_v56 = vrot.slane %v3077_v20, 1  ;;  %v3332_v33 = vrot.slane %v3077_v20, 2  ;;  %v7777_v55 = vld [vmem:[#allocation43_spill] sm:$0xff] }
 0x256   : > { %v3420_v43 = vmax.f32 %v3276_v47, %v3331_v61  ;;  %v3476_v45 = vrot.slane %v3077_v20, 3  ;;  %v3620_v19 = vrot.slane %v3077_v20, 4  ;;  %v3031_v42 = vmax.f32 %v2983_v4, %v7774_v5 }
 0x257   : > { %3840 = vst.msk [vmem:[%s6870_s28 + $0x68] sm:$0xff] %vm3728_vm5, %v3707_v48  ;;  %v3189_v62 = vsel %vm728_vm1, %v3186_v58, %v3188_v56  ;;  %v3333_v40 = vsel %vm308_vm0, %v3330_v36, %v3332_v33  ;;  %v3078_v18 = vmax.f32 %v3030_v41, %v7776_v34  ;;  %v2936_v31 = vmax.f32 %v7766_v13, %v7769_v28 }
 0x258   : > { %v3564_v1 = vmax.f32 %v3420_v43, %v3475_v29  ;;  %v3277_v54 = vmax.f32 %v3076_v15, %v3189_v62  ;;  %v3477_v8 = vsel %vm1234_vm2, %v3474_v32, %v3476_v45  ;;  %v3621_v9 = vsel %vm1488_vm3, %v3618_v10, %v3620_v19  ;;  %v7778_v62 = vld [vmem:[#allocation35_spill] sm:$0xff] }
 0x259   : > { %v3079_v4 = vmax.f32 %v3031_v42, %v7777_v55  ;;  %v3190_v17 = vrot.slane %v3078_v18, 1  ;;  %v3334_v11 = vrot.slane %v3078_v18, 2  ;;  %v3478_v20 = vrot.slane %v3078_v18, 3 }
 0x25a   : > { %v3708_v58 = vmax.f32 %v3564_v1, %v3619_v63  ;;  %v3421_v47 = vmax.f32 %v3277_v54, %v3333_v40  ;;  %v3622_v36 = vrot.slane %v3078_v18, 4  ;;  %v2984_v61 = vmax.f32 %v2936_v31, %v7772_v22 }
 0x25b   : > { %v3191_v41 = vrot.slane %v3079_v4, 1  ;;  %v3335_v48 = vrot.slane %v3079_v4, 2  ;;  %v3479_v13 = vrot.slane %v3079_v4, 3  ;;  %v3623_v29 = vrot.slane %v3079_v4, 4 }
 0x25c   : > { %3841 = vst.msk [vmem:[%s6870_s28 + $0x70] sm:$0xff] %vm3728_vm5, %v3708_v58  ;;  %v3565_v15 = vmax.f32 %v3421_v47, %v3477_v8  ;;  %v3032_v32 = vmax.f32 %v2984_v61, %v7775_v21  ;;  %v2937_v10 = vmax.f32 %v7767_v12, %v7770_v46  ;;  %v2938_v63 = vmax.f32 %v7768_v50, %v7771_v0 }
 0x25d   : > { %v3192_v56 = vsel %vm728_vm1, %v3190_v17, %v3191_v41  ;;  %v3336_v33 = vsel %vm308_vm0, %v3334_v11, %v3335_v48  ;;  %v3480_v43 = vsel %vm1234_vm2, %v3478_v20, %v3479_v13  ;;  %v3624_v45 = vsel %vm1488_vm3, %v3622_v36, %v3623_v29 }
 0x25e   : > { %v3709_v19 = vmax.f32 %v3565_v15, %v3621_v9  ;;  %v3278_v42 = vmax.f32 %v3078_v18, %v3192_v56  ;;  %v3080_v40 = vmax.f32 %v3032_v32, %v7778_v62  ;;  %v2985_v31 = vmax.f32 %v2937_v10, %v7773_v60 }
 0x25f   : > { %v2986_v1 = vmax.f32 %v2938_v63, %v7774_v5  ;;  %v2939_v12 = vmax.f32 %v7769_v28, %v7772_v22  ;;  %v2940_v50 = vmax.f32 %v7770_v46, %v7773_v60  ;;  %v2941_v54 = vmax.f32 %v7771_v0, %v7774_v5 }
 0x260   : > { %3842 = vst.msk [vmem:[%s6870_s28 + $0x78] sm:$0xff] %vm3728_vm5, %v3709_v19  ;;  %v3422_v8 = vmax.f32 %v3278_v42, %v3336_v33  ;;  %v3193_v9 = vrot.slane %v3080_v40, 1  ;;  %v3337_v18 = vrot.slane %v3080_v40, 2  ;;  %v3481_v17 = vrot.slane %v3080_v40, 3 }
 0x261   : > { %v3625_v11 = vrot.slane %v3080_v40, 4  ;;  %v3033_v20 = vmax.f32 %v2985_v31, %v7776_v34  ;;  %v3034_v58 = vmax.f32 %v2986_v1, %v7777_v55  ;;  %v2987_v47 = vmax.f32 %v2939_v12, %v7775_v21 }
 0x262   : > { %v3566_v28 = vmax.f32 %v3422_v8, %v3480_v43  ;;  %v3194_v46 = vsel %vm728_vm1, %v3191_v41, %v3193_v9  ;;  %v3338_v36 = vsel %vm308_vm0, %v3335_v48, %v3337_v18  ;;  %v3482_v0 = vsel %vm1234_vm2, %v3479_v13, %v3481_v17 }
 0x263   : > { %v3279_v61 = vmax.f32 %v3079_v4, %v3194_v46  ;;  %v3626_v15 = vsel %vm1488_vm3, %v3623_v29, %v3625_v11  ;;  %v3081_v32 = vmax.f32 %v3033_v20, %v6412_v51  ;;  %v3082_v10 = vmax.f32 %v3034_v58, %v6434_v2 }
 0x264   : > { %v3710_v63 = vmax.f32 %v3566_v28, %v3624_v45  ;;  %v3035_v56 = vmax.f32 %v2987_v47, %v7778_v62  ;;  %v2988_v33 = vmax.f32 %v2940_v50, %v7776_v34  ;;  %v2989_v43 = vmax.f32 %v2941_v54, %v7777_v55 }
 0x265   : > { %v3423_v19 = vmax.f32 %v3279_v61, %v3338_v36  ;;  %v3195_v41 = vrot.slane %v3081_v32, 1  ;;  %v3196_v42 = vrot.slane %v3082_v10, 1  ;;  %v3339_v48 = vrot.slane %v3081_v32, 2 }
 0x266   : > { %3843 = vst.msk [vmem:[%s6870_s28 + $0x80] sm:$0xff] %vm3728_vm5, %v3710_v63  ;;  %v3340_v4 = vrot.slane %v3082_v10, 2  ;;  %v3483_v13 = vrot.slane %v3081_v32, 3  ;;  %v3484_v29 = vrot.slane %v3082_v10, 3  ;;  %v3627_v40 = vrot.slane %v3081_v32, 4 }
 0x267   : > { %v3567_v31 = vmax.f32 %v3423_v19, %v3482_v0  ;;  %v3197_v45 = vsel %vm728_vm1, %v3195_v41, %v3196_v42  ;;  %v3628_v1 = vrot.slane %v3082_v10, 4  ;;  %v3083_v12 = vmax.f32 %v3035_v56, %v6420_v53 }
 0x268   : > { %v3280_v50 = vmax.f32 %v3081_v32, %v3197_v45  ;;  %v3341_v54 = vsel %vm308_vm0, %v3339_v48, %v3340_v4  ;;  %v3485_v8 = vsel %vm1234_vm2, %v3483_v13, %v3484_v29  ;;  %v3036_v9 = vmax.f32 %v2988_v33, %v6412_v51 }
 0x269   : > { %v3711_v18 = vmax.f32 %v3567_v31, %v3626_v15  ;;  %v3629_v17 = vsel %vm1488_vm3, %v3627_v40, %v3628_v1  ;;  %v3198_v11 = vrot.slane %v3083_v12, 1  ;;  %v3342_v20 = vrot.slane %v3083_v12, 2 }
 0x26a   : > { %v3424_v58 = vmax.f32 %v3280_v50, %v3341_v54  ;;  %v3486_v47 = vrot.slane %v3083_v12, 3  ;;  %v3630_v28 = vrot.slane %v3083_v12, 4  ;;  %v3037_v46 = vmax.f32 %v2989_v43, %v6434_v2 }
 0x26b   : > { %3844 = vst.msk [vmem:[%s6870_s28 + $0x88] sm:$0xff] %vm3728_vm5, %v3711_v18  ;;  %v3199_v36 = vsel %vm728_vm1, %v3196_v42, %v3198_v11  ;;  %v3343_v0 = vsel %vm308_vm0, %v3340_v4, %v3342_v20  ;;  %v3084_v61 = vmax.f32 %v3036_v9, %v6453_v30  ;;  %v2942_v15 = vmax.f32 %v7772_v22, %v7775_v21 }
 0x26c   : > { %v3568_v32 = vmax.f32 %v3424_v58, %v3485_v8  ;;  %v3281_v63 = vmax.f32 %v3082_v10, %v3199_v36  ;;  %v3487_v56 = vsel %vm1234_vm2, %v3484_v29, %v3486_v47  ;;  %v3631_v33 = vsel %vm1488_vm3, %v3628_v1, %v3630_v28 }
 0x26d   : > { %v3085_v43 = vmax.f32 %v3037_v46, %v6468_v44  ;;  %v3200_v19 = vrot.slane %v3084_v61, 1  ;;  %v3344_v41 = vrot.slane %v3084_v61, 2  ;;  %v3488_v48 = vrot.slane %v3084_v61, 3 }
 0x26e   : > { %v3712_v42 = vmax.f32 %v3568_v32, %v3629_v17  ;;  %v3425_v13 = vmax.f32 %v3281_v63, %v3343_v0  ;;  %v3632_v4 = vrot.slane %v3084_v61, 4  ;;  %v2990_v40 = vmax.f32 %v2942_v15, %v7778_v62 }
 0x26f   : > { %v3201_v31 = vrot.slane %v3085_v43, 1  ;;  %v3345_v45 = vrot.slane %v3085_v43, 2  ;;  %v3489_v22 = vrot.slane %v3085_v43, 3  ;;  %v3633_v12 = vrot.slane %v3085_v43, 4 }
 0x270   : > { %3845 = vst.msk [vmem:[%s6870_s28 + $0x90] sm:$0xff] %vm3728_vm5, %v3712_v42  ;;  %v3569_v10 = vmax.f32 %v3425_v13, %v3487_v56  ;;  %v3038_v29 = vmax.f32 %v2990_v40, %v6420_v53  ;;  %v2943_v1 = vmax.f32 %v7773_v60, %v7776_v34  ;;  %v2944_v50 = vmax.f32 %v7774_v5, %v7777_v55 }
 0x271   : > { %v3202_v54 = vsel %vm728_vm1, %v3200_v19, %v3201_v31  ;;  %v3346_v8 = vsel %vm308_vm0, %v3344_v41, %v3345_v45  ;;  %v3490_v9 = vsel %vm1234_vm2, %v3488_v48, %v3489_v22  ;;  %v3634_v18 = vsel %vm1488_vm3, %v3632_v4, %v3633_v12 }
 0x272   : > { %v3713_v17 = vmax.f32 %v3569_v10, %v3631_v33  ;;  %v3282_v11 = vmax.f32 %v3084_v61, %v3202_v54  ;;  %v3086_v20 = vmax.f32 %v3038_v29, %v6470_v52  ;;  %v2991_v58 = vmax.f32 %v2943_v1, %v6412_v51 }
 0x273   : > { %v2992_v47 = vmax.f32 %v2944_v50, %v6434_v2  ;;  %v2945_v60 = vmax.f32 %v7775_v21, %v7778_v62  ;;  %v2946_v5 = vmax.f32 %v7776_v34, %v6412_v51  ;;  %v2947_v28 = vmax.f32 %v7777_v55, %v6434_v2 }
 0x274   : > { %3846 = vst.msk [vmem:[%s6870_s28 + $0x98] sm:$0xff] %vm3728_vm5, %v3713_v17  ;;  %v3426_v46 = vmax.f32 %v3282_v11, %v3346_v8  ;;  %v3203_v36 = vrot.slane %v3086_v20, 1  ;;  %v3347_v0 = vrot.slane %v3086_v20, 2  ;;  %v3491_v61 = vrot.slane %v3086_v20, 3 }
 0x275   : > { %v3635_v15 = vrot.slane %v3086_v20, 4  ;;  %v3039_v32 = vmax.f32 %v2991_v58, %v6453_v30  ;;  %v3040_v63 = vmax.f32 %v2992_v47, %v6468_v44  ;;  %v2993_v56 = vmax.f32 %v2945_v60, %v6420_v53 }
 0x276   : > { %v3570_v21 = vmax.f32 %v3426_v46, %v3490_v9  ;;  %v3204_v51 = vsel %vm728_vm1, %v3201_v31, %v3203_v36  ;;  %v3348_v34 = vsel %vm308_vm0, %v3345_v45, %v3347_v0  ;;  %v3492_v2 = vsel %vm1234_vm2, %v3489_v22, %v3491_v61 }
 0x277   : > { %v3283_v55 = vmax.f32 %v3085_v43, %v3204_v51  ;;  %v3636_v33 = vsel %vm1488_vm3, %v3633_v12, %v3635_v15  ;;  %v3087_v19 = vmax.f32 %v3039_v32, %v6485_v59  ;;  %v3088_v41 = vmax.f32 %v3040_v63, %v6514_v14 }
 0x278   : > { %v3714_v48 = vmax.f32 %v3570_v21, %v3634_v18  ;;  %v3041_v42 = vmax.f32 %v2993_v56, %v6470_v52  ;;  %v2994_v13 = vmax.f32 %v2946_v5, %v6453_v30  ;;  %v2995_v4 = vmax.f32 %v2947_v28, %v6468_v44  ;;  %v7779_v56 = vld [vmem:[#allocation44_spill] sm:$0xff] }
 0x279   : > { %v3427_v40 = vmax.f32 %v3283_v55, %v3348_v34  ;;  %v3205_v31 = vrot.slane %v3087_v19, 1  ;;  %v3206_v10 = vrot.slane %v3088_v41, 1  ;;  %v3349_v45 = vrot.slane %v3087_v19, 2 }
 0x27a   : > { %3847 = vst.msk [vmem:[%s6870_s28 + $0xa0] sm:$0xff] %vm3728_vm5, %v3714_v48  ;;  %v3350_v43 = vrot.slane %v3088_v41, 2  ;;  %v3493_v22 = vrot.slane %v3087_v19, 3  ;;  %v3494_v12 = vrot.slane %v3088_v41, 3  ;;  %v3637_v29 = vrot.slane %v3087_v19, 4 }
 0x27b   : > { %v3571_v1 = vmax.f32 %v3427_v40, %v3492_v2  ;;  %v3207_v50 = vsel %vm728_vm1, %v3205_v31, %v3206_v10  ;;  %v3638_v54 = vrot.slane %v3088_v41, 4  ;;  %v3089_v8 = vmax.f32 %v3041_v42, %v6521_v24 }
 0x27c   : > { %v3284_v30 = vmax.f32 %v3087_v19, %v3207_v50  ;;  %v3351_v44 = vsel %vm308_vm0, %v3349_v45, %v3350_v43  ;;  %v3495_v9 = vsel %vm1234_vm2, %v3493_v22, %v3494_v12  ;;  %v3042_v18 = vmax.f32 %v2994_v13, %v6485_v59  ;;  %v7780_v13 = vld [vmem:[#allocation36_spill] sm:$0xff] }
 0x27d   : > { %v3715_v17 = vmax.f32 %v3571_v1, %v3636_v33  ;;  %v3639_v11 = vsel %vm1488_vm3, %v3637_v29, %v3638_v54  ;;  %v3208_v20 = vrot.slane %v3089_v8, 1  ;;  %v3352_v58 = vrot.slane %v3089_v8, 2 }
 0x27e   : > { %v3428_v47 = vmax.f32 %v3284_v30, %v3351_v44  ;;  %v3496_v60 = vrot.slane %v3089_v8, 3  ;;  %v3640_v5 = vrot.slane %v3089_v8, 4  ;;  %v3043_v28 = vmax.f32 %v2995_v4, %v6514_v14 }
 0x27f   : > { %3848 = vst.msk [vmem:[%s6870_s28 + $0xa8] sm:$0xff] %vm3728_vm5, %v3715_v17  ;;  %v3209_v46 = vsel %vm728_vm1, %v3206_v10, %v3208_v20  ;;  %v3353_v36 = vsel %vm308_vm0, %v3350_v43, %v3352_v58  ;;  %v3090_v0 = vmax.f32 %v3042_v18, %v6547_v27  ;;  %v2948_v59 = vmax.f32 %v7778_v62, %v6420_v53 }
 0x280   : > { %v3572_v61 = vmax.f32 %v3428_v47, %v3495_v9  ;;  %v3285_v15 = vmax.f32 %v3088_v41, %v3209_v46  ;;  %v3497_v32 = vsel %vm1234_vm2, %v3494_v12, %v3496_v60  ;;  %v3641_v63 = vsel %vm1488_vm3, %v3638_v54, %v3640_v5 }
 0x281   : > { %v3091_v14 = vmax.f32 %v3043_v28, %v7779_v56  ;;  %v3210_v21 = vrot.slane %v3090_v0, 1  ;;  %v3354_v51 = vrot.slane %v3090_v0, 2  ;;  %v3498_v34 = vrot.slane %v3090_v0, 3 }
 0x282   : > { %v3716_v2 = vmax.f32 %v3572_v61, %v3639_v11  ;;  %v3429_v55 = vmax.f32 %v3285_v15, %v3353_v36  ;;  %v3642_v33 = vrot.slane %v3090_v0, 4  ;;  %v2996_v27 = vmax.f32 %v2948_v59, %v6470_v52 }
 0x283   : > { %v3211_v19 = vrot.slane %v3091_v14, 1  ;;  %v3355_v48 = vrot.slane %v3091_v14, 2  ;;  %v3499_v53 = vrot.slane %v3091_v14, 3  ;;  %v3643_v62 = vrot.slane %v3091_v14, 4 }
 0x284   : > { %3849 = vst.msk [vmem:[%s6870_s28 + $0xb0] sm:$0xff] %vm3728_vm5, %v3716_v2  ;;  %v3573_v41 = vmax.f32 %v3429_v55, %v3497_v32  ;;  %v3044_v42 = vmax.f32 %v2996_v27, %v6521_v24  ;;  %v3215_v4 = vrot.slane %v7780_v13, 1  ;;  %v3216_v40 = vrot.slane %v6812_v7, 1  ;;  %v7781_v2 = vld [vmem:[#allocation47_spill] sm:$0xff] }
 0x285   : > { %v3212_v31 = vsel %vm728_vm1, %v3210_v21, %v3211_v19  ;;  %v3356_v10 = vsel %vm308_vm0, %v3354_v51, %v3355_v48  ;;  %v3500_v52 = vsel %vm1234_vm2, %v3498_v34, %v3499_v53  ;;  %v3644_v45 = vsel %vm1488_vm3, %v3642_v33, %v3643_v62 }
 0x286   : > { %v3717_v43 = vmax.f32 %v3573_v41, %v3641_v63  ;;  %v3286_v22 = vmax.f32 %v3090_v0, %v3212_v31  ;;  %v3092_v12 = vmax.f32 %v3044_v42, %v6554_v16  ;;  %v3217_v29 = vsel %vm728_vm1, %v3215_v4, %v3216_v40 }
 0x287   : > { %v3288_v24 = vmax.f32 %v7780_v13, %v3217_v29  ;;  %v3359_v1 = vrot.slane %v7780_v13, 2  ;;  %v3360_v50 = vrot.slane %v6812_v7, 2  ;;  %v3503_v54 = vrot.slane %v7780_v13, 3 }
 0x288   : > { %3850 = vst.msk [vmem:[%s6870_s28 + $0xb8] sm:$0xff] %vm3728_vm5, %v3717_v43  ;;  %v3430_v8 = vmax.f32 %v3286_v22, %v3356_v10  ;;  %v3213_v30 = vrot.slane %v3092_v12, 1  ;;  %v3357_v44 = vrot.slane %v3092_v12, 2  ;;  %v3501_v9 = vrot.slane %v3092_v12, 3 }
 0x289   : > { %v3645_v18 = vrot.slane %v3092_v12, 4  ;;  %v3361_v17 = vsel %vm308_vm0, %v3359_v1, %v3360_v50  ;;  %v3504_v16 = vrot.slane %v6812_v7, 3  ;;  %v3647_v11 = vrot.slane %v7780_v13, 4 }
 0x28a   : > { %v3574_v20 = vmax.f32 %v3430_v8, %v3500_v52  ;;  %v3214_v58 = vsel %vm728_vm1, %v3211_v19, %v3213_v30  ;;  %v3358_v47 = vsel %vm308_vm0, %v3355_v48, %v3357_v44  ;;  %v3502_v60 = vsel %vm1234_vm2, %v3499_v53, %v3501_v9 }
 0x28b   : > { %v3287_v5 = vmax.f32 %v3091_v14, %v3214_v58  ;;  %v3646_v28 = vsel %vm1488_vm3, %v3643_v62, %v3645_v18  ;;  %v3432_v46 = vmax.f32 %v3288_v24, %v3361_v17  ;;  %v3505_v36 = vsel %vm1234_vm2, %v3503_v54, %v3504_v16  ;;  %v7782_v24 = vld [vmem:[#allocation38_spill] sm:$0xff] }
 0x28c   : > { %v3718_v0 = vmax.f32 %v3574_v20, %v3644_v45  ;;  %v3648_v59 = vrot.slane %v6812_v7, 4  ;;  %v3218_v61 = vrot.slane %v6835_v49, 1  ;;  %v3362_v15 = vrot.slane %v6835_v49, 2 }
 0x28d   : > { %v3431_v32 = vmax.f32 %v3287_v5, %v3358_v47  ;;  %v3576_v63 = vmax.f32 %v3432_v46, %v3505_v36  ;;  %v3506_v56 = vrot.slane %v6835_v49, 3  ;;  %v3650_v21 = vrot.slane %v6835_v49, 4 }
 0x28e   : > { %3851 = vst.msk [vmem:[%s6870_s28 + $0xc0] sm:$0xff] %vm3728_vm5, %v3718_v0  ;;  %v3649_v14 = vsel %vm1488_vm3, %v3647_v11, %v3648_v59  ;;  %v3219_v51 = vsel %vm728_vm1, %v3216_v40, %v3218_v61  ;;  %v3363_v34 = vsel %vm308_vm0, %v3360_v50, %v3362_v15  ;;  %v3220_v55 = vrot.slane %v7781_v2, 1 }
 0x28f   : > { %v3575_v33 = vmax.f32 %v3431_v32, %v3502_v60  ;;  %v3720_v27 = vmax.f32 %v3576_v63, %v3649_v14  ;;  %v3289_v19 = vmax.f32 %v6812_v7, %v3219_v51  ;;  %v3507_v48 = vsel %vm1234_vm2, %v3504_v16, %v3506_v56 }
 0x290   : > { %v3651_v53 = vsel %vm1488_vm3, %v3648_v59, %v3650_v21  ;;  %v3221_v49 = vrot.slane %v6814_v25, 1  ;;  %v3364_v62 = vrot.slane %v7781_v2, 2  ;;  %v3365_v41 = vrot.slane %v6814_v25, 2 }
 0x291   : > { %v3719_v42 = vmax.f32 %v3575_v33, %v3646_v28  ;;  %3853 = vst.msk [vmem:[%s6870_s28 + $0xd0] sm:$0xff] %vm3728_vm5, %v3720_v27  ;;  %v3433_v13 = vmax.f32 %v3289_v19, %v3363_v34  ;;  %v3508_v4 = vrot.slane %v7781_v2, 3  ;;  %v3509_v40 = vrot.slane %v6814_v25, 3 }
 0x292   : > { %v3222_v7 = vsel %vm728_vm1, %v3220_v55, %v3221_v49  ;;  %v3366_v31 = vsel %vm308_vm0, %v3364_v62, %v3365_v41  ;;  %v3652_v10 = vrot.slane %v7781_v2, 4  ;;  %v3653_v52 = vrot.slane %v6814_v25, 4 }
 0x293   : > { %3852 = vst.msk [vmem:[%s6870_s28 + $0xc8] sm:$0xff] %vm3728_vm5, %v3719_v42  ;;  %v3577_v45 = vmax.f32 %v3433_v13, %v3507_v48  ;;  %v3290_v43 = vmax.f32 %v7781_v2, %v3222_v7  ;;  %v3510_v22 = vsel %vm1234_vm2, %v3508_v4, %v3509_v40  ;;  %v3098_v12 = vmax.f32 %v3050_v35, %v6819_v37 }
 0x294   : > { %v3654_v29 = vsel %vm1488_vm3, %v3652_v10, %v3653_v52  ;;  %v3225_v1 = vrot.slane %v7782_v24, 1  ;;  %v3226_v50 = vrot.slane %v6822_v26, 1  ;;  %v3369_v54 = vrot.slane %v7782_v24, 2 }
 0x295   : > { %v3721_v8 = vmax.f32 %v3577_v45, %v3651_v53  ;;  %v3434_v30 = vmax.f32 %v3290_v43, %v3366_v31  ;;  %v3223_v44 = vrot.slane %v3098_v12, 1  ;;  %v3367_v9 = vrot.slane %v3098_v12, 2 }
 0x296   : > { %v3511_v18 = vrot.slane %v3098_v12, 3  ;;  %v3655_v17 = vrot.slane %v3098_v12, 4  ;;  %v3227_v16 = vsel %vm728_vm1, %v3225_v1, %v3226_v50  ;;  %v3370_v11 = vrot.slane %v6822_v26, 2 }
 0x297   : > { %3854 = vst.msk [vmem:[%s6870_s28 + $0xd8] sm:$0xff] %vm3728_vm5, %v3721_v8  ;;  %v3578_v57 = vmax.f32 %v3434_v30, %v3510_v22  ;;  %v3224_v3 = vsel %vm728_vm1, %v3221_v49, %v3223_v44  ;;  %v3368_v35 = vsel %vm308_vm0, %v3365_v41, %v3367_v9  ;;  %v3292_v20 = vmax.f32 %v7782_v24, %v3227_v16 }
 0x298   : > { %v3291_v58 = vmax.f32 %v6814_v25, %v3224_v3  ;;  %v3512_v47 = vsel %vm1234_vm2, %v3509_v40, %v3511_v18  ;;  %v3656_v60 = vsel %vm1488_vm3, %v3653_v52, %v3655_v17  ;;  %v3371_v5 = vsel %vm308_vm0, %v3369_v54, %v3370_v11 }
 0x299   : > { %v3722_v28 = vmax.f32 %v3578_v57, %v3654_v29  ;;  %v3436_v46 = vmax.f32 %v3292_v20, %v3371_v5  ;;  %v3513_v36 = vrot.slane %v7782_v24, 3  ;;  %v3514_v0 = vrot.slane %v6822_v26, 3 }
 0x29a   : > { %v3435_v59 = vmax.f32 %v3291_v58, %v3368_v35  ;;  %v3657_v61 = vrot.slane %v7782_v24, 4  ;;  %v3658_v15 = vrot.slane %v6822_v26, 4  ;;  %v7783_v25 = vrot.slane %v6751_v38, 1 }
 0x29b   : > { %3855 = vst.msk [vmem:[%s6870_s28 + $0xe0] sm:$0xff] %vm3728_vm5, %v3722_v28  ;;  %v3515_v63 = vsel %vm1234_vm2, %v3513_v36, %v3514_v0  ;;  %v7784_v51 = vrot.slane %v6751_v38, 2  ;;  %v7785_v19 = vmax.f32 %v6830_v39, %v6819_v37 }
 0x29c   : > { %v2249_v32 = vmax.f32 %v6751_v38, %v7783_v25  ;;  %v3579_v56 = vmax.f32 %v3435_v59, %v3512_v47  ;;  %v3580_v21 = vmax.f32 %v3436_v46, %v3515_v63  ;;  %v3659_v14 = vsel %vm1488_vm3, %v3657_v61, %v3658_v15 }
 0x29e   : > { %v2469_v34 = vmax.f32 %v2249_v32, %v7784_v51  ;;  %v3723_v2 = vmax.f32 %v3579_v56, %v3656_v60  ;;  %v3724_v55 = vmax.f32 %v3580_v21, %v3659_v14 }
 0x2a0   : > { %v2689_v33 = vmax.f32 %v2469_v34, %v2568_v23  ;;  %3856 = vst.msk [vmem:[%s6870_s28 + $0xe8] sm:$0xff] %vm3728_vm5, %v3723_v2  ;;  %3857 = vst.msk [vmem:[%s6870_s28 + $0xf0] sm:$0xff] %vm3728_vm5, %v3724_v55 }
 0x2a2   : > { %v2909_v27 = vmax.f32 %v2689_v33, %v2788_v6 }
 0x2a4   : > { %v3101_v48 = vmax.f32 %v7785_v19, %v2909_v27 }
 0x2a6   : > { %v3228_v53 = vrot.slane %v3101_v48, 1  ;;  %v3372_v49 = vrot.slane %v3101_v48, 2  ;;  %v3516_v62 = vrot.slane %v3101_v48, 3  ;;  %v3660_v41 = vrot.slane %v3101_v48, 4 }
 0x2a8   : > { %v3229_v42 = vsel %vm728_vm1, %v3226_v50, %v3228_v53  ;;  %v3373_v23 = vsel %vm308_vm0, %v3370_v11, %v3372_v49  ;;  %v3517_v13 = vsel %vm1234_vm2, %v3514_v0, %v3516_v62  ;;  %v3661_v4 = vsel %vm1488_vm3, %v3658_v15, %v3660_v41 }
 0x2a9   : > { %v3293_v40 = vmax.f32 %v6822_v26, %v3229_v42 }
 0x2ab   : > { %v3437_v38 = vmax.f32 %v3293_v40, %v3373_v23 }
 0x2ad   : > { %v3581_v6 = vmax.f32 %v3437_v38, %v3517_v13 }
 0x2af   : > { %v3725_v7 = vmax.f32 %v3581_v6, %v3661_v4 }
 0x2b1   : > { %3858 = vst.msk [vmem:[%s6870_s28 + $0xf8] sm:$0xff] %vm3728_vm5, %v3725_v7 }
 0x2b2 PF: > { %s14_s14 = sadd.s32 1, %s4102_s14   ;;  %s7786_s12 = smov %s4098_s13 }
 0x2b3   : > { %p11_p5 = scmp.ge.s32.totalorder %s14_s14, 4   ;;  %s7787_s13 = smov %s7789_s15 }
 0x2b5   :  { %13 = sbr.rel (!%p11_p5) target bundleno = 2 (0x2), region = 78 }

</bundles_post_ra>
